<compile_context>
chip_gen: v5e
topology: v5e:2x2
jax: 0.10.0
libtpu: 0.0.40
codegen_flags: <defaults>
</compile_context>

<pallas_src>
import jax
import jax.numpy as jnp
from jax.experimental import pallas as pl
from jax.experimental.pallas import tpu as pltpu


SOFT_DIMS = [(1536, 768), (768, 384), (384, 192), (192, 96), (96, 48)]
FFN_DIMS = [(768, 384, 192), (192, 192, 192), (192, 96, 48)]
NUM_SOFT = len(SOFT_DIMS)
NUM_FFN = len(FFN_DIMS)


# ---------------------------------------------------------------------------
# Fused Pallas kernel: one grid step = one batch element, full forward pass.
# ---------------------------------------------------------------------------
def _deep_interact_fused_kernel(adj_ref, prot_ref, lig_ref, *rest):
    # rest = 2*NUM_SOFT soft-layer refs (w, b) + 4*NUM_FFN ffn refs
    #        (w1, b1, w2, b2) + the single output ref.
    o_ref = rest[-1]
    param_refs = rest[:-1]
    soft_refs = param_refs[: 2 * NUM_SOFT]
    ffn_refs = param_refs[2 * NUM_SOFT:]

    # --- softmax(adj) computed ONCE, shared by all 5 graph layers ----------
    adj = adj_ref[0]                                    # (N, N) f32
    m = jnp.max(adj, axis=-1, keepdims=True)
    e = jnp.exp(adj - m)
    inv = pl.reciprocal(jnp.sum(e, axis=-1, keepdims=True), approx=True)
    a = (e * inv).astype(jnp.bfloat16)                  # (N, N) bf16

    # --- ProteinProjection: 5 stacked DeepInteractLayers -------------------
    x = prot_ref[0]                                     # (N, 1536) f32
    for li in range(NUM_SOFT):
        w = soft_refs[2 * li][...]                      # (Din, Dout) bf16
        b = soft_refs[2 * li + 1][...]                  # (1, Dout)   f32
        # Reassociated: A @ (x @ W)  -- project onto the narrower Dout first,
        # then aggregate with the softmaxed adjacency.  bf16 MXU, f32 accum.
        proj = jnp.dot(x.astype(jnp.bfloat16), w,
                       preferred_element_type=jnp.float32)          # (N, Dout)
        agg = jnp.dot(a, proj.astype(jnp.bfloat16),
                      preferred_element_type=jnp.float32)           # (N, Dout)
        x = jnp.maximum(agg + b, 0.0)                                # f32

    # --- LigandProjection: 3 stacked FFNs (Linear -> ReLU -> Linear) -------
    y = lig_ref[0]                                      # (1, 768) f32
    for fi in range(NUM_FFN):
        w1 = ffn_refs[4 * fi][...]
        b1 = ffn_refs[4 * fi + 1][...]
        w2 = ffn_refs[4 * fi + 2][...]
        b2 = ffn_refs[4 * fi + 3][...]
        h = jnp.maximum(
            jnp.dot(y.astype(jnp.bfloat16), w1,
                    preferred_element_type=jnp.float32) + b1, 0.0)
        y = jnp.dot(h.astype(jnp.bfloat16), w2,
                    preferred_element_type=jnp.float32) + b2        # (1, Dout)

    # --- interaction: (protein * ligand).sum(-1) -> ELU ---------------------
    s = jnp.sum(x * y, axis=-1, keepdims=True)          # (N, 1) f32
    o_ref[0] = jnp.where(s > 0, s, jnp.exp(s) - 1.0)    # F.elu, alpha=1


# ---------------------------------------------------------------------------
# Parameters + forward wrapper
# ---------------------------------------------------------------------------
def _glorot(key, shape):
    fan_in, fan_out = shape
    lim = (6.0 / (fan_in + fan_out)) ** 0.5
    return jax.random.uniform(key, shape, jnp.float32, -lim, lim)


def init_params(key):
    params = {"soft": [], "ffn": []}
    for (din, dout) in SOFT_DIMS:
        key, kw = jax.random.split(key)
        params["soft"].append({
            "w": _glorot(kw, (din, dout)),
            "b": jnp.zeros((dout,), jnp.float32),
        })
    for (din, dhid, dout) in FFN_DIMS:
        key, k1, k2 = jax.random.split(key, 3)
        params["ffn"].append({
            "w1": _glorot(k1, (din, dhid)),
            "b1": jnp.zeros((dhid,), jnp.float32),
            "w2": _glorot(k2, (dhid, dout)),
            "b2": jnp.zeros((dout,), jnp.float32),
        })
    return params


def deep_interact_forward(params, protein, adj, ligand):
    B, N, din0 = protein.shape
    dl = ligand.shape[-1]

    # Flatten parameters into (array, spec) lists.  Weights are pre-cast to
    # bf16 (MXU-native); biases stay f32 and are reshaped to (1, D) so every
    # operand is >= 2-D.  All parameter blocks use a constant index_map, so
    # they are DMA'd once and stay resident in VMEM across the batch grid.
    flat, specs = [], []

    def add_param(arr):
        flat.append(arr)
        specs.append(pl.BlockSpec(arr.shape, lambda b: (0,) * arr.ndim))

    in_specs = [
        pl.BlockSpec((1, N, N), lambda b: (b, 0, 0)),        # adj
        pl.BlockSpec((1, N, din0), lambda b: (b, 0, 0)),     # protein
        pl.BlockSpec((1, 1, dl), lambda b: (b, 0, 0)),       # ligand (B,1,768)
    ]
    for layer in params["soft"]:
        add_param(layer["w"].astype(jnp.bfloat16))
        add_param(layer["b"].reshape(1, -1))
    for ffn in params["ffn"]:
        add_param(ffn["w1"].astype(jnp.bfloat16))
        add_param(ffn["b1"].reshape(1, -1))
        add_param(ffn["w2"].astype(jnp.bfloat16))
        add_param(ffn["b2"].reshape(1, -1))
    in_specs += specs

    out = pl.pallas_call(
        _deep_interact_fused_kernel,
        out_shape=jax.ShapeDtypeStruct((B, N, 1), jnp.float32),
        grid_spec=pltpu.PrefetchScalarGridSpec(
            num_scalar_prefetch=0,
            grid=(B,),
            in_specs=in_specs,
            out_specs=pl.BlockSpec((1, N, 1), lambda b: (b, 0, 0)),
        ),
        compiler_params=pltpu.CompilerParams(
            dimension_semantics=("parallel",),      # one batch per TC on v7x
            vmem_limit_bytes=32 * 1024 * 1024,
        ),
    )(adj, protein, ligand.reshape(B, 1, dl), *flat)
    return out[..., 0]


# Pure-JAX f32 reference for correctness checking.
def reference_forward(params, protein, adj, ligand):
    hp = jax.lax.Precision.HIGHEST
    a = jax.nn.softmax(adj, axis=-1)
    x = protein
    for layer in params["soft"]:
        agg = jnp.einsum("bij,bjd->bid", a, x, precision=hp)
        x = jnp.maximum(
            jnp.einsum("bid,de->bie", agg, layer["w"], precision=hp) + layer["b"],
            0.0)
    y = ligand
    for ffn in params["ffn"]:
        y = jnp.maximum(
            jnp.einsum("bi,ij->bj", y, ffn["w1"], precision=hp) + ffn["b1"], 0.0)
        y = jnp.einsum("bi,ij->bj", y, ffn["w2"], precision=hp) + ffn["b2"]
    s = jnp.sum(x * y[:, None, :], axis=-1)
    return jnp.where(s > 0, s, jnp.exp(s) - 1.0)


if __name__ == "__main__":
    key = jax.random.PRNGKey(0)
    kp, ka, kl, kparams = jax.random.split(key, 4)

    B, N = 2, 8
    protein = jax.random.normal(kp, (B, N, 1536), jnp.float32)
    adj = jax.random.normal(ka, (B, N, N), jnp.float32)
    ligand = jax.random.normal(kl, (B, 768), jnp.float32)
    params = init_params(kparams)

    out = jax.jit(deep_interact_forward)(params, protein, adj, ligand)
    out = jax.block_until_ready(out)

    assert out.shape == (B, N), out.shape
    ref = reference_forward(params, protein, adj, ligand)
    # bf16 MXU operands with f32 accumulation -> small drift vs f32 reference.
    if not jnp.allclose(out, ref, rtol=2e-2, atol=2e-2):
        raise SystemExit(f"mismatch: max abs err {jnp.max(jnp.abs(out - ref))}")
    print("KERNEL_OK")
</pallas_src>

<mosaic_0001>
module attributes {stable_mosaic.version = 11 : i64} {
  func.func @_deep_interact_fused_kernel(%arg0: i32, %arg1: memref<1x8x8xf32, #tpu.memory_space<vmem>>, %arg2: memref<1x8x1536xf32, #tpu.memory_space<vmem>>, %arg3: memref<1x1x768xf32, #tpu.memory_space<vmem>>, %arg4: memref<1536x768xbf16, #tpu.memory_space<vmem>>, %arg5: memref<1x768xf32, #tpu.memory_space<vmem>>, %arg6: memref<768x384xbf16, #tpu.memory_space<vmem>>, %arg7: memref<1x384xf32, #tpu.memory_space<vmem>>, %arg8: memref<384x192xbf16, #tpu.memory_space<vmem>>, %arg9: memref<1x192xf32, #tpu.memory_space<vmem>>, %arg10: memref<192x96xbf16, #tpu.memory_space<vmem>>, %arg11: memref<1x96xf32, #tpu.memory_space<vmem>>, %arg12: memref<96x48xbf16, #tpu.memory_space<vmem>>, %arg13: memref<1x48xf32, #tpu.memory_space<vmem>>, %arg14: memref<768x384xbf16, #tpu.memory_space<vmem>>, %arg15: memref<1x384xf32, #tpu.memory_space<vmem>>, %arg16: memref<384x192xbf16, #tpu.memory_space<vmem>>, %arg17: memref<1x192xf32, #tpu.memory_space<vmem>>, %arg18: memref<192x192xbf16, #tpu.memory_space<vmem>>, %arg19: memref<1x192xf32, #tpu.memory_space<vmem>>, %arg20: memref<192x192xbf16, #tpu.memory_space<vmem>>, %arg21: memref<1x192xf32, #tpu.memory_space<vmem>>, %arg22: memref<192x96xbf16, #tpu.memory_space<vmem>>, %arg23: memref<1x96xf32, #tpu.memory_space<vmem>>, %arg24: memref<96x48xbf16, #tpu.memory_space<vmem>>, %arg25: memref<1x48xf32, #tpu.memory_space<vmem>>, %arg26: memref<1x8x1xf32, #tpu.memory_space<vmem>>) attributes {dimension_semantics = [#tpu.dimension_semantics<parallel>], iteration_bounds = array<i64: 2>, scalar_prefetch = 0 : i64, scratch_operands = 0 : i64, tpu.core_type = #tpu.core_type<tc>, window_params = [{transform_indices = @transform_0, window_bounds = array<i64: 1, 8, 8>}, {transform_indices = @transform_1, window_bounds = array<i64: 1, 8, 1536>}, {transform_indices = @transform_2, window_bounds = array<i64: 1, 1, 768>}, {pipeline_mode = #tpu.pipeline_mode<synchronous>, transform_indices = @transform_3, window_bounds = array<i64: 1536, 768>}, {pipeline_mode = #tpu.pipeline_mode<synchronous>, transform_indices = @transform_4, window_bounds = array<i64: 1, 768>}, {pipeline_mode = #tpu.pipeline_mode<synchronous>, transform_indices = @transform_5, window_bounds = array<i64: 768, 384>}, {pipeline_mode = #tpu.pipeline_mode<synchronous>, transform_indices = @transform_6, window_bounds = array<i64: 1, 384>}, {pipeline_mode = #tpu.pipeline_mode<synchronous>, transform_indices = @transform_7, window_bounds = array<i64: 384, 192>}, {pipeline_mode = #tpu.pipeline_mode<synchronous>, transform_indices = @transform_8, window_bounds = array<i64: 1, 192>}, {pipeline_mode = #tpu.pipeline_mode<synchronous>, transform_indices = @transform_9, window_bounds = array<i64: 192, 96>}, {pipeline_mode = #tpu.pipeline_mode<synchronous>, transform_indices = @transform_10, window_bounds = array<i64: 1, 96>}, {pipeline_mode = #tpu.pipeline_mode<synchronous>, transform_indices = @transform_11, window_bounds = array<i64: 96, 48>}, {pipeline_mode = #tpu.pipeline_mode<synchronous>, transform_indices = @transform_12, window_bounds = array<i64: 1, 48>}, {pipeline_mode = #tpu.pipeline_mode<synchronous>, transform_indices = @transform_13, window_bounds = array<i64: 768, 384>}, {pipeline_mode = #tpu.pipeline_mode<synchronous>, transform_indices = @transform_14, window_bounds = array<i64: 1, 384>}, {pipeline_mode = #tpu.pipeline_mode<synchronous>, transform_indices = @transform_15, window_bounds = array<i64: 384, 192>}, {pipeline_mode = #tpu.pipeline_mode<synchronous>, transform_indices = @transform_16, window_bounds = array<i64: 1, 192>}, {pipeline_mode = #tpu.pipeline_mode<synchronous>, transform_indices = @transform_17, window_bounds = array<i64: 192, 192>}, {pipeline_mode = #tpu.pipeline_mode<synchronous>, transform_indices = @transform_18, window_bounds = array<i64: 1, 192>}, {pipeline_mode = #tpu.pipeline_mode<synchronous>, transform_indices = @transform_19, window_bounds = array<i64: 192, 192>}, {pipeline_mode = #tpu.pipeline_mode<synchronous>, transform_indices = @transform_20, window_bounds = array<i64: 1, 192>}, {pipeline_mode = #tpu.pipeline_mode<synchronous>, transform_indices = @transform_21, window_bounds = array<i64: 192, 96>}, {pipeline_mode = #tpu.pipeline_mode<synchronous>, transform_indices = @transform_22, window_bounds = array<i64: 1, 96>}, {pipeline_mode = #tpu.pipeline_mode<synchronous>, transform_indices = @transform_23, window_bounds = array<i64: 96, 48>}, {pipeline_mode = #tpu.pipeline_mode<synchronous>, transform_indices = @transform_24, window_bounds = array<i64: 1, 48>}, {transform_indices = @transform_25, window_bounds = array<i64: 1, 8, 1>}]} {
    %c0 = arith.constant 0 : index
    %c0_0 = arith.constant 0 : index
    %c0_1 = arith.constant 0 : index
    %0 = vector.load %arg1[%c0, %c0_0, %c0_1] : memref<1x8x8xf32, #tpu.memory_space<vmem>>, vector<1x8x8xf32>
    %1 = vector.shape_cast %0 : vector<1x8x8xf32> to vector<8x8xf32>
    %cst = arith.constant dense<0xFF800000> : vector<8xf32>
    %2 = vector.multi_reduction <maximumf>, %1, %cst [1] : vector<8x8xf32> to vector<8xf32>
    %3 = vector.shape_cast %2 : vector<8xf32> to vector<8x1xf32>
    %4 = vector.broadcast %3 : vector<8x1xf32> to vector<8x8xf32>
    %5 = arith.subf %1, %4 : vector<8x8xf32>
    %6 = math.exp %5 : vector<8x8xf32>
    %cst_2 = arith.constant dense<0.000000e+00> : vector<8xf32>
    %7 = vector.multi_reduction <add>, %6, %cst_2 [1] : vector<8x8xf32> to vector<8xf32>
    %8 = vector.shape_cast %7 : vector<8xf32> to vector<8x1xf32>
    %9 = tpu.reciprocal %8 {approx = true} : vector<8x1xf32> -> vector<8x1xf32>
    %10 = vector.broadcast %9 : vector<8x1xf32> to vector<8x8xf32>
    %11 = arith.mulf %6, %10 : vector<8x8xf32>
    %12 = arith.truncf %11 : vector<8x8xf32> to vector<8x8xbf16>
    %c0_3 = arith.constant 0 : index
    %c0_4 = arith.constant 0 : index
    %c0_5 = arith.constant 0 : index
    %13 = vector.load %arg2[%c0_3, %c0_4, %c0_5] : memref<1x8x1536xf32, #tpu.memory_space<vmem>>, vector<1x8x1536xf32>
    %14 = vector.shape_cast %13 : vector<1x8x1536xf32> to vector<8x1536xf32>
    %c0_6 = arith.constant 0 : index
    %c0_7 = arith.constant 0 : index
    %15 = vector.load %arg4[%c0_6, %c0_7] : memref<1536x768xbf16, #tpu.memory_space<vmem>>, vector<1536x768xbf16>
    %c0_8 = arith.constant 0 : index
    %c0_9 = arith.constant 0 : index
    %16 = vector.load %arg5[%c0_8, %c0_9] : memref<1x768xf32, #tpu.memory_space<vmem>>, vector<1x768xf32>
    %17 = arith.truncf %14 : vector<8x1536xf32> to vector<8x1536xbf16>
    %cst_10 = arith.constant dense<0.000000e+00> : vector<8x768xf32>
    %18 = tpu.matmul %17, %15, %cst_10 {dimension_numbers = #tpu.dot_dimension_numbers<[1], [0], [0], [1], [0, 0, 1, 1], [], []>} : vector<8x1536xbf16>, vector<1536x768xbf16>, vector<8x768xf32> -> vector<8x768xf32>
    %19 = arith.truncf %18 : vector<8x768xf32> to vector<8x768xbf16>
    %cst_11 = arith.constant dense<0.000000e+00> : vector<8x768xf32>
    %20 = tpu.matmul %12, %19, %cst_11 {dimension_numbers = #tpu.dot_dimension_numbers<[1], [0], [0], [1], [0, 0, 1, 1], [], []>} : vector<8x8xbf16>, vector<8x768xbf16>, vector<8x768xf32> -> vector<8x768xf32>
    %21 = vector.broadcast %16 : vector<1x768xf32> to vector<8x768xf32>
    %22 = arith.addf %20, %21 : vector<8x768xf32>
    %cst_12 = arith.constant 0.000000e+00 : f32
    %23 = vector.broadcast %cst_12 : f32 to vector<8x768xf32>
    %24 = arith.maximumf %22, %23 : vector<8x768xf32>
    %c0_13 = arith.constant 0 : index
    %c0_14 = arith.constant 0 : index
    %25 = vector.load %arg6[%c0_13, %c0_14] : memref<768x384xbf16, #tpu.memory_space<vmem>>, vector<768x384xbf16>
    %c0_15 = arith.constant 0 : index
    %c0_16 = arith.constant 0 : index
    %26 = vector.load %arg7[%c0_15, %c0_16] : memref<1x384xf32, #tpu.memory_space<vmem>>, vector<1x384xf32>
    %27 = arith.truncf %24 : vector<8x768xf32> to vector<8x768xbf16>
    %cst_17 = arith.constant dense<0.000000e+00> : vector<8x384xf32>
    %28 = tpu.matmul %27, %25, %cst_17 {dimension_numbers = #tpu.dot_dimension_numbers<[1], [0], [0], [1], [0, 0, 1, 1], [], []>} : vector<8x768xbf16>, vector<768x384xbf16>, vector<8x384xf32> -> vector<8x384xf32>
    %29 = arith.truncf %28 : vector<8x384xf32> to vector<8x384xbf16>
    %cst_18 = arith.constant dense<0.000000e+00> : vector<8x384xf32>
    %30 = tpu.matmul %12, %29, %cst_18 {dimension_numbers = #tpu.dot_dimension_numbers<[1], [0], [0], [1], [0, 0, 1, 1], [], []>} : vector<8x8xbf16>, vector<8x384xbf16>, vector<8x384xf32> -> vector<8x384xf32>
    %31 = vector.broadcast %26 : vector<1x384xf32> to vector<8x384xf32>
    %32 = arith.addf %30, %31 : vector<8x384xf32>
    %cst_19 = arith.constant 0.000000e+00 : f32
    %33 = vector.broadcast %cst_19 : f32 to vector<8x384xf32>
    %34 = arith.maximumf %32, %33 : vector<8x384xf32>
    %c0_20 = arith.constant 0 : index
    %c0_21 = arith.constant 0 : index
    %35 = vector.load %arg8[%c0_20, %c0_21] : memref<384x192xbf16, #tpu.memory_space<vmem>>, vector<384x192xbf16>
    %c0_22 = arith.constant 0 : index
    %c0_23 = arith.constant 0 : index
    %36 = vector.load %arg9[%c0_22, %c0_23] : memref<1x192xf32, #tpu.memory_space<vmem>>, vector<1x192xf32>
    %37 = arith.truncf %34 : vector<8x384xf32> to vector<8x384xbf16>
    %cst_24 = arith.constant dense<0.000000e+00> : vector<8x192xf32>
    %38 = tpu.matmul %37, %35, %cst_24 {dimension_numbers = #tpu.dot_dimension_numbers<[1], [0], [0], [1], [0, 0, 1, 1], [], []>} : vector<8x384xbf16>, vector<384x192xbf16>, vector<8x192xf32> -> vector<8x192xf32>
    %39 = arith.truncf %38 : vector<8x192xf32> to vector<8x192xbf16>
    %cst_25 = arith.constant dense<0.000000e+00> : vector<8x192xf32>
    %40 = tpu.matmul %12, %39, %cst_25 {dimension_numbers = #tpu.dot_dimension_numbers<[1], [0], [0], [1], [0, 0, 1, 1], [], []>} : vector<8x8xbf16>, vector<8x192xbf16>, vector<8x192xf32> -> vector<8x192xf32>
    %41 = vector.broadcast %36 : vector<1x192xf32> to vector<8x192xf32>
    %42 = arith.addf %40, %41 : vector<8x192xf32>
    %cst_26 = arith.constant 0.000000e+00 : f32
    %43 = vector.broadcast %cst_26 : f32 to vector<8x192xf32>
    %44 = arith.maximumf %42, %43 : vector<8x192xf32>
    %c0_27 = arith.constant 0 : index
    %c0_28 = arith.constant 0 : index
    %45 = vector.load %arg10[%c0_27, %c0_28] : memref<192x96xbf16, #tpu.memory_space<vmem>>, vector<192x96xbf16>
    %c0_29 = arith.constant 0 : index
    %c0_30 = arith.constant 0 : index
    %46 = vector.load %arg11[%c0_29, %c0_30] : memref<1x96xf32, #tpu.memory_space<vmem>>, vector<1x96xf32>
    %47 = arith.truncf %44 : vector<8x192xf32> to vector<8x192xbf16>
    %cst_31 = arith.constant dense<0.000000e+00> : vector<8x96xf32>
    %48 = tpu.matmul %47, %45, %cst_31 {dimension_numbers = #tpu.dot_dimension_numbers<[1], [0], [0], [1], [0, 0, 1, 1], [], []>} : vector<8x192xbf16>, vector<192x96xbf16>, vector<8x96xf32> -> vector<8x96xf32>
    %49 = arith.truncf %48 : vector<8x96xf32> to vector<8x96xbf16>
    %cst_32 = arith.constant dense<0.000000e+00> : vector<8x96xf32>
    %50 = tpu.matmul %12, %49, %cst_32 {dimension_numbers = #tpu.dot_dimension_numbers<[1], [0], [0], [1], [0, 0, 1, 1], [], []>} : vector<8x8xbf16>, vector<8x96xbf16>, vector<8x96xf32> -> vector<8x96xf32>
    %51 = vector.broadcast %46 : vector<1x96xf32> to vector<8x96xf32>
    %52 = arith.addf %50, %51 : vector<8x96xf32>
    %cst_33 = arith.constant 0.000000e+00 : f32
    %53 = vector.broadcast %cst_33 : f32 to vector<8x96xf32>
    %54 = arith.maximumf %52, %53 : vector<8x96xf32>
    %c0_34 = arith.constant 0 : index
    %c0_35 = arith.constant 0 : index
    %55 = vector.load %arg12[%c0_34, %c0_35] : memref<96x48xbf16, #tpu.memory_space<vmem>>, vector<96x48xbf16>
    %c0_36 = arith.constant 0 : index
    %c0_37 = arith.constant 0 : index
    %56 = vector.load %arg13[%c0_36, %c0_37] : memref<1x48xf32, #tpu.memory_space<vmem>>, vector<1x48xf32>
    %57 = arith.truncf %54 : vector<8x96xf32> to vector<8x96xbf16>
    %cst_38 = arith.constant dense<0.000000e+00> : vector<8x48xf32>
    %58 = tpu.matmul %57, %55, %cst_38 {dimension_numbers = #tpu.dot_dimension_numbers<[1], [0], [0], [1], [0, 0, 1, 1], [], []>} : vector<8x96xbf16>, vector<96x48xbf16>, vector<8x48xf32> -> vector<8x48xf32>
    %59 = arith.truncf %58 : vector<8x48xf32> to vector<8x48xbf16>
    %cst_39 = arith.constant dense<0.000000e+00> : vector<8x48xf32>
    %60 = tpu.matmul %12, %59, %cst_39 {dimension_numbers = #tpu.dot_dimension_numbers<[1], [0], [0], [1], [0, 0, 1, 1], [], []>} : vector<8x8xbf16>, vector<8x48xbf16>, vector<8x48xf32> -> vector<8x48xf32>
    %61 = vector.broadcast %56 : vector<1x48xf32> to vector<8x48xf32>
    %62 = arith.addf %60, %61 : vector<8x48xf32>
    %cst_40 = arith.constant 0.000000e+00 : f32
    %63 = vector.broadcast %cst_40 : f32 to vector<8x48xf32>
    %64 = arith.maximumf %62, %63 : vector<8x48xf32>
    %c0_41 = arith.constant 0 : index
    %c0_42 = arith.constant 0 : index
    %c0_43 = arith.constant 0 : index
    %65 = vector.load %arg3[%c0_41, %c0_42, %c0_43] : memref<1x1x768xf32, #tpu.memory_space<vmem>>, vector<1x1x768xf32>
    %66 = vector.shape_cast %65 : vector<1x1x768xf32> to vector<1x768xf32>
    %c0_44 = arith.constant 0 : index
    %c0_45 = arith.constant 0 : index
    %67 = vector.load %arg14[%c0_44, %c0_45] : memref<768x384xbf16, #tpu.memory_space<vmem>>, vector<768x384xbf16>
    %c0_46 = arith.constant 0 : index
    %c0_47 = arith.constant 0 : index
    %68 = vector.load %arg15[%c0_46, %c0_47] : memref<1x384xf32, #tpu.memory_space<vmem>>, vector<1x384xf32>
    %c0_48 = arith.constant 0 : index
    %c0_49 = arith.constant 0 : index
    %69 = vector.load %arg16[%c0_48, %c0_49] : memref<384x192xbf16, #tpu.memory_space<vmem>>, vector<384x192xbf16>
    %c0_50 = arith.constant 0 : index
    %c0_51 = arith.constant 0 : index
    %70 = vector.load %arg17[%c0_50, %c0_51] : memref<1x192xf32, #tpu.memory_space<vmem>>, vector<1x192xf32>
    %71 = arith.truncf %66 : vector<1x768xf32> to vector<1x768xbf16>
    %cst_52 = arith.constant dense<0.000000e+00> : vector<1x384xf32>
    %72 = tpu.matmul %71, %67, %cst_52 {dimension_numbers = #tpu.dot_dimension_numbers<[1], [0], [0], [1], [0, 0, 1, 1], [], []>} : vector<1x768xbf16>, vector<768x384xbf16>, vector<1x384xf32> -> vector<1x384xf32>
    %73 = arith.addf %72, %68 : vector<1x384xf32>
    %cst_53 = arith.constant 0.000000e+00 : f32
    %74 = vector.broadcast %cst_53 : f32 to vector<1x384xf32>
    %75 = arith.maximumf %73, %74 : vector<1x384xf32>
    %76 = arith.truncf %75 : vector<1x384xf32> to vector<1x384xbf16>
    %cst_54 = arith.constant dense<0.000000e+00> : vector<1x192xf32>
    %77 = tpu.matmul %76, %69, %cst_54 {dimension_numbers = #tpu.dot_dimension_numbers<[1], [0], [0], [1], [0, 0, 1, 1], [], []>} : vector<1x384xbf16>, vector<384x192xbf16>, vector<1x192xf32> -> vector<1x192xf32>
    %78 = arith.addf %77, %70 : vector<1x192xf32>
    %c0_55 = arith.constant 0 : index
    %c0_56 = arith.constant 0 : index
    %79 = vector.load %arg18[%c0_55, %c0_56] : memref<192x192xbf16, #tpu.memory_space<vmem>>, vector<192x192xbf16>
    %c0_57 = arith.constant 0 : index
    %c0_58 = arith.constant 0 : index
    %80 = vector.load %arg19[%c0_57, %c0_58] : memref<1x192xf32, #tpu.memory_space<vmem>>, vector<1x192xf32>
    %c0_59 = arith.constant 0 : index
    %c0_60 = arith.constant 0 : index
    %81 = vector.load %arg20[%c0_59, %c0_60] : memref<192x192xbf16, #tpu.memory_space<vmem>>, vector<192x192xbf16>
    %c0_61 = arith.constant 0 : index
    %c0_62 = arith.constant 0 : index
    %82 = vector.load %arg21[%c0_61, %c0_62] : memref<1x192xf32, #tpu.memory_space<vmem>>, vector<1x192xf32>
    %83 = arith.truncf %78 : vector<1x192xf32> to vector<1x192xbf16>
    %cst_63 = arith.constant dense<0.000000e+00> : vector<1x192xf32>
    %84 = tpu.matmul %83, %79, %cst_63 {dimension_numbers = #tpu.dot_dimension_numbers<[1], [0], [0], [1], [0, 0, 1, 1], [], []>} : vector<1x192xbf16>, vector<192x192xbf16>, vector<1x192xf32> -> vector<1x192xf32>
    %85 = arith.addf %84, %80 : vector<1x192xf32>
    %cst_64 = arith.constant 0.000000e+00 : f32
    %86 = vector.broadcast %cst_64 : f32 to vector<1x192xf32>
    %87 = arith.maximumf %85, %86 : vector<1x192xf32>
    %88 = arith.truncf %87 : vector<1x192xf32> to vector<1x192xbf16>
    %cst_65 = arith.constant dense<0.000000e+00> : vector<1x192xf32>
    %89 = tpu.matmul %88, %81, %cst_65 {dimension_numbers = #tpu.dot_dimension_numbers<[1], [0], [0], [1], [0, 0, 1, 1], [], []>} : vector<1x192xbf16>, vector<192x192xbf16>, vector<1x192xf32> -> vector<1x192xf32>
    %90 = arith.addf %89, %82 : vector<1x192xf32>
    %c0_66 = arith.constant 0 : index
    %c0_67 = arith.constant 0 : index
    %91 = vector.load %arg22[%c0_66, %c0_67] : memref<192x96xbf16, #tpu.memory_space<vmem>>, vector<192x96xbf16>
    %c0_68 = arith.constant 0 : index
    %c0_69 = arith.constant 0 : index
    %92 = vector.load %arg23[%c0_68, %c0_69] : memref<1x96xf32, #tpu.memory_space<vmem>>, vector<1x96xf32>
    %c0_70 = arith.constant 0 : index
    %c0_71 = arith.constant 0 : index
    %93 = vector.load %arg24[%c0_70, %c0_71] : memref<96x48xbf16, #tpu.memory_space<vmem>>, vector<96x48xbf16>
    %c0_72 = arith.constant 0 : index
    %c0_73 = arith.constant 0 : index
    %94 = vector.load %arg25[%c0_72, %c0_73] : memref<1x48xf32, #tpu.memory_space<vmem>>, vector<1x48xf32>
    %95 = arith.truncf %90 : vector<1x192xf32> to vector<1x192xbf16>
    %cst_74 = arith.constant dense<0.000000e+00> : vector<1x96xf32>
    %96 = tpu.matmul %95, %91, %cst_74 {dimension_numbers = #tpu.dot_dimension_numbers<[1], [0], [0], [1], [0, 0, 1, 1], [], []>} : vector<1x192xbf16>, vector<192x96xbf16>, vector<1x96xf32> -> vector<1x96xf32>
    %97 = arith.addf %96, %92 : vector<1x96xf32>
    %cst_75 = arith.constant 0.000000e+00 : f32
    %98 = vector.broadcast %cst_75 : f32 to vector<1x96xf32>
    %99 = arith.maximumf %97, %98 : vector<1x96xf32>
    %100 = arith.truncf %99 : vector<1x96xf32> to vector<1x96xbf16>
    %cst_76 = arith.constant dense<0.000000e+00> : vector<1x48xf32>
    %101 = tpu.matmul %100, %93, %cst_76 {dimension_numbers = #tpu.dot_dimension_numbers<[1], [0], [0], [1], [0, 0, 1, 1], [], []>} : vector<1x96xbf16>, vector<96x48xbf16>, vector<1x48xf32> -> vector<1x48xf32>
    %102 = arith.addf %101, %94 : vector<1x48xf32>
    %103 = vector.broadcast %102 : vector<1x48xf32> to vector<8x48xf32>
    %104 = arith.mulf %64, %103 : vector<8x48xf32>
    %cst_77 = arith.constant dense<0.000000e+00> : vector<8xf32>
    %105 = vector.multi_reduction <add>, %104, %cst_77 [1] : vector<8x48xf32> to vector<8xf32>
    %106 = vector.shape_cast %105 : vector<8xf32> to vector<8x1xf32>
    %cst_78 = arith.constant 0.000000e+00 : f32
    %107 = vector.broadcast %cst_78 : f32 to vector<8x1xf32>
    %108 = arith.cmpf ogt, %106, %107 : vector<8x1xf32>
    %109 = math.exp %106 : vector<8x1xf32>
    %cst_79 = arith.constant 1.000000e+00 : f32
    %110 = vector.broadcast %cst_79 : f32 to vector<8x1xf32>
    %111 = arith.subf %109, %110 : vector<8x1xf32>
    %112 = arith.select %108, %106, %111 : vector<8x1xi1>, vector<8x1xf32>
    %c0_80 = arith.constant 0 : index
    %c0_81 = arith.constant 0 : index
    %c0_82 = arith.constant 0 : index
    %113 = vector.load %arg26[%c0_80, %c0_81, %c0_82] : memref<1x8x1xf32, #tpu.memory_space<vmem>>, vector<1x8x1xf32>
    %114 = vector.shape_cast %113 : vector<1x8x1xf32> to vector<8x1xf32>
    %115 = vector.shape_cast %112 : vector<8x1xf32> to vector<1x8x1xf32>
    tpu.vector_store %arg26[%c0_80, %c0_81, %c0_82], %115 {strides = array<i32>} : memref<1x8x1xf32, #tpu.memory_space<vmem>>, vector<1x8x1xf32>,
    return
  }
  func.func @transform_0(%arg0: i32) -> (i32, i32, i32) {
    %c0_i32 = arith.constant 0 : i32
    %c0_i32_0 = arith.constant 0 : i32
    %c0_i32_1 = arith.constant 0 : i32
    return %arg0, %c0_i32, %c0_i32_0 : i32, i32, i32
  }
  func.func @transform_1(%arg0: i32) -> (i32, i32, i32) {
    %c0_i32 = arith.constant 0 : i32
    %c0_i32_0 = arith.constant 0 : i32
    %c0_i32_1 = arith.constant 0 : i32
    return %arg0, %c0_i32, %c0_i32_0 : i32, i32, i32
  }
  func.func @transform_2(%arg0: i32) -> (i32, i32, i32) {
    %c0_i32 = arith.constant 0 : i32
    %c0_i32_0 = arith.constant 0 : i32
    %c0_i32_1 = arith.constant 0 : i32
    return %arg0, %c0_i32, %c0_i32_0 : i32, i32, i32
  }
  func.func @transform_3(%arg0: i32) -> (i32, i32) {
    %c0_i32 = arith.constant 0 : i32
    %c0_i32_0 = arith.constant 0 : i32
    %c0_i32_1 = arith.constant 0 : i32
    return %c0_i32, %c0_i32_0 : i32, i32
  }
  func.func @transform_4(%arg0: i32) -> (i32, i32) {
    %c0_i32 = arith.constant 0 : i32
    %c0_i32_0 = arith.constant 0 : i32
    %c0_i32_1 = arith.constant 0 : i32
    return %c0_i32, %c0_i32_0 : i32, i32
  }
  func.func @transform_5(%arg0: i32) -> (i32, i32) {
    %c0_i32 = arith.constant 0 : i32
    %c0_i32_0 = arith.constant 0 : i32
    %c0_i32_1 = arith.constant 0 : i32
    return %c0_i32, %c0_i32_0 : i32, i32
  }
  func.func @transform_6(%arg0: i32) -> (i32, i32) {
    %c0_i32 = arith.constant 0 : i32
    %c0_i32_0 = arith.constant 0 : i32
    %c0_i32_1 = arith.constant 0 : i32
    return %c0_i32, %c0_i32_0 : i32, i32
  }
  func.func @transform_7(%arg0: i32) -> (i32, i32) {
    %c0_i32 = arith.constant 0 : i32
    %c0_i32_0 = arith.constant 0 : i32
    %c0_i32_1 = arith.constant 0 : i32
    return %c0_i32, %c0_i32_0 : i32, i32
  }
  func.func @transform_8(%arg0: i32) -> (i32, i32) {
    %c0_i32 = arith.constant 0 : i32
    %c0_i32_0 = arith.constant 0 : i32
    %c0_i32_1 = arith.constant 0 : i32
    return %c0_i32, %c0_i32_0 : i32, i32
  }
  func.func @transform_9(%arg0: i32) -> (i32, i32) {
    %c0_i32 = arith.constant 0 : i32
    %c0_i32_0 = arith.constant 0 : i32
    %c0_i32_1 = arith.constant 0 : i32
    return %c0_i32, %c0_i32_0 : i32, i32
  }
  func.func @transform_10(%arg0: i32) -> (i32, i32) {
    %c0_i32 = arith.constant 0 : i32
    %c0_i32_0 = arith.constant 0 : i32
    %c0_i32_1 = arith.constant 0 : i32
    return %c0_i32, %c0_i32_0 : i32, i32
  }
  func.func @transform_11(%arg0: i32) -> (i32, i32) {
    %c0_i32 = arith.constant 0 : i32
    %c0_i32_0 = arith.constant 0 : i32
    %c0_i32_1 = arith.constant 0 : i32
    return %c0_i32, %c0_i32_0 : i32, i32
  }
  func.func @transform_12(%arg0: i32) -> (i32, i32) {
    %c0_i32 = arith.constant 0 : i32
    %c0_i32_0 = arith.constant 0 : i32
    %c0_i32_1 = arith.constant 0 : i32
    return %c0_i32, %c0_i32_0 : i32, i32
  }
  func.func @transform_13(%arg0: i32) -> (i32, i32) {
    %c0_i32 = arith.constant 0 : i32
    %c0_i32_0 = arith.constant 0 : i32
    %c0_i32_1 = arith.constant 0 : i32
    return %c0_i32, %c0_i32_0 : i32, i32
  }
  func.func @transform_14(%arg0: i32) -> (i32, i32) {
    %c0_i32 = arith.constant 0 : i32
    %c0_i32_0 = arith.constant 0 : i32
    %c0_i32_1 = arith.constant 0 : i32
    return %c0_i32, %c0_i32_0 : i32, i32
  }
  func.func @transform_15(%arg0: i32) -> (i32, i32) {
    %c0_i32 = arith.constant 0 : i32
    %c0_i32_0 = arith.constant 0 : i32
    %c0_i32_1 = arith.constant 0 : i32
    return %c0_i32, %c0_i32_0 : i32, i32
  }
  func.func @transform_16(%arg0: i32) -> (i32, i32) {
    %c0_i32 = arith.constant 0 : i32
    %c0_i32_0 = arith.constant 0 : i32
    %c0_i32_1 = arith.constant 0 : i32
    return %c0_i32, %c0_i32_0 : i32, i32
  }
  func.func @transform_17(%arg0: i32) -> (i32, i32) {
    %c0_i32 = arith.constant 0 : i32
    %c0_i32_0 = arith.constant 0 : i32
    %c0_i32_1 = arith.constant 0 : i32
    return %c0_i32, %c0_i32_0 : i32, i32
  }
  func.func @transform_18(%arg0: i32) -> (i32, i32) {
    %c0_i32 = arith.constant 0 : i32
    %c0_i32_0 = arith.constant 0 : i32
    %c0_i32_1 = arith.constant 0 : i32
    return %c0_i32, %c0_i32_0 : i32, i32
  }
  func.func @transform_19(%arg0: i32) -> (i32, i32) {
    %c0_i32 = arith.constant 0 : i32
    %c0_i32_0 = arith.constant 0 : i32
    %c0_i32_1 = arith.constant 0 : i32
    return %c0_i32, %c0_i32_0 : i32, i32
  }
  func.func @transform_20(%arg0: i32) -> (i32, i32) {
    %c0_i32 = arith.constant 0 : i32
    %c0_i32_0 = arith.constant 0 : i32
    %c0_i32_1 = arith.constant 0 : i32
    return %c0_i32, %c0_i32_0 : i32, i32
  }
  func.func @transform_21(%arg0: i32) -> (i32, i32) {
    %c0_i32 = arith.constant 0 : i32
    %c0_i32_0 = arith.constant 0 : i32
    %c0_i32_1 = arith.constant 0 : i32
    return %c0_i32, %c0_i32_0 : i32, i32
  }
  func.func @transform_22(%arg0: i32) -> (i32, i32) {
    %c0_i32 = arith.constant 0 : i32
    %c0_i32_0 = arith.constant 0 : i32
    %c0_i32_1 = arith.constant 0 : i32
    return %c0_i32, %c0_i32_0 : i32, i32
  }
  func.func @transform_23(%arg0: i32) -> (i32, i32) {
    %c0_i32 = arith.constant 0 : i32
    %c0_i32_0 = arith.constant 0 : i32
    %c0_i32_1 = arith.constant 0 : i32
    return %c0_i32, %c0_i32_0 : i32, i32
  }
  func.func @transform_24(%arg0: i32) -> (i32, i32) {
    %c0_i32 = arith.constant 0 : i32
    %c0_i32_0 = arith.constant 0 : i32
    %c0_i32_1 = arith.constant 0 : i32
    return %c0_i32, %c0_i32_0 : i32, i32
  }
  func.func @transform_25(%arg0: i32) -> (i32, i32, i32) {
    %c0_i32 = arith.constant 0 : i32
    %c0_i32_0 = arith.constant 0 : i32
    %c0_i32_1 = arith.constant 0 : i32
    return %arg0, %c0_i32, %c0_i32_0 : i32, i32, i32
  }
}

</mosaic_0001>

<bundles_post_ra>
// kernel: deep_interact_forward.1
= control target key start
LH: loop header
LB: loop body
LE: loop exit
PB: predicated region body
PF: predicated region fallthrough
CT: control target
= control target key end

     0   :  { %s14975_s29 = smov 0   ;;  %s21575_s0 = inlined_call_operand.vmem [shape: f32[2,8,8], index: 0, kind: input, shape index: {}]   ;;  %s21576_s1 = inlined_call_operand.vmem [shape: f32[2,8,1536], index: 1, kind: input, shape index: {}]   ;;  %s21577_s2 = inlined_call_operand.vmem [shape: f32[2,1,768], index: 2, kind: input, shape index: {}]   ;;  %s21578_s3 = inlined_call_operand.vmem [shape: bf16[1536,768], index: 3, kind: input, shape index: {}]   ;;  %s21579_s4 = inlined_call_operand.vmem [shape: f32[1,768], index: 4, kind: input, shape index: {}]   ;;  %s21580_s5 = inlined_call_operand.vmem [shape: bf16[768,384], index: 5, kind: input, shape index: {}]   ;;  %s21581_s6 = inlined_call_operand.vmem [shape: f32[1,384], index: 6, kind: input, shape index: {}]   ;;  %s21582_s7 = inlined_call_operand.vmem [shape: bf16[384,192], index: 7, kind: input, shape index: {}]   ;;  %s21583_s8 = inlined_call_operand.vmem [shape: f32[1,192], index: 8, kind: input, shape index: {}]   ;;  %s21584_s9 = inlined_call_operand.vmem [shape: bf16[192,96], index: 9, kind: input, shape index: {}]   ;;  %s21585_s10 = inlined_call_operand.vmem [shape: f32[1,96], index: 10, kind: input, shape index: {}]   ;;  %s21586_s11 = inlined_call_operand.vmem [shape: bf16[96,48], index: 11, kind: input, shape index: {}]   ;;  %s21587_s12 = inlined_call_operand.vmem [shape: f32[1,48], index: 12, kind: input, shape index: {}]   ;;  %s21588_s13 = inlined_call_operand.vmem [shape: bf16[768,384], index: 13, kind: input, shape index: {}]   ;;  %s21589_s14 = inlined_call_operand.vmem [shape: f32[1,384], index: 14, kind: input, shape index: {}]   ;;  %s21590_s15 = inlined_call_operand.vmem [shape: bf16[384,192], index: 15, kind: input, shape index: {}]   ;;  %s21591_s16 = inlined_call_operand.vmem [shape: f32[1,192], index: 16, kind: input, shape index: {}]   ;;  %s21592_s17 = inlined_call_operand.vmem [shape: bf16[192,192], index: 17, kind: input, shape index: {}]   ;;  %s21593_s18 = inlined_call_operand.vmem [shape: f32[1,192], index: 18, kind: input, shape index: {}]   ;;  %s21594_s19 = inlined_call_operand.vmem [shape: bf16[192,192], index: 19, kind: input, shape index: {}]   ;;  %s21595_s20 = inlined_call_operand.vmem [shape: f32[1,192], index: 20, kind: input, shape index: {}]   ;;  %s21596_s21 = inlined_call_operand.vmem [shape: bf16[192,96], index: 21, kind: input, shape index: {}]   ;;  %s21597_s22 = inlined_call_operand.vmem [shape: f32[1,96], index: 22, kind: input, shape index: {}]   ;;  %s21598_s23 = inlined_call_operand.vmem [shape: bf16[96,48], index: 23, kind: input, shape index: {}]   ;;  %s21599_s24 = inlined_call_operand.vmem [shape: f32[1,48], index: 24, kind: input, shape index: {}]   ;;  %s21600_s25 = inlined_call_operand.vmem [shape: f32[2,8,1], index: 25, kind: output, shape index: {}]  }
   0x1   :  { %21609 = sst [smem:[#allocation2_spill]] %s21575_s0 }
   0x2   :  { %21610 = sst [smem:[#allocation3_spill]] %s21576_s1 }
   0x3   :  { %21611 = sst [smem:[#allocation4_spill]] %s21577_s2 }
   0x4   :  { %21612 = sst [smem:[#allocation5_spill]] %s21578_s3 }
   0x5   :  { %21613 = sst [smem:[#allocation6_spill]] %s21579_s4 }
   0x6   :  { %21614 = sst [smem:[#allocation7_spill]] %s21580_s5 }
   0x7   :  { %21615 = sst [smem:[#allocation8_spill]] %s21581_s6 }
   0x8   :  { %21616 = sst [smem:[#allocation9_spill]] %s21582_s7 }
   0x9   :  { %21617 = sst [smem:[#allocation10_spill]] %s21583_s8 }
   0xa   :  { %21618 = sst [smem:[#allocation11_spill]] %s21584_s9 }
   0xb LB: > { %s9566_s2 = sadd.s32 4294967295, %s14843_s29   ;;  %p9570_p0 = scmp.ge.s32.totalorder %s14843_s29, 1  ;;  %s14843_s29 = sphi %s14975_s29, %s35_s29  }
   0xc   : > { %p705_p1 = scmp.lt.s32.totalorder %s14843_s29, 3 }
   0xe   : > { %p706_p2 = pnand %p9570_p0, %p705_p1 }
   0xf   : > { %s21619_s7 = sld [smem:[#allocation5_spill]] (!%p706_p2)  ;;  %p780_p3 = scmp.lt.s32.totalorder (!%p706_p2), %s9566_s2, 1 }
  0x10   : > { %709 = sbr.rel (%p706_p2) target bundleno = 2976 (0xba0), region = 120  ;;  %s21620_s8 = sld [smem:[#allocation3_spill]] (!%p706_p2) }
  0x11   : > { %s21622_s6 = sld [smem:[#allocation2_spill]] (!%p706_p2) }
  0x12   : > { %s21623_s4 = sld [smem:[#allocation7_spill]] (!%p706_p2) }
  0x13   : > { %s21625_s3 = sld [smem:[#allocation9_spill]] (!%p706_p2) }
  0x14   : > { %s21627_s0 = sld [smem:[#allocation11_spill]] (!%p706_p2) }
  0x15   : > { %v9744_v0 = vld [vmem:[%s21619_s7 + $0x150] sm:$0xf]  ;;  %v13819_v1 = vld [vmem:[%s21619_s7 + $0x164] sm:$0xf0]  ;;  %v9720_v11 = vld [vmem:[%s21619_s7 + $0x120] sm:$0xf] }
  0x16   : > { %v9936_v2 = vld [vmem:[%s21619_s7 + $0x2d0] sm:$0xf]  ;;  %v9745_v3 = vor.u32 %v13819_v1, %v9744_v0  ;;  %v13867_v4 = vld [vmem:[%s21619_s7 + $0x2e4] sm:$0xf0]  ;;  %v13813_v13 = vld [vmem:[%s21619_s7 + $0x134] sm:$0xf0] }
  0x17   : > { %v10128_v5 = vld [vmem:[%s21619_s7 + $0x450] sm:$0xf]  ;;  %v13915_v6 = vld [vmem:[%s21619_s7 + $0x464] sm:$0xf0]  ;;  %v9937_v7 = vor.u32 %v13867_v4, %v9936_v2  ;;  %v9912_v14 = vld [vmem:[%s21619_s7 + $0x2a0] sm:$0xf]  ;;  %v9721_v16 = vor.u32 %v13813_v13, %v9720_v11 }
  0x18   : > { %v10129_v8 = vor.u32 %v13915_v6, %v10128_v5  ;;  %v10320_v9 = vld [vmem:[%s21619_s7 + $0x5d0] sm:$0xf]  ;;  %v13963_v10 = vld [vmem:[%s21619_s7 + $0x5e4] sm:$0xf0]  ;;  %4293 = vmatpush.bf16.msra.mxu0 %v9745_v3  ;;  %v13861_v15 = vld [vmem:[%s21619_s7 + $0x2b4] sm:$0xf0] }
  0x19   : > { %v10321_v12 = vor.u32 %v13963_v10, %v10320_v9  ;;  %4306 = vmatpush.bf16.msra.mxu1 %v9937_v7  ;;  %v9913_v17 = vor.u32 %v13861_v15, %v9912_v14  ;;  %v10104_v18 = vld [vmem:[%s21619_s7 + $0x420] sm:$0xf]  ;;  %v13909_v19 = vld [vmem:[%s21619_s7 + $0x434] sm:$0xf0]  ;;  %v9696_v23 = vld [vmem:[%s21619_s7 + $0xf0] sm:$0xf] }
  0x1a   : > { %4319 = vmatpush.bf16.msra.mxu2 %v10129_v8  ;;  %v10296_v20 = vld [vmem:[%s21619_s7 + $0x5a0] sm:$0xf]  ;;  %v10105_v21 = vor.u32 %v13909_v19, %v10104_v18  ;;  %v13957_v22 = vld [vmem:[%s21619_s7 + $0x5b4] sm:$0xf0]  ;;  %v13807_v24 = vld [vmem:[%s21619_s7 + $0x104] sm:$0xf0] }
  0x1b   : > { %4332 = vmatpush.bf16.msra.mxu3 %v10321_v12  ;;  %v10297_v25 = vor.u32 %v13957_v22, %v10296_v20  ;;  %v9888_v26 = vld [vmem:[%s21619_s7 + $0x270] sm:$0xf]  ;;  %v13855_v27 = vld [vmem:[%s21619_s7 + $0x284] sm:$0xf0]  ;;  %v9697_v29 = vor.u32 %v13807_v24, %v9696_v23  ;;  %v9672_v35 = vld [vmem:[%s21619_s7 + $0xc0] sm:$0xf] }
  0x1c   : > { %v10080_v28 = vld [vmem:[%s21619_s7 + $0x3f0] sm:$0xf]  ;;  %4294 = vmatpush.bf16.msra.mxu0 %v9721_v16  ;;  %v13903_v30 = vld [vmem:[%s21619_s7 + $0x404] sm:$0xf0]  ;;  %v9889_v33 = vor.u32 %v13855_v27, %v9888_v26  ;;  %v13801_v36 = vld [vmem:[%s21619_s7 + $0xd4] sm:$0xf0] }
  0x1d   : > { %v10272_v31 = vld [vmem:[%s21619_s7 + $0x570] sm:$0xf]  ;;  %v13951_v32 = vld [vmem:[%s21619_s7 + $0x584] sm:$0xf0]  ;;  %4307 = vmatpush.bf16.msra.mxu1 %v9913_v17  ;;  %v10081_v34 = vor.u32 %v13903_v30, %v10080_v28  ;;  %v9864_v37 = vld [vmem:[%s21619_s7 + $0x240] sm:$0xf]  ;;  %v9673_v44 = vor.u32 %v13801_v36, %v9672_v35 }
  0x1e   : > { %4320 = vmatpush.bf16.msra.mxu2 %v10105_v21  ;;  %v10273_v38 = vor.u32 %v13951_v32, %v10272_v31  ;;  %v13849_v39 = vld [vmem:[%s21619_s7 + $0x254] sm:$0xf0]  ;;  %v10056_v40 = vld [vmem:[%s21619_s7 + $0x3c0] sm:$0xf]  ;;  %v9648_v47 = vld [vmem:[%s21619_s7 + $0x90] sm:$0xf] }
  0x1f   : > { %4333 = vmatpush.bf16.msra.mxu3 %v10297_v25  ;;  %v13897_v41 = vld [vmem:[%s21619_s7 + $0x3d4] sm:$0xf0]  ;;  %v10248_v42 = vld [vmem:[%s21619_s7 + $0x540] sm:$0xf]  ;;  %v9865_v45 = vor.u32 %v13849_v39, %v9864_v37  ;;  %v13795_v48 = vld [vmem:[%s21619_s7 + $0xa4] sm:$0xf0] }
  0x20   : > { %v13945_v43 = vld [vmem:[%s21619_s7 + $0x554] sm:$0xf0]  ;;  %4295 = vmatpush.bf16.msra.mxu0 %v9697_v29  ;;  %v10057_v46 = vor.u32 %v13897_v41, %v10056_v40  ;;  %v9840_v49 = vld [vmem:[%s21619_s7 + $0x210] sm:$0xf]  ;;  %v13843_v51 = vld [vmem:[%s21619_s7 + $0x224] sm:$0xf0]  ;;  %v9649_v56 = vor.u32 %v13795_v48, %v9648_v47 }
  0x21   : > { %4308 = vmatpush.bf16.msra.mxu1 %v9889_v33  ;;  %v10249_v50 = vor.u32 %v13945_v43, %v10248_v42  ;;  %v10032_v52 = vld [vmem:[%s21619_s7 + $0x390] sm:$0xf]  ;;  %v13891_v53 = vld [vmem:[%s21619_s7 + $0x3a4] sm:$0xf0]  ;;  %v9841_v57 = vor.u32 %v13843_v51, %v9840_v49  ;;  %v9624_v59 = vld [vmem:[%s21619_s7 + $0x60] sm:$0xf] }
  0x22   : > { %4321 = vmatpush.bf16.msra.mxu2 %v10081_v34  ;;  %v10224_v54 = vld [vmem:[%s21619_s7 + $0x510] sm:$0xf]  ;;  %v13939_v55 = vld [vmem:[%s21619_s7 + $0x524] sm:$0xf0]  ;;  %v10033_v58 = vor.u32 %v13891_v53, %v10032_v52  ;;  %v13789_v60 = vld [vmem:[%s21619_s7 + $0x74] sm:$0xf0] }
  0x23   : > { %4334 = vmatpush.bf16.msra.mxu3 %v10273_v38  ;;  %v9816_v61 = vld [vmem:[%s21619_s7 + $0x1e0] sm:$0xf]  ;;  %v10225_v62 = vor.u32 %v13939_v55, %v10224_v54  ;;  %v13837_v63 = vld [vmem:[%s21619_s7 + $0x1f4] sm:$0xf0]  ;;  %v9625_v4 = vor.u32 %v13789_v60, %v9624_v59  ;;  %v9600_v7 = vld [vmem:[%s21619_s7 + $0x30] sm:$0xf] }
  0x24   : > { %4296 = vmatpush.bf16.msra.mxu0 %v9673_v44  ;;  %v10008_v0 = vld [vmem:[%s21619_s7 + $0x360] sm:$0xf]  ;;  %v13885_v1 = vld [vmem:[%s21619_s7 + $0x374] sm:$0xf0]  ;;  %v9817_v5 = vor.u32 %v13837_v63, %v9816_v61  ;;  %v13783_v8 = vld [vmem:[%s21619_s7 + $0x44] sm:$0xf0] }
  0x25   : > { %4309 = vmatpush.bf16.msra.mxu1 %v9865_v45  ;;  %v10200_v2 = vld [vmem:[%s21619_s7 + $0x4e0] sm:$0xf]  ;;  %v13933_v3 = vld [vmem:[%s21619_s7 + $0x4f4] sm:$0xf0]  ;;  %v10009_v6 = vor.u32 %v13885_v1, %v10008_v0  ;;  %v9792_v9 = vld [vmem:[%s21619_s7 + $0x1b0] sm:$0xf]  ;;  %v9601_v16 = vor.u32 %v13783_v8, %v9600_v7 }
  0x26   : > { %4322 = vmatpush.bf16.msra.mxu2 %v10057_v46  ;;  %v10201_v10 = vor.u32 %v13933_v3, %v10200_v2  ;;  %v13831_v11 = vld [vmem:[%s21619_s7 + $0x1c4] sm:$0xf0]  ;;  %v9984_v12 = vld [vmem:[%s21619_s7 + $0x330] sm:$0xf]  ;;  %v9576_v17 = vld [vmem:[%s21619_s7] sm:$0xf] }
  0x27   : > { %4335 = vmatpush.bf16.msra.mxu3 %v10249_v50  ;;  %v13879_v13 = vld [vmem:[%s21619_s7 + $0x344] sm:$0xf0]  ;;  %v10176_v14 = vld [vmem:[%s21619_s7 + $0x4b0] sm:$0xf]  ;;  %v13777_v18 = vld [vmem:[%s21619_s7 + $0x14] sm:$0xf0]  ;;  %v9793_v19 = vor.u32 %v13831_v11, %v9792_v9 }
  0x28   : > { %4297 = vmatpush.bf16.msra.mxu0 %v9649_v56  ;;  %v13927_v15 = vld [vmem:[%s21619_s7 + $0x4c4] sm:$0xf0]  ;;  %v9985_v20 = vor.u32 %v13879_v13, %v9984_v12  ;;  %v9768_v21 = vld [vmem:[%s21619_s7 + $0x180] sm:$0xf]  ;;  %v13825_v22 = vld [vmem:[%s21619_s7 + $0x194] sm:$0xf0]  ;;  %v9577_v31 = vor.u32 %v13777_v18, %v9576_v17 }
  0x29   : > { %4310 = vmatpush.bf16.msra.mxu1 %v9841_v57  ;;  %v9960_v23 = vld [vmem:[%s21619_s7 + $0x300] sm:$0xf]  ;;  %v10177_v24 = vor.u32 %v13927_v15, %v10176_v14  ;;  %v13873_v25 = vld [vmem:[%s21619_s7 + $0x314] sm:$0xf0]  ;;  %v10512_v28 = vld [vmem:[%s21619_s7 + $0x750] sm:$0xf]  ;;  %v9769_v35 = vor.u32 %v13825_v22, %v9768_v21 }
  0x2a   : > { %4323 = vmatpush.bf16.msra.mxu2 %v10033_v58  ;;  %v10152_v26 = vld [vmem:[%s21619_s7 + $0x480] sm:$0xf]  ;;  %v13921_v27 = vld [vmem:[%s21619_s7 + $0x494] sm:$0xf0]  ;;  %v14011_v29 = vld [vmem:[%s21619_s7 + $0x764] sm:$0xf0]  ;;  %v9961_v36 = vor.u32 %v13873_v25, %v9960_v23 }
  0x2b   : > { %4336 = vmatpush.bf16.msra.mxu3 %v10225_v62  ;;  %v10704_v30 = vld [vmem:[%s21619_s7 + $0x8d0] sm:$0xf]  ;;  %v14059_v32 = vld [vmem:[%s21619_s7 + $0x8e4] sm:$0xf0]  ;;  %v10153_v39 = vor.u32 %v13921_v27, %v10152_v26  ;;  %v10513_v40 = vor.u32 %v14011_v29, %v10512_v28  ;;  %v10488_v43 = vld [vmem:[%s21619_s7 + $0x720] sm:$0xf] }
  0x2c   : > { %4298 = vmatpush.bf16.msra.mxu0 %v9625_v4  ;;  %v10896_v33 = vld [vmem:[%s21619_s7 + $0xa50] sm:$0xf]  ;;  %v14107_v34 = vld [vmem:[%s21619_s7 + $0xa64] sm:$0xf0]  ;;  %v10705_v41 = vor.u32 %v14059_v32, %v10704_v30  ;;  %v14005_v44 = vld [vmem:[%s21619_s7 + $0x734] sm:$0xf0] }
  0x2d   : > { %4311 = vmatpush.bf16.msra.mxu1 %v9817_v5  ;;  %v11088_v37 = vld [vmem:[%s21619_s7 + $0xbd0] sm:$0xf]  ;;  %v14155_v38 = vld [vmem:[%s21619_s7 + $0xbe4] sm:$0xf0]  ;;  %v10897_v42 = vor.u32 %v14107_v34, %v10896_v33  ;;  %v10680_v45 = vld [vmem:[%s21619_s7 + $0x8a0] sm:$0xf]  ;;  %v10489_v52 = vor.u32 %v14005_v44, %v10488_v43 }
  0x2e   : > { %4324 = vmatpush.bf16.msra.mxu2 %v10009_v6  ;;  %v11089_v46 = vor.u32 %v14155_v38, %v11088_v37  ;;  %v14053_v47 = vld [vmem:[%s21619_s7 + $0x8b4] sm:$0xf0]  ;;  %v10872_v48 = vld [vmem:[%s21619_s7 + $0xa20] sm:$0xf]  ;;  %v10464_v53 = vld [vmem:[%s21619_s7 + $0x6f0] sm:$0xf] }
  0x2f   : > { %4337 = vmatpush.bf16.msra.mxu3 %v10201_v10  ;;  %v14101_v49 = vld [vmem:[%s21619_s7 + $0xa34] sm:$0xf0]  ;;  %v11064_v50 = vld [vmem:[%s21619_s7 + $0xba0] sm:$0xf]  ;;  %v13999_v54 = vld [vmem:[%s21619_s7 + $0x704] sm:$0xf0]  ;;  %v10681_v55 = vor.u32 %v14053_v47, %v10680_v45 }
  0x30   : > { %4299 = vmatpush.bf16.msra.mxu0 %v9601_v16  ;;  %v14149_v51 = vld [vmem:[%s21619_s7 + $0xbb4] sm:$0xf0]  ;;  %v10873_v56 = vor.u32 %v14101_v49, %v10872_v48  ;;  %v10656_v57 = vld [vmem:[%s21619_s7 + $0x870] sm:$0xf]  ;;  %v14047_v58 = vld [vmem:[%s21619_s7 + $0x884] sm:$0xf0]  ;;  %v10465_v1 = vor.u32 %v13999_v54, %v10464_v53 }
  0x31   : > { %4312 = vmatpush.bf16.msra.mxu1 %v9793_v19  ;;  %v11065_v59 = vor.u32 %v14149_v51, %v11064_v50  ;;  %v10848_v60 = vld [vmem:[%s21619_s7 + $0x9f0] sm:$0xf]  ;;  %v14095_v61 = vld [vmem:[%s21619_s7 + $0xa04] sm:$0xf0]  ;;  %v10440_v0 = vld [vmem:[%s21619_s7 + $0x6c0] sm:$0xf]  ;;  %v10657_v5 = vor.u32 %v14047_v58, %v10656_v57 }
  0x32   : > { %4325 = vmatpush.bf16.msra.mxu2 %v9985_v20  ;;  %v11040_v62 = vld [vmem:[%s21619_s7 + $0xb70] sm:$0xf]  ;;  %v14143_v63 = vld [vmem:[%s21619_s7 + $0xb84] sm:$0xf0]  ;;  %s21632_s2 = smov (!%p780_p3, %s9566_s2), 1  ;;  %v10849_v6 = vor.u32 %v14095_v61, %v10848_v60  ;;  %vm799_vm0 = vcmask 64512  }
  0x33   : > { %4338 = vmatpush.bf16.msra.mxu3 %v10177_v24  ;;  %v13993_v2 = vld [vmem:[%s21619_s7 + $0x6d4] sm:$0xf0]  ;;  %v10632_v3 = vld [vmem:[%s21619_s7 + $0x840] sm:$0xf]  ;;  %s14818_s28 = smul.u32 96, %s21632_s2  ;;  %v11041_v9 = vor.u32 %v14143_v63, %v11040_v62  ;;  %vm5251_vm1 = vcmask 1043456  }
  0x34   : > { %4300 = vmatpush.bf16.msra.mxu0 %v9577_v31  ;;  %v14041_v4 = vld [vmem:[%s21619_s7 + $0x854] sm:$0xf0]  ;;  %v10824_v7 = vld [vmem:[%s21619_s7 + $0x9c0] sm:$0xf]  ;;  %v10416_v12 = vld [vmem:[%s21619_s7 + $0x690] sm:$0xf]  ;;  %v10441_v13 = vor.u32 %v13993_v2, %v10440_v0 }
  0x35   : > { %4313 = vmatpush.bf16.msra.mxu1 %v9769_v35  ;;  %v14089_v8 = vld [vmem:[%s21619_s7 + $0x9d4] sm:$0xf0]  ;;  %v11016_v10 = vld [vmem:[%s21619_s7 + $0xb40] sm:$0xf]  ;;  %s15284_s27 = scalar_lea.vmem %s21620_s8, %s14818_s28  ;;  %v10633_v14 = vor.u32 %v14041_v4, %v10632_v3  ;;  %v13987_v19 = vld [vmem:[%s21619_s7 + $0x6a4] sm:$0xf0] }
  0x36   : > { %4326 = vmatpush.bf16.msra.mxu2 %v9961_v36  ;;  %v14137_v11 = vld [vmem:[%s21619_s7 + $0xb54] sm:$0xf0]  ;;  %v10825_v15 = vor.u32 %v14089_v8, %v10824_v7  ;;  %v814_v16 = vld [vmem:[%s15284_s27 + $0x10] sm:$0xff]  ;;  %v812_v17 = vld [vmem:[%s15284_s27] sm:$0xff]  ;;  %v10417_v32 = vor.u32 %v13987_v19, %v10416_v12  ;;  %s21621_s28 = sshll.u32 %s21632_s2, 3  ;;  %s21624_s8 = sld [smem:[#allocation6_spill]] }
  0x37   : > { %4339 = vmatpush.bf16.msra.mxu3 %v10153_v39  ;;  %v815_v18 = vld [vmem:[%s15284_s27 + $0x18] sm:$0xff]  ;;  %v10608_v20 = vld [vmem:[%s21619_s7 + $0x810] sm:$0xf]  ;;  %v15295_v21 = vpack.c.bf16 %v814_v16, %v814_v16  ;;  %v15297_v22 = vpack.c.bf16 %v812_v17, %v812_v17  ;;  %v813_v24 = vld [vmem:[%s15284_s27 + $0x8] sm:$0xff]  ;;  %v11017_v25 = vor.u32 %v14137_v11, %v11016_v10  ;;  %s16597_s9 = scalar_lea.vmem %s21622_s6, %s21621_s28  ;;  %s21628_s26 = sld [smem:[#allocation10_spill]]  ;;  %vm7126_vm2 = vcmask 523264  }
  0x38   : > { %4345 = vmatpush.bf16.msrb.mxu0 %v10513_v40  ;;  %v15299_v23 = vpack.c.bf16 %v815_v18, %v815_v18  ;;  %v14035_v26 = vld [vmem:[%s21619_s7 + $0x824] sm:$0xf0]  ;;  %v10800_v27 = vld [vmem:[%s21619_s7 + $0x990] sm:$0xf]  ;;  %v15311_v29 = vpack.c.bf16 %v813_v24, %v813_v24  ;;  %v10392_v35 = vld [vmem:[%s21619_s7 + $0x660] sm:$0xf] }
  0x39   : > { %4358 = vmatpush.bf16.msrb.mxu1 %v10705_v41  ;;  %v14083_v28 = vld [vmem:[%s21619_s7 + $0x9a4] sm:$0xf0]  ;;  %v10992_v30 = vld [vmem:[%s21619_s7 + $0xb10] sm:$0xf]  ;;  %4327 = vmatmul.bf16.vlgmr.msra.gmra.mxu2 %v15295_v21  ;;  %v10609_v33 = vor.u32 %v14035_v26, %v10608_v20  ;;  %v13981_v36 = vld [vmem:[%s21619_s7 + $0x674] sm:$0xf0] }
  0x3a   : > { %4371 = vmatpush.bf16.msrb.mxu2 %v10897_v42  ;;  %v14131_v31 = vld [vmem:[%s21619_s7 + $0xb24] sm:$0xf0]  ;;  %4301 = vmatmul.bf16.vlgmr.msra.gmra.mxu0 %v15297_v22  ;;  %v10801_v34 = vor.u32 %v14083_v28, %v10800_v27  ;;  %v10584_v37 = vld [vmem:[%s21619_s7 + $0x7e0] sm:$0xf]  ;;  %v14029_v39 = vld [vmem:[%s21619_s7 + $0x7f4] sm:$0xf0]  ;;  %v10393_v44 = vor.u32 %v13981_v36, %v10392_v35 }
  0x3b   : > { %4384 = vmatpush.bf16.msrb.mxu3 %v11089_v46  ;;  %v10993_v38 = vor.u32 %v14131_v31, %v10992_v30  ;;  %v10776_v40 = vld [vmem:[%s21619_s7 + $0x960] sm:$0xf]  ;;  %v14077_v41 = vld [vmem:[%s21619_s7 + $0x974] sm:$0xf0]  ;;  %4314 = vmatmul.bf16.vlgmr.msra.gmra.mxu1 %v15311_v29  ;;  %v10585_v45 = vor.u32 %v14029_v39, %v10584_v37  ;;  %v10368_v47 = vld [vmem:[%s21619_s7 + $0x630] sm:$0xf] }
  0x3c   : > { %4346 = vmatpush.bf16.msrb.mxu0 %v10489_v52  ;;  %4340 = vmatmul.bf16.vlgmr.msra.gmra.mxu3 %v15299_v23  ;;  %v10968_v42 = vld [vmem:[%s21619_s7 + $0xae0] sm:$0xf]  ;;  %v14125_v43 = vld [vmem:[%s21619_s7 + $0xaf4] sm:$0xf0]  ;;  %v10777_v46 = vor.u32 %v14077_v41, %v10776_v40  ;;  %v13975_v48 = vld [vmem:[%s21619_s7 + $0x644] sm:$0xf0] }
  0x3d   : > { %4359 = vmatpush.bf16.msrb.mxu1 %v10681_v55  ;;  %v10560_v49 = vld [vmem:[%s21619_s7 + $0x7b0] sm:$0xf]  ;;  %v10969_v50 = vor.u32 %v14125_v43, %v10968_v42  ;;  %v14023_v51 = vld [vmem:[%s21619_s7 + $0x7c4] sm:$0xf0]  ;;  %v10344_v57 = vld [vmem:[%s21619_s7 + $0x600] sm:$0xf] }
  0x3e   : > { %4372 = vmatpush.bf16.msrb.mxu2 %v10873_v56  ;;  %v10752_v52 = vld [vmem:[%s21619_s7 + $0x930] sm:$0xf]  ;;  %v14071_v53 = vld [vmem:[%s21619_s7 + $0x944] sm:$0xf0]  ;;  %v10369_v56 = vor.u32 %v13975_v48, %v10368_v47  ;;  %v13969_v58 = vld [vmem:[%s21619_s7 + $0x614] sm:$0xf0] }
  0x3f   : > { %4385 = vmatpush.bf16.msrb.mxu3 %v11065_v59  ;;  %v10944_v54 = vld [vmem:[%s21619_s7 + $0xab0] sm:$0xf]  ;;  %v14119_v55 = vld [vmem:[%s21619_s7 + $0xac4] sm:$0xf0]  ;;  %v10561_v59 = vor.u32 %v14023_v51, %v10560_v49  ;;  %v10753_v60 = vor.u32 %v14071_v53, %v10752_v52  ;;  %v10536_v61 = vld [vmem:[%s21619_s7 + $0x780] sm:$0xf]  ;;  %v10345_v7 = vor.u32 %v13969_v58, %v10344_v57 }
  0x40   : > { %4347 = vmatpush.bf16.msrb.mxu0 %v10465_v1  ;;  %v14017_v62 = vld [vmem:[%s21619_s7 + $0x794] sm:$0xf0]  ;;  %v10728_v63 = vld [vmem:[%s21619_s7 + $0x900] sm:$0xf]  ;;  %v10945_v0 = vor.u32 %v14119_v55, %v10944_v54  ;;  %v11280_v4 = vld [vmem:[%s21619_s7 + $0xd50] sm:$0xf] }
  0x41   : > { %4360 = vmatpush.bf16.msrb.mxu1 %v10657_v5  ;;  %v14065_v1 = vld [vmem:[%s21619_s7 + $0x914] sm:$0xf0]  ;;  %v10920_v2 = vld [vmem:[%s21619_s7 + $0xa80] sm:$0xf]  ;;  %v14203_v5 = vld [vmem:[%s21619_s7 + $0xd64] sm:$0xf0]  ;;  %v10537_v11 = vor.u32 %v14017_v62, %v10536_v61 }
  0x42   : > { %4373 = vmatpush.bf16.msrb.mxu2 %v10849_v6  ;;  %v14113_v3 = vld [vmem:[%s21619_s7 + $0xa94] sm:$0xf0]  ;;  %v11472_v6 = vld [vmem:[%s21619_s7 + $0xed0] sm:$0xf]  ;;  %v14251_v8 = vld [vmem:[%s21619_s7 + $0xee4] sm:$0xf0]  ;;  %v10729_v12 = vor.u32 %v14065_v1, %v10728_v63  ;;  %v11281_v17 = vor.u32 %v14203_v5, %v11280_v4 }
  0x43   : > { %4386 = vmatpush.bf16.msrb.mxu3 %v11041_v9  ;;  %v11664_v9 = vld [vmem:[%s21619_s7 + $0x1050] sm:$0xf]  ;;  %v14299_v10 = vld [vmem:[%s21619_s7 + $0x1064] sm:$0xf0]  ;;  %v10921_v16 = vor.u32 %v14113_v3, %v10920_v2  ;;  %v11256_v18 = vld [vmem:[%s21619_s7 + $0xd20] sm:$0xf]  ;;  %v11473_v24 = vor.u32 %v14251_v8, %v11472_v6 }
  0x44   : > { %4348 = vmatpush.bf16.msrb.mxu0 %v10441_v13  ;;  %v11856_v13 = vld [vmem:[%s21619_s7 + $0x11d0] sm:$0xf]  ;;  %v816_v19 = vld [vmem:[%s15284_s27 + $0x20] sm:$0xff]  ;;  %v819_v20 = vld [vmem:[%s15284_s27 + $0x38] sm:$0xff]  ;;  %vm7227_vm3 = vcmask 785408   ;;  %vm9478_vm4 = vcmask 392192  }
  0x45   : > { %4361 = vmatpush.bf16.msrb.mxu1 %v10633_v14  ;;  %v14347_v14 = vld [vmem:[%s21619_s7 + $0x11e4] sm:$0xf0]  ;;  %v14197_v26 = vld [vmem:[%s21619_s7 + $0xd34] sm:$0xf0]  ;;  %v11448_v27 = vld [vmem:[%s21619_s7 + $0xea0] sm:$0xf]  ;;  %v15449_v37 = vpack.c.bf16 %v816_v19, %v816_v19 }
  0x46   : > { %4374 = vmatpush.bf16.msrb.mxu2 %v10825_v15  ;;  %v818_v15 = vld [vmem:[%s15284_s27 + $0x30] sm:$0xff]  ;;  %v817_v28 = vld [vmem:[%s15284_s27 + $0x28] sm:$0xff]  ;;  %v11857_v30 = vor.u32 %v14347_v14, %v11856_v13  ;;  %v14245_v31 = vld [vmem:[%s21619_s7 + $0xeb4] sm:$0xf0]  ;;  %v11257_v39 = vor.u32 %v14197_v26, %v11256_v18  ;;  %vm9487_vm5 = vcmask 7168  }
  0x47   : > { %4387 = vmatpush.bf16.msrb.mxu3 %v11017_v25  ;;  %v11665_v25 = vor.u32 %v14299_v10, %v11664_v9  ;;  %v11832_v35 = vld [vmem:[%s21619_s7 + $0x11a0] sm:$0xf]  ;;  %v14341_v36 = vld [vmem:[%s21619_s7 + $0x11b4] sm:$0xf0]  ;;  %v15453_v40 = vpack.c.bf16 %v817_v28, %v817_v28  ;;  %v11449_v41 = vor.u32 %v14245_v31, %v11448_v27  ;;  %v11232_v43 = vld [vmem:[%s21619_s7 + $0xcf0] sm:$0xf] }
  0x48   : > { %4349 = vmatpush.bf16.msrb.mxu0 %v10417_v32  ;;  %v11640_v32 = vld [vmem:[%s21619_s7 + $0x1020] sm:$0xf]  ;;  %v14239_v47 = vld [vmem:[%s21619_s7 + $0xe84] sm:$0xf0]  ;;  %v11616_v48 = vld [vmem:[%s21619_s7 + $0xff0] sm:$0xf] }
  0x49   : > { %4362 = vmatpush.bf16.msrb.mxu1 %v10609_v33  ;;  %v14293_v33 = vld [vmem:[%s21619_s7 + $0x1034] sm:$0xf0]  ;;  %v14287_v49 = vld [vmem:[%s21619_s7 + $0x1004] sm:$0xf0]  ;;  %v11208_v55 = vld [vmem:[%s21619_s7 + $0xcc0] sm:$0xf] }
  0x4a   : > { %4375 = vmatpush.bf16.msrb.mxu2 %v10801_v34  ;;  %v15441_v34 = vpack.c.bf16 %v818_v15, %v818_v15  ;;  %v11641_v42 = vor.u32 %v14293_v33, %v11640_v32  ;;  %v14335_v51 = vld [vmem:[%s21619_s7 + $0x1184] sm:$0xf0]  ;;  %v11617_v54 = vor.u32 %v14287_v49, %v11616_v48  ;;  %v11400_v57 = vld [vmem:[%s21619_s7 + $0xe40] sm:$0xf]  ;;  %v14281_v61 = vld [vmem:[%s21619_s7 + $0xfd4] sm:$0xf0] }
  0x4b   : > { %4388 = vmatpush.bf16.msrb.mxu3 %v10993_v38  ;;  %v15451_v38 = vpack.c.bf16 %v819_v20, %v819_v20  ;;  %v11784_v62 = vld [vmem:[%s21619_s7 + $0x1140] sm:$0xf]  ;;  %v14329_v63 = vld [vmem:[%s21619_s7 + $0x1154] sm:$0xf0]  ;;  %v11184_v3 = vld [vmem:[%s21619_s7 + $0xc90] sm:$0xf] }
  0x4c   : > { %4350 = vmatpush.bf16.msrb.mxu0 %v10393_v44  ;;  %v14191_v44 = vld [vmem:[%s21619_s7 + $0xd04] sm:$0xf0]  ;;  %v11376_v5 = vld [vmem:[%s21619_s7 + $0xe10] sm:$0xf]  ;;  %v11785_v6 = vor.u32 %v14329_v63, %v11784_v62  ;;  %v11160_v15 = vld [vmem:[%s21619_s7 + $0xc60] sm:$0xf] }
  0x4d   : > { %4363 = vmatpush.bf16.msrb.mxu1 %v10585_v45  ;;  %v11424_v45 = vld [vmem:[%s21619_s7 + $0xe70] sm:$0xf]  ;;  %v11233_v52 = vor.u32 %v14191_v44, %v11232_v43  ;;  %v14179_v4 = vld [vmem:[%s21619_s7 + $0xca4] sm:$0xf0]  ;;  %v14221_v19 = vld [vmem:[%s21619_s7 + $0xdf4] sm:$0xf0] }
  0x4e   : > { %4376 = vmatpush.bf16.msrb.mxu2 %v10777_v46  ;;  %v11833_v46 = vor.u32 %v14341_v36, %v11832_v35  ;;  %v11425_v53 = vor.u32 %v14239_v47, %v11424_v45  ;;  %v11568_v8 = vld [vmem:[%s21619_s7 + $0xf90] sm:$0xf]  ;;  %v14275_v9 = vld [vmem:[%s21619_s7 + $0xfa4] sm:$0xf0]  ;;  %v11544_v20 = vld [vmem:[%s21619_s7 + $0xf60] sm:$0xf] }
  0x4f   : > { %4389 = vmatpush.bf16.msrb.mxu3 %v10969_v50  ;;  %v11808_v50 = vld [vmem:[%s21619_s7 + $0x1170] sm:$0xf]  ;;  %v11569_v14 = vor.u32 %v14275_v9, %v11568_v8  ;;  %v14317_v26 = vld [vmem:[%s21619_s7 + $0x10f4] sm:$0xf0]  ;;  %v14167_v32 = vld [vmem:[%s21619_s7 + $0xc44] sm:$0xf0] }
  0x50   : > { %4351 = vmatpush.bf16.msrb.mxu0 %v10369_v56  ;;  %v14185_v56 = vld [vmem:[%s21619_s7 + $0xcd4] sm:$0xf0]  ;;  %v11809_v58 = vor.u32 %v14335_v51, %v11808_v50  ;;  %v11760_v10 = vld [vmem:[%s21619_s7 + $0x1110] sm:$0xf]  ;;  %v14215_v36 = vld [vmem:[%s21619_s7 + $0xdc4] sm:$0xf0] }
  0x51   : > { %4364 = vmatpush.bf16.msrb.mxu1 %v10561_v59  ;;  %v14233_v59 = vld [vmem:[%s21619_s7 + $0xe54] sm:$0xf0]  ;;  %v11136_v31 = vld [vmem:[%s21619_s7 + $0xc30] sm:$0xf]  ;;  %v14311_v43 = vld [vmem:[%s21619_s7 + $0x10c4] sm:$0xf0] }
  0x52   : > { %4377 = vmatpush.bf16.msrb.mxu2 %v10753_v60  ;;  %v11592_v60 = vld [vmem:[%s21619_s7 + $0xfc0] sm:$0xf]  ;;  %v11401_v1 = vor.u32 %v14233_v59, %v11400_v57  ;;  %v11328_v33 = vld [vmem:[%s21619_s7 + $0xdb0] sm:$0xf]  ;;  %v11137_v44 = vor.u32 %v14167_v32, %v11136_v31  ;;  %v14209_v50 = vld [vmem:[%s21619_s7 + $0xd94] sm:$0xf0] }
  0x53   : > { %4390 = vmatpush.bf16.msrb.mxu3 %v10945_v0  ;;  %v11209_v0 = vor.u32 %v14185_v56, %v11208_v55  ;;  %v11593_v2 = vor.u32 %v14281_v61, %v11592_v60  ;;  %v11112_v45 = vld [vmem:[%s21619_s7 + $0xc00] sm:$0xf]  ;;  %v11329_v47 = vor.u32 %v14215_v36, %v11328_v33  ;;  %v14305_v55 = vld [vmem:[%s21619_s7 + $0x1094] sm:$0xf0]  ;;  %v13816_v56 = vld [vmem:[%s21619_s7 + $0x154] sm:$0xf] }
  0x54   : > { %4352 = vmatpush.bf16.msrb.mxu0 %v10345_v7  ;;  %v14227_v7 = vld [vmem:[%s21619_s7 + $0xe24] sm:$0xf0]  ;;  %v11304_v49 = vld [vmem:[%s21619_s7 + $0xd80] sm:$0xf]  ;;  %v9746_v57 = vld [vmem:[%s21619_s7 + $0x168] sm:$0xf0] }
  0x55   : > { %4365 = vmatpush.bf16.msrb.mxu1 %v10537_v11  ;;  %v14323_v11 = vld [vmem:[%s21619_s7 + $0x1124] sm:$0xf0]  ;;  %v11377_v13 = vor.u32 %v14227_v7, %v11376_v5  ;;  %v11496_v51 = vld [vmem:[%s21619_s7 + $0xf00] sm:$0xf]  ;;  %v9938_v60 = vld [vmem:[%s21619_s7 + $0x2e8] sm:$0xf0]  ;;  %v11305_v63 = vor.u32 %v14209_v50, %v11304_v49  ;;  %v9749_v5 = vor.u32 %v13816_v56, %v9746_v57 }
  0x56   : > { %4378 = vmatpush.bf16.msrb.mxu2 %v10729_v12  ;;  %v11185_v12 = vor.u32 %v14179_v4, %v11184_v3  ;;  %v11761_v18 = vor.u32 %v14323_v11, %v11760_v10  ;;  %v13912_v61 = vld [vmem:[%s21619_s7 + $0x454] sm:$0xf]  ;;  %v10130_v62 = vld [vmem:[%s21619_s7 + $0x468] sm:$0xf0]  ;;  %v820_v3 = vld [vmem:[%s15284_s27 + $0x40] sm:$0xff] }
  0x57   : > { %4391 = vmatpush.bf16.msrb.mxu3 %v10921_v16  ;;  %4353 = vmatmul.bf16.vlgmr.msrb.gmra.mxu0 %v15449_v37  ;;  %v14173_v16 = vld [vmem:[%s21619_s7 + $0xc74] sm:$0xf0]  ;;  %v821_v7 = vld [vmem:[%s15284_s27 + $0x48] sm:$0xff]  ;;  %v10133_v10 = vor.u32 %v13912_v61, %v10130_v62  ;;  %v13810_v11 = vld [vmem:[%s21619_s7 + $0x124] sm:$0xf] }
  0x58   : > { %4397 = vmatpush.bf16.msra.mxu0 %v11281_v17  ;;  %4366 = vmatmul.bf16.vlgmr.msrb.gmra.mxu1 %v15453_v40  ;;  %v11352_v17 = vld [vmem:[%s21619_s7 + $0xde0] sm:$0xf]  ;;  %v11161_v27 = vor.u32 %v14173_v16, %v11160_v15  ;;  %v823_v8 = vld [vmem:[%s15284_s27 + $0x58] sm:$0xff]  ;;  %v15640_v15 = vpack.c.bf16 %v820_v3, %v820_v3  ;;  %v13804_v31 = vld [vmem:[%s21619_s7 + $0xf4] sm:$0xf] }
  0x59   : > { %4410 = vmatpush.bf16.msra.mxu1 %v11473_v24  ;;  %4379 = vmatmul.bf16.vlgmr.msrb.gmra.mxu2 %v15441_v34  ;;  %v14269_v24 = vld [vmem:[%s21619_s7 + $0xf74] sm:$0xf0]  ;;  %v11353_v28 = vor.u32 %v14221_v19, %v11352_v17  ;;  %v9914_v16 = vld [vmem:[%s21619_s7 + $0x2b8] sm:$0xf0]  ;;  %v13906_v17 = vld [vmem:[%s21619_s7 + $0x424] sm:$0xf] }
  0x5a   : > { %4423 = vmatpush.bf16.msra.mxu2 %v11665_v25  ;;  %4392 = vmatmul.bf16.vlgmr.msrb.gmra.mxu3 %v15451_v38  ;;  %v11736_v25 = vld [vmem:[%s21619_s7 + $0x10e0] sm:$0xf]  ;;  %v9698_v32 = vld [vmem:[%s21619_s7 + $0x108] sm:$0xf0]  ;;  %v13852_v33 = vld [vmem:[%s21619_s7 + $0x274] sm:$0xf] }
  0x5b   : > { %4436 = vmatpush.bf16.msra.mxu3 %v11857_v30  ;;  %v11545_v30 = vor.u32 %v14269_v24, %v11544_v20  ;;  %v11737_v35 = vor.u32 %v14317_v26, %v11736_v25  ;;  %v15653_v20 = vpack.c.bf16 %v821_v7, %v821_v7  ;;  %v13954_v24 = vld [vmem:[%s21619_s7 + $0x5a4] sm:$0xf]  ;;  %v10298_v25 = vld [vmem:[%s21619_s7 + $0x5b8] sm:$0xf0]  ;;  %v15661_v26 = vpack.c.bf16 %v823_v8, %v823_v8  ;;  %v9890_v36 = vld [vmem:[%s21619_s7 + $0x288] sm:$0xf0] }
  0x5c   : > { %4398 = vmatpush.bf16.msra.mxu0 %v11257_v39  ;;  %v11520_v39 = vld [vmem:[%s21619_s7 + $0xf30] sm:$0xf]  ;;  %v13846_v49 = vld [vmem:[%s21619_s7 + $0x244] sm:$0xf]  ;;  %v13840_v61 = vld [vmem:[%s21619_s7 + $0x214] sm:$0xf] }
  0x5d   : > { %4411 = vmatpush.bf16.msra.mxu1 %v11449_v41  ;;  %v14263_v41 = vld [vmem:[%s21619_s7 + $0xf44] sm:$0xf0]  ;;  %v10226_v3 = vld [vmem:[%s21619_s7 + $0x528] sm:$0xf0]  ;;  %v13786_v7 = vld [vmem:[%s21619_s7 + $0x64] sm:$0xf] }
  0x5e   : > { %4424 = vmatpush.bf16.msra.mxu2 %v11641_v42  ;;  %v11712_v42 = vld [vmem:[%s21619_s7 + $0x10b0] sm:$0xf]  ;;  %v11521_v48 = vor.u32 %v14263_v41, %v11520_v39  ;;  %v13900_v39 = vld [vmem:[%s21619_s7 + $0x3f4] sm:$0xf]  ;;  %v10082_v41 = vld [vmem:[%s21619_s7 + $0x408] sm:$0xf0] }
  0x5f   : > { %4437 = vmatpush.bf16.msra.mxu3 %v11833_v46  ;;  %v14161_v46 = vld [vmem:[%s21619_s7 + $0xc14] sm:$0xf0]  ;;  %v9626_v8 = vld [vmem:[%s21619_s7 + $0x78] sm:$0xf0] }
  0x60   : > { %4399 = vmatpush.bf16.msra.mxu0 %v11233_v52  ;;  %v11713_v52 = vor.u32 %v14311_v43, %v11712_v42  ;;  %v11113_v59 = vor.u32 %v14161_v46, %v11112_v45  ;;  %v13948_v42 = vld [vmem:[%s21619_s7 + $0x574] sm:$0xf]  ;;  %v10274_v43 = vld [vmem:[%s21619_s7 + $0x588] sm:$0xf0]  ;;  %v9893_v45 = vor.u32 %v13852_v33, %v9890_v36  ;;  %v10085_v46 = vor.u32 %v13900_v39, %v10082_v41  ;;  %v13774_v41 = vld [vmem:[%s21619_s7 + $0x4] sm:$0xf] }
  0x61   : > { %4412 = vmatpush.bf16.msra.mxu1 %v11425_v53  ;;  %v14257_v53 = vld [vmem:[%s21619_s7 + $0xf14] sm:$0xf0]  ;;  %v10277_v50 = vor.u32 %v13948_v42, %v10274_v43  ;;  %v9986_v33 = vld [vmem:[%s21619_s7 + $0x348] sm:$0xf0]  ;;  %v9578_v42 = vld [vmem:[%s21619_s7 + $0x18] sm:$0xf0] }
  0x62   : > { %4425 = vmatpush.bf16.msra.mxu2 %v11617_v54  ;;  %v11688_v54 = vld [vmem:[%s21619_s7 + $0x1080] sm:$0xf]  ;;  %v10178_v36 = vld [vmem:[%s21619_s7 + $0x4c8] sm:$0xf0] }
  0x63   : > { %4438 = vmatpush.bf16.msra.mxu3 %v11809_v58  ;;  %v13864_v58 = vld [vmem:[%s21619_s7 + $0x2d4] sm:$0xf]  ;;  %v11689_v4 = vor.u32 %v14305_v55, %v11688_v54  ;;  %v13942_v54 = vld [vmem:[%s21619_s7 + $0x544] sm:$0xf]  ;;  %v10250_v55 = vld [vmem:[%s21619_s7 + $0x558] sm:$0xf0] }
  0x64   : > { %4400 = vmatpush.bf16.msra.mxu0 %v11209_v0  ;;  %v11497_v0 = vor.u32 %v14257_v53, %v11496_v51  ;;  %v9941_v9 = vor.u32 %v13864_v58, %v9938_v60  ;;  %v9866_v51 = vld [vmem:[%s21619_s7 + $0x258] sm:$0xf0]  ;;  %v9650_v60 = vld [vmem:[%s21619_s7 + $0xa8] sm:$0xf0]  ;;  %v10253_v62 = vor.u32 %v13942_v54, %v10250_v55  ;;  %v14056_v54 = vld [vmem:[%s21619_s7 + $0x8d4] sm:$0xf]  ;;  %v9581_v55 = vor.u32 %v13774_v41, %v9578_v42 }
  0x65   : > { %4413 = vmatpush.bf16.msra.mxu1 %v11401_v1  ;;  %v13960_v1 = vld [vmem:[%s21619_s7 + $0x5d4] sm:$0xf]  ;;  %v10058_v53 = vld [vmem:[%s21619_s7 + $0x3d8] sm:$0xf0]  ;;  %v9869_v57 = vor.u32 %v13846_v49, %v9866_v51  ;;  %v14038_v41 = vld [vmem:[%s21619_s7 + $0x844] sm:$0xf] }
  0x66   : > { %4426 = vmatpush.bf16.msra.mxu2 %v11593_v2  ;;  %v10322_v2 = vld [vmem:[%s21619_s7 + $0x5e8] sm:$0xf0]  ;;  %v9962_v49 = vld [vmem:[%s21619_s7 + $0x318] sm:$0xf0] }
  0x67   : > { %4439 = vmatpush.bf16.msra.mxu3 %v11785_v6  ;;  %v822_v6 = vld [vmem:[%s15284_s27 + $0x50] sm:$0xff]  ;;  %v10154_v51 = vld [vmem:[%s21619_s7 + $0x498] sm:$0xf0]  ;;  %s21626_s27 = sld [smem:[#allocation8_spill]] }
  0x68   : > { %4401 = vmatpush.bf16.msra.mxu0 %v11185_v12  ;;  %v9722_v12 = vld [vmem:[%s21619_s7 + $0x138] sm:$0xf0]  ;;  %v15651_v19 = vpack.c.bf16 %v822_v6, %v822_v6 }
  0x69   : > { %4414 = vmatpush.bf16.msra.mxu1 %v11377_v13  ;;  %v13858_v13 = vld [vmem:[%s21619_s7 + $0x2a4] sm:$0xf] }
  0x6a   : > { %4427 = vmatpush.bf16.msra.mxu2 %v11569_v14  ;;  %v10325_v14 = vor.u32 %v13960_v1, %v10322_v2  ;;  %v10034_v1 = vld [vmem:[%s21619_s7 + $0x3a8] sm:$0xf0]  ;;  %v13936_v2 = vld [vmem:[%s21619_s7 + $0x514] sm:$0xf] }
  0x6b   : > { %4440 = vmatpush.bf16.msra.mxu3 %v11761_v18  ;;  %v10106_v18 = vld [vmem:[%s21619_s7 + $0x438] sm:$0xf0] }
  0x6c   : > { %4402 = vmatpush.bf16.msra.mxu0 %v11161_v27  ;;  %v9725_v27 = vor.u32 %v13810_v11, %v9722_v12  ;;  %v9818_v11 = vld [vmem:[%s21619_s7 + $0x1f8] sm:$0xf0]  ;;  %v13882_v12 = vld [vmem:[%s21619_s7 + $0x364] sm:$0xf] }
  0x6d   : > { %4415 = vmatpush.bf16.msra.mxu1 %v11353_v28  ;;  %v9917_v28 = vor.u32 %v13858_v13, %v9914_v16  ;;  %v10010_v13 = vld [vmem:[%s21619_s7 + $0x378] sm:$0xf0] }
  0x6e   : > { %4428 = vmatpush.bf16.msra.mxu2 %v11545_v30  ;;  %v10109_v30 = vor.u32 %v13906_v17, %v10106_v18  ;;  %v10202_v16 = vld [vmem:[%s21619_s7 + $0x4f8] sm:$0xf0]  ;;  %v9629_v17 = vor.u32 %v13786_v7, %v9626_v8  ;;  %v14098_v8 = vld [vmem:[%s21619_s7 + $0xa24] sm:$0xf] }
  0x6f   : > { %4441 = vmatpush.bf16.msra.mxu3 %v11737_v35  ;;  %v10301_v35 = vor.u32 %v13954_v24, %v10298_v25  ;;  %v10013_v24 = vor.u32 %v13882_v12, %v10010_v13  ;;  %v13780_v25 = vld [vmem:[%s21619_s7 + $0x34] sm:$0xf]  ;;  %v10682_v7 = vld [vmem:[%s21619_s7 + $0x8b8] sm:$0xf0] }
  0x70   : > { %4403 = vmatpush.bf16.msra.mxu0 %v11137_v44  ;;  %v9701_v44 = vor.u32 %v13804_v31, %v9698_v32  ;;  %v9794_v31 = vld [vmem:[%s21619_s7 + $0x1c8] sm:$0xf0]  ;;  %v13876_v32 = vld [vmem:[%s21619_s7 + $0x334] sm:$0xf] }
  0x71   : > { %4416 = vmatpush.bf16.msra.mxu1 %v11329_v47  ;;  %v13798_v47 = vld [vmem:[%s21619_s7 + $0xc4] sm:$0xf] }
  0x72   : > { %4429 = vmatpush.bf16.msra.mxu2 %v11521_v48  ;;  %v9674_v48 = vld [vmem:[%s21619_s7 + $0xd8] sm:$0xf0] }
  0x73   : > { %4442 = vmatpush.bf16.msra.mxu3 %v11713_v52  ;;  %v13894_v52 = vld [vmem:[%s21619_s7 + $0x3c4] sm:$0xf]  ;;  %v9677_v56 = vor.u32 %v13798_v47, %v9674_v48 }
  0x74   : > { %4404 = vmatpush.bf16.msra.mxu0 %v11113_v59  ;;  %v10061_v58 = vor.u32 %v13894_v52, %v10058_v53  ;;  %v13792_v59 = vld [vmem:[%s21619_s7 + $0x94] sm:$0xf]  ;;  %v13870_v47 = vld [vmem:[%s21619_s7 + $0x304] sm:$0xf]  ;;  %v10514_v53 = vld [vmem:[%s21619_s7 + $0x768] sm:$0xf0] }
  0x75   : > { %4417 = vmatpush.bf16.msra.mxu1 %v11305_v63  ;;  %v9842_v63 = vld [vmem:[%s21619_s7 + $0x228] sm:$0xf0]  ;;  %v14008_v52 = vld [vmem:[%s21619_s7 + $0x754] sm:$0xf] }
  0x76   : > { %4430 = vmatpush.bf16.msra.mxu2 %v11497_v0  ;;  %v13888_v0 = vld [vmem:[%s21619_s7 + $0x394] sm:$0xf] }
  0x77   : > { %4443 = vmatpush.bf16.msra.mxu3 %v11689_v4  ;;  %4405 = vmatmul.bf16.vlgmr.msra.gmra.mxu0 %v15640_v15  ;;  %v9653_v4 = vor.u32 %v13792_v59, %v9650_v60  ;;  %v10037_v6 = vor.u32 %v13888_v0, %v10034_v1  ;;  %v9965_v60 = vor.u32 %v13870_v47, %v9962_v49  ;;  %v11018_v47 = vld [vmem:[%s21619_s7 + $0xb58] sm:$0xf0] }
  0x78   : > { %4449 = vmatpush.bf16.msrb.mxu0 %v9749_v5  ;;  %4418 = vmatmul.bf16.vlgmr.msra.gmra.mxu1 %v15653_v20  ;;  %v9845_v5 = vor.u32 %v13840_v61, %v9842_v63  ;;  %v14152_v61 = vld [vmem:[%s21619_s7 + $0xbd4] sm:$0xf]  ;;  %v10517_v0 = vor.u32 %v14008_v52, %v10514_v53  ;;  %v10418_v52 = vld [vmem:[%s21619_s7 + $0x6a8] sm:$0xf0] }
  0x79   : > { %4462 = vmatpush.bf16.msrb.mxu1 %v9941_v9  ;;  %4431 = vmatmul.bf16.vlgmr.msra.gmra.mxu2 %v15651_v19  ;;  %v13834_v9 = vld [vmem:[%s21619_s7 + $0x1e4] sm:$0xf]  ;;  %v14032_v53 = vld [vmem:[%s21619_s7 + $0x814] sm:$0xf] }
  0x7a   : > { %4475 = vmatpush.bf16.msrb.mxu2 %v10133_v10  ;;  %4444 = vmatmul.bf16.vlgmr.msra.gmra.mxu3 %v15661_v26  ;;  %v10229_v10 = vor.u32 %v13936_v2, %v10226_v3  ;;  %v9821_v18 = vor.u32 %v13834_v9, %v9818_v11  ;;  %v14002_v3 = vld [vmem:[%s21619_s7 + $0x724] sm:$0xf]  ;;  %v10874_v9 = vld [vmem:[%s21619_s7 + $0xa38] sm:$0xf0] }
  0x7b   : > { %4488 = vmatpush.bf16.msrb.mxu3 %v10325_v14  ;;  %v13930_v14 = vld [vmem:[%s21619_s7 + $0x4e4] sm:$0xf]  ;;  %v11066_v11 = vld [vmem:[%s21619_s7 + $0xbb8] sm:$0xf0] }
  0x7c   : > { %4450 = vmatpush.bf16.msrb.mxu0 %v9725_v27  ;;  %v9602_v27 = vld [vmem:[%s21619_s7 + $0x48] sm:$0xf0] }
  0x7d   : > { %4463 = vmatpush.bf16.msrb.mxu1 %v9917_v28  ;;  %v13828_v28 = vld [vmem:[%s21619_s7 + $0x1b4] sm:$0xf]  ;;  %v9605_v39 = vor.u32 %v13780_v25, %v9602_v27  ;;  %v10658_v25 = vld [vmem:[%s21619_s7 + $0x888] sm:$0xf0] }
  0x7e   : > { %4476 = vmatpush.bf16.msrb.mxu2 %v10109_v30  ;;  %v10205_v30 = vor.u32 %v13930_v14, %v10202_v16  ;;  %v9797_v43 = vor.u32 %v13828_v28, %v9794_v31  ;;  %v10877_v14 = vor.u32 %v14098_v8, %v10874_v9  ;;  %v13996_v16 = vld [vmem:[%s21619_s7 + $0x6f4] sm:$0xf]  ;;  %v10850_v28 = vld [vmem:[%s21619_s7 + $0xa08] sm:$0xf0] }
  0x7f   : > { %4489 = vmatpush.bf16.msrb.mxu3 %v10301_v35  ;;  %v13924_v35 = vld [vmem:[%s21619_s7 + $0x4b4] sm:$0xf]  ;;  %v11042_v31 = vld [vmem:[%s21619_s7 + $0xb88] sm:$0xf0] }
  0x80   : > { %4451 = vmatpush.bf16.msrb.mxu0 %v9701_v44  ;;  %v9989_v44 = vor.u32 %v13876_v32, %v9986_v33  ;;  %v10181_v48 = vor.u32 %v13924_v35, %v10178_v36  ;;  %v14092_v27 = vld [vmem:[%s21619_s7 + $0x9f4] sm:$0xf]  ;;  %v13990_v36 = vld [vmem:[%s21619_s7 + $0x6c4] sm:$0xf] }
  0x81   : > { %4464 = vmatpush.bf16.msrb.mxu1 %v9893_v45  ;;  %v13822_v45 = vld [vmem:[%s21619_s7 + $0x184] sm:$0xf]  ;;  %v10853_v35 = vor.u32 %v14092_v27, %v10850_v28 }
  0x82   : > { %4477 = vmatpush.bf16.msrb.mxu2 %v10085_v46  ;;  %v9770_v46 = vld [vmem:[%s21619_s7 + $0x198] sm:$0xf0]  ;;  %v13966_v28 = vld [vmem:[%s21619_s7 + $0x604] sm:$0xf] }
  0x83   : > { %4490 = vmatpush.bf16.msrb.mxu3 %v10277_v50  ;;  %v13918_v50 = vld [vmem:[%s21619_s7 + $0x484] sm:$0xf]  ;;  %v9773_v59 = vor.u32 %v13822_v45, %v9770_v46  ;;  %v10826_v45 = vld [vmem:[%s21619_s7 + $0x9d8] sm:$0xf0] }
  0x84   : > { %4452 = vmatpush.bf16.msrb.mxu0 %v9677_v56  ;;  %v10706_v56 = vld [vmem:[%s21619_s7 + $0x8e8] sm:$0xf0]  ;;  %v10157_v63 = vor.u32 %v13918_v50, %v10154_v51  ;;  %v14134_v46 = vld [vmem:[%s21619_s7 + $0xb44] sm:$0xf]  ;;  %v13984_v51 = vld [vmem:[%s21619_s7 + $0x694] sm:$0xf] }
  0x85   : > { %4465 = vmatpush.bf16.msrb.mxu1 %v9869_v57  ;;  %v14104_v57 = vld [vmem:[%s21619_s7 + $0xa54] sm:$0xf]  ;;  %v10709_v1 = vor.u32 %v14056_v54, %v10706_v56  ;;  %v11021_v54 = vor.u32 %v14134_v46, %v11018_v47 }
  0x86   : > { %4478 = vmatpush.bf16.msrb.mxu2 %v10061_v58  ;;  %v10898_v58 = vld [vmem:[%s21619_s7 + $0xa68] sm:$0xf0]  ;;  %v14080_v56 = vld [vmem:[%s21619_s7 + $0x994] sm:$0xf] }
  0x87   : > { %4491 = vmatpush.bf16.msrb.mxu3 %v10253_v62  ;;  %v11090_v62 = vld [vmem:[%s21619_s7 + $0xbe8] sm:$0xf0]  ;;  %v10901_v2 = vor.u32 %v14104_v57, %v10898_v58  ;;  %v14128_v58 = vld [vmem:[%s21619_s7 + $0xb14] sm:$0xf] }
  0x88   : > { %4453 = vmatpush.bf16.msrb.mxu0 %v9653_v4  ;;  %v10490_v4 = vld [vmem:[%s21619_s7 + $0x738] sm:$0xf0]  ;;  %v10802_v57 = vld [vmem:[%s21619_s7 + $0x9a8] sm:$0xf0]  ;;  %v14248_v46 = vld [vmem:[%s21619_s7 + $0xed4] sm:$0xf] }
  0x89   : > { %4466 = vmatpush.bf16.msrb.mxu1 %v9845_v5  ;;  %v14050_v5 = vld [vmem:[%s21619_s7 + $0x8a4] sm:$0xf]  ;;  %v10493_v12 = vor.u32 %v14002_v3, %v10490_v4  ;;  %v10586_v3 = vld [vmem:[%s21619_s7 + $0x7f8] sm:$0xf0] }
  0x8a   : > { %4479 = vmatpush.bf16.msrb.mxu2 %v10037_v6  ;;  %v11093_v6 = vor.u32 %v14152_v61, %v11090_v62  ;;  %v10685_v13 = vor.u32 %v14050_v5, %v10682_v7  ;;  %v10805_v62 = vor.u32 %v14080_v56, %v10802_v57  ;;  %v14074_v4 = vld [vmem:[%s21619_s7 + $0x964] sm:$0xf]  ;;  %v10778_v5 = vld [vmem:[%s21619_s7 + $0x978] sm:$0xf0] }
  0x8b   : > { %4492 = vmatpush.bf16.msrb.mxu3 %v10229_v10  ;;  %v14146_v10 = vld [vmem:[%s21619_s7 + $0xba4] sm:$0xf]  ;;  %v10970_v7 = vld [vmem:[%s21619_s7 + $0xaf8] sm:$0xf0] }
  0x8c   : > { %4454 = vmatpush.bf16.msrb.mxu0 %v9629_v17  ;;  %v10466_v17 = vld [vmem:[%s21619_s7 + $0x708] sm:$0xf0] }
  0x8d   : > { %4467 = vmatpush.bf16.msrb.mxu1 %v9821_v18  ;;  %v14044_v18 = vld [vmem:[%s21619_s7 + $0x874] sm:$0xf]  ;;  %v10469_v32 = vor.u32 %v13996_v16, %v10466_v17  ;;  %v10562_v16 = vld [vmem:[%s21619_s7 + $0x7c8] sm:$0xf0] }
  0x8e   : > { %4480 = vmatpush.bf16.msrb.mxu2 %v10013_v24  ;;  %v11069_v24 = vor.u32 %v14146_v10, %v11066_v11  ;;  %v10661_v33 = vor.u32 %v14044_v18, %v10658_v25  ;;  %v10781_v10 = vor.u32 %v14074_v4, %v10778_v5  ;;  %v13972_v11 = vld [vmem:[%s21619_s7 + $0x634] sm:$0xf]  ;;  %v10754_v18 = vld [vmem:[%s21619_s7 + $0x948] sm:$0xf0] }
  0x8f   : > { %4493 = vmatpush.bf16.msrb.mxu3 %v10205_v30  ;;  %v14140_v30 = vld [vmem:[%s21619_s7 + $0xb74] sm:$0xf]  ;;  %v10946_v25 = vld [vmem:[%s21619_s7 + $0xac8] sm:$0xf0] }
  0x90   : > { %4455 = vmatpush.bf16.msrb.mxu0 %v9605_v39  ;;  %v10442_v39 = vld [vmem:[%s21619_s7 + $0x6d8] sm:$0xf0]  ;;  %v11045_v42 = vor.u32 %v14140_v30, %v11042_v31  ;;  %v14068_v17 = vld [vmem:[%s21619_s7 + $0x934] sm:$0xf] }
  0x91   : > { %4468 = vmatpush.bf16.msrb.mxu1 %v9797_v43  ;;  %v10634_v43 = vld [vmem:[%s21619_s7 + $0x858] sm:$0xf0] }
  0x92   : > { %4481 = vmatpush.bf16.msrb.mxu2 %v9989_v44  ;;  %v14086_v44 = vld [vmem:[%s21619_s7 + $0x9c4] sm:$0xf]  ;;  %v10637_v49 = vor.u32 %v14038_v41, %v10634_v43  ;;  %v10346_v30 = vld [vmem:[%s21619_s7 + $0x618] sm:$0xf0] }
  0x93   : > { %4494 = vmatpush.bf16.msrb.mxu3 %v10181_v48  ;;  %v10445_v48 = vor.u32 %v13990_v36, %v10442_v39  ;;  %v10829_v50 = vor.u32 %v14086_v44, %v10826_v45  ;;  %v14062_v36 = vld [vmem:[%s21619_s7 + $0x904] sm:$0xf]  ;;  %v10730_v41 = vld [vmem:[%s21619_s7 + $0x918] sm:$0xf0]  ;;  %v14200_v44 = vld [vmem:[%s21619_s7 + $0xd54] sm:$0xf]  ;;  %v10349_v47 = vor.u32 %v13966_v28, %v10346_v30 }
  0x94   : > { %4456 = vmatpush.bf16.msrb.mxu0 %v9581_v55  ;;  %v10610_v55 = vld [vmem:[%s21619_s7 + $0x828] sm:$0xf0]  ;;  %v10922_v43 = vld [vmem:[%s21619_s7 + $0xa98] sm:$0xf0]  ;;  %v14230_v28 = vld [vmem:[%s21619_s7 + $0xe44] sm:$0xf] }
  0x95   : > { %4469 = vmatpush.bf16.msrb.mxu1 %v9773_v59  ;;  %v10994_v59 = vld [vmem:[%s21619_s7 + $0xb28] sm:$0xf0]  ;;  %v10613_v61 = vor.u32 %v14032_v53, %v10610_v55  ;;  %v14344_v53 = vld [vmem:[%s21619_s7 + $0x11d4] sm:$0xf] }
  0x96   : > { %4482 = vmatpush.bf16.msrb.mxu2 %v9965_v60  ;;  %v10421_v60 = vor.u32 %v13984_v51, %v10418_v52  ;;  %v11282_v45 = vld [vmem:[%s21619_s7 + $0xd68] sm:$0xf0]  ;;  %v10733_v52 = vor.u32 %v14062_v36, %v10730_v41  ;;  %v11786_v36 = vld [vmem:[%s21619_s7 + $0x1158] sm:$0xf0] }
  0x97   : > { %4495 = vmatpush.bf16.msrb.mxu3 %v10157_v63  ;;  %4457 = vmatmul.bf16.vlgmr.msrb.gmra.mxu0 %v15297_v22  ;;  %v13978_v63 = vld [vmem:[%s21619_s7 + $0x664] sm:$0xf]  ;;  %v11285_v56 = vor.u32 %v14200_v44, %v11282_v45  ;;  %v11186_v44 = vld [vmem:[%s21619_s7 + $0xca8] sm:$0xf0]  ;;  %v14224_v45 = vld [vmem:[%s21619_s7 + $0xe14] sm:$0xf] }
  0x98   : > { %4501 = vmatpush.bf16.msra.mxu0 %v10517_v0  ;;  %4470 = vmatmul.bf16.vlgmr.msrb.gmra.mxu1 %v15311_v29  ;;  %v10394_v0 = vld [vmem:[%s21619_s7 + $0x678] sm:$0xf0] }
  0x99   : > { %4514 = vmatpush.bf16.msra.mxu1 %v10709_v1  ;;  %4483 = vmatmul.bf16.vlgmr.msrb.gmra.mxu2 %v15295_v21  ;;  %v14026_v1 = vld [vmem:[%s21619_s7 + $0x7e4] sm:$0xf]  ;;  %v10397_v8 = vor.u32 %v13978_v63, %v10394_v0  ;;  %v11450_v63 = vld [vmem:[%s21619_s7 + $0xeb8] sm:$0xf0] }
  0x9a   : > { %4527 = vmatpush.bf16.msra.mxu2 %v10901_v2  ;;  %4496 = vmatmul.bf16.vlgmr.msrb.gmra.mxu3 %v15299_v23  ;;  %v10997_v2 = vor.u32 %v14128_v58, %v10994_v59  ;;  %v10589_v9 = vor.u32 %v14026_v1, %v10586_v3  ;;  %v14194_v59 = vld [vmem:[%s21619_s7 + $0xd24] sm:$0xf]  ;;  %v11642_v1 = vld [vmem:[%s21619_s7 + $0x1038] sm:$0xf0] }
  0x9b   : > { %4540 = vmatpush.bf16.msra.mxu3 %v11093_v6  ;;  %v14122_v6 = vld [vmem:[%s21619_s7 + $0xae4] sm:$0xf]  ;;  %v11834_v3 = vld [vmem:[%s21619_s7 + $0x11b8] sm:$0xf0] }
  0x9c   : > { %4502 = vmatpush.bf16.msra.mxu0 %v10493_v12  ;;  %v10370_v12 = vld [vmem:[%s21619_s7 + $0x648] sm:$0xf0]  ;;  %v14290_v0 = vld [vmem:[%s21619_s7 + $0x1024] sm:$0xf] }
  0x9d   : > { %4515 = vmatpush.bf16.msra.mxu1 %v10685_v13  ;;  %v14020_v13 = vld [vmem:[%s21619_s7 + $0x7b4] sm:$0xf]  ;;  %v10373_v27 = vor.u32 %v13972_v11, %v10370_v12  ;;  %v11426_v11 = vld [vmem:[%s21619_s7 + $0xe88] sm:$0xf0] }
  0x9e   : > { %4528 = vmatpush.bf16.msra.mxu2 %v10877_v14  ;;  %v10973_v14 = vor.u32 %v14122_v6, %v10970_v7  ;;  %v10565_v31 = vor.u32 %v14020_v13, %v10562_v16  ;;  %v11645_v6 = vor.u32 %v14290_v0, %v11642_v1  ;;  %v14188_v7 = vld [vmem:[%s21619_s7 + $0xcf4] sm:$0xf]  ;;  %v11618_v13 = vld [vmem:[%s21619_s7 + $0x1008] sm:$0xf0] }
  0x9f   : > { %4541 = vmatpush.bf16.msra.mxu3 %v11069_v24  ;;  %v14116_v24 = vld [vmem:[%s21619_s7 + $0xab4] sm:$0xf]  ;;  %v11810_v16 = vld [vmem:[%s21619_s7 + $0x1188] sm:$0xf0] }
  0xa0   : > { %4503 = vmatpush.bf16.msra.mxu0 %v10469_v32  ;;  %v10757_v32 = vor.u32 %v14068_v17, %v10754_v18  ;;  %v10949_v39 = vor.u32 %v14116_v24, %v10946_v25  ;;  %v14284_v12 = vld [vmem:[%s21619_s7 + $0xff4] sm:$0xf]  ;;  %v14182_v25 = vld [vmem:[%s21619_s7 + $0xcc4] sm:$0xf] }
  0xa1   : > { %4516 = vmatpush.bf16.msra.mxu1 %v10661_v33  ;;  %v14014_v33 = vld [vmem:[%s21619_s7 + $0x784] sm:$0xf]  ;;  %v11621_v24 = vor.u32 %v14284_v12, %v11618_v13  ;;  %v11714_v12 = vld [vmem:[%s21619_s7 + $0x10c8] sm:$0xf0] }
  0xa2   : > { %4529 = vmatpush.bf16.msra.mxu2 %v10853_v35  ;;  %v10538_v35 = vld [vmem:[%s21619_s7 + $0x798] sm:$0xf0] }
  0xa3   : > { %4542 = vmatpush.bf16.msra.mxu3 %v11045_v42  ;;  %v14110_v42 = vld [vmem:[%s21619_s7 + $0xa84] sm:$0xf]  ;;  %v10541_v51 = vor.u32 %v14014_v33, %v10538_v35  ;;  %v11594_v33 = vld [vmem:[%s21619_s7 + $0xfd8] sm:$0xf0] }
  0xa4   : > { %4504 = vmatpush.bf16.msra.mxu0 %v10445_v48  ;;  %v11474_v48 = vld [vmem:[%s21619_s7 + $0xee8] sm:$0xf0]  ;;  %v10925_v55 = vor.u32 %v14110_v42, %v10922_v43  ;;  %v14326_v35 = vld [vmem:[%s21619_s7 + $0x1144] sm:$0xf]  ;;  %v14176_v43 = vld [vmem:[%s21619_s7 + $0xc94] sm:$0xf] }
  0xa5   : > { %4517 = vmatpush.bf16.msra.mxu1 %v10637_v49  ;;  %v14296_v49 = vld [vmem:[%s21619_s7 + $0x1054] sm:$0xf]  ;;  %v11477_v57 = vor.u32 %v14248_v46, %v11474_v48  ;;  %v11789_v46 = vor.u32 %v14326_v35, %v11786_v36  ;;  %v11690_v35 = vld [vmem:[%s21619_s7 + $0x1098] sm:$0xf0] }
  0xa6   : > { %4530 = vmatpush.bf16.msra.mxu2 %v10829_v50  ;;  %v11666_v50 = vld [vmem:[%s21619_s7 + $0x1068] sm:$0xf0]  ;;  %v14272_v48 = vld [vmem:[%s21619_s7 + $0xf94] sm:$0xf] }
  0xa7   : > { %4543 = vmatpush.bf16.msra.mxu3 %v11021_v54  ;;  %v11858_v54 = vld [vmem:[%s21619_s7 + $0x11e8] sm:$0xf0]  ;;  %v11669_v58 = vor.u32 %v14296_v49, %v11666_v50  ;;  %v14320_v50 = vld [vmem:[%s21619_s7 + $0x1114] sm:$0xf] }
  0xa8   : > { %4505 = vmatpush.bf16.msra.mxu0 %v10421_v60  ;;  %v11258_v60 = vld [vmem:[%s21619_s7 + $0xd38] sm:$0xf0]  ;;  %v11570_v49 = vld [vmem:[%s21619_s7 + $0xfa8] sm:$0xf0] }
  0xa9   : > { %4518 = vmatpush.bf16.msra.mxu1 %v10613_v61  ;;  %v14242_v61 = vld [vmem:[%s21619_s7 + $0xea4] sm:$0xf]  ;;  %v11261_v4 = vor.u32 %v14194_v59, %v11258_v60  ;;  %v11354_v59 = vld [vmem:[%s21619_s7 + $0xdf8] sm:$0xf0] }
  0xaa   : > { %4531 = vmatpush.bf16.msra.mxu2 %v10805_v62  ;;  %v11861_v62 = vor.u32 %v14344_v53, %v11858_v54  ;;  %v11453_v5 = vor.u32 %v14242_v61, %v11450_v63  ;;  %v11573_v54 = vor.u32 %v14272_v48, %v11570_v49  ;;  %v14266_v60 = vld [vmem:[%s21619_s7 + $0xf64] sm:$0xf]  ;;  %v11546_v61 = vld [vmem:[%s21619_s7 + $0xf78] sm:$0xf0]  ;;  %v13916_v48 = vld [vmem:[%s21619_s7 + $0x46c] sm:$0xf0] }
  0xab   : > { %4544 = vmatpush.bf16.msra.mxu3 %v10997_v2  ;;  %v14338_v2 = vld [vmem:[%s21619_s7 + $0x11a4] sm:$0xf]  ;;  %v11738_v63 = vld [vmem:[%s21619_s7 + $0x10f8] sm:$0xf0] }
  0xac   : > { %4506 = vmatpush.bf16.msra.mxu0 %v10397_v8  ;;  %v11234_v8 = vld [vmem:[%s21619_s7 + $0xd08] sm:$0xf0] }
  0xad   : > { %4519 = vmatpush.bf16.msra.mxu1 %v10589_v9  ;;  %v14236_v9 = vld [vmem:[%s21619_s7 + $0xe74] sm:$0xf]  ;;  %v11237_v17 = vor.u32 %v14188_v7, %v11234_v8  ;;  %v11330_v8 = vld [vmem:[%s21619_s7 + $0xdc8] sm:$0xf0] }
  0xae   : > { %4532 = vmatpush.bf16.msra.mxu2 %v10781_v10  ;;  %v11837_v10 = vor.u32 %v14338_v2, %v11834_v3  ;;  %v11429_v18 = vor.u32 %v14236_v9, %v11426_v11  ;;  %v11549_v3 = vor.u32 %v14266_v60, %v11546_v61  ;;  %v14260_v9 = vld [vmem:[%s21619_s7 + $0xf34] sm:$0xf]  ;;  %v13814_v60 = vld [vmem:[%s21619_s7 + $0x13c] sm:$0xf0]  ;;  %v9920_v61 = vld [vmem:[%s21619_s7 + $0x2a8] sm:$0xf] }
  0xaf   : > { %4545 = vmatpush.bf16.msra.mxu3 %v10973_v14  ;;  %v14332_v14 = vld [vmem:[%s21619_s7 + $0x1174] sm:$0xf] }
  0xb0   : > { %4507 = vmatpush.bf16.msra.mxu0 %v10373_v27  ;;  %v11210_v27 = vld [vmem:[%s21619_s7 + $0xcd8] sm:$0xf0]  ;;  %v11813_v30 = vor.u32 %v14332_v14, %v11810_v16  ;;  %v14308_v11 = vld [vmem:[%s21619_s7 + $0x10b4] sm:$0xf]  ;;  %v14158_v16 = vld [vmem:[%s21619_s7 + $0xc04] sm:$0xf] }
  0xb1   : > { %4520 = vmatpush.bf16.msra.mxu1 %v10565_v31  ;;  %v11402_v31 = vld [vmem:[%s21619_s7 + $0xe58] sm:$0xf0] }
  0xb2   : > { %4533 = vmatpush.bf16.msra.mxu2 %v10757_v32  ;;  %v14278_v32 = vld [vmem:[%s21619_s7 + $0xfc4] sm:$0xf]  ;;  %v11405_v41 = vor.u32 %v14230_v28, %v11402_v31  ;;  %v11306_v28 = vld [vmem:[%s21619_s7 + $0xd98] sm:$0xf0]  ;;  %v11717_v31 = vor.u32 %v14308_v11, %v11714_v12  ;;  %v9896_v11 = vld [vmem:[%s21619_s7 + $0x278] sm:$0xf] }
  0xb3   : > { %4546 = vmatpush.bf16.msra.mxu3 %v10949_v39  ;;  %v11213_v39 = vor.u32 %v14182_v25, %v11210_v27  ;;  %v11597_v42 = vor.u32 %v14278_v32, %v11594_v33  ;;  %v14206_v27 = vld [vmem:[%s21619_s7 + $0xd84] sm:$0xf]  ;;  %v11498_v32 = vld [vmem:[%s21619_s7 + $0xf18] sm:$0xf0] }
  0xb4   : > { %4508 = vmatpush.bf16.msra.mxu0 %v10349_v47  ;;  %v11378_v47 = vld [vmem:[%s21619_s7 + $0xe28] sm:$0xf0]  ;;  %v14302_v33 = vld [vmem:[%s21619_s7 + $0x1084] sm:$0xf] }
  0xb5   : > { %4521 = vmatpush.bf16.msra.mxu1 %v10541_v51  ;;  %v11762_v51 = vld [vmem:[%s21619_s7 + $0x1128] sm:$0xf0]  ;;  %v11381_v53 = vor.u32 %v14224_v45, %v11378_v47  ;;  %v10136_v47 = vld [vmem:[%s21619_s7 + $0x458] sm:$0xf] }
  0xb6   : > { %4534 = vmatpush.bf16.msra.mxu2 %v10733_v52  ;;  %v11189_v52 = vor.u32 %v14176_v43, %v11186_v44 }
  0xb7   : > { %4547 = vmatpush.bf16.msra.mxu3 %v10925_v55  ;;  %4509 = vmatmul.bf16.vlgmr.msra.gmra.mxu0 %v15449_v37  ;;  %v14170_v55 = vld [vmem:[%s21619_s7 + $0xc64] sm:$0xf]  ;;  %v4302_v1 = vpop.f32.mrf.mxu0 }
  0xb8   : > { %4553 = vmatpush.bf16.msrb.mxu0 %v11285_v56  ;;  %4522 = vmatmul.bf16.vlgmr.msra.gmra.mxu1 %v15453_v40  ;;  %v11162_v56 = vld [vmem:[%s21619_s7 + $0xc78] sm:$0xf0]  ;;  %v4315_v13 = vpop.f32.mrf.mxu1 }
  0xb9   : > { %4566 = vmatpush.bf16.msrb.mxu1 %v11477_v57  ;;  %4535 = vmatmul.bf16.vlgmr.msra.gmra.mxu2 %v15441_v34  ;;  %v14218_v57 = vld [vmem:[%s21619_s7 + $0xde4] sm:$0xf]  ;;  %v11165_v0 = vor.u32 %v14170_v55, %v11162_v56  ;;  %v11693_v55 = vor.u32 %v14302_v33, %v11690_v35  ;;  %v13850_v35 = vld [vmem:[%s21619_s7 + $0x25c] sm:$0xf0] }
  0xba   : > { %4579 = vmatpush.bf16.msrb.mxu2 %v11669_v58  ;;  %4548 = vmatmul.bf16.vlgmr.msra.gmra.mxu3 %v15451_v38  ;;  %v11765_v58 = vor.u32 %v14320_v50, %v11762_v51  ;;  %v11357_v2 = vor.u32 %v14218_v57, %v11354_v59  ;;  %v11309_v50 = vor.u32 %v14206_v27, %v11306_v28  ;;  %v9728_v59 = vld [vmem:[%s21619_s7 + $0x128] sm:$0xf] }
  0xbb   : > { %4592 = vmatpush.bf16.msrb.mxu3 %v11861_v62  ;;  %v14314_v62 = vld [vmem:[%s21619_s7 + $0x10e4] sm:$0xf] }
  0xbc   : > { %4554 = vmatpush.bf16.msrb.mxu0 %v11261_v4  ;;  %v14164_v4 = vld [vmem:[%s21619_s7 + $0xc34] sm:$0xf]  ;;  %v11741_v7 = vor.u32 %v14314_v62, %v11738_v63  ;;  %v4328_v36 = vpop.f32.mrf.mxu2 }
  0xbd   : > { %4567 = vmatpush.bf16.msrb.mxu1 %v11453_v5  ;;  %v11138_v5 = vld [vmem:[%s21619_s7 + $0xc48] sm:$0xf0] }
  0xbe   : > { %4580 = vmatpush.bf16.msrb.mxu2 %v11645_v6  ;;  %v14212_v6 = vld [vmem:[%s21619_s7 + $0xdb4] sm:$0xf]  ;;  %v11141_v14 = vor.u32 %v14164_v4, %v11138_v5  ;;  %v13958_v4 = vld [vmem:[%s21619_s7 + $0x5bc] sm:$0xf0]  ;;  %v9729_v5 = vor.u32 %v13814_v60, %v9728_v59 }
  0xbf   : > { %4593 = vmatpush.bf16.msrb.mxu3 %v11837_v10  ;;  %v11522_v10 = vld [vmem:[%s21619_s7 + $0xf48] sm:$0xf0]  ;;  %v4341_v44 = vpop.f32.mrf.mxu3  ;;  %v4304_v49 = vpop.f32.mrf.mxu0 }
  0xc0   : > { %4555 = vmatpush.bf16.msrb.mxu0 %v11237_v17  ;;  %v11114_v17 = vld [vmem:[%s21619_s7 + $0xc18] sm:$0xf0]  ;;  %v11525_v25 = vor.u32 %v14260_v9, %v11522_v10  ;;  %v4317_v62 = vpop.f32.mrf.mxu1  ;;  %v9704_v9 = vld [vmem:[%s21619_s7 + $0xf8] sm:$0xf]  ;;  %v13808_v10 = vld [vmem:[%s21619_s7 + $0x10c] sm:$0xf0] }
  0xc1   : > { %4568 = vmatpush.bf16.msrb.mxu1 %v11429_v18  ;;  %v4316_v18 = vadd.f32 %v4315_v13, %v4302_v1  ;;  %v11117_v45 = vor.u32 %v14158_v16, %v11114_v17  ;;  %v10112_v1 = vld [vmem:[%s21619_s7 + $0x428] sm:$0xf]  ;;  %v10088_v16 = vld [vmem:[%s21619_s7 + $0x3f8] sm:$0xf]  ;;  %v13904_v17 = vld [vmem:[%s21619_s7 + $0x40c] sm:$0xf0] }
  0xc2   : > { %4581 = vmatpush.bf16.msrb.mxu2 %v11621_v24  ;;  %v11333_v24 = vor.u32 %v14212_v6, %v11330_v8  ;;  %v10089_v28 = vor.u32 %v13904_v17, %v10088_v16  ;;  %v9848_v49 = vld [vmem:[%s21619_s7 + $0x218] sm:$0xf]  ;;  %v9632_v62 = vld [vmem:[%s21619_s7 + $0x68] sm:$0xf]  ;;  %v13784_v17 = vld [vmem:[%s21619_s7 + $0x4c] sm:$0xf0] }
  0xc3   : > { %4594 = vmatpush.bf16.msrb.mxu3 %v11813_v30  ;;  %v14254_v30 = vld [vmem:[%s21619_s7 + $0xf04] sm:$0xf]  ;;  %v4329_v43 = vadd.f32 %v4328_v36, %v4316_v18  ;;  %v10280_v18 = vld [vmem:[%s21619_s7 + $0x578] sm:$0xf]  ;;  %v10064_v36 = vld [vmem:[%s21619_s7 + $0x3c8] sm:$0xf] }
  0xc4   : > { %4556 = vmatpush.bf16.msrb.mxu0 %v11213_v39  ;;  %v9752_v39 = vld [vmem:[%s21619_s7 + $0x158] sm:$0xf]  ;;  %v11501_v51 = vor.u32 %v14254_v30, %v11498_v32  ;;  %v4330_v6 = vpop.f32.mrf.mxu2  ;;  %v9680_v30 = vld [vmem:[%s21619_s7 + $0xc8] sm:$0xf] }
  0xc5   : > { %4569 = vmatpush.bf16.msrb.mxu1 %v11405_v41  ;;  %v13820_v41 = vld [vmem:[%s21619_s7 + $0x16c] sm:$0xf0]  ;;  %v9872_v32 = vld [vmem:[%s21619_s7 + $0x248] sm:$0xf]  ;;  %v9608_v16 = vld [vmem:[%s21619_s7 + $0x38] sm:$0xf] }
  0xc6   : > { %4582 = vmatpush.bf16.msrb.mxu2 %v11597_v42  ;;  %v9944_v42 = vld [vmem:[%s21619_s7 + $0x2d8] sm:$0xf]  ;;  %v9753_v56 = vor.u32 %v13820_v41, %v9752_v39  ;;  %v13898_v39 = vld [vmem:[%s21619_s7 + $0x3dc] sm:$0xf0]  ;;  %v10256_v41 = vld [vmem:[%s21619_s7 + $0x548] sm:$0xf] }
  0xc7   : > { %4595 = vmatpush.bf16.msrb.mxu3 %v11789_v46  ;;  %v13868_v46 = vld [vmem:[%s21619_s7 + $0x2ec] sm:$0xf0]  ;;  %v4343_v12 = vpop.f32.mrf.mxu3 }
  0xc8   : > { %4557 = vmatpush.bf16.msrb.mxu0 %v11189_v52  ;;  %v10328_v52 = vld [vmem:[%s21619_s7 + $0x5d8] sm:$0xf]  ;;  %v9945_v57 = vor.u32 %v13868_v46, %v9944_v42  ;;  %v13946_v42 = vld [vmem:[%s21619_s7 + $0x55c] sm:$0xf0]  ;;  %v10065_v46 = vor.u32 %v13898_v39, %v10064_v36 }
  0xc9   : > { %4570 = vmatpush.bf16.msrb.mxu1 %v11381_v53  ;;  %v13964_v53 = vld [vmem:[%s21619_s7 + $0x5ec] sm:$0xf0]  ;;  %v13778_v36 = vld [vmem:[%s21619_s7 + $0x1c] sm:$0xf0] }
  0xca   : > { %4583 = vmatpush.bf16.msrb.mxu2 %v11573_v54  ;;  %v16227_v54 = vadd.f32 %v4341_v44, %v4329_v43  ;;  %v10329_v63 = vor.u32 %v13964_v53, %v10328_v52  ;;  %v10257_v52 = vor.u32 %v13946_v42, %v10256_v41  ;;  %v13844_v53 = vld [vmem:[%s21619_s7 + $0x22c] sm:$0xf0]  ;;  %v9776_v42 = vld [vmem:[%s21619_s7 + $0x188] sm:$0xf] }
  0xcb   : > { %4596 = vmatpush.bf16.msrb.mxu3 %v11765_v58  ;;  %v10137_v58 = vor.u32 %v13916_v48, %v10136_v47  ;;  %v9656_v47 = vld [vmem:[%s21619_s7 + $0x98] sm:$0xf]  ;;  %v13796_v48 = vld [vmem:[%s21619_s7 + $0xac] sm:$0xf0]  ;;  %v9849_v60 = vor.u32 %v13844_v53, %v9848_v49  ;;  %v13922_v49 = vld [vmem:[%s21619_s7 + $0x49c] sm:$0xf0] }
  0xcc   : > { %4558 = vmatpush.bf16.msrb.mxu0 %v11165_v0  ;;  %v13862_v0 = vld [vmem:[%s21619_s7 + $0x2bc] sm:$0xf0]  ;;  %v9657_v59 = vor.u32 %v13796_v48, %v9656_v47  ;;  %v10160_v48 = vld [vmem:[%s21619_s7 + $0x488] sm:$0xf]  ;;  %v10712_v53 = vld [vmem:[%s21619_s7 + $0x8d8] sm:$0xf] }
  0xcd   : > { %4571 = vmatpush.bf16.msrb.mxu1 %v11357_v2  ;;  %v13910_v2 = vld [vmem:[%s21619_s7 + $0x43c] sm:$0xf0] }
  0xce   : > { %4584 = vmatpush.bf16.msrb.mxu2 %v11549_v3  ;;  %v10304_v3 = vld [vmem:[%s21619_s7 + $0x5a8] sm:$0xf]  ;;  %v10113_v8 = vor.u32 %v13910_v2, %v10112_v1  ;;  %v13874_v47 = vld [vmem:[%s21619_s7 + $0x31c] sm:$0xf0] }
  0xcf   : > { %4597 = vmatpush.bf16.msrb.mxu3 %v11741_v7  ;;  %v9921_v7 = vor.u32 %v13862_v0, %v9920_v61  ;;  %v10305_v13 = vor.u32 %v13958_v4, %v10304_v3  ;;  %v9824_v0 = vld [vmem:[%s21619_s7 + $0x1e8] sm:$0xf]  ;;  %v13838_v3 = vld [vmem:[%s21619_s7 + $0x1fc] sm:$0xf0] }
  0xd0   : > { %4559 = vmatpush.bf16.msrb.mxu0 %v11141_v14  ;;  %v13856_v14 = vld [vmem:[%s21619_s7 + $0x28c] sm:$0xf0]  ;;  %v10016_v4 = vld [vmem:[%s21619_s7 + $0x368] sm:$0xf] }
  0xd1   : > { %4572 = vmatpush.bf16.msrb.mxu1 %v11333_v24  ;;  %v13952_v24 = vld [vmem:[%s21619_s7 + $0x58c] sm:$0xf0]  ;;  %v9897_v27 = vor.u32 %v13856_v14, %v9896_v11 }
  0xd2   : > { %4585 = vmatpush.bf16.msrb.mxu2 %v11525_v25  ;;  %v9705_v25 = vor.u32 %v13808_v10, %v9704_v9  ;;  %v10281_v33 = vor.u32 %v13952_v24, %v10280_v18  ;;  %v13934_v9 = vld [vmem:[%s21619_s7 + $0x4fc] sm:$0xf0]  ;;  %v9800_v18 = vld [vmem:[%s21619_s7 + $0x1b8] sm:$0xf] }
  0xd3   : > { %4598 = vmatpush.bf16.msrb.mxu3 %v11717_v31  ;;  %v13802_v31 = vld [vmem:[%s21619_s7 + $0xdc] sm:$0xf0] }
  0xd4   : > { %4560 = vmatpush.bf16.msrb.mxu0 %v11117_v45  ;;  %v9681_v43 = vor.u32 %v13802_v31, %v9680_v30  ;;  %v4354_v44 = vpop.f32.mrf.mxu0  ;;  %v9873_v45 = vor.u32 %v13850_v35, %v9872_v32  ;;  %v13880_v30 = vld [vmem:[%s21619_s7 + $0x34c] sm:$0xf0]  ;;  %v10184_v31 = vld [vmem:[%s21619_s7 + $0x4b8] sm:$0xf]  ;;  %v9584_v35 = vld [vmem:[%s21619_s7 + $0x8] sm:$0xf] }
  0xd5   : > { %4573 = vmatpush.bf16.msrb.mxu1 %v11309_v50  ;;  %v4355_v50 = vadd.f32 %v4354_v44, %v16227_v54  ;;  %v13940_v54 = vld [vmem:[%s21619_s7 + $0x52c] sm:$0xf0]  ;;  %v9968_v44 = vld [vmem:[%s21619_s7 + $0x308] sm:$0xf] }
  0xd6   : > { %4586 = vmatpush.bf16.msrb.mxu2 %v11501_v51  ;;  %v4367_v51 = vpop.f32.mrf.mxu1  ;;  %v13928_v32 = vld [vmem:[%s21619_s7 + $0x4cc] sm:$0xf0] }
  0xd7   : > { %4599 = vmatpush.bf16.msrb.mxu3 %v11693_v55  ;;  %4561 = vmatmul.bf16.vlgmr.msrb.gmra.mxu0 %v15640_v15  ;;  %v10040_v55 = vld [vmem:[%s21619_s7 + $0x398] sm:$0xf] }
  0xd8   : > { %4605 = vmatpush.bf16.msra.mxu0 %v9753_v56  ;;  %4574 = vmatmul.bf16.vlgmr.msrb.gmra.mxu1 %v15653_v20  ;;  %v13892_v56 = vld [vmem:[%s21619_s7 + $0x3ac] sm:$0xf0] }
  0xd9   : > { %4618 = vmatpush.bf16.msra.mxu1 %v9945_v57  ;;  %4587 = vmatmul.bf16.vlgmr.msrb.gmra.mxu2 %v15651_v19  ;;  %v10232_v57 = vld [vmem:[%s21619_s7 + $0x518] sm:$0xf]  ;;  %v10041_v61 = vor.u32 %v13892_v56, %v10040_v55  ;;  %v9585_v55 = vor.u32 %v13778_v36, %v9584_v35  ;;  %v14060_v56 = vld [vmem:[%s21619_s7 + $0x8ec] sm:$0xf0]  ;;  %v10448_v36 = vld [vmem:[%s21619_s7 + $0x6c8] sm:$0xf] }
  0xda   : > { %4631 = vmatpush.bf16.msra.mxu2 %v10137_v58  ;;  %4600 = vmatmul.bf16.vlgmr.msrb.gmra.mxu3 %v15661_v26  ;;  %v4368_v58 = vadd.f32 %v4367_v51, %v4355_v50  ;;  %v10233_v2 = vor.u32 %v13940_v54, %v10232_v57  ;;  %v10520_v51 = vld [vmem:[%s21619_s7 + $0x758] sm:$0xf]  ;;  %v14108_v54 = vld [vmem:[%s21619_s7 + $0xa6c] sm:$0xf0] }
  0xdb   : > { %4644 = vmatpush.bf16.msra.mxu3 %v10329_v63  ;;  %v13790_v63 = vld [vmem:[%s21619_s7 + $0x7c] sm:$0xf0]  ;;  %v10904_v57 = vld [vmem:[%s21619_s7 + $0xa58] sm:$0xf] }
  0xdc   : > { %4606 = vmatpush.bf16.msra.mxu0 %v9729_v5  ;;  %v4380_v1 = vpop.f32.mrf.mxu2  ;;  %v13886_v5 = vld [vmem:[%s21619_s7 + $0x37c] sm:$0xf0]  ;;  %v9633_v10 = vor.u32 %v13790_v63, %v9632_v62  ;;  %v4356_v12 = vpop.f32.mrf.mxu0  ;;  %v10161_v62 = vor.u32 %v13922_v49, %v10160_v48 }
  0xdd   : > { %4619 = vmatpush.bf16.msra.mxu1 %v9921_v7  ;;  %v4381_v6 = vadd.f32 %v4380_v1, %v4368_v58  ;;  %v4393_v7 = vpop.f32.mrf.mxu3  ;;  %v10017_v14 = vor.u32 %v13886_v5, %v10016_v4  ;;  %v10905_v1 = vor.u32 %v14108_v54, %v10904_v57  ;;  %v10688_v4 = vld [vmem:[%s21619_s7 + $0x8a8] sm:$0xf]  ;;  %v14138_v48 = vld [vmem:[%s21619_s7 + $0xb5c] sm:$0xf0]  ;;  %v10616_v57 = vld [vmem:[%s21619_s7 + $0x818] sm:$0xf] }
  0xde   : > { %4632 = vmatpush.bf16.msra.mxu2 %v10113_v8  ;;  %v10208_v8 = vld [vmem:[%s21619_s7 + $0x4e8] sm:$0xf]  ;;  %v4369_v24 = vpop.f32.mrf.mxu1 }
  0xdf   : > { %4645 = vmatpush.bf16.msra.mxu3 %v10305_v13  ;;  %v16354_v11 = vadd.f32 %v4393_v7, %v4381_v6  ;;  %v9825_v13 = vor.u32 %v13838_v3, %v9824_v0  ;;  %v10713_v0 = vor.u32 %v14060_v56, %v10712_v53  ;;  %v14006_v3 = vld [vmem:[%s21619_s7 + $0x73c] sm:$0xf0]  ;;  %v10880_v7 = vld [vmem:[%s21619_s7 + $0xa28] sm:$0xf]  ;;  %v13988_v56 = vld [vmem:[%s21619_s7 + $0x6ac] sm:$0xf0] }
  0xe0   : > { %4607 = vmatpush.bf16.msra.mxu0 %v9705_v25  ;;  %v10209_v25 = vor.u32 %v13934_v9, %v10208_v8  ;;  %v14054_v6 = vld [vmem:[%s21619_s7 + $0x8bc] sm:$0xf0]  ;;  %v11072_v9 = vld [vmem:[%s21619_s7 + $0xba8] sm:$0xf] }
  0xe1   : > { %4620 = vmatpush.bf16.msra.mxu1 %v9897_v27  ;;  %v13832_v27 = vld [vmem:[%s21619_s7 + $0x1cc] sm:$0xf0]  ;;  %v14102_v8 = vld [vmem:[%s21619_s7 + $0xa3c] sm:$0xf0] }
  0xe2   : > { %4633 = vmatpush.bf16.msra.mxu2 %v10089_v28  ;;  %v9992_v28 = vld [vmem:[%s21619_s7 + $0x338] sm:$0xf]  ;;  %v9801_v39 = vor.u32 %v13832_v27, %v9800_v18 }
  0xe3   : > { %4646 = vmatpush.bf16.msra.mxu3 %v10281_v33  ;;  %v9609_v33 = vor.u32 %v13784_v17, %v9608_v16  ;;  %v9993_v41 = vor.u32 %v13880_v30, %v9992_v28  ;;  %v10472_v16 = vld [vmem:[%s21619_s7 + $0x6f8] sm:$0xf]  ;;  %v14000_v17 = vld [vmem:[%s21619_s7 + $0x70c] sm:$0xf0] }
  0xe4   : > { %4608 = vmatpush.bf16.msra.mxu0 %v9681_v43  ;;  %v13826_v43 = vld [vmem:[%s21619_s7 + $0x19c] sm:$0xf0]  ;;  %v10664_v18 = vld [vmem:[%s21619_s7 + $0x878] sm:$0xf]  ;;  %v14096_v28 = vld [vmem:[%s21619_s7 + $0xa0c] sm:$0xf0] }
  0xe5   : > { %4621 = vmatpush.bf16.msra.mxu1 %v9873_v45  ;;  %v4382_v45 = vpop.f32.mrf.mxu2  ;;  %v4395_v50 = vpop.f32.mrf.mxu3  ;;  %v9777_v58 = vor.u32 %v13826_v43, %v9776_v42  ;;  %v10856_v27 = vld [vmem:[%s21619_s7 + $0x9f8] sm:$0xf]  ;;  %v14042_v43 = vld [vmem:[%s21619_s7 + $0x85c] sm:$0xf0] }
  0xe6   : > { %4634 = vmatpush.bf16.msra.mxu2 %v10065_v46  ;;  %v10185_v46 = vor.u32 %v13928_v32, %v10184_v31  ;;  %v11048_v30 = vld [vmem:[%s21619_s7 + $0xb78] sm:$0xf]  ;;  %v14144_v31 = vld [vmem:[%s21619_s7 + $0xb8c] sm:$0xf0]  ;;  %v10473_v32 = vor.u32 %v14000_v17, %v10472_v16  ;;  %v10857_v35 = vor.u32 %v14096_v28, %v10856_v27  ;;  %v14090_v45 = vld [vmem:[%s21619_s7 + $0x9dc] sm:$0xf0] }
  0xe7   : > { %4647 = vmatpush.bf16.msra.mxu3 %v10257_v52  ;;  %v14012_v52 = vld [vmem:[%s21619_s7 + $0x76c] sm:$0xf0]  ;;  %v11049_v42 = vor.u32 %v14144_v31, %v11048_v30  ;;  %v10376_v28 = vld [vmem:[%s21619_s7 + $0x638] sm:$0xf] }
  0xe8   : > { %4609 = vmatpush.bf16.msra.mxu0 %v9657_v59  ;;  %v9969_v59 = vor.u32 %v13874_v47, %v9968_v44  ;;  %v10521_v63 = vor.u32 %v14012_v52, %v10520_v51  ;;  %v10832_v44 = vld [vmem:[%s21619_s7 + $0x9c8] sm:$0xf]  ;;  %v13976_v30 = vld [vmem:[%s21619_s7 + $0x64c] sm:$0xf0]  ;;  %v10568_v31 = vld [vmem:[%s21619_s7 + $0x7b8] sm:$0xf] }
  0xe9   : > { %4622 = vmatpush.bf16.msra.mxu1 %v9849_v60  ;;  %v11096_v60 = vld [vmem:[%s21619_s7 + $0xbd8] sm:$0xf]  ;;  %v11024_v47 = vld [vmem:[%s21619_s7 + $0xb48] sm:$0xf]  ;;  %v10833_v53 = vor.u32 %v14090_v45, %v10832_v44  ;;  %v13970_v44 = vld [vmem:[%s21619_s7 + $0x61c] sm:$0xf0] }
  0xea   : > { %4635 = vmatpush.bf16.msra.mxu2 %v10041_v61  ;;  %v14156_v61 = vld [vmem:[%s21619_s7 + $0xbec] sm:$0xf0]  ;;  %v10544_v45 = vld [vmem:[%s21619_s7 + $0x788] sm:$0xf] }
  0xeb   : > { %4648 = vmatpush.bf16.msra.mxu3 %v10233_v2  ;;  %v10496_v2 = vld [vmem:[%s21619_s7 + $0x728] sm:$0xf]  ;;  %v11097_v5 = vor.u32 %v14156_v61, %v11096_v60  ;;  %v14084_v60 = vld [vmem:[%s21619_s7 + $0x9ac] sm:$0xf0]  ;;  %v11000_v61 = vld [vmem:[%s21619_s7 + $0xb18] sm:$0xf] }
  0xec   : > { %4610 = vmatpush.bf16.msra.mxu0 %v9633_v10  ;;  %v14150_v10 = vld [vmem:[%s21619_s7 + $0xbbc] sm:$0xf0]  ;;  %v10497_v12 = vor.u32 %v14006_v3, %v10496_v2  ;;  %v10400_v2 = vld [vmem:[%s21619_s7 + $0x668] sm:$0xf] }
  0xed   : > { %4623 = vmatpush.bf16.msra.mxu1 %v9825_v13  ;;  %v10689_v13 = vor.u32 %v14054_v6, %v10688_v4  ;;  %v11073_v24 = vor.u32 %v14150_v10, %v11072_v9  ;;  %v13982_v3 = vld [vmem:[%s21619_s7 + $0x67c] sm:$0xf0]  ;;  %v10592_v4 = vld [vmem:[%s21619_s7 + $0x7e8] sm:$0xf] }
  0xee   : > { %4636 = vmatpush.bf16.msra.mxu2 %v10017_v14  ;;  %v10881_v14 = vor.u32 %v14102_v8, %v10880_v7  ;;  %v14030_v7 = vld [vmem:[%s21619_s7 + $0x7fc] sm:$0xf0]  ;;  %v10784_v8 = vld [vmem:[%s21619_s7 + $0x968] sm:$0xf]  ;;  %v10401_v17 = vor.u32 %v13982_v3, %v10400_v2  ;;  %v11864_v2 = vld [vmem:[%s21619_s7 + $0x11d8] sm:$0xf] }
  0xef   : > { %4649 = vmatpush.bf16.msra.mxu3 %v10209_v25  ;;  %v14048_v25 = vld [vmem:[%s21619_s7 + $0x88c] sm:$0xf0]  ;;  %v14078_v9 = vld [vmem:[%s21619_s7 + $0x97c] sm:$0xf0] }
  0xf0   : > { %4611 = vmatpush.bf16.msra.mxu0 %v9609_v33  ;;  %v10665_v33 = vor.u32 %v14048_v25, %v10664_v18  ;;  %v10593_v25 = vor.u32 %v14030_v7, %v10592_v4  ;;  %v10785_v27 = vor.u32 %v14078_v9, %v10784_v8  ;;  %v14348_v3 = vld [vmem:[%s21619_s7 + $0x11ec] sm:$0xf0]  ;;  %v11264_v8 = vld [vmem:[%s21619_s7 + $0xd28] sm:$0xf]  ;;  %v14198_v9 = vld [vmem:[%s21619_s7 + $0xd3c] sm:$0xf0] }
  0xf1   : > { %4624 = vmatpush.bf16.msra.mxu1 %v9801_v39  ;;  %v13994_v39 = vld [vmem:[%s21619_s7 + $0x6dc] sm:$0xf0] }
  0xf2   : > { %4637 = vmatpush.bf16.msra.mxu2 %v9993_v41  ;;  %v10640_v41 = vld [vmem:[%s21619_s7 + $0x848] sm:$0xf]  ;;  %v10449_v50 = vor.u32 %v13994_v39, %v10448_v36  ;;  %v14072_v36 = vld [vmem:[%s21619_s7 + $0x94c] sm:$0xf0]  ;;  %v10952_v39 = vld [vmem:[%s21619_s7 + $0xab8] sm:$0xf] }
  0xf3   : > { %4650 = vmatpush.bf16.msra.mxu3 %v10185_v46  ;;  %v10641_v52 = vor.u32 %v14042_v43, %v10640_v41  ;;  %v14120_v41 = vld [vmem:[%s21619_s7 + $0xacc] sm:$0xf0]  ;;  %v10377_v43 = vor.u32 %v13976_v30, %v10376_v28  ;;  %v11240_v30 = vld [vmem:[%s21619_s7 + $0xcf8] sm:$0xf] }
  0xf4   : > { %4612 = vmatpush.bf16.msra.mxu0 %v9585_v55  ;;  %v4406_v46 = vpop.f32.mrf.mxu0  ;;  %v10424_v55 = vld [vmem:[%s21619_s7 + $0x698] sm:$0xf] }
  0xf5   : > { %4625 = vmatpush.bf16.msra.mxu1 %v9777_v58  ;;  %v4407_v49 = vadd.f32 %v4406_v46, %v16354_v11  ;;  %v4419_v51 = vpop.f32.mrf.mxu1  ;;  %v11025_v11 = vor.u32 %v14138_v48, %v11024_v47  ;;  %v14036_v58 = vld [vmem:[%s21619_s7 + $0x82c] sm:$0xf0]  ;;  %v14018_v46 = vld [vmem:[%s21619_s7 + $0x79c] sm:$0xf0] }
  0xf6   : > { %4638 = vmatpush.bf16.msra.mxu2 %v9969_v59  ;;  %v10808_v59 = vld [vmem:[%s21619_s7 + $0x998] sm:$0xf] }
  0xf7   : > { %4651 = vmatpush.bf16.msra.mxu3 %v10161_v62  ;;  %4613 = vmatmul.bf16.vlgmr.msra.gmra.mxu0 %v15297_v22  ;;  %v4420_v54 = vadd.f32 %v4419_v51, %v4407_v49  ;;  %v14132_v62 = vld [vmem:[%s21619_s7 + $0xb2c] sm:$0xf0]  ;;  %v10736_v49 = vld [vmem:[%s21619_s7 + $0x908] sm:$0xf] }
  0xf8   : > { %4657 = vmatpush.bf16.msrb.mxu0 %v10521_v63  ;;  %4626 = vmatmul.bf16.vlgmr.msra.gmra.mxu1 %v15311_v29  ;;  %v10425_v63 = vor.u32 %v13988_v56, %v10424_v55  ;;  %v10928_v51 = vld [vmem:[%s21619_s7 + $0xa88] sm:$0xf]  ;;  %v11288_v55 = vld [vmem:[%s21619_s7 + $0xd58] sm:$0xf]  ;;  %v14204_v56 = vld [vmem:[%s21619_s7 + $0xd6c] sm:$0xf0] }
  0xf9   : > { %4670 = vmatpush.bf16.msrb.mxu1 %v10713_v0  ;;  %4639 = vmatmul.bf16.vlgmr.msra.gmra.mxu2 %v15295_v21  ;;  %v10617_v0 = vor.u32 %v14036_v58, %v10616_v57 }
  0xfa   : > { %4683 = vmatpush.bf16.msrb.mxu2 %v10905_v1  ;;  %4652 = vmatmul.bf16.vlgmr.msra.gmra.mxu3 %v15299_v23  ;;  %v10809_v1 = vor.u32 %v14084_v60, %v10808_v59  ;;  %v798_v59 = vld [vmem:[%s16597_s9] sm:$0xff] }
  0xfb   : > { %4696 = vmatpush.bf16.msrb.mxu3 %v11097_v5  ;;  %v11001_v5 = vor.u32 %v14132_v62, %v11000_v61  ;;  %v11672_v61 = vld [vmem:[%s21619_s7 + $0x1058] sm:$0xf]  ;;  %v14300_v62 = vld [vmem:[%s21619_s7 + $0x106c] sm:$0xf0] }
  0xfc   : > { %4658 = vmatpush.bf16.msrb.mxu0 %v10497_v12  ;;  %v4432_v6 = vpop.f32.mrf.mxu2  ;;  %v4408_v16 = vpop.f32.mrf.mxu0  ;;  %v11673_v7 = vor.u32 %v14300_v62, %v11672_v61 }
  0xfd   : > { %4671 = vmatpush.bf16.msrb.mxu1 %v10689_v13  ;;  %v4433_v10 = vadd.f32 %v4432_v6, %v4420_v54  ;;  %v4445_v12 = vpop.f32.mrf.mxu3  ;;  %v10976_v13 = vld [vmem:[%s21619_s7 + $0xae8] sm:$0xf]  ;;  %v4421_v18 = vpop.f32.mrf.mxu1  ;;  %v14252_v54 = vld [vmem:[%s21619_s7 + $0xeec] sm:$0xf0]  ;;  %v14294_v16 = vld [vmem:[%s21619_s7 + $0x103c] sm:$0xf0] }
  0xfe   : > { %4684 = vmatpush.bf16.msrb.mxu2 %v10881_v14  ;;  %v14126_v14 = vld [vmem:[%s21619_s7 + $0xafc] sm:$0xf0] }
  0xff   : > { %4697 = vmatpush.bf16.msrb.mxu3 %v11073_v24  ;;  %v16554_v24 = vadd.f32 %v4445_v12, %v4433_v10  ;;  %v11456_v10 = vld [vmem:[%s21619_s7 + $0xea8] sm:$0xf]  ;;  %v11865_v12 = vor.u32 %v14348_v3, %v11864_v2  ;;  %v14342_v18 = vld [vmem:[%s21619_s7 + $0x11bc] sm:$0xf0]  ;;  %v11768_v3 = vld [vmem:[%s21619_s7 + $0x1118] sm:$0xf] }
 0x100   : > { %4659 = vmatpush.bf16.msrb.mxu0 %v10473_v32  ;;  %v10977_v32 = vor.u32 %v14126_v14, %v10976_v13  ;;  %v14246_v13 = vld [vmem:[%s21619_s7 + $0xebc] sm:$0xf0]  ;;  %v11648_v14 = vld [vmem:[%s21619_s7 + $0x1028] sm:$0xf] }
 0x101   : > { %4672 = vmatpush.bf16.msrb.mxu1 %v10665_v33  ;;  %v14024_v33 = vld [vmem:[%s21619_s7 + $0x7cc] sm:$0xf0]  ;;  %v11649_v28 = vor.u32 %v14294_v16, %v11648_v14  ;;  %v14222_v14 = vld [vmem:[%s21619_s7 + $0xdfc] sm:$0xf0]  ;;  %v11552_v16 = vld [vmem:[%s21619_s7 + $0xf68] sm:$0xf] }
 0x102   : > { %4685 = vmatpush.bf16.msrb.mxu2 %v10857_v35  ;;  %v10760_v35 = vld [vmem:[%s21619_s7 + $0x938] sm:$0xf]  ;;  %v10569_v47 = vor.u32 %v14024_v33, %v10568_v31  ;;  %v14192_v31 = vld [vmem:[%s21619_s7 + $0xd0c] sm:$0xf0] }
 0x103   : > { %4698 = vmatpush.bf16.msrb.mxu3 %v11049_v42  ;;  %v10352_v42 = vld [vmem:[%s21619_s7 + $0x608] sm:$0xf]  ;;  %v10761_v48 = vor.u32 %v14072_v36, %v10760_v35  ;;  %v14240_v35 = vld [vmem:[%s21619_s7 + $0xe8c] sm:$0xf0]  ;;  %v11624_v36 = vld [vmem:[%s21619_s7 + $0xff8] sm:$0xf] }
 0x104   : > { %4660 = vmatpush.bf16.msrb.mxu0 %v10449_v50  ;;  %v14066_v50 = vld [vmem:[%s21619_s7 + $0x91c] sm:$0xf0]  ;;  %v4434_v57 = vpop.f32.mrf.mxu2  ;;  %v10353_v60 = vor.u32 %v13970_v44, %v10352_v42  ;;  %v14336_v42 = vld [vmem:[%s21619_s7 + $0x118c] sm:$0xf0] }
 0x105   : > { %4673 = vmatpush.bf16.msrb.mxu1 %v10641_v52  ;;  %v10953_v52 = vor.u32 %v14120_v41, %v10952_v39  ;;  %v4447_v58 = vpop.f32.mrf.mxu3  ;;  %v14288_v39 = vld [vmem:[%s21619_s7 + $0x100c] sm:$0xf0]  ;;  %v11816_v41 = vld [vmem:[%s21619_s7 + $0x1178] sm:$0xf] }
 0x106   : > { %4686 = vmatpush.bf16.msrb.mxu2 %v10833_v53  ;;  %v14114_v53 = vld [vmem:[%s21619_s7 + $0xa9c] sm:$0xf0]  ;;  %v11192_v58 = vld [vmem:[%s21619_s7 + $0xc98] sm:$0xf] }
 0x107   : > { %4699 = vmatpush.bf16.msrb.mxu3 %v11025_v11  ;;  %v11480_v11 = vld [vmem:[%s21619_s7 + $0xed8] sm:$0xf]  ;;  %v10929_v4 = vor.u32 %v14114_v53, %v10928_v51  ;;  %v11600_v51 = vld [vmem:[%s21619_s7 + $0xfc8] sm:$0xf] }
 0x108   : > { %4661 = vmatpush.bf16.msrb.mxu0 %v10425_v63  ;;  %v800_v63 = vsel %vm799_vm0, %v798_v59, -inf  ;;  %v11481_v6 = vor.u32 %v14252_v54, %v11480_v11  ;;  %v11792_v53 = vld [vmem:[%s21619_s7 + $0x1148] sm:$0xf]  ;;  %v14180_v59 = vld [vmem:[%s21619_s7 + $0xcac] sm:$0xf0] }
 0x109   : > { %4674 = vmatpush.bf16.msrb.mxu1 %v10617_v0  ;;  %v10545_v0 = vor.u32 %v14018_v46, %v10544_v45  ;;  %801 = vmax.xlane.f32.xlu0 %v800_v63  ;;  %v11625_v45 = vor.u32 %v14288_v39, %v11624_v36  ;;  %v11216_v46 = vld [vmem:[%s21619_s7 + $0xcc8] sm:$0xf]  ;;  %v14228_v63 = vld [vmem:[%s21619_s7 + $0xe2c] sm:$0xf0]  ;;  %v11144_v36 = vld [vmem:[%s21619_s7 + $0xc38] sm:$0xf] }
 0x10a   : > { %4687 = vmatpush.bf16.msrb.mxu2 %v10809_v1  ;;  %v10737_v1 = vor.u32 %v14066_v50, %v10736_v49  ;;  %v11817_v49 = vor.u32 %v14336_v42, %v11816_v41  ;;  %v14234_v50 = vld [vmem:[%s21619_s7 + $0xe5c] sm:$0xf0]  ;;  %v14168_v39 = vld [vmem:[%s21619_s7 + $0xc4c] sm:$0xf0]  ;;  %v11336_v41 = vld [vmem:[%s21619_s7 + $0xdb8] sm:$0xf] }
 0x10b   : > { %4700 = vmatpush.bf16.msrb.mxu3 %v11001_v5  ;;  %v11289_v5 = vor.u32 %v14204_v56, %v11288_v55  ;;  %v14330_v55 = vld [vmem:[%s21619_s7 + $0x115c] sm:$0xf0] }
 0x10c   : > { %4662 = vmatpush.bf16.msrb.mxu0 %v10401_v17  ;;  %v11840_v17 = vld [vmem:[%s21619_s7 + $0x11a8] sm:$0xf]  ;;  %v11793_v62 = vor.u32 %v14330_v55, %v11792_v53 }
 0x10d   : > { %4675 = vmatpush.bf16.msrb.mxu1 %v10593_v25  ;;  %v11265_v25 = vor.u32 %v14198_v9, %v11264_v8  ;;  %v11841_v33 = vor.u32 %v14342_v18, %v11840_v17  ;;  %v11168_v8 = vld [vmem:[%s21619_s7 + $0xc68] sm:$0xf]  ;;  %v14174_v9 = vld [vmem:[%s21619_s7 + $0xc7c] sm:$0xf0] }
 0x10e   : > { %4688 = vmatpush.bf16.msrb.mxu2 %v10785_v27  ;;  %v11457_v27 = vor.u32 %v14246_v13, %v11456_v10  ;;  %v11360_v10 = vld [vmem:[%s21619_s7 + $0xde8] sm:$0xf]  ;;  %v14270_v17 = vld [vmem:[%s21619_s7 + $0xf7c] sm:$0xf0] }
 0x10f   : > { %4701 = vmatpush.bf16.msrb.mxu3 %v10977_v32  ;;  %v11432_v32 = vld [vmem:[%s21619_s7 + $0xe78] sm:$0xf]  ;;  %v11312_v55 = vld [vmem:[%s21619_s7 + $0xd88] sm:$0xf] }
 0x110   : > { %4663 = vmatpush.bf16.msrb.mxu0 %v10377_v43  ;;  %v11241_v43 = vor.u32 %v14192_v31, %v11240_v30  ;;  %v11433_v44 = vor.u32 %v14240_v35, %v11432_v32  ;;  %v11169_v30 = vor.u32 %v14174_v9, %v11168_v8  ;;  %v11553_v35 = vor.u32 %v14270_v17, %v11552_v16  ;;  %v10330_v8 = vld [vmem:[%s21619_s7 + $0x5f0] sm:$0xf0]  ;;  %v9730_v16 = vld [vmem:[%s21619_s7 + $0x140] sm:$0xf0]  ;;  %v13859_v17 = vld [vmem:[%s21619_s7 + $0x2ac] sm:$0xf] }
 0x111   : > { %4676 = vmatpush.bf16.msrb.mxu1 %v10569_v47  ;;  %v14186_v47 = vld [vmem:[%s21619_s7 + $0xcdc] sm:$0xf0] }
 0x112   : > { %4689 = vmatpush.bf16.msrb.mxu2 %v10761_v48  ;;  %v11408_v48 = vld [vmem:[%s21619_s7 + $0xe48] sm:$0xf]  ;;  %v11217_v56 = vor.u32 %v14186_v47, %v11216_v46  ;;  %v14264_v46 = vld [vmem:[%s21619_s7 + $0xf4c] sm:$0xf0]  ;;  %v11720_v47 = vld [vmem:[%s21619_s7 + $0x10b8] sm:$0xf] }
 0x113   : > { %4702 = vmatpush.bf16.msrb.mxu3 %v10953_v52  ;;  %v14282_v52 = vld [vmem:[%s21619_s7 + $0xfdc] sm:$0xf0]  ;;  %v11409_v11 = vor.u32 %v14234_v50, %v11408_v48  ;;  %v14312_v48 = vld [vmem:[%s21619_s7 + $0x10cc] sm:$0xf0]  ;;  %v11120_v50 = vld [vmem:[%s21619_s7 + $0xc08] sm:$0xf] }
 0x114   : > { %4664 = vmatpush.bf16.msrb.mxu0 %v10353_v60  ;;  %v4458_v57 = vpop.f32.mrf.mxu0  ;;  %v11601_v54 = vor.u32 %v14282_v52, %v11600_v51  ;;  %v11384_v60 = vld [vmem:[%s21619_s7 + $0xe18] sm:$0xf]  ;;  %v14162_v51 = vld [vmem:[%s21619_s7 + $0xc1c] sm:$0xf0] }
 0x115   : > { %4677 = vmatpush.bf16.msrb.mxu1 %v10545_v0  ;;  %v4471_v61 = vpop.f32.mrf.mxu1  ;;  %v11576_v0 = vld [vmem:[%s21619_s7 + $0xf98] sm:$0xf] }
 0x116   : > { %4690 = vmatpush.bf16.msrb.mxu2 %v10737_v1  ;;  %v14276_v1 = vld [vmem:[%s21619_s7 + $0xfac] sm:$0xf0]  ;;  %v4472_v2 = vadd.f32 %v4471_v61, %v4458_v57  ;;  %v11504_v57 = vld [vmem:[%s21619_s7 + $0xf08] sm:$0xf] }
 0x117   : > { %4703 = vmatpush.bf16.msrb.mxu3 %v10929_v4  ;;  %4665 = vmatmul.bf16.vlgmr.msrb.gmra.mxu0 %v15449_v37  ;;  %v14324_v4 = vld [vmem:[%s21619_s7 + $0x112c] sm:$0xf0] }
 0x118   : > { %4709 = vmatpush.bf16.msra.mxu0 %v11289_v5  ;;  %4678 = vmatmul.bf16.vlgmr.msrb.gmra.mxu1 %v15453_v40  ;;  %v11193_v5 = vor.u32 %v14180_v59, %v11192_v58  ;;  %v11769_v13 = vor.u32 %v14324_v4, %v11768_v3  ;;  %v14258_v58 = vld [vmem:[%s21619_s7 + $0xf1c] sm:$0xf0]  ;;  %v11696_v59 = vld [vmem:[%s21619_s7 + $0x1088] sm:$0xf]  ;;  %v13913_v3 = vld [vmem:[%s21619_s7 + $0x45c] sm:$0xf] }
 0x119   : > { %4722 = vmatpush.bf16.msra.mxu1 %v11481_v6  ;;  %4691 = vmatmul.bf16.vlgmr.msrb.gmra.mxu2 %v15441_v34  ;;  %v11385_v6 = vor.u32 %v14228_v63, %v11384_v60  ;;  %v14306_v60 = vld [vmem:[%s21619_s7 + $0x109c] sm:$0xf0]  ;;  %v9754_v63 = vld [vmem:[%s21619_s7 + $0x170] sm:$0xf0] }
 0x11a   : > { %4735 = vmatpush.bf16.msra.mxu2 %v11673_v7  ;;  %4704 = vmatmul.bf16.vlgmr.msrb.gmra.mxu3 %v15451_v38  ;;  %v11577_v7 = vor.u32 %v14276_v1, %v11576_v0  ;;  %v13865_v0 = vld [vmem:[%s21619_s7 + $0x2dc] sm:$0xf]  ;;  %v11121_v1 = vor.u32 %v14162_v51, %v11120_v50  ;;  %v10138_v4 = vld [vmem:[%s21619_s7 + $0x470] sm:$0xf0]  ;;  %v11697_v9 = vor.u32 %v14306_v60, %v11696_v59  ;;  %v10258_v59 = vld [vmem:[%s21619_s7 + $0x560] sm:$0xf0] }
 0x11b   : > { %4748 = vmatpush.bf16.msra.mxu3 %v11865_v12 }
 0x11c   : > { %4710 = vmatpush.bf16.msra.mxu0 %v11265_v25  ;;  %v4484_v12 = vpop.f32.mrf.mxu2  ;;  %v4460_v32 = vpop.f32.mrf.mxu0 }
 0x11d   : > { %4723 = vmatpush.bf16.msra.mxu1 %v11457_v27  ;;  %v4485_v18 = vadd.f32 %v4484_v12, %v4472_v2  ;;  %v4497_v25 = vpop.f32.mrf.mxu3  ;;  %v11744_v27 = vld [vmem:[%s21619_s7 + $0x10e8] sm:$0xf]  ;;  %v4473_v42 = vpop.f32.mrf.mxu1  ;;  %v9946_v2 = vld [vmem:[%s21619_s7 + $0x2f0] sm:$0xf0]  ;;  %v10306_v32 = vld [vmem:[%s21619_s7 + $0x5c0] sm:$0xf0] }
 0x11e   : > { %4736 = vmatpush.bf16.msra.mxu2 %v11649_v28  ;;  %v14318_v28 = vld [vmem:[%s21619_s7 + $0x10fc] sm:$0xf0]  ;;  %v9949_v12 = vor.u32 %v13865_v0, %v9946_v2  ;;  %v13853_v42 = vld [vmem:[%s21619_s7 + $0x27c] sm:$0xf] }
 0x11f   : > { %4749 = vmatpush.bf16.msra.mxu3 %v11841_v33  ;;  %v16761_v31 = vadd.f32 %v4497_v25, %v4485_v18  ;;  %v11361_v33 = vor.u32 %v14222_v14, %v11360_v10  ;;  %v13811_v14 = vld [vmem:[%s21619_s7 + $0x12c] sm:$0xf]  ;;  %v9922_v25 = vld [vmem:[%s21619_s7 + $0x2c0] sm:$0xf0]  ;;  %v13793_v0 = vld [vmem:[%s21619_s7 + $0x9c] sm:$0xf] }
 0x120   : > { %4711 = vmatpush.bf16.msra.mxu0 %v11241_v43  ;;  %v11745_v43 = vor.u32 %v14318_v28, %v11744_v27  ;;  %v13907_v27 = vld [vmem:[%s21619_s7 + $0x42c] sm:$0xf]  ;;  %v10114_v28 = vld [vmem:[%s21619_s7 + $0x440] sm:$0xf0]  ;;  %v13841_v2 = vld [vmem:[%s21619_s7 + $0x21c] sm:$0xf] }
 0x121   : > { %4724 = vmatpush.bf16.msra.mxu1 %v11433_v44  ;;  %v14216_v44 = vld [vmem:[%s21619_s7 + $0xdcc] sm:$0xf0] }
 0x122   : > { %4737 = vmatpush.bf16.msra.mxu2 %v11625_v45  ;;  %v11528_v45 = vld [vmem:[%s21619_s7 + $0xf38] sm:$0xf]  ;;  %v11337_v52 = vor.u32 %v14216_v44, %v11336_v41  ;;  %v9706_v41 = vld [vmem:[%s21619_s7 + $0x110] sm:$0xf0] }
 0x123   : > { %4750 = vmatpush.bf16.msra.mxu3 %v11817_v49  ;;  %v11145_v49 = vor.u32 %v14168_v39, %v11144_v36  ;;  %v11529_v53 = vor.u32 %v14264_v46, %v11528_v45  ;;  %v10117_v36 = vor.u32 %v13907_v27, %v10114_v28  ;;  %v13805_v39 = vld [vmem:[%s21619_s7 + $0xfc] sm:$0xf]  ;;  %v9898_v44 = vld [vmem:[%s21619_s7 + $0x290] sm:$0xf0]  ;;  %v9826_v28 = vld [vmem:[%s21619_s7 + $0x200] sm:$0xf0] }
 0x124   : > { %4712 = vmatpush.bf16.msra.mxu0 %v11217_v56  ;;  %v14210_v56 = vld [vmem:[%s21619_s7 + $0xd9c] sm:$0xf0]  ;;  %v13901_v45 = vld [vmem:[%s21619_s7 + $0x3fc] sm:$0xf]  ;;  %v10090_v46 = vld [vmem:[%s21619_s7 + $0x410] sm:$0xf0]  ;;  %v9901_v50 = vor.u32 %v13853_v42, %v9898_v44 }
 0x125   : > { %4725 = vmatpush.bf16.msra.mxu1 %v11409_v11  ;;  %v4486_v11 = vpop.f32.mrf.mxu2  ;;  %v4499_v61 = vpop.f32.mrf.mxu3  ;;  %v10093_v51 = vor.u32 %v13901_v45, %v10090_v46  ;;  %v13781_v46 = vld [vmem:[%s21619_s7 + $0x3c] sm:$0xf] }
 0x126   : > { %4738 = vmatpush.bf16.msra.mxu2 %v11601_v54  ;;  %v11721_v54 = vor.u32 %v14312_v48, %v11720_v47  ;;  %v13949_v47 = vld [vmem:[%s21619_s7 + $0x57c] sm:$0xf]  ;;  %v10282_v48 = vld [vmem:[%s21619_s7 + $0x590] sm:$0xf0]  ;;  %v13895_v11 = vld [vmem:[%s21619_s7 + $0x3cc] sm:$0xf] }
 0x127   : > { %4751 = vmatpush.bf16.msra.mxu3 %v11793_v62  ;;  %v13817_v62 = vld [vmem:[%s21619_s7 + $0x15c] sm:$0xf] }
 0x128   : > { %4713 = vmatpush.bf16.msra.mxu0 %v11193_v5  ;;  %v11313_v5 = vor.u32 %v14210_v56, %v11312_v55  ;;  %v9757_v10 = vor.u32 %v13817_v62, %v9754_v63  ;;  %v13847_v55 = vld [vmem:[%s21619_s7 + $0x24c] sm:$0xf]  ;;  %v10285_v56 = vor.u32 %v13949_v47, %v10282_v48  ;;  %v9610_v47 = vld [vmem:[%s21619_s7 + $0x50] sm:$0xf0]  ;;  %v13829_v48 = vld [vmem:[%s21619_s7 + $0x1bc] sm:$0xf] }
 0x129   : > { %4726 = vmatpush.bf16.msra.mxu1 %v11385_v6  ;;  %v11505_v6 = vor.u32 %v14258_v58, %v11504_v57  ;;  %v9874_v57 = vld [vmem:[%s21619_s7 + $0x260] sm:$0xf0]  ;;  %v13943_v58 = vld [vmem:[%s21619_s7 + $0x54c] sm:$0xf] }
 0x12a   : > { %4739 = vmatpush.bf16.msra.mxu2 %v11577_v7  ;;  %v13961_v7 = vld [vmem:[%s21619_s7 + $0x5dc] sm:$0xf]  ;;  %v9877_v62 = vor.u32 %v13847_v55, %v9874_v57  ;;  %v9613_v57 = vor.u32 %v13781_v46, %v9610_v47 }
 0x12b   : > { %4752 = vmatpush.bf16.msra.mxu3 %v11769_v13  ;;  %v10141_v13 = vor.u32 %v13913_v3, %v10138_v4  ;;  %v10333_v18 = vor.u32 %v13961_v7, %v10330_v8  ;;  %v13889_v7 = vld [vmem:[%s21619_s7 + $0x39c] sm:$0xf]  ;;  %v10042_v8 = vld [vmem:[%s21619_s7 + $0x3b0] sm:$0xf0] }
 0x12c   : > { %4714 = vmatpush.bf16.msra.mxu0 %v11169_v30  ;;  %v13955_v30 = vld [vmem:[%s21619_s7 + $0x5ac] sm:$0xf]  ;;  %v13925_v55 = vld [vmem:[%s21619_s7 + $0x4bc] sm:$0xf] }
 0x12d   : > { %4727 = vmatpush.bf16.msra.mxu1 %v11361_v33  ;;  %v9733_v33 = vor.u32 %v13811_v14, %v9730_v16  ;;  %v10045_v14 = vor.u32 %v13889_v7, %v10042_v8  ;;  %v13787_v16 = vld [vmem:[%s21619_s7 + $0x6c] sm:$0xf]  ;;  %v14057_v7 = vld [vmem:[%s21619_s7 + $0x8dc] sm:$0xf] }
 0x12e   : > { %4740 = vmatpush.bf16.msra.mxu2 %v11553_v35  ;;  %v9925_v35 = vor.u32 %v13859_v17, %v9922_v25  ;;  %v9634_v17 = vld [vmem:[%s21619_s7 + $0x80] sm:$0xf0]  ;;  %v13997_v47 = vld [vmem:[%s21619_s7 + $0x6fc] sm:$0xf] }
 0x12f   : > { %4753 = vmatpush.bf16.msra.mxu3 %v11745_v43  ;;  %v10309_v43 = vor.u32 %v13955_v30, %v10306_v32  ;;  %v13883_v30 = vld [vmem:[%s21619_s7 + $0x36c] sm:$0xf]  ;;  %v10018_v32 = vld [vmem:[%s21619_s7 + $0x380] sm:$0xf0] }
 0x130   : > { %4715 = vmatpush.bf16.msra.mxu0 %v11145_v49  ;;  %v9709_v49 = vor.u32 %v13805_v39, %v9706_v41  ;;  %v10210_v39 = vld [vmem:[%s21619_s7 + $0x500] sm:$0xf0]  ;;  %v9637_v41 = vor.u32 %v13787_v16, %v9634_v17  ;;  %v10021_v45 = vor.u32 %v13883_v30, %v10018_v32  ;;  %v11098_v16 = vld [vmem:[%s21619_s7 + $0xbf0] sm:$0xf0]  ;;  %v14051_v32 = vld [vmem:[%s21619_s7 + $0x8ac] sm:$0xf] }
 0x131   : > { %4728 = vmatpush.bf16.msra.mxu1 %v11337_v52  ;;  %v13799_v52 = vld [vmem:[%s21619_s7 + $0xcc] sm:$0xf]  ;;  %v10498_v30 = vld [vmem:[%s21619_s7 + $0x740] sm:$0xf0] }
 0x132   : > { %4741 = vmatpush.bf16.msra.mxu2 %v11529_v53  ;;  %v9682_v53 = vld [vmem:[%s21619_s7 + $0xe0] sm:$0xf0] }
 0x133   : > { %4754 = vmatpush.bf16.msra.mxu3 %v11721_v54  ;;  %v10066_v54 = vld [vmem:[%s21619_s7 + $0x3e0] sm:$0xf0]  ;;  %v9685_v60 = vor.u32 %v13799_v52, %v9682_v53  ;;  %v13877_v52 = vld [vmem:[%s21619_s7 + $0x33c] sm:$0xf]  ;;  %v9994_v53 = vld [vmem:[%s21619_s7 + $0x350] sm:$0xf0] }
 0x134   : > { %4716 = vmatpush.bf16.msra.mxu0 %v11121_v1  ;;  %v4510_v61 = vpop.f32.mrf.mxu0  ;;  %v10069_v63 = vor.u32 %v13895_v11, %v10066_v54  ;;  %v9658_v1 = vld [vmem:[%s21619_s7 + $0xb0] sm:$0xf0]  ;;  %v13775_v11 = vld [vmem:[%s21619_s7 + $0xc] sm:$0xf]  ;;  %v9586_v54 = vld [vmem:[%s21619_s7 + $0x20] sm:$0xf0] }
 0x135   : > { %4729 = vmatpush.bf16.msra.mxu1 %v11313_v5  ;;  %v4511_v3 = vadd.f32 %v4510_v61, %v16761_v31  ;;  %v4523_v4 = vpop.f32.mrf.mxu1  ;;  %v10261_v5 = vor.u32 %v13943_v58, %v10258_v59  ;;  %v10234_v31 = vld [vmem:[%s21619_s7 + $0x530] sm:$0xf0]  ;;  %v9997_v59 = vor.u32 %v13877_v52, %v9994_v53  ;;  %v9778_v61 = vld [vmem:[%s21619_s7 + $0x1a0] sm:$0xf0]  ;;  %v9589_v8 = vor.u32 %v13775_v11, %v9586_v54  ;;  %v14093_v52 = vld [vmem:[%s21619_s7 + $0x9fc] sm:$0xf] }
 0x136   : > { %4742 = vmatpush.bf16.msra.mxu2 %v11505_v6  ;;  %v9850_v6 = vld [vmem:[%s21619_s7 + $0x230] sm:$0xf0] }
 0x137   : > { %4755 = vmatpush.bf16.msra.mxu3 %v11697_v9  ;;  %4717 = vmatmul.bf16.vlgmr.msra.gmra.mxu0 %v15640_v15  ;;  %v13937_v9 = vld [vmem:[%s21619_s7 + $0x51c] sm:$0xf]  ;;  %v10858_v53 = vld [vmem:[%s21619_s7 + $0xa10] sm:$0xf0] }
 0x138   : > { %4761 = vmatpush.bf16.msrb.mxu0 %v9757_v10  ;;  %4730 = vmatmul.bf16.vlgmr.msra.gmra.mxu1 %v15653_v20  ;;  %v4524_v10 = vadd.f32 %v4523_v4, %v4511_v3  ;;  %v10237_v27 = vor.u32 %v13937_v9, %v10234_v31  ;;  %v10162_v3 = vld [vmem:[%s21619_s7 + $0x4a0] sm:$0xf0]  ;;  %v10714_v9 = vld [vmem:[%s21619_s7 + $0x8f0] sm:$0xf0]  ;;  %v14105_v31 = vld [vmem:[%s21619_s7 + $0xa5c] sm:$0xf]  ;;  %v10861_v54 = vor.u32 %v14093_v52, %v10858_v53 }
 0x139   : > { %4774 = vmatpush.bf16.msrb.mxu1 %v9949_v12  ;;  %4743 = vmatmul.bf16.vlgmr.msra.gmra.mxu2 %v15651_v19  ;;  %v9661_v12 = vor.u32 %v13793_v0, %v9658_v1  ;;  %v9970_v1 = vld [vmem:[%s21619_s7 + $0x320] sm:$0xf0] }
 0x13a   : > { %4787 = vmatpush.bf16.msrb.mxu2 %v10141_v13  ;;  %4756 = vmatmul.bf16.vlgmr.msra.gmra.mxu3 %v15661_v26  ;;  %v9853_v13 = vor.u32 %v13841_v2, %v9850_v6  ;;  %v13919_v2 = vld [vmem:[%s21619_s7 + $0x48c] sm:$0xf]  ;;  %v10522_v6 = vld [vmem:[%s21619_s7 + $0x770] sm:$0xf0] }
 0x13b   : > { %4800 = vmatpush.bf16.msrb.mxu3 %v10333_v18  ;;  %v13835_v18 = vld [vmem:[%s21619_s7 + $0x1ec] sm:$0xf]  ;;  %v10165_v17 = vor.u32 %v13919_v2, %v10162_v3  ;;  %v11026_v3 = vld [vmem:[%s21619_s7 + $0xb60] sm:$0xf0] }
 0x13c   : > { %4762 = vmatpush.bf16.msrb.mxu0 %v9733_v33  ;;  %v4536_v25 = vpop.f32.mrf.mxu2  ;;  %v9829_v44 = vor.u32 %v13835_v18, %v9826_v28  ;;  %v14003_v28 = vld [vmem:[%s21619_s7 + $0x72c] sm:$0xf] }
 0x13d   : > { %4775 = vmatpush.bf16.msrb.mxu1 %v9925_v35  ;;  %v4537_v33 = vadd.f32 %v4536_v25, %v4524_v10  ;;  %v4549_v35 = vpop.f32.mrf.mxu3  ;;  %v10906_v10 = vld [vmem:[%s21619_s7 + $0xa70] sm:$0xf0]  ;;  %v10717_v25 = vor.u32 %v14057_v7, %v10714_v9  ;;  %v14135_v2 = vld [vmem:[%s21619_s7 + $0xb4c] sm:$0xf]  ;;  %v13985_v9 = vld [vmem:[%s21619_s7 + $0x69c] sm:$0xf] }
 0x13e   : > { %4788 = vmatpush.bf16.msrb.mxu2 %v10117_v36  ;;  %v13931_v36 = vld [vmem:[%s21619_s7 + $0x4ec] sm:$0xf] }
 0x13f   : > { %4801 = vmatpush.bf16.msrb.mxu3 %v10309_v43  ;;  %v16960_v42 = vadd.f32 %v4549_v35, %v4537_v33  ;;  %v4512_v43 = vpop.f32.mrf.mxu0  ;;  %v10690_v35 = vld [vmem:[%s21619_s7 + $0x8c0] sm:$0xf0] }
 0x140   : > { %4763 = vmatpush.bf16.msrb.mxu0 %v9709_v49  ;;  %v4525_v49 = vpop.f32.mrf.mxu1  ;;  %v11074_v43 = vld [vmem:[%s21619_s7 + $0xbc0] sm:$0xf0] }
 0x141   : > { %4776 = vmatpush.bf16.msrb.mxu1 %v9901_v50  ;;  %v10213_v50 = vor.u32 %v13931_v36, %v10210_v39  ;;  %v14099_v36 = vld [vmem:[%s21619_s7 + $0xa2c] sm:$0xf]  ;;  %v10882_v39 = vld [vmem:[%s21619_s7 + $0xa40] sm:$0xf0]  ;;  %v14045_v49 = vld [vmem:[%s21619_s7 + $0x87c] sm:$0xf] }
 0x142   : > { %4789 = vmatpush.bf16.msrb.mxu2 %v10093_v51  ;;  %v9802_v51 = vld [vmem:[%s21619_s7 + $0x1d0] sm:$0xf0]  ;;  %v10885_v46 = vor.u32 %v14099_v36, %v10882_v39  ;;  %v10594_v39 = vld [vmem:[%s21619_s7 + $0x800] sm:$0xf0] }
 0x143   : > { %4802 = vmatpush.bf16.msrb.mxu3 %v10285_v56  ;;  %v10186_v56 = vld [vmem:[%s21619_s7 + $0x4d0] sm:$0xf0]  ;;  %v9805_v58 = vor.u32 %v13829_v48, %v9802_v51 }
 0x144   : > { %4764 = vmatpush.bf16.msrb.mxu0 %v9685_v60  ;;  %v13823_v60 = vld [vmem:[%s21619_s7 + $0x18c] sm:$0xf]  ;;  %v10189_v0 = vor.u32 %v13925_v55, %v10186_v56  ;;  %v10474_v48 = vld [vmem:[%s21619_s7 + $0x710] sm:$0xf0]  ;;  %v14141_v55 = vld [vmem:[%s21619_s7 + $0xb7c] sm:$0xf] }
 0x145   : > { %4777 = vmatpush.bf16.msrb.mxu1 %v9877_v62  ;;  %v13871_v62 = vld [vmem:[%s21619_s7 + $0x30c] sm:$0xf]  ;;  %v4551_v4 = vpop.f32.mrf.mxu3  ;;  %v10666_v51 = vld [vmem:[%s21619_s7 + $0x890] sm:$0xf0] }
 0x146   : > { %4790 = vmatpush.bf16.msrb.mxu2 %v10069_v63  ;;  %v4538_v63 = vpop.f32.mrf.mxu2  ;;  %v11050_v56 = vld [vmem:[%s21619_s7 + $0xb90] sm:$0xf0]  ;;  %v10669_v11 = vor.u32 %v14045_v49, %v10666_v51 }
 0x147   : > { %4803 = vmatpush.bf16.msrb.mxu3 %v10261_v5  ;;  %v14009_v5 = vld [vmem:[%s21619_s7 + $0x75c] sm:$0xf]  ;;  %v14087_v63 = vld [vmem:[%s21619_s7 + $0x9cc] sm:$0xf] }
 0x148   : > { %4765 = vmatpush.bf16.msrb.mxu0 %v9661_v12  ;;  %v9781_v12 = vor.u32 %v13823_v60, %v9778_v61  ;;  %v10525_v18 = vor.u32 %v14009_v5, %v10522_v6  ;;  %v14039_v60 = vld [vmem:[%s21619_s7 + $0x84c] sm:$0xf]  ;;  %v11053_v61 = vor.u32 %v14141_v55, %v11050_v56  ;;  %v13973_v55 = vld [vmem:[%s21619_s7 + $0x63c] sm:$0xf]  ;;  %v10378_v56 = vld [vmem:[%s21619_s7 + $0x650] sm:$0xf0] }
 0x149   : > { %4778 = vmatpush.bf16.msrb.mxu1 %v9853_v13  ;;  %v9973_v13 = vor.u32 %v13871_v62, %v9970_v1  ;;  %v10642_v62 = vld [vmem:[%s21619_s7 + $0x860] sm:$0xf0] }
 0x14a   : > { %4791 = vmatpush.bf16.msrb.mxu2 %v10045_v14  ;;  %v14153_v14 = vld [vmem:[%s21619_s7 + $0xbdc] sm:$0xf]  ;;  %v10645_v7 = vor.u32 %v14039_v60, %v10642_v62  ;;  %v10381_v62 = vor.u32 %v13973_v55, %v10378_v56  ;;  %v11242_v56 = vld [vmem:[%s21619_s7 + $0xd10] sm:$0xf0] }
 0x14b   : > { %4804 = vmatpush.bf16.msrb.mxu3 %v10237_v27  ;;  %v10909_v27 = vor.u32 %v14105_v31, %v10906_v10  ;;  %v11101_v33 = vor.u32 %v14153_v14, %v11098_v16  ;;  %v10426_v31 = vld [vmem:[%s21619_s7 + $0x6b0] sm:$0xf0]  ;;  %v14033_v10 = vld [vmem:[%s21619_s7 + $0x81c] sm:$0xf] }
 0x14c   : > { %4766 = vmatpush.bf16.msrb.mxu0 %v9637_v41  ;;  %v14147_v41 = vld [vmem:[%s21619_s7 + $0xbac] sm:$0xf]  ;;  %v14081_v14 = vld [vmem:[%s21619_s7 + $0x99c] sm:$0xf]  ;;  %v10810_v16 = vld [vmem:[%s21619_s7 + $0x9b0] sm:$0xf0] }
 0x14d   : > { %4779 = vmatpush.bf16.msrb.mxu1 %v9829_v44  ;;  %v10501_v44 = vor.u32 %v14003_v28, %v10498_v30  ;;  %v10813_v28 = vor.u32 %v14081_v14, %v10810_v16  ;;  %v13979_v30 = vld [vmem:[%s21619_s7 + $0x66c] sm:$0xf]  ;;  %v14117_v60 = vld [vmem:[%s21619_s7 + $0xabc] sm:$0xf]  ;;  %v11482_v16 = vld [vmem:[%s21619_s7 + $0xef0] sm:$0xf0] }
 0x14e   : > { %4792 = vmatpush.bf16.msrb.mxu2 %v10021_v45  ;;  %v10693_v45 = vor.u32 %v14051_v32, %v10690_v35  ;;  %v10402_v32 = vld [vmem:[%s21619_s7 + $0x680] sm:$0xf0]  ;;  %v14189_v55 = vld [vmem:[%s21619_s7 + $0xcfc] sm:$0xf] }
 0x14f   : > { %4805 = vmatpush.bf16.msrb.mxu3 %v10213_v50  ;;  %v11077_v50 = vor.u32 %v14147_v41, %v11074_v43  ;;  %v14075_v41 = vld [vmem:[%s21619_s7 + $0x96c] sm:$0xf]  ;;  %v10786_v43 = vld [vmem:[%s21619_s7 + $0x980] sm:$0xf0]  ;;  %v10405_v49 = vor.u32 %v13979_v30, %v10402_v32  ;;  %v11866_v30 = vld [vmem:[%s21619_s7 + $0x11f0] sm:$0xf0] }
 0x150   : > { %4767 = vmatpush.bf16.msrb.mxu0 %v9613_v57  ;;  %v10477_v57 = vor.u32 %v13997_v47, %v10474_v48  ;;  %v10978_v47 = vld [vmem:[%s21619_s7 + $0xb00] sm:$0xf0]  ;;  %v10789_v53 = vor.u32 %v14075_v41, %v10786_v43  ;;  %v14243_v43 = vld [vmem:[%s21619_s7 + $0xeac] sm:$0xf] }
 0x151   : > { %4780 = vmatpush.bf16.msrb.mxu1 %v9805_v58  ;;  %v13991_v58 = vld [vmem:[%s21619_s7 + $0x6cc] sm:$0xf]  ;;  %v11266_v41 = vld [vmem:[%s21619_s7 + $0xd40] sm:$0xf0] }
 0x152   : > { %4793 = vmatpush.bf16.msrb.mxu2 %v9997_v59  ;;  %v10450_v59 = vld [vmem:[%s21619_s7 + $0x6e0] sm:$0xf0] }
 0x153   : > { %4806 = vmatpush.bf16.msrb.mxu3 %v10189_v0  ;;  %v10834_v0 = vld [vmem:[%s21619_s7 + $0x9e0] sm:$0xf0]  ;;  %v10453_v5 = vor.u32 %v13991_v58, %v10450_v59  ;;  %v14069_v58 = vld [vmem:[%s21619_s7 + $0x93c] sm:$0xf]  ;;  %v10762_v59 = vld [vmem:[%s21619_s7 + $0x950] sm:$0xf0] }
 0x154   : > { %4768 = vmatpush.bf16.msrb.mxu0 %v9589_v8  ;;  %v4562_v1 = vpop.f32.mrf.mxu0  ;;  %v10837_v8 = vor.u32 %v14087_v63, %v10834_v0  ;;  %v13967_v63 = vld [vmem:[%s21619_s7 + $0x60c] sm:$0xf]  ;;  %v10354_v0 = vld [vmem:[%s21619_s7 + $0x620] sm:$0xf0] }
 0x155   : > { %4781 = vmatpush.bf16.msrb.mxu1 %v9781_v12  ;;  %v4563_v4 = vadd.f32 %v4562_v1, %v16960_v42  ;;  %v4575_v6 = vpop.f32.mrf.mxu1  ;;  %v11029_v42 = vor.u32 %v14135_v2, %v11026_v3  ;;  %v10765_v2 = vor.u32 %v14069_v58, %v10762_v59  ;;  %v14015_v3 = vld [vmem:[%s21619_s7 + $0x78c] sm:$0xf]  ;;  %v10357_v14 = vor.u32 %v13967_v63, %v10354_v0  ;;  %v14285_v58 = vld [vmem:[%s21619_s7 + $0xffc] sm:$0xf]  ;;  %v11626_v59 = vld [vmem:[%s21619_s7 + $0x1010] sm:$0xf0] }
 0x156   : > { %4794 = vmatpush.bf16.msrb.mxu2 %v9973_v13  ;;  %v10618_v13 = vld [vmem:[%s21619_s7 + $0x830] sm:$0xf0]  ;;  %v11629_v0 = vor.u32 %v14285_v58, %v11626_v59  ;;  %v14165_v59 = vld [vmem:[%s21619_s7 + $0xc3c] sm:$0xf] }
 0x157   : > { %4807 = vmatpush.bf16.msrb.mxu3 %v10165_v17  ;;  %4769 = vmatmul.bf16.vlgmr.msrb.gmra.mxu0 %v15297_v22  ;;  %v4576_v12 = vadd.f32 %v4575_v6, %v4563_v4  ;;  %v14129_v17 = vld [vmem:[%s21619_s7 + $0xb1c] sm:$0xf]  ;;  %v10546_v4 = vld [vmem:[%s21619_s7 + $0x7a0] sm:$0xf0] }
 0x158   : > { %4813 = vmatpush.bf16.msra.mxu0 %v10525_v18  ;;  %4782 = vmatmul.bf16.vlgmr.msrb.gmra.mxu1 %v15311_v29  ;;  %v11002_v18 = vld [vmem:[%s21619_s7 + $0xb30] sm:$0xf0] }
 0x159   : > { %4826 = vmatpush.bf16.msra.mxu1 %v10717_v25  ;;  %4795 = vmatmul.bf16.vlgmr.msrb.gmra.mxu2 %v15295_v21  ;;  %v10429_v25 = vor.u32 %v13985_v9, %v10426_v31  ;;  %v11005_v35 = vor.u32 %v14129_v17, %v11002_v18  ;;  %v10930_v9 = vld [vmem:[%s21619_s7 + $0xaa0] sm:$0xf0]  ;;  %v14297_v17 = vld [vmem:[%s21619_s7 + $0x105c] sm:$0xf]  ;;  %v11674_v18 = vld [vmem:[%s21619_s7 + $0x1070] sm:$0xf0] }
 0x15a   : > { %4839 = vmatpush.bf16.msra.mxu2 %v10909_v27  ;;  %4808 = vmatmul.bf16.vlgmr.msrb.gmra.mxu3 %v15299_v23  ;;  %v10621_v27 = vor.u32 %v14033_v10, %v10618_v13  ;;  %v14201_v10 = vld [vmem:[%s21619_s7 + $0xd5c] sm:$0xf] }
 0x15b   : > { %4852 = vmatpush.bf16.msra.mxu3 %v11101_v33  ;;  %v14027_v33 = vld [vmem:[%s21619_s7 + $0x7ec] sm:$0xf] }
 0x15c   : > { %4814 = vmatpush.bf16.msra.mxu0 %v10501_v44  ;;  %v4588_v36 = vpop.f32.mrf.mxu2  ;;  %v4564_v48 = vpop.f32.mrf.mxu0  ;;  %v10597_v52 = vor.u32 %v14027_v33, %v10594_v39  ;;  %v14195_v39 = vld [vmem:[%s21619_s7 + $0xd2c] sm:$0xf] }
 0x15d   : > { %4827 = vmatpush.bf16.msra.mxu1 %v10693_v45  ;;  %v4589_v44 = vadd.f32 %v4588_v36, %v4576_v12  ;;  %v4601_v45 = vpop.f32.mrf.mxu3  ;;  %v14249_v12 = vld [vmem:[%s21619_s7 + $0xedc] sm:$0xf]  ;;  %v11677_v36 = vor.u32 %v14297_v17, %v11674_v18  ;;  %v14339_v48 = vld [vmem:[%s21619_s7 + $0x11ac] sm:$0xf] }
 0x15e   : > { %4840 = vmatpush.bf16.msra.mxu2 %v10885_v46  ;;  %v14123_v46 = vld [vmem:[%s21619_s7 + $0xaec] sm:$0xf] }
 0x15f   : > { %4853 = vmatpush.bf16.msra.mxu3 %v11077_v50  ;;  %v4577_v50 = vpop.f32.mrf.mxu1  ;;  %v17159_v51 = vadd.f32 %v4601_v45, %v4589_v44  ;;  %v11458_v45 = vld [vmem:[%s21619_s7 + $0xec0] sm:$0xf0] }
 0x160   : > { %4815 = vmatpush.bf16.msra.mxu0 %v10477_v57  ;;  %v14021_v57 = vld [vmem:[%s21619_s7 + $0x7bc] sm:$0xf]  ;;  %v11269_v50 = vor.u32 %v14195_v39, %v11266_v41  ;;  %v14171_v41 = vld [vmem:[%s21619_s7 + $0xc6c] sm:$0xf] }
 0x161   : > { %4828 = vmatpush.bf16.msra.mxu1 %v10669_v11  ;;  %v10981_v11 = vor.u32 %v14123_v46, %v10978_v47  ;;  %v14291_v46 = vld [vmem:[%s21619_s7 + $0x102c] sm:$0xf]  ;;  %v11650_v47 = vld [vmem:[%s21619_s7 + $0x1040] sm:$0xf0] }
 0x162   : > { %4841 = vmatpush.bf16.msra.mxu2 %v10861_v54  ;;  %v10570_v54 = vld [vmem:[%s21619_s7 + $0x7d0] sm:$0xf0] }
 0x163   : > { %4854 = vmatpush.bf16.msra.mxu3 %v11053_v61  ;;  %v10954_v61 = vld [vmem:[%s21619_s7 + $0xad0] sm:$0xf0]  ;;  %v10573_v1 = vor.u32 %v14021_v57, %v10570_v54  ;;  %v14237_v57 = vld [vmem:[%s21619_s7 + $0xe7c] sm:$0xf] }
 0x164   : > { %4816 = vmatpush.bf16.msra.mxu0 %v10453_v5  ;;  %v14063_v5 = vld [vmem:[%s21619_s7 + $0x90c] sm:$0xf]  ;;  %v10957_v6 = vor.u32 %v14117_v60, %v10954_v61  ;;  %v4590_v31 = vpop.f32.mrf.mxu2  ;;  %v11434_v54 = vld [vmem:[%s21619_s7 + $0xe90] sm:$0xf0]  ;;  %v14333_v60 = vld [vmem:[%s21619_s7 + $0x117c] sm:$0xf] }
 0x165   : > { %4829 = vmatpush.bf16.msra.mxu1 %v10645_v7  ;;  %v10738_v7 = vld [vmem:[%s21619_s7 + $0x920] sm:$0xf0]  ;;  %v4603_v13 = vpop.f32.mrf.mxu3  ;;  %v11818_v61 = vld [vmem:[%s21619_s7 + $0x1190] sm:$0xf0]  ;;  %v11437_v63 = vor.u32 %v14237_v57, %v11434_v54 }
 0x166   : > { %4842 = vmatpush.bf16.msra.mxu2 %v10837_v8  ;;  %v14111_v8 = vld [vmem:[%s21619_s7 + $0xa8c] sm:$0xf]  ;;  %v14177_v13 = vld [vmem:[%s21619_s7 + $0xc9c] sm:$0xf] }
 0x167   : > { %4855 = vmatpush.bf16.msra.mxu3 %v11029_v42  ;;  %v11290_v42 = vld [vmem:[%s21619_s7 + $0xd70] sm:$0xf0]  ;;  %v10933_v32 = vor.u32 %v14111_v8, %v10930_v9  ;;  %v14327_v8 = vld [vmem:[%s21619_s7 + $0x114c] sm:$0xf]  ;;  %v11794_v9 = vld [vmem:[%s21619_s7 + $0x1160] sm:$0xf0] }
 0x168   : > { %4817 = vmatpush.bf16.msra.mxu0 %v10429_v25  ;;  %v10549_v25 = vor.u32 %v14015_v3, %v10546_v4  ;;  %v11293_v33 = vor.u32 %v14201_v10, %v11290_v42  ;;  %v14231_v3 = vld [vmem:[%s21619_s7 + $0xe4c] sm:$0xf]  ;;  %v11821_v4 = vor.u32 %v14333_v60, %v11818_v61  ;;  %v11797_v18 = vor.u32 %v14327_v8, %v11794_v9  ;;  %v11146_v60 = vld [vmem:[%s21619_s7 + $0xc50] sm:$0xf0]  ;;  %v14213_v61 = vld [vmem:[%s21619_s7 + $0xdbc] sm:$0xf] }
 0x169   : > { %4830 = vmatpush.bf16.msra.mxu1 %v10621_v27  ;;  %v10741_v27 = vor.u32 %v14063_v5, %v10738_v7  ;;  %v11410_v5 = vld [vmem:[%s21619_s7 + $0xe60] sm:$0xf0]  ;;  %v14207_v8 = vld [vmem:[%s21619_s7 + $0xd8c] sm:$0xf] }
 0x16a   : > { %4843 = vmatpush.bf16.msra.mxu2 %v10813_v28  ;;  %v14345_v28 = vld [vmem:[%s21619_s7 + $0x11dc] sm:$0xf]  ;;  %v11602_v7 = vld [vmem:[%s21619_s7 + $0xfe0] sm:$0xf0]  ;;  %v11413_v42 = vor.u32 %v14231_v3, %v11410_v5  ;;  %v11149_v5 = vor.u32 %v14165_v59, %v11146_v60  ;;  %v13911_v59 = vld [vmem:[%s21619_s7 + $0x444] sm:$0xf0] }
 0x16b   : > { %4856 = vmatpush.bf16.msra.mxu3 %v11005_v35  ;;  %v11485_v35 = vor.u32 %v14249_v12, %v11482_v16  ;;  %v11869_v44 = vor.u32 %v14345_v28, %v11866_v30  ;;  %v14225_v16 = vld [vmem:[%s21619_s7 + $0xe1c] sm:$0xf]  ;;  %v11578_v28 = vld [vmem:[%s21619_s7 + $0xfb0] sm:$0xf0]  ;;  %v10312_v60 = vld [vmem:[%s21619_s7 + $0x5b0] sm:$0xf] }
 0x16c   : > { %4818 = vmatpush.bf16.msra.mxu0 %v10405_v49  ;;  %v11842_v49 = vld [vmem:[%s21619_s7 + $0x11c0] sm:$0xf0]  ;;  %v14309_v3 = vld [vmem:[%s21619_s7 + $0x10bc] sm:$0xf] }
 0x16d   : > { %4831 = vmatpush.bf16.msra.mxu1 %v10597_v52  ;;  %v11461_v52 = vor.u32 %v14243_v43, %v11458_v45  ;;  %v11170_v43 = vld [vmem:[%s21619_s7 + $0xc80] sm:$0xf0] }
 0x16e   : > { %4844 = vmatpush.bf16.msra.mxu2 %v10789_v53  ;;  %v11653_v53 = vor.u32 %v14291_v46, %v11650_v47  ;;  %v11362_v47 = vld [vmem:[%s21619_s7 + $0xe00] sm:$0xf0] }
 0x16f   : > { %4857 = vmatpush.bf16.msra.mxu3 %v10981_v11  ;;  %v11845_v11 = vor.u32 %v14339_v48, %v11842_v49  ;;  %v14267_v48 = vld [vmem:[%s21619_s7 + $0xf6c] sm:$0xf]  ;;  %v11554_v49 = vld [vmem:[%s21619_s7 + $0xf80] sm:$0xf0] }
 0x170   : > { %4819 = vmatpush.bf16.msra.mxu0 %v10381_v62  ;;  %v11245_v62 = vor.u32 %v14189_v55, %v11242_v56  ;;  %v11746_v55 = vld [vmem:[%s21619_s7 + $0x1100] sm:$0xf0]  ;;  %v11173_v56 = vor.u32 %v14171_v41, %v11170_v43  ;;  %v11557_v58 = vor.u32 %v14267_v48, %v11554_v49  ;;  %v13917_v41 = vld [vmem:[%s21619_s7 + $0x474] sm:$0xf0] }
 0x171   : > { %4832 = vmatpush.bf16.msra.mxu1 %v10573_v1  ;;  %v14183_v1 = vld [vmem:[%s21619_s7 + $0xccc] sm:$0xf] }
 0x172   : > { %4845 = vmatpush.bf16.msra.mxu2 %v10765_v2  ;;  %v11218_v2 = vld [vmem:[%s21619_s7 + $0xce0] sm:$0xf0] }
 0x173   : > { %4858 = vmatpush.bf16.msra.mxu3 %v10957_v6  ;;  %v14279_v6 = vld [vmem:[%s21619_s7 + $0xfcc] sm:$0xf]  ;;  %v11221_v31 = vor.u32 %v14183_v1, %v11218_v2  ;;  %v14261_v1 = vld [vmem:[%s21619_s7 + $0xf3c] sm:$0xf]  ;;  %v11530_v2 = vld [vmem:[%s21619_s7 + $0xf50] sm:$0xf0] }
 0x174   : > { %4820 = vmatpush.bf16.msra.mxu0 %v10357_v14  ;;  %v4614_v10 = vpop.f32.mrf.mxu0  ;;  %v11605_v12 = vor.u32 %v14279_v6, %v11602_v7  ;;  %v11194_v14 = vld [vmem:[%s21619_s7 + $0xcb0] sm:$0xf0]  ;;  %v14159_v6 = vld [vmem:[%s21619_s7 + $0xc0c] sm:$0xf]  ;;  %v11122_v7 = vld [vmem:[%s21619_s7 + $0xc20] sm:$0xf0] }
 0x175   : > { %4833 = vmatpush.bf16.msra.mxu1 %v10549_v25  ;;  %v4627_v17 = vpop.f32.mrf.mxu1  ;;  %v11386_v25 = vld [vmem:[%s21619_s7 + $0xe30] sm:$0xf0] }
 0x176   : > { %4846 = vmatpush.bf16.msra.mxu2 %v10741_v27  ;;  %v14273_v27 = vld [vmem:[%s21619_s7 + $0xf9c] sm:$0xf]  ;;  %v4628_v30 = vadd.f32 %v4627_v17, %v4614_v10  ;;  %v11314_v10 = vld [vmem:[%s21619_s7 + $0xda0] sm:$0xf0]  ;;  %v14303_v17 = vld [vmem:[%s21619_s7 + $0x108c] sm:$0xf] }
 0x177   : > { %4859 = vmatpush.bf16.msra.mxu3 %v10933_v32  ;;  %4821 = vmatmul.bf16.vlgmr.msra.gmra.mxu0 %v15449_v37  ;;  %v14321_v32 = vld [vmem:[%s21619_s7 + $0x111c] sm:$0xf]  ;;  %v11581_v39 = vor.u32 %v14273_v27, %v11578_v28  ;;  %v14836_v28 = vld [vmem:[%s16597_s9] sm:$0xff] }
 0x178   : > { %4865 = vmatpush.bf16.msrb.mxu0 %v11293_v33  ;;  %4834 = vmatmul.bf16.vlgmr.msra.gmra.mxu1 %v15453_v40  ;;  %v11770_v33 = vld [vmem:[%s21619_s7 + $0x1130] sm:$0xf0] }
 0x179   : > { %4878 = vmatpush.bf16.msrb.mxu1 %v11485_v35  ;;  %4847 = vmatmul.bf16.vlgmr.msra.gmra.mxu2 %v15441_v34  ;;  %v11197_v35 = vor.u32 %v14177_v13, %v11194_v14  ;;  %v11773_v46 = vor.u32 %v14321_v32, %v11770_v33  ;;  %v13821_v32 = vld [vmem:[%s21619_s7 + $0x174] sm:$0xf0]  ;;  %v9952_v33 = vld [vmem:[%s21619_s7 + $0x2e0] sm:$0xf] }
 0x17a   : > { %4891 = vmatpush.bf16.msrb.mxu2 %v11677_v36  ;;  %4860 = vmatmul.bf16.vlgmr.msra.gmra.mxu3 %v15451_v38  ;;  %v11389_v36 = vor.u32 %v14225_v16, %v11386_v25  ;;  %v9760_v25 = vld [vmem:[%s21619_s7 + $0x160] sm:$0xf] }
 0x17b   : > { %4904 = vmatpush.bf16.msrb.mxu3 %v11869_v44  ;;  %v14219_v44 = vld [vmem:[%s21619_s7 + $0xdec] sm:$0xf]  ;;  %v9761_v49 = vor.u32 %v13821_v32, %v9760_v25  ;;  %v13851_v25 = vld [vmem:[%s21619_s7 + $0x264] sm:$0xf0] }
 0x17c   : > { %4866 = vmatpush.bf16.msrb.mxu0 %v11269_v50  ;;  %v4640_v45 = vpop.f32.mrf.mxu2  ;;  %v11365_v54 = vor.u32 %v14219_v44, %v11362_v47  ;;  %v802_v14 = vpop.xlane.xlu0 %801  ;;  %v11317_v44 = vor.u32 %v14207_v8, %v11314_v10  ;;  %v13965_v47 = vld [vmem:[%s21619_s7 + $0x5f4] sm:$0xf0]  ;;  %v13947_v32 = vld [vmem:[%s21619_s7 + $0x564] sm:$0xf0] }
 0x17d   : > { %4879 = vmatpush.bf16.msrb.mxu1 %v11461_v52  ;;  %v4641_v50 = vadd.f32 %v4640_v45, %v4628_v30  ;;  %v4653_v52 = vpop.f32.mrf.mxu3  ;;  %v803_v30 = vsub.f32 %v14836_v28, %v802_v14  ;;  %v13905_v8 = vld [vmem:[%s21619_s7 + $0x414] sm:$0xf0]  ;;  %v9688_v14 = vld [vmem:[%s21619_s7 + $0xd0] sm:$0xf]  ;;  %v13899_v28 = vld [vmem:[%s21619_s7 + $0x3e4] sm:$0xf0] }
 0x17e   : > { %4892 = vmatpush.bf16.msrb.mxu2 %v11653_v53  ;;  %v14315_v53 = vld [vmem:[%s21619_s7 + $0x10ec] sm:$0xf] }
 0x17f   : > { %4905 = vmatpush.bf16.msrb.mxu3 %v11845_v11  ;;  %v17357_v57 = vadd.f32 %v4653_v52, %v4641_v50  ;;  %v4616_v11 = vpop.f32.mrf.mxu0  ;;  %v804_v43 = vmul.f32 1.442695, %v803_v30  ;;  %v10264_v30 = vld [vmem:[%s21619_s7 + $0x550] sm:$0xf] }
 0x180   : > { %4867 = vmatpush.bf16.msrb.mxu0 %v11245_v62  ;;  %v4629_v62 = vpop.f32.mrf.mxu1 }
 0x181   : > { %4880 = vmatpush.bf16.msrb.mxu1 %v11437_v63  ;;  %v11749_v63 = vor.u32 %v14315_v53, %v11746_v55  ;;  %14830 = vpow2.f32 %v804_v43  ;;  %v9736_v53 = vld [vmem:[%s21619_s7 + $0x130] sm:$0xf]  ;;  %v13815_v55 = vld [vmem:[%s21619_s7 + $0x144] sm:$0xf0]  ;;  %v13797_v43 = vld [vmem:[%s21619_s7 + $0xb4] sm:$0xf0] }
 0x182   : > { %4893 = vmatpush.bf16.msrb.mxu2 %v11629_v0  ;;  %v11338_v0 = vld [vmem:[%s21619_s7 + $0xdd0] sm:$0xf0]  ;;  %v9737_v62 = vor.u32 %v13815_v55, %v9736_v53 }
 0x183   : > { %4906 = vmatpush.bf16.msrb.mxu3 %v11821_v4  ;;  %v11722_v4 = vld [vmem:[%s21619_s7 + $0x10d0] sm:$0xf0]  ;;  %v11341_v9 = vor.u32 %v14213_v61, %v11338_v0  ;;  %v13959_v61 = vld [vmem:[%s21619_s7 + $0x5c4] sm:$0xf0] }
 0x184   : > { %4868 = vmatpush.bf16.msrb.mxu0 %v11221_v31  ;;  %v11533_v31 = vor.u32 %v14261_v1, %v11530_v2  ;;  %v4642_v13 = vpop.f32.mrf.mxu2  ;;  %v11725_v16 = vor.u32 %v14309_v3, %v11722_v4  ;;  %v9712_v1 = vld [vmem:[%s21619_s7 + $0x100] sm:$0xf]  ;;  %v13809_v2 = vld [vmem:[%s21619_s7 + $0x114] sm:$0xf0] }
 0x185   : > { %4881 = vmatpush.bf16.msrb.mxu1 %v11413_v42  ;;  %v14255_v42 = vld [vmem:[%s21619_s7 + $0xf0c] sm:$0xf]  ;;  %v4655_v27 = vpop.f32.mrf.mxu3  ;;  %v9904_v3 = vld [vmem:[%s21619_s7 + $0x280] sm:$0xf]  ;;  %v9713_v10 = vor.u32 %v13809_v2, %v9712_v1 }
 0x186   : > { %4894 = vmatpush.bf16.msrb.mxu2 %v11605_v12  ;;  %v11506_v12 = vld [vmem:[%s21619_s7 + $0xf20] sm:$0xf0]  ;;  %v10072_v27 = vld [vmem:[%s21619_s7 + $0x3d0] sm:$0xf] }
 0x187   : > { %4907 = vmatpush.bf16.msrb.mxu3 %v11797_v18  ;;  %v11698_v18 = vld [vmem:[%s21619_s7 + $0x10a0] sm:$0xf0]  ;;  %v11509_v45 = vor.u32 %v14255_v42, %v11506_v12  ;;  %v17465_v4 = vpop.eup %14830 }
 0x188   : > { %4869 = vmatpush.bf16.msrb.mxu0 %v11197_v35  ;;  %v13869_v35 = vld [vmem:[%s21619_s7 + $0x2f4] sm:$0xf0]  ;;  %v11701_v48 = vor.u32 %v14303_v17, %v11698_v18  ;;  %v806_v42 = vsel %vm799_vm0, %v17465_v4, 0.0  ;;  %v9880_v17 = vld [vmem:[%s21619_s7 + $0x250] sm:$0xf] }
 0x189   : > { %4882 = vmatpush.bf16.msrb.mxu1 %v11389_v36  ;;  %v11125_v36 = vor.u32 %v14159_v6, %v11122_v7  ;;  %v9953_v50 = vor.u32 %v13869_v35, %v9952_v33  ;;  %v13857_v6 = vld [vmem:[%s21619_s7 + $0x294] sm:$0xf0]  ;;  %v10096_v7 = vld [vmem:[%s21619_s7 + $0x400] sm:$0xf]  ;;  %807 = vadd.xlane.f32.xlu0 %v806_v42 }
 0x18a   : > { %4895 = vmatpush.bf16.msrb.mxu2 %v11581_v39  ;;  %v10144_v39 = vld [vmem:[%s21619_s7 + $0x460] sm:$0xf]  ;;  %v9905_v12 = vor.u32 %v13857_v6, %v9904_v3  ;;  %v10097_v13 = vor.u32 %v13905_v8, %v10096_v7  ;;  %v10216_v3 = vld [vmem:[%s21619_s7 + $0x4f0] sm:$0xf]  ;;  %v13785_v42 = vld [vmem:[%s21619_s7 + $0x54] sm:$0xf0] }
 0x18b   : > { %4908 = vmatpush.bf16.msrb.mxu3 %v11773_v46  ;;  %v10336_v46 = vld [vmem:[%s21619_s7 + $0x5e0] sm:$0xf]  ;;  %v10145_v52 = vor.u32 %v13917_v41, %v10144_v39  ;;  %v10073_v39 = vor.u32 %v13899_v28, %v10072_v27  ;;  %v13929_v27 = vld [vmem:[%s21619_s7 + $0x4d4] sm:$0xf0] }
 0x18c   : > { %4870 = vmatpush.bf16.msrb.mxu0 %v11173_v56  ;;  %v9928_v56 = vld [vmem:[%s21619_s7 + $0x2b0] sm:$0xf]  ;;  %v10337_v11 = vor.u32 %v13965_v47, %v10336_v46  ;;  %v9664_v41 = vld [vmem:[%s21619_s7 + $0xa0] sm:$0xf]  ;;  %v10265_v47 = vor.u32 %v13947_v32, %v10264_v30  ;;  %v13779_v32 = vld [vmem:[%s21619_s7 + $0x24] sm:$0xf0] }
 0x18d   : > { %4883 = vmatpush.bf16.msrb.mxu1 %v11365_v54  ;;  %v13863_v54 = vld [vmem:[%s21619_s7 + $0x2c4] sm:$0xf0]  ;;  %v9665_v55 = vor.u32 %v13797_v43, %v9664_v41  ;;  %v9592_v30 = vld [vmem:[%s21619_s7 + $0x10] sm:$0xf] }
 0x18e   : > { %4896 = vmatpush.bf16.msrb.mxu2 %v11557_v58  ;;  %v10120_v58 = vld [vmem:[%s21619_s7 + $0x430] sm:$0xf] }
 0x18f   : > { %4909 = vmatpush.bf16.msrb.mxu3 %v11749_v63  ;;  %v9929_v63 = vor.u32 %v13863_v54, %v9928_v56  ;;  %v10121_v0 = vor.u32 %v13911_v59, %v10120_v58  ;;  %v9640_v54 = vld [vmem:[%s21619_s7 + $0x70] sm:$0xf]  ;;  %v13791_v58 = vld [vmem:[%s21619_s7 + $0x84] sm:$0xf0] }
 0x190   : > { %4871 = vmatpush.bf16.msrb.mxu0 %v11149_v5  ;;  %v10313_v5 = vor.u32 %v13959_v61, %v10312_v60  ;;  %v9832_v59 = vld [vmem:[%s21619_s7 + $0x1f0] sm:$0xf]  ;;  %v9641_v6 = vor.u32 %v13791_v58, %v9640_v54  ;;  %v11104_v58 = vld [vmem:[%s21619_s7 + $0xbe0] sm:$0xf] }
 0x191   : > { %4884 = vmatpush.bf16.msrb.mxu1 %v11341_v9  ;;  %v10288_v9 = vld [vmem:[%s21619_s7 + $0x580] sm:$0xf]  ;;  %v9976_v41 = vld [vmem:[%s21619_s7 + $0x310] sm:$0xf] }
 0x192   : > { %4897 = vmatpush.bf16.msrb.mxu2 %v11533_v31  ;;  %v13953_v31 = vld [vmem:[%s21619_s7 + $0x594] sm:$0xf0] }
 0x193   : > { %4910 = vmatpush.bf16.msrb.mxu3 %v11725_v16  ;;  %v13803_v16 = vld [vmem:[%s21619_s7 + $0xe4] sm:$0xf0]  ;;  %v10289_v18 = vor.u32 %v13953_v31, %v10288_v9 }
 0x194   : > { %4872 = vmatpush.bf16.msrb.mxu0 %v11125_v36  ;;  %v9689_v33 = vor.u32 %v13803_v16, %v9688_v14  ;;  %v4666_v35 = vpop.f32.mrf.mxu0  ;;  %v9881_v36 = vor.u32 %v13851_v25, %v9880_v17  ;;  %v13833_v16 = vld [vmem:[%s21619_s7 + $0x1d4] sm:$0xf0]  ;;  %v10000_v17 = vld [vmem:[%s21619_s7 + $0x340] sm:$0xf] }
 0x195   : > { %4885 = vmatpush.bf16.msrb.mxu1 %v11317_v44  ;;  %v9856_v44 = vld [vmem:[%s21619_s7 + $0x220] sm:$0xf]  ;;  %v4679_v46 = vpop.f32.mrf.mxu1 }
 0x196   : > { %4898 = vmatpush.bf16.msrb.mxu2 %v11509_v45  ;;  %v4667_v45 = vadd.f32 %v4666_v35, %v17357_v57  ;;  %v13941_v57 = vld [vmem:[%s21619_s7 + $0x534] sm:$0xf0]  ;;  %v10192_v25 = vld [vmem:[%s21619_s7 + $0x4c0] sm:$0xf] }
 0x197   : > { %4911 = vmatpush.bf16.msrb.mxu3 %v11701_v48  ;;  %4873 = vmatmul.bf16.vlgmr.msrb.gmra.mxu0 %v15640_v15  ;;  %v13845_v48 = vld [vmem:[%s21619_s7 + $0x234] sm:$0xf0] }
 0x198   : > { %4917 = vmatpush.bf16.msra.mxu0 %v9761_v49  ;;  %4886 = vmatmul.bf16.vlgmr.msrb.gmra.mxu1 %v15653_v20  ;;  %v10048_v49 = vld [vmem:[%s21619_s7 + $0x3a0] sm:$0xf]  ;;  %v4680_v53 = vadd.f32 %v4679_v46, %v4667_v45  ;;  %v9857_v56 = vor.u32 %v13845_v48, %v9856_v44  ;;  %v10193_v44 = vor.u32 %v13929_v27, %v10192_v25  ;;  %v13875_v45 = vld [vmem:[%s21619_s7 + $0x324] sm:$0xf0]  ;;  %v10168_v46 = vld [vmem:[%s21619_s7 + $0x490] sm:$0xf] }
 0x199   : > { %4930 = vmatpush.bf16.msra.mxu1 %v9953_v50  ;;  %4899 = vmatmul.bf16.vlgmr.msrb.gmra.mxu2 %v15651_v19  ;;  %v13893_v50 = vld [vmem:[%s21619_s7 + $0x3b4] sm:$0xf0]  ;;  %v9977_v54 = vor.u32 %v13875_v45, %v9976_v41  ;;  %v10864_v25 = vld [vmem:[%s21619_s7 + $0xa00] sm:$0xf]  ;;  %v10648_v41 = vld [vmem:[%s21619_s7 + $0x850] sm:$0xf] }
 0x19a   : > { %4943 = vmatpush.bf16.msra.mxu2 %v10145_v52  ;;  %4912 = vmatmul.bf16.vlgmr.msrb.gmra.mxu3 %v15661_v26  ;;  %v10240_v52 = vld [vmem:[%s21619_s7 + $0x520] sm:$0xf]  ;;  %v14097_v27 = vld [vmem:[%s21619_s7 + $0xa14] sm:$0xf0]  ;;  %v10840_v45 = vld [vmem:[%s21619_s7 + $0x9d0] sm:$0xf] }
 0x19b   : > { %4956 = vmatpush.bf16.msra.mxu3 %v10337_v11  ;;  %v10049_v11 = vor.u32 %v13893_v50, %v10048_v49  ;;  %v10241_v61 = vor.u32 %v13941_v57, %v10240_v52  ;;  %v10528_v49 = vld [vmem:[%s21619_s7 + $0x760] sm:$0xf]  ;;  %v14013_v50 = vld [vmem:[%s21619_s7 + $0x774] sm:$0xf0]  ;;  %v9593_v57 = vor.u32 %v13779_v32, %v9592_v30 }
 0x19c   : > { %4918 = vmatpush.bf16.msra.mxu0 %v9737_v62  ;;  %v4692_v60 = vpop.f32.mrf.mxu2  ;;  %v13839_v62 = vld [vmem:[%s21619_s7 + $0x204] sm:$0xf0]  ;;  %v4668_v8 = vpop.f32.mrf.mxu0  ;;  %v10720_v52 = vld [vmem:[%s21619_s7 + $0x8e0] sm:$0xf]  ;;  %v14145_v30 = vld [vmem:[%s21619_s7 + $0xb94] sm:$0xf0] }
 0x19d   : > { %4931 = vmatpush.bf16.msra.mxu1 %v9929_v63  ;;  %v10024_v63 = vld [vmem:[%s21619_s7 + $0x370] sm:$0xf]  ;;  %v4693_v1 = vadd.f32 %v4692_v60, %v4680_v53  ;;  %v4705_v2 = vpop.f32.mrf.mxu3  ;;  %v9833_v9 = vor.u32 %v13839_v62, %v9832_v59  ;;  %v14061_v53 = vld [vmem:[%s21619_s7 + $0x8f4] sm:$0xf0]  ;;  %v14103_v8 = vld [vmem:[%s21619_s7 + $0xa44] sm:$0xf0] }
 0x19e   : > { %4944 = vmatpush.bf16.msra.mxu2 %v10121_v0  ;;  %v13887_v0 = vld [vmem:[%s21619_s7 + $0x384] sm:$0xf0]  ;;  %v14157_v59 = vld [vmem:[%s21619_s7 + $0xbf4] sm:$0xf0]  ;;  %v10721_v62 = vor.u32 %v14061_v53, %v10720_v52 }
 0x19f   : > { %4957 = vmatpush.bf16.msra.mxu3 %v10313_v5  ;;  %v13935_v5 = vld [vmem:[%s21619_s7 + $0x504] sm:$0xf0]  ;;  %v17561_v7 = vadd.f32 %v4705_v2, %v4693_v1  ;;  %v10025_v31 = vor.u32 %v13887_v0, %v10024_v63  ;;  %v10504_v0 = vld [vmem:[%s21619_s7 + $0x730] sm:$0xf] }
 0x1a0   : > { %4919 = vmatpush.bf16.msra.mxu0 %v9713_v10  ;;  %v9616_v10 = vld [vmem:[%s21619_s7 + $0x40] sm:$0xf]  ;;  %v10217_v14 = vor.u32 %v13935_v5, %v10216_v3  ;;  %v14007_v1 = vld [vmem:[%s21619_s7 + $0x744] sm:$0xf0]  ;;  %v10696_v2 = vld [vmem:[%s21619_s7 + $0x8b0] sm:$0xf]  ;;  %v11105_v3 = vor.u32 %v14157_v59, %v11104_v58 }
 0x1a1   : > { %4932 = vmatpush.bf16.msra.mxu1 %v9905_v12  ;;  %v9808_v12 = vld [vmem:[%s21619_s7 + $0x1c0] sm:$0xf]  ;;  %v9617_v28 = vor.u32 %v13785_v42, %v9616_v10  ;;  %v14055_v5 = vld [vmem:[%s21619_s7 + $0x8c4] sm:$0xf0]  ;;  %v10505_v10 = vor.u32 %v14007_v1, %v10504_v0  ;;  %v14037_v59 = vld [vmem:[%s21619_s7 + $0x834] sm:$0xf0] }
 0x1a2   : > { %4945 = vmatpush.bf16.msra.mxu2 %v10097_v13  ;;  %v4681_v13 = vpop.f32.mrf.mxu1  ;;  %v10697_v42 = vor.u32 %v14055_v5, %v10696_v2  ;;  %v13983_v5 = vld [vmem:[%s21619_s7 + $0x684] sm:$0xf0] }
 0x1a3   : > { %4958 = vmatpush.bf16.msra.mxu3 %v10289_v18  ;;  %v13881_v18 = vld [vmem:[%s21619_s7 + $0x354] sm:$0xf0]  ;;  %v10480_v13 = vld [vmem:[%s21619_s7 + $0x700] sm:$0xf] }
 0x1a4   : > { %4920 = vmatpush.bf16.msra.mxu0 %v9689_v33  ;;  %v9809_v33 = vor.u32 %v13833_v16, %v9808_v12  ;;  %v10001_v35 = vor.u32 %v13881_v18, %v10000_v17  ;;  %v4694_v43 = vpop.f32.mrf.mxu2  ;;  %v10672_v16 = vld [vmem:[%s21619_s7 + $0x880] sm:$0xf]  ;;  %v14049_v18 = vld [vmem:[%s21619_s7 + $0x894] sm:$0xf0] }
 0x1a5   : > { %4933 = vmatpush.bf16.msra.mxu1 %v9881_v36  ;;  %v9784_v36 = vld [vmem:[%s21619_s7 + $0x190] sm:$0xf]  ;;  %v4707_v48 = vpop.f32.mrf.mxu3 }
 0x1a6   : > { %4946 = vmatpush.bf16.msra.mxu2 %v10073_v39  ;;  %v13827_v39 = vld [vmem:[%s21619_s7 + $0x1a4] sm:$0xf0]  ;;  %v11032_v48 = vld [vmem:[%s21619_s7 + $0xb50] sm:$0xf] }
 0x1a7   : > { %4959 = vmatpush.bf16.msra.mxu3 %v10265_v47  ;;  %v13923_v47 = vld [vmem:[%s21619_s7 + $0x4a4] sm:$0xf0] }
 0x1a8   : > { %4921 = vmatpush.bf16.msra.mxu0 %v9665_v55  ;;  %v10912_v55 = vld [vmem:[%s21619_s7 + $0xa60] sm:$0xf]  ;;  %v10169_v60 = vor.u32 %v13923_v47, %v10168_v46  ;;  %v14091_v46 = vld [vmem:[%s21619_s7 + $0x9e4] sm:$0xf0] }
 0x1a9   : > { %4934 = vmatpush.bf16.msra.mxu1 %v9857_v56  ;;  %v14109_v56 = vld [vmem:[%s21619_s7 + $0xa74] sm:$0xf0] }
 0x1aa   : > { %4947 = vmatpush.bf16.msra.mxu2 %v10049_v11  ;;  %v9785_v11 = vor.u32 %v13827_v39, %v9784_v36  ;;  %v10913_v63 = vor.u32 %v14109_v56, %v10912_v55  ;;  %v10456_v36 = vld [vmem:[%s21619_s7 + $0x6d0] sm:$0xf]  ;;  %v13995_v39 = vld [vmem:[%s21619_s7 + $0x6e4] sm:$0xf0]  ;;  %v10841_v55 = vor.u32 %v14091_v46, %v10840_v45  ;;  %v10432_v56 = vld [vmem:[%s21619_s7 + $0x6a0] sm:$0xf] }
 0x1ab   : > { %4960 = vmatpush.bf16.msra.mxu3 %v10241_v61  ;;  %v10529_v61 = vor.u32 %v14013_v50, %v10528_v49  ;;  %v14139_v49 = vld [vmem:[%s21619_s7 + $0xb64] sm:$0xf0]  ;;  %v10457_v52 = vor.u32 %v13995_v39, %v10456_v36  ;;  %v14025_v39 = vld [vmem:[%s21619_s7 + $0x7d4] sm:$0xf0] }
 0x1ac   : > { %4922 = vmatpush.bf16.msra.mxu0 %v9641_v6  ;;  %v10888_v6 = vld [vmem:[%s21619_s7 + $0xa30] sm:$0xf]  ;;  %v14121_v45 = vld [vmem:[%s21619_s7 + $0xad4] sm:$0xf0] }
 0x1ad   : > { %4935 = vmatpush.bf16.msra.mxu1 %v9833_v9  ;;  %v11080_v9 = vld [vmem:[%s21619_s7 + $0xbb0] sm:$0xf]  ;;  %v10889_v12 = vor.u32 %v14103_v8, %v10888_v6 }
 0x1ae   : > { %4948 = vmatpush.bf16.msra.mxu2 %v10025_v31  ;;  %v14151_v31 = vld [vmem:[%s21619_s7 + $0xbc4] sm:$0xf0]  ;;  %v10600_v6 = vld [vmem:[%s21619_s7 + $0x7f0] sm:$0xf] }
 0x1af   : > { %4961 = vmatpush.bf16.msra.mxu3 %v10217_v14  ;;  %v14001_v14 = vld [vmem:[%s21619_s7 + $0x714] sm:$0xf0]  ;;  %v11081_v17 = vor.u32 %v14151_v31, %v11080_v9  ;;  %v14031_v31 = vld [vmem:[%s21619_s7 + $0x804] sm:$0xf0] }
 0x1b0   : > { %4923 = vmatpush.bf16.msra.mxu0 %v9617_v28  ;;  %v11056_v28 = vld [vmem:[%s21619_s7 + $0xb80] sm:$0xf]  ;;  %v10481_v32 = vor.u32 %v14001_v14, %v10480_v13  ;;  %v10984_v14 = vld [vmem:[%s21619_s7 + $0xaf0] sm:$0xf] }
 0x1b1   : > { %4936 = vmatpush.bf16.msra.mxu1 %v9809_v33  ;;  %v10673_v33 = vor.u32 %v14049_v18, %v10672_v16  ;;  %v11057_v43 = vor.u32 %v14145_v30, %v11056_v28  ;;  %v14127_v16 = vld [vmem:[%s21619_s7 + $0xb04] sm:$0xf0]  ;;  %v10601_v28 = vor.u32 %v14031_v31, %v10600_v6  ;;  %v14349_v6 = vld [vmem:[%s21619_s7 + $0x11f4] sm:$0xf0] }
 0x1b2   : > { %4949 = vmatpush.bf16.msra.mxu2 %v10001_v35  ;;  %v10865_v35 = vor.u32 %v14097_v27, %v10864_v25  ;;  %v10985_v36 = vor.u32 %v14127_v16, %v10984_v14  ;;  %v14247_v16 = vld [vmem:[%s21619_s7 + $0xec4] sm:$0xf0] }
 0x1b3   : > { %4962 = vmatpush.bf16.msra.mxu3 %v10193_v44  ;;  %v14043_v44 = vld [vmem:[%s21619_s7 + $0x864] sm:$0xf0] }
 0x1b4   : > { %4924 = vmatpush.bf16.msra.mxu0 %v9593_v57  ;;  %v4718_v47 = vpop.f32.mrf.mxu0  ;;  %v10649_v53 = vor.u32 %v14043_v44, %v10648_v41  ;;  %v10768_v41 = vld [vmem:[%s21619_s7 + $0x940] sm:$0xf] }
 0x1b5   : > { %4937 = vmatpush.bf16.msra.mxu1 %v9785_v11  ;;  %v4719_v50 = vadd.f32 %v4718_v47, %v17561_v7  ;;  %v4731_v57 = vpop.f32.mrf.mxu1  ;;  %v13989_v11 = vld [vmem:[%s21619_s7 + $0x6b4] sm:$0xf0]  ;;  %v11033_v7 = vor.u32 %v14139_v49, %v11032_v48  ;;  %v10960_v44 = vld [vmem:[%s21619_s7 + $0xac0] sm:$0xf]  ;;  %v10360_v47 = vld [vmem:[%s21619_s7 + $0x610] sm:$0xf] }
 0x1b6   : > { %4950 = vmatpush.bf16.msra.mxu2 %v9977_v54  ;;  %v10624_v54 = vld [vmem:[%s21619_s7 + $0x820] sm:$0xf]  ;;  %v10433_v0 = vor.u32 %v13989_v11, %v10432_v56  ;;  %v13971_v48 = vld [vmem:[%s21619_s7 + $0x624] sm:$0xf0]  ;;  %v10936_v11 = vld [vmem:[%s21619_s7 + $0xa90] sm:$0xf] }
 0x1b7   : > { %4963 = vmatpush.bf16.msra.mxu3 %v10169_v60  ;;  %4925 = vmatmul.bf16.vlgmr.msra.gmra.mxu0 %v15297_v22  ;;  %v4732_v58 = vadd.f32 %v4731_v57, %v4719_v50  ;;  %v10816_v60 = vld [vmem:[%s21619_s7 + $0x9a0] sm:$0xf]  ;;  %v10625_v1 = vor.u32 %v14037_v59, %v10624_v54  ;;  %v14019_v57 = vld [vmem:[%s21619_s7 + $0x7a4] sm:$0xf0]  ;;  %v14205_v59 = vld [vmem:[%s21619_s7 + $0xd74] sm:$0xf0] }
 0x1b8   : > { %4969 = vmatpush.bf16.msrb.mxu0 %v10529_v61  ;;  %4938 = vmatmul.bf16.vlgmr.msra.gmra.mxu1 %v15311_v29  ;;  %v14085_v61 = vld [vmem:[%s21619_s7 + $0x9b4] sm:$0xf0]  ;;  %v14067_v56 = vld [vmem:[%s21619_s7 + $0x924] sm:$0xf0] }
 0x1b9   : > { %4982 = vmatpush.bf16.msrb.mxu1 %v10721_v62  ;;  %4951 = vmatmul.bf16.vlgmr.msra.gmra.mxu2 %v15295_v21  ;;  %v11008_v62 = vld [vmem:[%s21619_s7 + $0xb20] sm:$0xf]  ;;  %v10817_v2 = vor.u32 %v14085_v61, %v10816_v60  ;;  %v14115_v54 = vld [vmem:[%s21619_s7 + $0xaa4] sm:$0xf0] }
 0x1ba   : > { %4995 = vmatpush.bf16.msrb.mxu2 %v10913_v63  ;;  %4964 = vmatmul.bf16.vlgmr.msra.gmra.mxu3 %v15299_v23  ;;  %v14133_v63 = vld [vmem:[%s21619_s7 + $0xb34] sm:$0xf0]  ;;  %v11488_v60 = vld [vmem:[%s21619_s7 + $0xee0] sm:$0xf] }
 0x1bb   : > { %5008 = vmatpush.bf16.msrb.mxu3 %v11105_v3  ;;  %v10408_v3 = vld [vmem:[%s21619_s7 + $0x670] sm:$0xf]  ;;  %v11009_v8 = vor.u32 %v14133_v63, %v11008_v62  ;;  %v10361_v62 = vor.u32 %v13971_v48, %v10360_v47  ;;  %v14253_v63 = vld [vmem:[%s21619_s7 + $0xef4] sm:$0xf0] }
 0x1bc   : > { %4970 = vmatpush.bf16.msrb.mxu0 %v10505_v10  ;;  %v4744_v9 = vpop.f32.mrf.mxu2  ;;  %v10792_v10 = vld [vmem:[%s21619_s7 + $0x970] sm:$0xf]  ;;  %v10409_v18 = vor.u32 %v13983_v5, %v10408_v3  ;;  %v11872_v5 = vld [vmem:[%s21619_s7 + $0x11e0] sm:$0xf]  ;;  %v11489_v31 = vor.u32 %v14253_v63, %v11488_v60  ;;  %v14337_v47 = vld [vmem:[%s21619_s7 + $0x1194] sm:$0xf0] }
 0x1bd   : > { %4983 = vmatpush.bf16.msrb.mxu1 %v10697_v42  ;;  %v14079_v42 = vld [vmem:[%s21619_s7 + $0x984] sm:$0xf0]  ;;  %v4757_v13 = vpop.f32.mrf.mxu3  ;;  %v4733_v25 = vpop.f32.mrf.mxu1  ;;  %v11873_v14 = vor.u32 %v14349_v6, %v11872_v5  ;;  %v11200_v63 = vld [vmem:[%s21619_s7 + $0xca0] sm:$0xf]  ;;  %v14229_v5 = vld [vmem:[%s21619_s7 + $0xe34] sm:$0xf0] }
 0x1be   : > { %4996 = vmatpush.bf16.msrb.mxu2 %v10889_v12  ;;  %v4745_v12 = vadd.f32 %v4744_v9, %v4732_v58  ;;  %v10793_v30 = vor.u32 %v14079_v42, %v10792_v10  ;;  %v11296_v58 = vld [vmem:[%s21619_s7 + $0xd60] sm:$0xf]  ;;  %v11272_v42 = vld [vmem:[%s21619_s7 + $0xd30] sm:$0xf] }
 0x1bf   : > { %5009 = vmatpush.bf16.msrb.mxu3 %v11081_v17  ;;  %v4720_v17 = vpop.f32.mrf.mxu0  ;;  %v11297_v9 = vor.u32 %v14205_v59, %v11296_v58  ;;  %v11848_v25 = vld [vmem:[%s21619_s7 + $0x11b0] sm:$0xf]  ;;  %v14331_v58 = vld [vmem:[%s21619_s7 + $0x1164] sm:$0xf0]  ;;  %v11584_v6 = vld [vmem:[%s21619_s7 + $0xfa0] sm:$0xf] }
 0x1c0   : > { %4971 = vmatpush.bf16.msrb.mxu0 %v10481_v32  ;;  %v17760_v27 = vadd.f32 %v4757_v13, %v4745_v12  ;;  %v10384_v32 = vld [vmem:[%s21619_s7 + $0x640] sm:$0xf]  ;;  %v14199_v12 = vld [vmem:[%s21619_s7 + $0xd44] sm:$0xf0]  ;;  %v11464_v13 = vld [vmem:[%s21619_s7 + $0xeb0] sm:$0xf] }
 0x1c1   : > { %4984 = vmatpush.bf16.msrb.mxu1 %v10673_v33  ;;  %v13977_v33 = vld [vmem:[%s21619_s7 + $0x654] sm:$0xf0]  ;;  %v11656_v17 = vld [vmem:[%s21619_s7 + $0x1030] sm:$0xf] }
 0x1c2   : > { %4997 = vmatpush.bf16.msrb.mxu2 %v10865_v35  ;;  %v10576_v35 = vld [vmem:[%s21619_s7 + $0x7c0] sm:$0xf]  ;;  %v10385_v46 = vor.u32 %v13977_v33, %v10384_v32  ;;  %v11465_v32 = vor.u32 %v14247_v16, %v11464_v13  ;;  %v14175_v16 = vld [vmem:[%s21619_s7 + $0xc84] sm:$0xf0] }
 0x1c3   : > { %5010 = vmatpush.bf16.msrb.mxu3 %v11057_v43  ;;  %v14073_v43 = vld [vmem:[%s21619_s7 + $0x954] sm:$0xf0]  ;;  %v10577_v49 = vor.u32 %v14025_v39, %v10576_v35  ;;  %v11248_v35 = vld [vmem:[%s21619_s7 + $0xd00] sm:$0xf] }
 0x1c4   : > { %4972 = vmatpush.bf16.msrb.mxu0 %v10457_v52  ;;  %v10769_v50 = vor.u32 %v14073_v43, %v10768_v41  ;;  %v10552_v52 = vld [vmem:[%s21619_s7 + $0x790] sm:$0xf]  ;;  %v11440_v39 = vld [vmem:[%s21619_s7 + $0xe80] sm:$0xf]  ;;  %v14241_v43 = vld [vmem:[%s21619_s7 + $0xe94] sm:$0xf0] }
 0x1c5   : > { %4985 = vmatpush.bf16.msrb.mxu1 %v10649_v53  ;;  %v10744_v53 = vld [vmem:[%s21619_s7 + $0x910] sm:$0xf]  ;;  %v4759_v61 = vpop.f32.mrf.mxu3 }
 0x1c6   : > { %4998 = vmatpush.bf16.msrb.mxu2 %v10841_v55  ;;  %v10961_v55 = vor.u32 %v14121_v45, %v10960_v44  ;;  %v10745_v3 = vor.u32 %v14067_v56, %v10744_v53  ;;  %v11632_v44 = vld [vmem:[%s21619_s7 + $0x1000] sm:$0xf]  ;;  %v14289_v45 = vld [vmem:[%s21619_s7 + $0x1014] sm:$0xf0]  ;;  %v11416_v53 = vld [vmem:[%s21619_s7 + $0xe50] sm:$0xf] }
 0x1c7   : > { %5011 = vmatpush.bf16.msrb.mxu3 %v11033_v7  ;;  %v4746_v7 = vpop.f32.mrf.mxu2  ;;  %v14235_v56 = vld [vmem:[%s21619_s7 + $0xe64] sm:$0xf0] }
 0x1c8   : > { %4973 = vmatpush.bf16.msrb.mxu0 %v10433_v0  ;;  %v11680_v0 = vld [vmem:[%s21619_s7 + $0x1060] sm:$0xf]  ;;  %v11800_v7 = vld [vmem:[%s21619_s7 + $0x1150] sm:$0xf]  ;;  %v11417_v61 = vor.u32 %v14235_v56, %v11416_v53 }
 0x1c9   : > { %4986 = vmatpush.bf16.msrb.mxu1 %v10625_v1  ;;  %v14301_v1 = vld [vmem:[%s21619_s7 + $0x1074] sm:$0xf0]  ;;  %v11536_v53 = vld [vmem:[%s21619_s7 + $0xf40] sm:$0xf] }
 0x1ca   : > { %4999 = vmatpush.bf16.msrb.mxu2 %v10817_v2  ;;  %v10553_v2 = vor.u32 %v14019_v57, %v10552_v52  ;;  %v11681_v10 = vor.u32 %v14301_v1, %v11680_v0  ;;  %v11224_v52 = vld [vmem:[%s21619_s7 + $0xcd0] sm:$0xf]  ;;  %v14187_v57 = vld [vmem:[%s21619_s7 + $0xce4] sm:$0xf0]  ;;  %v14181_v0 = vld [vmem:[%s21619_s7 + $0xcb4] sm:$0xf0] }
 0x1cb   : > { %5012 = vmatpush.bf16.msrb.mxu3 %v11009_v8  ;;  %v10937_v8 = vor.u32 %v14115_v54, %v10936_v11  ;;  %v11608_v11 = vld [vmem:[%s21619_s7 + $0xfd0] sm:$0xf]  ;;  %v14283_v54 = vld [vmem:[%s21619_s7 + $0xfe4] sm:$0xf0]  ;;  %v11225_v59 = vor.u32 %v14187_v57, %v11224_v52  ;;  %v11392_v1 = vld [vmem:[%s21619_s7 + $0xe20] sm:$0xf] }
 0x1cc   : > { %4974 = vmatpush.bf16.msrb.mxu0 %v10409_v18  ;;  %v14295_v18 = vld [vmem:[%s21619_s7 + $0x1044] sm:$0xf0]  ;;  %v14217_v57 = vld [vmem:[%s21619_s7 + $0xdd4] sm:$0xf0]  ;;  %v11728_v56 = vld [vmem:[%s21619_s7 + $0x10c0] sm:$0xf] }
 0x1cd   : > { %4987 = vmatpush.bf16.msrb.mxu1 %v10601_v28  ;;  %v14343_v28 = vld [vmem:[%s21619_s7 + $0x11c4] sm:$0xf0]  ;;  %v11657_v33 = vor.u32 %v14295_v18, %v11656_v17  ;;  %v11368_v17 = vld [vmem:[%s21619_s7 + $0xdf0] sm:$0xf] }
 0x1ce   : > { %5000 = vmatpush.bf16.msrb.mxu2 %v10793_v30  ;;  %v11273_v30 = vor.u32 %v14199_v12, %v11272_v42  ;;  %v11849_v41 = vor.u32 %v14343_v28, %v11848_v25  ;;  %v11201_v42 = vor.u32 %v14181_v0, %v11200_v63  ;;  %v11393_v12 = vor.u32 %v14229_v5, %v11392_v1  ;;  %v14223_v28 = vld [vmem:[%s21619_s7 + $0xe04] sm:$0xf0]  ;;  %v11512_v63 = vld [vmem:[%s21619_s7 + $0xf10] sm:$0xf] }
 0x1cf   : > { %5013 = vmatpush.bf16.msrb.mxu3 %v10985_v36  ;;  %v14193_v36 = vld [vmem:[%s21619_s7 + $0xd14] sm:$0xf0]  ;;  %v14307_v5 = vld [vmem:[%s21619_s7 + $0x10a4] sm:$0xf0] }
 0x1d0   : > { %4975 = vmatpush.bf16.msrb.mxu0 %v10385_v46  ;;  %v11824_v46 = vld [vmem:[%s21619_s7 + $0x1180] sm:$0xf]  ;;  %v11249_v48 = vor.u32 %v14193_v36, %v11248_v35  ;;  %v11752_v36 = vld [vmem:[%s21619_s7 + $0x10f0] sm:$0xf] }
 0x1d1   : > { %4988 = vmatpush.bf16.msrb.mxu1 %v10577_v49  ;;  %v11441_v49 = vor.u32 %v14241_v43, %v11440_v39  ;;  %v14319_v39 = vld [vmem:[%s21619_s7 + $0x1104] sm:$0xf0] }
 0x1d2   : > { %5001 = vmatpush.bf16.msrb.mxu2 %v10769_v50  ;;  %v11633_v50 = vor.u32 %v14289_v45, %v11632_v44  ;;  %v11369_v45 = vor.u32 %v14223_v28, %v11368_v17  ;;  %v11753_v52 = vor.u32 %v14319_v39, %v11752_v36  ;;  %v13962_v17 = vld [vmem:[%s21619_s7 + $0x5e4] sm:$0xf]  ;;  %v13860_v36 = vld [vmem:[%s21619_s7 + $0x2b4] sm:$0xf] }
 0x1d3   : > { %5014 = vmatpush.bf16.msrb.mxu3 %v10961_v55  ;;  %v11825_v55 = vor.u32 %v14337_v47, %v11824_v46  ;;  %v11152_v47 = vld [vmem:[%s21619_s7 + $0xc40] sm:$0xf] }
 0x1d4   : > { %4976 = vmatpush.bf16.msrb.mxu0 %v10361_v62  ;;  %v4770_v60 = vpop.f32.mrf.mxu0  ;;  %v11609_v62 = vor.u32 %v14283_v54, %v11608_v11  ;;  %v14313_v11 = vld [vmem:[%s21619_s7 + $0x10d4] sm:$0xf0] }
 0x1d5   : > { %4989 = vmatpush.bf16.msrb.mxu1 %v10553_v2  ;;  %v4783_v2 = vpop.f32.mrf.mxu1  ;;  %v11729_v1 = vor.u32 %v14313_v11, %v11728_v56  ;;  %v9906_v56 = vld [vmem:[%s21619_s7 + $0x298] sm:$0xf0]  ;;  %v13902_v11 = vld [vmem:[%s21619_s7 + $0x404] sm:$0xf] }
 0x1d6   : > { %5002 = vmatpush.bf16.msrb.mxu2 %v10745_v3  ;;  %v11801_v3 = vor.u32 %v14331_v58, %v11800_v7  ;;  %v11128_v7 = vld [vmem:[%s21619_s7 + $0xc10] sm:$0xf]  ;;  %v14163_v58 = vld [vmem:[%s21619_s7 + $0xc24] sm:$0xf0] }
 0x1d7   : > { %5015 = vmatpush.bf16.msrb.mxu3 %v10937_v8  ;;  %4977 = vmatmul.bf16.vlgmr.msrb.gmra.mxu0 %v15449_v37  ;;  %v14277_v8 = vld [vmem:[%s21619_s7 + $0xfb4] sm:$0xf0] }
 0x1d8   : > { %5021 = vmatpush.bf16.msra.mxu0 %v11297_v9  ;;  %4990 = vmatmul.bf16.vlgmr.msrb.gmra.mxu1 %v15453_v40  ;;  %v4784_v9 = vadd.f32 %v4783_v2, %v4770_v60  ;;  %v11585_v13 = vor.u32 %v14277_v8, %v11584_v6  ;;  %v14259_v2 = vld [vmem:[%s21619_s7 + $0xf24] sm:$0xf0]  ;;  %v13818_v8 = vld [vmem:[%s21619_s7 + $0x164] sm:$0xf] }
 0x1d9   : > { %5034 = vmatpush.bf16.msra.mxu1 %v11489_v31  ;;  %5003 = vmatmul.bf16.vlgmr.msrb.gmra.mxu2 %v15441_v34  ;;  %v11776_v31 = vld [vmem:[%s21619_s7 + $0x1120] sm:$0xf] }
 0x1da   : > { %5047 = vmatpush.bf16.msra.mxu2 %v11681_v10  ;;  %5016 = vmatmul.bf16.vlgmr.msrb.gmra.mxu3 %v15451_v38  ;;  %v14325_v10 = vld [vmem:[%s21619_s7 + $0x1134] sm:$0xf0] }
 0x1db   : > { %5060 = vmatpush.bf16.msra.mxu3 %v11873_v14  ;;  %v11176_v14 = vld [vmem:[%s21619_s7 + $0xc70] sm:$0xf]  ;;  %v11777_v25 = vor.u32 %v14325_v10, %v11776_v31  ;;  %v13866_v31 = vld [vmem:[%s21619_s7 + $0x2e4] sm:$0xf]  ;;  %v11129_v10 = vor.u32 %v14163_v58, %v11128_v7  ;;  %v10290_v58 = vld [vmem:[%s21619_s7 + $0x598] sm:$0xf0] }
 0x1dc   : > { %5022 = vmatpush.bf16.msra.mxu0 %v11273_v30  ;;  %v4796_v18 = vpop.f32.mrf.mxu2  ;;  %v11560_v30 = vld [vmem:[%s21619_s7 + $0xf70] sm:$0xf]  ;;  %v4772_v44 = vpop.f32.mrf.mxu0  ;;  %v13950_v7 = vld [vmem:[%s21619_s7 + $0x584] sm:$0xf] }
 0x1dd   : > { %5035 = vmatpush.bf16.msra.mxu1 %v11465_v32  ;;  %v14271_v32 = vld [vmem:[%s21619_s7 + $0xf84] sm:$0xf0]  ;;  %v4809_v35 = vpop.f32.mrf.mxu3  ;;  %v13908_v44 = vld [vmem:[%s21619_s7 + $0x434] sm:$0xf] }
 0x1de   : > { %5048 = vmatpush.bf16.msra.mxu2 %v11657_v33  ;;  %v4797_v33 = vadd.f32 %v4796_v18, %v4784_v9  ;;  %v11561_v46 = vor.u32 %v14271_v32, %v11560_v30  ;;  %v9762_v9 = vld [vmem:[%s21619_s7 + $0x178] sm:$0xf0] }
 0x1df   : > { %5061 = vmatpush.bf16.msra.mxu3 %v11849_v41  ;;  %v11177_v41 = vor.u32 %v14175_v16, %v11176_v14  ;;  %v11513_v16 = vor.u32 %v14259_v2, %v11512_v63  ;;  %v10338_v18 = vld [vmem:[%s21619_s7 + $0x5f8] sm:$0xf0]  ;;  %v9765_v28 = vor.u32 %v13818_v8, %v9762_v9  ;;  %v9690_v63 = vld [vmem:[%s21619_s7 + $0xe8] sm:$0xf0] }
 0x1e0   : > { %5023 = vmatpush.bf16.msra.mxu0 %v11249_v48  ;;  %v17958_v43 = vadd.f32 %v4809_v35, %v4797_v33  ;;  %v14169_v48 = vld [vmem:[%s21619_s7 + $0xc54] sm:$0xf0]  ;;  %v13812_v33 = vld [vmem:[%s21619_s7 + $0x134] sm:$0xf]  ;;  %v9738_v35 = vld [vmem:[%s21619_s7 + $0x148] sm:$0xf0]  ;;  %v10341_v39 = vor.u32 %v13962_v17, %v10338_v18 }
 0x1e1   : > { %5036 = vmatpush.bf16.msra.mxu1 %v11441_v49  ;;  %v11344_v49 = vld [vmem:[%s21619_s7 + $0xdc0] sm:$0xf]  ;;  %v11153_v54 = vor.u32 %v14169_v48, %v11152_v47  ;;  %v10314_v47 = vld [vmem:[%s21619_s7 + $0x5c8] sm:$0xf0]  ;;  %v9741_v48 = vor.u32 %v13812_v33, %v9738_v35 }
 0x1e2   : > { %5049 = vmatpush.bf16.msra.mxu2 %v11633_v50  ;;  %v4785_v50 = vpop.f32.mrf.mxu1  ;;  %v9882_v2 = vld [vmem:[%s21619_s7 + $0x268] sm:$0xf0] }
 0x1e3   : > { %5062 = vmatpush.bf16.msra.mxu3 %v11825_v55  ;;  %v14265_v55 = vld [vmem:[%s21619_s7 + $0xf54] sm:$0xf0]  ;;  %v10266_v8 = vld [vmem:[%s21619_s7 + $0x568] sm:$0xf0] }
 0x1e4   : > { %5024 = vmatpush.bf16.msra.mxu0 %v11225_v59  ;;  %v11345_v59 = vor.u32 %v14217_v57, %v11344_v49  ;;  %v11537_v60 = vor.u32 %v14265_v55, %v11536_v53  ;;  %v4798_v0 = vpop.f32.mrf.mxu2  ;;  %v9714_v57 = vld [vmem:[%s21619_s7 + $0x118] sm:$0xf0]  ;;  %v13854_v53 = vld [vmem:[%s21619_s7 + $0x284] sm:$0xf] }
 0x1e5   : > { %5037 = vmatpush.bf16.msra.mxu1 %v11417_v61  ;;  %v11320_v61 = vld [vmem:[%s21619_s7 + $0xd90] sm:$0xf]  ;;  %v4811_v6 = vpop.f32.mrf.mxu3  ;;  %v13848_v0 = vld [vmem:[%s21619_s7 + $0x254] sm:$0xf] }
 0x1e6   : > { %5050 = vmatpush.bf16.msra.mxu2 %v11609_v62  ;;  %v14211_v62 = vld [vmem:[%s21619_s7 + $0xda4] sm:$0xf0]  ;;  %v13944_v6 = vld [vmem:[%s21619_s7 + $0x554] sm:$0xf] }
 0x1e7   : > { %5063 = vmatpush.bf16.msra.mxu3 %v11801_v3  ;;  %v11704_v3 = vld [vmem:[%s21619_s7 + $0x1090] sm:$0xf]  ;;  %v11321_v14 = vor.u32 %v14211_v62, %v11320_v61  ;;  %v13800_v62 = vld [vmem:[%s21619_s7 + $0xd4] sm:$0xf]  ;;  %v10269_v18 = vor.u32 %v13944_v6, %v10266_v8 }
 0x1e8   : > { %5025 = vmatpush.bf16.msra.mxu0 %v11201_v42  ;;  %v9954_v42 = vld [vmem:[%s21619_s7 + $0x2f8] sm:$0xf0]  ;;  %v9693_v9 = vor.u32 %v13800_v62, %v9690_v63  ;;  %v13776_v8 = vld [vmem:[%s21619_s7 + $0x14] sm:$0xf] }
 0x1e9   : > { %5038 = vmatpush.bf16.msra.mxu1 %v11393_v12  ;;  %v13914_v12 = vld [vmem:[%s21619_s7 + $0x464] sm:$0xf]  ;;  %v9957_v30 = vor.u32 %v13866_v31, %v9954_v42 }
 0x1ea   : > { %5051 = vmatpush.bf16.msra.mxu2 %v11585_v13  ;;  %v10146_v13 = vld [vmem:[%s21619_s7 + $0x478] sm:$0xf0] }
 0x1eb   : > { %5064 = vmatpush.bf16.msra.mxu3 %v11777_v25  ;;  %v11705_v25 = vor.u32 %v14307_v5, %v11704_v3  ;;  %v10149_v32 = vor.u32 %v13914_v12, %v10146_v13  ;;  %v13896_v3 = vld [vmem:[%s21619_s7 + $0x3d4] sm:$0xf]  ;;  %v10074_v5 = vld [vmem:[%s21619_s7 + $0x3e8] sm:$0xf0]  ;;  %v13794_v12 = vld [vmem:[%s21619_s7 + $0xa4] sm:$0xf] }
 0x1ec   : > { %5026 = vmatpush.bf16.msra.mxu0 %v11177_v41  ;;  %v9930_v41 = vld [vmem:[%s21619_s7 + $0x2c8] sm:$0xf0]  ;;  %v10077_v42 = vor.u32 %v13896_v3, %v10074_v5  ;;  %v9666_v13 = vld [vmem:[%s21619_s7 + $0xb8] sm:$0xf0]  ;;  %v13926_v3 = vld [vmem:[%s21619_s7 + $0x4c4] sm:$0xf] }
 0x1ed   : > { %5039 = vmatpush.bf16.msra.mxu1 %v11369_v45  ;;  %v10122_v45 = vld [vmem:[%s21619_s7 + $0x448] sm:$0xf0]  ;;  %v9933_v49 = vor.u32 %v13860_v36, %v9930_v41  ;;  %v9669_v35 = vor.u32 %v13794_v12, %v9666_v13  ;;  %v13788_v41 = vld [vmem:[%s21619_s7 + $0x74] sm:$0xf]  ;;  %v10194_v5 = vld [vmem:[%s21619_s7 + $0x4d8] sm:$0xf0] }
 0x1ee   : > { %5052 = vmatpush.bf16.msra.mxu2 %v11561_v46  ;;  %v13956_v46 = vld [vmem:[%s21619_s7 + $0x5b4] sm:$0xf]  ;;  %v10125_v50 = vor.u32 %v13908_v44, %v10122_v45  ;;  %v9642_v44 = vld [vmem:[%s21619_s7 + $0x88] sm:$0xf0] }
 0x1ef   : > { %5065 = vmatpush.bf16.msra.mxu3 %v11753_v52  ;;  %v13806_v52 = vld [vmem:[%s21619_s7 + $0x104] sm:$0xf]  ;;  %v10317_v55 = vor.u32 %v13956_v46, %v10314_v47  ;;  %v13836_v45 = vld [vmem:[%s21619_s7 + $0x1f4] sm:$0xf]  ;;  %v9786_v12 = vld [vmem:[%s21619_s7 + $0x1a8] sm:$0xf0] }
 0x1f0   : > { %5027 = vmatpush.bf16.msra.mxu0 %v11153_v54  ;;  %v10098_v54 = vld [vmem:[%s21619_s7 + $0x418] sm:$0xf0]  ;;  %v13872_v13 = vld [vmem:[%s21619_s7 + $0x314] sm:$0xf] }
 0x1f1   : > { %5040 = vmatpush.bf16.msra.mxu1 %v11345_v59  ;;  %v9717_v59 = vor.u32 %v13806_v52, %v9714_v57  ;;  %v10101_v61 = vor.u32 %v13902_v11, %v10098_v54 }
 0x1f2   : > { %5053 = vmatpush.bf16.msra.mxu2 %v11537_v60  ;;  %v9909_v60 = vor.u32 %v13854_v53, %v9906_v56  ;;  %v13932_v53 = vld [vmem:[%s21619_s7 + $0x4f4] sm:$0xf]  ;;  %v9645_v56 = vor.u32 %v13788_v41, %v9642_v44 }
 0x1f3   : > { %5066 = vmatpush.bf16.msra.mxu3 %v11729_v1  ;;  %v10293_v1 = vor.u32 %v13950_v7, %v10290_v58 }
 0x1f4   : > { %5028 = vmatpush.bf16.msra.mxu0 %v11129_v10  ;;  %v4822_v31 = vpop.f32.mrf.mxu0  ;;  %v9885_v10 = vor.u32 %v13848_v0, %v9882_v2  ;;  %v9810_v0 = vld [vmem:[%s21619_s7 + $0x1d8] sm:$0xf0] }
 0x1f5   : > { %5041 = vmatpush.bf16.msra.mxu1 %v11321_v14  ;;  %v13842_v14 = vld [vmem:[%s21619_s7 + $0x224] sm:$0xf]  ;;  %v4835_v17 = vpop.f32.mrf.mxu1  ;;  %v10002_v2 = vld [vmem:[%s21619_s7 + $0x358] sm:$0xf0] }
 0x1f6   : > { %5054 = vmatpush.bf16.msra.mxu2 %v11513_v16  ;;  %v4823_v16 = vadd.f32 %v4822_v31, %v17958_v43  ;;  %v10242_v43 = vld [vmem:[%s21619_s7 + $0x538] sm:$0xf0] }
 0x1f7   : > { %5067 = vmatpush.bf16.msra.mxu3 %v11705_v25  ;;  %5029 = vmatmul.bf16.vlgmr.msra.gmra.mxu0 %v15640_v15  ;;  %v9858_v25 = vld [vmem:[%s21619_s7 + $0x238] sm:$0xf0] }
 0x1f8   : > { %5073 = vmatpush.bf16.msrb.mxu0 %v9765_v28  ;;  %5042 = vmatmul.bf16.vlgmr.msra.gmra.mxu1 %v15653_v20  ;;  %v13890_v28 = vld [vmem:[%s21619_s7 + $0x3a4] sm:$0xf]  ;;  %v4836_v33 = vadd.f32 %v4835_v17, %v4823_v16  ;;  %v9861_v36 = vor.u32 %v13842_v14, %v9858_v25  ;;  %v10197_v16 = vor.u32 %v13926_v3, %v10194_v5  ;;  %v9978_v17 = vld [vmem:[%s21619_s7 + $0x328] sm:$0xf0]  ;;  %v10674_v3 = vld [vmem:[%s21619_s7 + $0x898] sm:$0xf0] }
 0x1f9   : > { %5086 = vmatpush.bf16.msrb.mxu1 %v9957_v30  ;;  %5055 = vmatmul.bf16.vlgmr.msra.gmra.mxu2 %v15651_v19  ;;  %v10050_v30 = vld [vmem:[%s21619_s7 + $0x3b8] sm:$0xf0]  ;;  %v10170_v25 = vld [vmem:[%s21619_s7 + $0x4a8] sm:$0xf0]  ;;  %v9981_v44 = vor.u32 %v13872_v13, %v9978_v17  ;;  %v14094_v5 = vld [vmem:[%s21619_s7 + $0xa04] sm:$0xf] }
 0x1fa   : > { %5099 = vmatpush.bf16.msrb.mxu2 %v10149_v32  ;;  %5068 = vmatmul.bf16.vlgmr.msra.gmra.mxu3 %v15661_v26  ;;  %v13938_v32 = vld [vmem:[%s21619_s7 + $0x524] sm:$0xf]  ;;  %v14088_v13 = vld [vmem:[%s21619_s7 + $0x9d4] sm:$0xf] }
 0x1fb   : > { %5112 = vmatpush.bf16.msrb.mxu3 %v10341_v39  ;;  %v10053_v39 = vor.u32 %v13890_v28, %v10050_v30  ;;  %v10245_v47 = vor.u32 %v13938_v32, %v10242_v43  ;;  %v14010_v30 = vld [vmem:[%s21619_s7 + $0x764] sm:$0xf]  ;;  %v10530_v32 = vld [vmem:[%s21619_s7 + $0x778] sm:$0xf0]  ;;  %v14136_v17 = vld [vmem:[%s21619_s7 + $0xb54] sm:$0xf] }
 0x1fc   : > { %5074 = vmatpush.bf16.msrb.mxu0 %v9741_v48  ;;  %v4848_v46 = vpop.f32.mrf.mxu2  ;;  %v9834_v48 = vld [vmem:[%s21619_s7 + $0x208] sm:$0xf0]  ;;  %v4824_v54 = vpop.f32.mrf.mxu0  ;;  %v14058_v43 = vld [vmem:[%s21619_s7 + $0x8e4] sm:$0xf] }
 0x1fd   : > { %5087 = vmatpush.bf16.msrb.mxu1 %v9933_v49  ;;  %v13884_v49 = vld [vmem:[%s21619_s7 + $0x374] sm:$0xf]  ;;  %v4849_v52 = vadd.f32 %v4848_v46, %v4836_v33  ;;  %v4861_v57 = vpop.f32.mrf.mxu3  ;;  %v9837_v7 = vor.u32 %v13836_v45, %v9834_v48  ;;  %v4837_v62 = vpop.f32.mrf.mxu1  ;;  %v14154_v45 = vld [vmem:[%s21619_s7 + $0xbe4] sm:$0xf]  ;;  %v11106_v46 = vld [vmem:[%s21619_s7 + $0xbf8] sm:$0xf0]  ;;  %v10533_v48 = vor.u32 %v14010_v30, %v10530_v32 }
 0x1fe   : > { %5100 = vmatpush.bf16.msrb.mxu2 %v10125_v50  ;;  %v10026_v50 = vld [vmem:[%s21619_s7 + $0x388] sm:$0xf0]  ;;  %v14100_v54 = vld [vmem:[%s21619_s7 + $0xa34] sm:$0xf] }
 0x1ff   : > { %5113 = vmatpush.bf16.msrb.mxu3 %v10317_v55  ;;  %v10218_v55 = vld [vmem:[%s21619_s7 + $0x508] sm:$0xf0]  ;;  %v18157_v11 = vadd.f32 %v4861_v57, %v4849_v52  ;;  %v10029_v58 = vor.u32 %v13884_v49, %v10026_v50  ;;  %v14004_v52 = vld [vmem:[%s21619_s7 + $0x734] sm:$0xf] }
 0x200   : > { %5075 = vmatpush.bf16.msrb.mxu0 %v9717_v59  ;;  %v13782_v59 = vld [vmem:[%s21619_s7 + $0x44] sm:$0xf]  ;;  %v10221_v63 = vor.u32 %v13932_v53, %v10218_v55  ;;  %v10506_v57 = vld [vmem:[%s21619_s7 + $0x748] sm:$0xf0]  ;;  %v14052_v53 = vld [vmem:[%s21619_s7 + $0x8b4] sm:$0xf]  ;;  %v11109_v55 = vor.u32 %v14154_v45, %v11106_v46 }
 0x201   : > { %5088 = vmatpush.bf16.msrb.mxu1 %v9909_v60  ;;  %v9618_v60 = vld [vmem:[%s21619_s7 + $0x58] sm:$0xf0]  ;;  %v14130_v45 = vld [vmem:[%s21619_s7 + $0xb24] sm:$0xf] }
 0x202   : > { %5101 = vmatpush.bf16.msrb.mxu2 %v10101_v61  ;;  %v13830_v61 = vld [vmem:[%s21619_s7 + $0x1c4] sm:$0xf]  ;;  %v9621_v6 = vor.u32 %v13782_v59, %v9618_v60  ;;  %v11082_v59 = vld [vmem:[%s21619_s7 + $0xbc8] sm:$0xf0]  ;;  %v10509_v60 = vor.u32 %v14004_v52, %v10506_v57  ;;  %v11010_v46 = vld [vmem:[%s21619_s7 + $0xb38] sm:$0xf0] }
 0x203   : > { %5114 = vmatpush.bf16.msrb.mxu3 %v10293_v1  ;;  %v13878_v1 = vld [vmem:[%s21619_s7 + $0x344] sm:$0xf]  ;;  %v9813_v31 = vor.u32 %v13830_v61, %v9810_v0  ;;  %v10482_v0 = vld [vmem:[%s21619_s7 + $0x718] sm:$0xf0]  ;;  %v10410_v52 = vld [vmem:[%s21619_s7 + $0x688] sm:$0xf0] }
 0x204   : > { %5076 = vmatpush.bf16.msrb.mxu0 %v9693_v9  ;;  %v9594_v9 = vld [vmem:[%s21619_s7 + $0x28] sm:$0xf0]  ;;  %v4850_v14 = vpop.f32.mrf.mxu2  ;;  %v14028_v57 = vld [vmem:[%s21619_s7 + $0x7f4] sm:$0xf] }
 0x205   : > { %5089 = vmatpush.bf16.msrb.mxu1 %v9885_v10  ;;  %v10005_v10 = vor.u32 %v13878_v1, %v10002_v2  ;;  %v4863_v28 = vpop.f32.mrf.mxu3  ;;  %v9597_v33 = vor.u32 %v13776_v8, %v9594_v9  ;;  %v14046_v1 = vld [vmem:[%s21619_s7 + $0x884] sm:$0xf]  ;;  %v11058_v9 = vld [vmem:[%s21619_s7 + $0xb98] sm:$0xf0]  ;;  %v10842_v14 = vld [vmem:[%s21619_s7 + $0x9e8] sm:$0xf0] }
 0x206   : > { %5102 = vmatpush.bf16.msrb.mxu2 %v10077_v42  ;;  %v13824_v42 = vld [vmem:[%s21619_s7 + $0x194] sm:$0xf]  ;;  %v14142_v8 = vld [vmem:[%s21619_s7 + $0xb84] sm:$0xf]  ;;  %v10845_v32 = vor.u32 %v14088_v13, %v10842_v14  ;;  %v10554_v14 = vld [vmem:[%s21619_s7 + $0x7a8] sm:$0xf0] }
 0x207   : > { %5115 = vmatpush.bf16.msrb.mxu3 %v10269_v18  ;;  %v13920_v18 = vld [vmem:[%s21619_s7 + $0x494] sm:$0xf]  ;;  %v9789_v41 = vor.u32 %v13824_v42, %v9786_v12  ;;  %v10458_v12 = vld [vmem:[%s21619_s7 + $0x6e8] sm:$0xf0] }
 0x208   : > { %5077 = vmatpush.bf16.msrb.mxu0 %v9669_v35  ;;  %v10722_v35 = vld [vmem:[%s21619_s7 + $0x8f8] sm:$0xf0]  ;;  %v13992_v42 = vld [vmem:[%s21619_s7 + $0x6d4] sm:$0xf] }
 0x209   : > { %5090 = vmatpush.bf16.msrb.mxu1 %v9861_v36  ;;  %v14106_v36 = vld [vmem:[%s21619_s7 + $0xa64] sm:$0xf]  ;;  %v10725_v49 = vor.u32 %v14058_v43, %v10722_v35  ;;  %v14016_v13 = vld [vmem:[%s21619_s7 + $0x794] sm:$0xf] }
 0x20a   : > { %5103 = vmatpush.bf16.msrb.mxu2 %v10053_v39  ;;  %v10914_v39 = vld [vmem:[%s21619_s7 + $0xa78] sm:$0xf0]  ;;  %v13986_v43 = vld [vmem:[%s21619_s7 + $0x6a4] sm:$0xf] }
 0x20b   : > { %5116 = vmatpush.bf16.msrb.mxu3 %v10245_v47  ;;  %v10173_v47 = vor.u32 %v13920_v18, %v10170_v25  ;;  %v10917_v50 = vor.u32 %v14106_v36, %v10914_v39  ;;  %v11034_v18 = vld [vmem:[%s21619_s7 + $0xb68] sm:$0xf0]  ;;  %v10461_v25 = vor.u32 %v13992_v42, %v10458_v12  ;;  %v14034_v35 = vld [vmem:[%s21619_s7 + $0x824] sm:$0xf]  ;;  %v10626_v39 = vld [vmem:[%s21619_s7 + $0x838] sm:$0xf0] }
 0x20c   : > { %5078 = vmatpush.bf16.msrb.mxu0 %v9645_v56  ;;  %v10698_v56 = vld [vmem:[%s21619_s7 + $0x8c8] sm:$0xf0]  ;;  %v11037_v36 = vor.u32 %v14136_v17, %v11034_v18  ;;  %v13968_v12 = vld [vmem:[%s21619_s7 + $0x614] sm:$0xf] }
 0x20d   : > { %5091 = vmatpush.bf16.msrb.mxu1 %v9837_v7  ;;  %v10890_v7 = vld [vmem:[%s21619_s7 + $0xa48] sm:$0xf0]  ;;  %v10701_v61 = vor.u32 %v14052_v53, %v10698_v56  ;;  %v11013_v53 = vor.u32 %v14130_v45, %v11010_v46  ;;  %v14064_v17 = vld [vmem:[%s21619_s7 + $0x914] sm:$0xf]  ;;  %v14298_v45 = vld [vmem:[%s21619_s7 + $0x1064] sm:$0xf] }
 0x20e   : > { %5104 = vmatpush.bf16.msrb.mxu2 %v10029_v58  ;;  %v14148_v58 = vld [vmem:[%s21619_s7 + $0xbb4] sm:$0xf]  ;;  %v10893_v62 = vor.u32 %v14100_v54, %v10890_v7  ;;  %v10602_v56 = vld [vmem:[%s21619_s7 + $0x808] sm:$0xf0]  ;;  %v11682_v46 = vld [vmem:[%s21619_s7 + $0x1078] sm:$0xf0] }
 0x20f   : > { %5117 = vmatpush.bf16.msrb.mxu3 %v10221_v63  ;;  %v13998_v63 = vld [vmem:[%s21619_s7 + $0x704] sm:$0xf]  ;;  %v11085_v2 = vor.u32 %v14148_v58, %v11082_v59  ;;  %v14076_v54 = vld [vmem:[%s21619_s7 + $0x974] sm:$0xf]  ;;  %v10794_v7 = vld [vmem:[%s21619_s7 + $0x988] sm:$0xf0] }
 0x210   : > { %5079 = vmatpush.bf16.msrb.mxu0 %v9621_v6  ;;  %v10866_v6 = vld [vmem:[%s21619_s7 + $0xa18] sm:$0xf0]  ;;  %v14124_v59 = vld [vmem:[%s21619_s7 + $0xaf4] sm:$0xf] }
 0x211   : > { %5092 = vmatpush.bf16.msrb.mxu1 %v9813_v31  ;;  %v10485_v31 = vor.u32 %v13998_v63, %v10482_v0  ;;  %v10605_v0 = vor.u32 %v14028_v57, %v10602_v56  ;;  %v11685_v56 = vor.u32 %v14298_v45, %v11682_v46  ;;  %v11394_v46 = vld [vmem:[%s21619_s7 + $0xe38] sm:$0xf0] }
 0x212   : > { %5105 = vmatpush.bf16.msrb.mxu2 %v10005_v10  ;;  %v10677_v10 = vor.u32 %v14046_v1, %v10674_v3  ;;  %v10797_v1 = vor.u32 %v14076_v54, %v10794_v7  ;;  %v10386_v3 = vld [vmem:[%s21619_s7 + $0x658] sm:$0xf0]  ;;  %v14196_v54 = vld [vmem:[%s21619_s7 + $0xd34] sm:$0xf]  ;;  %v11274_v7 = vld [vmem:[%s21619_s7 + $0xd48] sm:$0xf0] }
 0x213   : > { %5118 = vmatpush.bf16.msrb.mxu3 %v10197_v16 }
 0x214   : > { %5080 = vmatpush.bf16.msrb.mxu0 %v9597_v33  ;;  %v18301_v16 = vpop.f32.mrf.mxu0  ;;  %v10434_v33 = vld [vmem:[%s21619_s7 + $0x6b8] sm:$0xf0] }
 0x215   : > { %5093 = vmatpush.bf16.msrb.mxu1 %v9789_v41  ;;  %v18309_v28 = vpop.f32.mrf.mxu1  ;;  %v14082_v41 = vld [vmem:[%s21619_s7 + $0x9a4] sm:$0xf] }
 0x216   : > { %5106 = vmatpush.bf16.msrb.mxu2 %v9981_v44  ;;  %v10818_v44 = vld [vmem:[%s21619_s7 + $0x9b8] sm:$0xf0] }
 0x217   : > { %5119 = vmatpush.bf16.msrb.mxu3 %v10173_v47  ;;  %5081 = vmatmul.bf16.vlgmr.msrb.gmra.mxu0 %v15297_v22  ;;  %v14040_v22 = vld [vmem:[%s21619_s7 + $0x854] sm:$0xf]  ;;  %v10437_v47 = vor.u32 %v13986_v43, %v10434_v33  ;;  %v14202_v33 = vld [vmem:[%s21619_s7 + $0xd64] sm:$0xf] }
 0x218   : > { %5125 = vmatpush.bf16.msra.mxu0 %v10533_v48  ;;  %5094 = vmatmul.bf16.vlgmr.msrb.gmra.mxu1 %v15311_v29  ;;  %v10650_v29 = vld [vmem:[%s21619_s7 + $0x868] sm:$0xf0]  ;;  %v10629_v48 = vor.u32 %v14034_v35, %v10626_v39  ;;  %v11298_v35 = vld [vmem:[%s21619_s7 + $0xd78] sm:$0xf0] }
 0x219   : > { %5138 = vmatpush.bf16.msra.mxu1 %v10725_v49  ;;  %5107 = vmatmul.bf16.vlgmr.msrb.gmra.mxu2 %v15295_v21  ;;  %v10869_v21 = vor.u32 %v14094_v5, %v10866_v6  ;;  %v10653_v30 = vor.u32 %v14040_v22, %v10650_v29  ;;  %v10821_v49 = vor.u32 %v14082_v41, %v10818_v44  ;;  %v14022_v5 = vld [vmem:[%s21619_s7 + $0x7c4] sm:$0xf]  ;;  %v10362_v22 = vld [vmem:[%s21619_s7 + $0x628] sm:$0xf0]  ;;  %v11490_v44 = vld [vmem:[%s21619_s7 + $0xef8] sm:$0xf0] }
 0x21a   : > { %5151 = vmatpush.bf16.msra.mxu2 %v10917_v50  ;;  %5120 = vmatmul.bf16.vlgmr.msrb.gmra.mxu3 %v15299_v23  ;;  %v11061_v23 = vor.u32 %v14142_v8, %v11058_v9  ;;  %v13980_v50 = vld [vmem:[%s21619_s7 + $0x674] sm:$0xf]  ;;  %v10578_v8 = vld [vmem:[%s21619_s7 + $0x7d8] sm:$0xf0]  ;;  %v14070_v9 = vld [vmem:[%s21619_s7 + $0x944] sm:$0xf]  ;;  %v10365_v41 = vor.u32 %v13968_v12, %v10362_v22  ;;  %v11301_v57 = vor.u32 %v14202_v33, %v11298_v35 }
 0x21b   : > { %5164 = vmatpush.bf16.msra.mxu3 %v11109_v55  ;;  %v11826_v12 = vld [vmem:[%s21619_s7 + $0x1198] sm:$0xf0] }
 0x21c   : > { %5126 = vmatpush.bf16.msra.mxu0 %v10509_v60  ;;  %v18344_v55 = vpop.f32.mrf.mxu2  ;;  %v10986_v60 = vld [vmem:[%s21619_s7 + $0xb08] sm:$0xf0] }
 0x21d   : > { %5139 = vmatpush.bf16.msra.mxu1 %v10701_v61  ;;  %v18355_v58 = vpop.f32.mrf.mxu3  ;;  %v4876_v61 = vpop.f32.mrf.mxu0  ;;  %v10989_v6 = vor.u32 %v14124_v59, %v10986_v60  ;;  %v14244_v59 = vld [vmem:[%s21619_s7 + $0xeb4] sm:$0xf] }
 0x21e   : > { %5152 = vmatpush.bf16.msra.mxu2 %v10893_v62  ;;  %v10413_v62 = vor.u32 %v13980_v50, %v10410_v52  ;;  %v4889_v63 = vpop.f32.mrf.mxu1  ;;  %v11874_v50 = vld [vmem:[%s21619_s7 + $0x11f8] sm:$0xf0]  ;;  %v11466_v61 = vld [vmem:[%s21619_s7 + $0xec8] sm:$0xf0] }
 0x21f   : > { %5165 = vmatpush.bf16.msra.mxu3 %v11085_v2  ;;  %v13974_v2 = vld [vmem:[%s21619_s7 + $0x644] sm:$0xf]  ;;  %v11658_v63 = vld [vmem:[%s21619_s7 + $0x1048] sm:$0xf0] }
 0x220   : > { %5127 = vmatpush.bf16.msra.mxu0 %v10485_v31  ;;  %v10770_v31 = vld [vmem:[%s21619_s7 + $0x958] sm:$0xf0]  ;;  %v10389_v42 = vor.u32 %v13974_v2, %v10386_v3  ;;  %v11277_v2 = vor.u32 %v14196_v54, %v11274_v7  ;;  %v11469_v3 = vor.u32 %v14244_v59, %v11466_v61  ;;  %v14172_v54 = vld [vmem:[%s21619_s7 + $0xc74] sm:$0xf]  ;;  %v11178_v7 = vld [vmem:[%s21619_s7 + $0xc88] sm:$0xf0] }
 0x221   : > { %5140 = vmatpush.bf16.msra.mxu1 %v10677_v10  ;;  %v14118_v10 = vld [vmem:[%s21619_s7 + $0xac4] sm:$0xf]  ;;  %v10773_v29 = vor.u32 %v14070_v9, %v10770_v31  ;;  %v14220_v59 = vld [vmem:[%s21619_s7 + $0xdf4] sm:$0xf] }
 0x222   : > { %5153 = vmatpush.bf16.msra.mxu2 %v10869_v21  ;;  %v10962_v21 = vld [vmem:[%s21619_s7 + $0xad8] sm:$0xf0]  ;;  %v14238_v9 = vld [vmem:[%s21619_s7 + $0xe84] sm:$0xf]  ;;  %v14268_v61 = vld [vmem:[%s21619_s7 + $0xf74] sm:$0xf] }
 0x223   : > { %5166 = vmatpush.bf16.msra.mxu3 %v11061_v23  ;;  %v10581_v23 = vor.u32 %v14022_v5, %v10578_v8  ;;  %v10965_v18 = vor.u32 %v14118_v10, %v10962_v21  ;;  %v11250_v8 = vld [vmem:[%s21619_s7 + $0xd18] sm:$0xf0]  ;;  %v14286_v21 = vld [vmem:[%s21619_s7 + $0x1004] sm:$0xf] }
 0x224   : > { %5128 = vmatpush.bf16.msra.mxu0 %v10461_v25  ;;  %v10746_v25 = vld [vmem:[%s21619_s7 + $0x928] sm:$0xf0]  ;;  %v4902_v43 = vpop.f32.mrf.mxu2  ;;  %v11442_v10 = vld [vmem:[%s21619_s7 + $0xe98] sm:$0xf0] }
 0x225   : > { %5141 = vmatpush.bf16.msra.mxu1 %v10653_v30  ;;  %v14112_v30 = vld [vmem:[%s21619_s7 + $0xa94] sm:$0xf]  ;;  %v4915_v39 = vpop.f32.mrf.mxu3 }
 0x226   : > { %5154 = vmatpush.bf16.msra.mxu2 %v10845_v32  ;;  %v10938_v32 = vld [vmem:[%s21619_s7 + $0xaa8] sm:$0xf0]  ;;  %v11202_v39 = vld [vmem:[%s21619_s7 + $0xcb8] sm:$0xf0] }
 0x227   : > { %5167 = vmatpush.bf16.msra.mxu3 %v11037_v36  ;;  %v14250_v36 = vld [vmem:[%s21619_s7 + $0xee4] sm:$0xf]  ;;  %v10941_v52 = vor.u32 %v14112_v30, %v10938_v32  ;;  %v11802_v30 = vld [vmem:[%s21619_s7 + $0x1168] sm:$0xf0] }
 0x228   : > { %5129 = vmatpush.bf16.msra.mxu0 %v10437_v47  ;;  %v10557_v47 = vor.u32 %v14016_v13, %v10554_v14  ;;  %v14232_v13 = vld [vmem:[%s21619_s7 + $0xe54] sm:$0xf] }
 0x229   : > { %5142 = vmatpush.bf16.msra.mxu1 %v10629_v48  ;;  %v10749_v48 = vor.u32 %v14064_v17, %v10746_v25  ;;  %v14280_v17 = vld [vmem:[%s21619_s7 + $0xfd4] sm:$0xf] }
 0x22a   : > { %5155 = vmatpush.bf16.msra.mxu2 %v10821_v49  ;;  %v14346_v49 = vld [vmem:[%s21619_s7 + $0x11e4] sm:$0xf]  ;;  %v14328_v25 = vld [vmem:[%s21619_s7 + $0x1154] sm:$0xf] }
 0x22b   : > { %5168 = vmatpush.bf16.msra.mxu3 %v11013_v53  ;;  %v11493_v53 = vor.u32 %v14250_v36, %v11490_v44  ;;  %v11877_v60 = vor.u32 %v14346_v49, %v11874_v50  ;;  %v14178_v36 = vld [vmem:[%s21619_s7 + $0xca4] sm:$0xf]  ;;  %v11805_v45 = vor.u32 %v14328_v25, %v11802_v30  ;;  %v11778_v50 = vld [vmem:[%s21619_s7 + $0x1138] sm:$0xf0]  ;;  %v11322_v25 = vld [vmem:[%s21619_s7 + $0xda8] sm:$0xf0] }
 0x22c   : > { %5130 = vmatpush.bf16.msra.mxu0 %v10413_v62  ;;  %v14292_v62 = vld [vmem:[%s21619_s7 + $0x1034] sm:$0xf]  ;;  %v14322_v49 = vld [vmem:[%s21619_s7 + $0x1124] sm:$0xf] }
 0x22d   : > { %5143 = vmatpush.bf16.msra.mxu1 %v10605_v0  ;;  %v14340_v0 = vld [vmem:[%s21619_s7 + $0x11b4] sm:$0xf]  ;;  %v11661_v5 = vor.u32 %v14292_v62, %v11658_v63  ;;  %v11562_v62 = vld [vmem:[%s21619_s7 + $0xf88] sm:$0xf0] }
 0x22e   : > { %5156 = vmatpush.bf16.msra.mxu2 %v10797_v1  ;;  %v11850_v1 = vld [vmem:[%s21619_s7 + $0x11c8] sm:$0xf0]  ;;  %v14256_v30 = vld [vmem:[%s21619_s7 + $0xf14] sm:$0xf] }
 0x22f   : > { %5169 = vmatpush.bf16.msra.mxu3 %v10989_v6  ;;  %v14190_v6 = vld [vmem:[%s21619_s7 + $0xd04] sm:$0xf]  ;;  %v11853_v31 = vor.u32 %v14340_v0, %v11850_v1  ;;  %v14316_v0 = vld [vmem:[%s21619_s7 + $0x10f4] sm:$0xf]  ;;  %v11754_v1 = vld [vmem:[%s21619_s7 + $0x1108] sm:$0xf0] }
 0x230   : > { %5131 = vmatpush.bf16.msra.mxu0 %v10389_v42  ;;  %v11634_v42 = vld [vmem:[%s21619_s7 + $0x1018] sm:$0xf0]  ;;  %v11253_v22 = vor.u32 %v14190_v6, %v11250_v8  ;;  %v11565_v8 = vor.u32 %v14268_v61, %v11562_v62 }
 0x231   : > { %5144 = vmatpush.bf16.msra.mxu1 %v10581_v23  ;;  %v11445_v23 = vor.u32 %v14238_v9, %v11442_v10  ;;  %v14166_v9 = vld [vmem:[%s21619_s7 + $0xc44] sm:$0xf] }
 0x232   : > { %5157 = vmatpush.bf16.msra.mxu2 %v10773_v29  ;;  %v11637_v29 = vor.u32 %v14286_v21, %v11634_v42  ;;  %v14214_v10 = vld [vmem:[%s21619_s7 + $0xdc4] sm:$0xf]  ;;  %v11757_v42 = vor.u32 %v14316_v0, %v11754_v1 }
 0x233   : > { %5170 = vmatpush.bf16.msra.mxu3 %v10965_v18  ;;  %v11610_v18 = vld [vmem:[%s21619_s7 + $0xfe8] sm:$0xf0] }
 0x234   : > { %5132 = vmatpush.bf16.msra.mxu0 %v10365_v41  ;;  %v18511_v43 = vpop.f32.mrf.mxu0  ;;  %v11613_v35 = vor.u32 %v14280_v17, %v11610_v18  ;;  %v14226_v41 = vld [vmem:[%s21619_s7 + $0xe24] sm:$0xf] }
 0x235   : > { %5145 = vmatpush.bf16.msra.mxu1 %v10557_v47  ;;  %v18522_v44 = vpop.f32.mrf.mxu1  ;;  %v14274_v47 = vld [vmem:[%s21619_s7 + $0xfa4] sm:$0xf] }
 0x236   : > { %5158 = vmatpush.bf16.msra.mxu2 %v10749_v48  ;;  %v11586_v48 = vld [vmem:[%s21619_s7 + $0xfb8] sm:$0xf0] }
 0x237   : > { %5171 = vmatpush.bf16.msra.mxu3 %v10941_v52  ;;  %5133 = vmatmul.bf16.vlgmr.msra.gmra.mxu0 %v15449_v37  ;;  %v14184_v37 = vld [vmem:[%s21619_s7 + $0xcd4] sm:$0xf]  ;;  %v11205_v52 = vor.u32 %v14178_v36, %v11202_v39  ;;  %v11706_v39 = vld [vmem:[%s21619_s7 + $0x10a8] sm:$0xf0] }
 0x238   : > { %5177 = vmatpush.bf16.msrb.mxu0 %v11301_v57  ;;  %5146 = vmatmul.bf16.vlgmr.msra.gmra.mxu1 %v15453_v40  ;;  %v11418_v40 = vld [vmem:[%s21619_s7 + $0xe68] sm:$0xf0]  ;;  %v4875_v57 = vadd.f32 %v18301_v16, %v18157_v11  ;;  %v11781_v11 = vor.u32 %v14322_v49, %v11778_v50  ;;  %v14304_v36 = vld [vmem:[%s21619_s7 + $0x1094] sm:$0xf] }
 0x239   : > { %5190 = vmatpush.bf16.msrb.mxu1 %v11493_v53  ;;  %5159 = vmatmul.bf16.vlgmr.msra.gmra.mxu2 %v15441_v34  ;;  %v14334_v34 = vld [vmem:[%s21619_s7 + $0x1184] sm:$0xf]  ;;  %v11421_v33 = vor.u32 %v14232_v13, %v11418_v40  ;;  %v11397_v53 = vor.u32 %v14226_v41, %v11394_v46  ;;  %v11370_v16 = vld [vmem:[%s21619_s7 + $0xe08] sm:$0xf0]  ;;  %v14208_v40 = vld [vmem:[%s21619_s7 + $0xd94] sm:$0xf]  ;;  %v11709_v49 = vor.u32 %v14304_v36, %v11706_v39 }
 0x23a   : > { %5203 = vmatpush.bf16.msrb.mxu2 %v11685_v56  ;;  %5172 = vmatmul.bf16.vlgmr.msra.gmra.mxu3 %v15451_v38  ;;  %v11226_v38 = vld [vmem:[%s21619_s7 + $0xce8] sm:$0xf0]  ;;  %v11829_v14 = vor.u32 %v14334_v34, %v11826_v12  ;;  %v11589_v56 = vor.u32 %v14274_v47, %v11586_v48  ;;  %v11373_v6 = vor.u32 %v14220_v59, %v11370_v16  ;;  %v14262_v34 = vld [vmem:[%s21619_s7 + $0xf44] sm:$0xf]  ;;  %v11538_v12 = vld [vmem:[%s21619_s7 + $0xf58] sm:$0xf0] }
 0x23b   : > { %5216 = vmatpush.bf16.msrb.mxu3 %v11877_v60  ;;  %v11229_v32 = vor.u32 %v14184_v37, %v11226_v38  ;;  %v11541_v13 = vor.u32 %v14262_v34, %v11538_v12  ;;  %v11325_v46 = vor.u32 %v14208_v40, %v11322_v25  ;;  %v5231_v48 = vpack.c.bf16 %v17760_v27, %v17760_v27  ;;  %v11970_v12 = vld [vmem:[%s21623_s4 + $0xa8] sm:$0xf]  ;;  %v14369_v25 = vld [vmem:[%s21623_s4 + $0x98] sm:$0xf0] }
 0x23c   : > { %5178 = vmatpush.bf16.msrb.mxu0 %v11277_v2  ;;  %v18550_v60 = vpop.f32.mrf.mxu2  ;;  %v11181_v2 = vor.u32 %v14172_v54, %v11178_v7  ;;  %v4940_v59 = vadd.f32 %v18522_v44, %v18511_v43 }
 0x23d   : > { %5191 = vmatpush.bf16.msrb.mxu1 %v11469_v3  ;;  %v18561_v63 = vpop.f32.mrf.mxu3  ;;  %v4928_v3 = vpop.f32.mrf.mxu0 }
 0x23e   : > { %5204 = vmatpush.bf16.msrb.mxu2 %v11661_v5  ;;  %v4888_v5 = vadd.f32 %v18309_v28, %v4875_v57  ;;  %v4941_v21 = vpop.f32.mrf.mxu1  ;;  %v11346_v28 = vld [vmem:[%s21619_s7 + $0xdd8] sm:$0xf0]  ;;  %v5259_v57 = vsel %vm5251_vm1, %v5231_v48, 0  ;;  %v4953_v62 = vadd.f32 %v18550_v60, %v4940_v59  ;;  %v11934_v48 = vld [vmem:[%s21623_s4 + $0x60] sm:$0xf] }
 0x23f   : > { %5217 = vmatpush.bf16.msrb.mxu3 %v11853_v31  ;;  %v11154_v31 = vld [vmem:[%s21619_s7 + $0xc58] sm:$0xf0]  ;;  %v11349_v38 = vor.u32 %v14214_v10, %v11346_v28  ;;  %v12162_v21 = vld [vmem:[%s21623_s4 + $0x228] sm:$0xf] }
 0x240   : > { %5179 = vmatpush.bf16.msrb.mxu0 %v11253_v22  ;;  %v4901_v22 = vadd.f32 %v18344_v55, %v4888_v5  ;;  %v11157_v37 = vor.u32 %v14166_v9, %v11154_v31  ;;  %v11130_v55 = vld [vmem:[%s21619_s7 + $0xc28] sm:$0xf0]  ;;  %v14405_v59 = vld [vmem:[%s21623_s4 + $0x1b8] sm:$0xf0] }
 0x241   : > { %5192 = vmatpush.bf16.msrb.mxu1 %v11445_v23  ;;  %v14310_v23 = vld [vmem:[%s21619_s7 + $0x10c4] sm:$0xf] }
 0x242   : > { %5205 = vmatpush.bf16.msrb.mxu2 %v11637_v29  ;;  %v11730_v29 = vld [vmem:[%s21619_s7 + $0x10d8] sm:$0xf0] }
 0x243   : > { %5218 = vmatpush.bf16.msrb.mxu3 %v11829_v14  ;;  %v14160_v14 = vld [vmem:[%s21619_s7 + $0xc14] sm:$0xf]  ;;  %v11733_v18 = vor.u32 %v14310_v23, %v11730_v29  ;;  %v12150_v23 = vld [vmem:[%s21623_s4 + $0x210] sm:$0xf] }
 0x244   : > { %5180 = vmatpush.bf16.msrb.mxu0 %v11229_v32  ;;  %v4954_v17 = vpop.f32.mrf.mxu2  ;;  %v11514_v32 = vld [vmem:[%s21619_s7 + $0xf28] sm:$0xf0]  ;;  %v11133_v41 = vor.u32 %v14160_v14, %v11130_v55 }
 0x245   : > { %5193 = vmatpush.bf16.msrb.mxu1 %v11421_v33  ;;  %v4967_v33 = vpop.f32.mrf.mxu3  ;;  %v11517_v47 = vor.u32 %v14256_v30, %v11514_v32  ;;  %v12138_v30 = vld [vmem:[%s21623_s4 + $0x1f8] sm:$0xf] }
 0x246   : > { %5206 = vmatpush.bf16.msrb.mxu2 %v11613_v35  ;;  %v4914_v35 = vadd.f32 %v18355_v58, %v4901_v22  ;;  %v5230_v58 = vpack.c.bf16 %v17159_v51, %v17159_v51  ;;  %v14372_v22 = vld [vmem:[%s21623_s4 + $0xb0] sm:$0xf0]  ;;  %v14414_v33 = vld [vmem:[%s21623_s4 + $0x200] sm:$0xf0] }
 0x247   : > { %5219 = vmatpush.bf16.msrb.mxu3 %v11805_v45  ;;  %v5229_v45 = vpack.c.bf16 %v16554_v24, %v16554_v24 }
 0x248   : > { %5181 = vmatpush.bf16.msrb.mxu0 %v11205_v52  ;;  %v5232_v50 = vpack.c.bf16 %v4914_v35, %v4914_v35  ;;  %v5256_v24 = vsel %vm5251_vm1, %v5230_v58, 0  ;;  %v12139_v35 = vor.u32 %v14414_v33, %v12138_v30  ;;  %v14411_v58 = vld [vmem:[%s21623_s4 + $0x1e8] sm:$0xf0]  ;;  %v14468_v30 = vld [vmem:[%s21623_s4 + $0x3b0] sm:$0xf0] }
 0x249   : > { %5194 = vmatpush.bf16.msrb.mxu1 %v11397_v53  ;;  %v5253_v52 = vsel %vm5251_vm1, %v5229_v45, 0  ;;  %v808_v53 = vpop.xlane.xlu0 %807  ;;  %v14366_v45 = vld [vmem:[%s21623_s4 + $0x80] sm:$0xf0]  ;;  %v11960_v33 = vld [vmem:[%s21623_s4 + $0x9c] sm:$0xf0] }
 0x24a   : > { %5207 = vmatpush.bf16.msrb.mxu2 %v11589_v56  ;;  %v5262_v51 = vsel %vm5251_vm1, %v5232_v50, 0  ;;  %14832 = vrcp.f32 %v808_v53 }
 0x24b   : > { %5220 = vmatpush.bf16.msrb.mxu3 %v11781_v11 }
 0x24c   : > { %5182 = vmatpush.bf16.msrb.mxu0 %v11181_v2 }
 0x24d   : > { %5195 = vmatpush.bf16.msrb.mxu1 %v11373_v6 }
 0x24e   : > { %5208 = vmatpush.bf16.msrb.mxu2 %v11565_v8 }
 0x24f   : > { %5221 = vmatpush.bf16.msrb.mxu3 %v11757_v42 }
 0x250   : > { %5183 = vmatpush.bf16.msrb.mxu0 %v11157_v37  ;;  %v14833_v56 = vpop.eup %14832  ;;  %v11971_v37 = vor.u32 %v14372_v22, %v11970_v12  ;;  %v11972_v12 = vld [vmem:[%s21623_s4 + $0xb4] sm:$0xf0] }
 0x251   : > { %5196 = vmatpush.bf16.msrb.mxu1 %v11349_v38  ;;  %v810_v7 = vmul.f32 %v14833_v56, %v17465_v4  ;;  %v14417_v38 = vld [vmem:[%s21623_s4 + $0x218] sm:$0xf0]  ;;  %v11922_v56 = vld [vmem:[%s21623_s4 + $0x48] sm:$0xf] }
 0x252   : > { %5209 = vmatpush.bf16.msrb.mxu2 %v11541_v13  ;;  %v12151_v55 = vor.u32 %v14417_v38, %v12150_v23  ;;  %v11886_v23 = vld [vmem:[%s21623_s4] sm:$0xf] }
 0x253   : > { %5222 = vmatpush.bf16.msrb.mxu3 %v11733_v18  ;;  %v18637_v61 = vpack.c.bf16 %v810_v7, %v810_v7  ;;  %v11958_v18 = vld [vmem:[%s21623_s4 + $0x90] sm:$0xf] }
 0x254   : > { %5184 = vmatpush.bf16.msrb.mxu0 %v11133_v41  ;;  %v4978_v27 = vpop.f32.mrf.mxu0  ;;  %v11959_v32 = vor.u32 %v14369_v25, %v11958_v18  ;;  %v11946_v41 = vld [vmem:[%s21623_s4 + $0x78] sm:$0xf]  ;;  %v12102_v7 = vld [vmem:[%s21623_s4 + $0x1b0] sm:$0xf] }
 0x255   : > { %5197 = vmatpush.bf16.msrb.mxu1 %v11325_v46  ;;  %v4991_v54 = vpop.f32.mrf.mxu1  ;;  %v12126_v46 = vld [vmem:[%s21623_s4 + $0x1e0] sm:$0xf] }
 0x256   : > { %5210 = vmatpush.bf16.msrb.mxu2 %v11517_v47  ;;  %v11947_v47 = vor.u32 %v14366_v45, %v11946_v41  ;;  %v12018_v45 = vld [vmem:[%s21623_s4 + $0x108] sm:$0xf] }
 0x257   : > { %5223 = vmatpush.bf16.msrb.mxu3 %v11709_v49  ;;  %5185 = vmatmul.bf16.vlgmr.msrb.gmra.mxu0 %v15640_v15  ;;  %v14363_v49 = vld [vmem:[%s21623_s4 + $0x68] sm:$0xf0] }
 0x258   : > { %5277 = vmatpush.bf16.msra.mxu0 %v5253_v52  ;;  %5198 = vmatmul.bf16.vlgmr.msrb.gmra.mxu1 %v15653_v20  ;;  %v12127_v52 = vor.u32 %v14411_v58, %v12126_v46  ;;  %v14384_v46 = vld [vmem:[%s21623_s4 + $0x110] sm:$0xf0] }
 0x259   : > { %5290 = vmatpush.bf16.msra.mxu1 %v5256_v24  ;;  %5211 = vmatmul.bf16.vlgmr.msrb.gmra.mxu2 %v15651_v19  ;;  %v4966_v19 = vadd.f32 %v18561_v63, %v4953_v62  ;;  %v14420_v63 = vld [vmem:[%s21623_s4 + $0x230] sm:$0xf0]  ;;  %v12114_v24 = vld [vmem:[%s21623_s4 + $0x1c8] sm:$0xf] }
 0x25a   : > { %5303 = vmatpush.bf16.msra.mxu2 %v5259_v57  ;;  %5224 = vmatmul.bf16.vlgmr.msrb.gmra.mxu3 %v15661_v26  ;;  %v12163_v34 = vor.u32 %v14420_v63, %v12162_v21  ;;  %v14408_v57 = vld [vmem:[%s21623_s4 + $0x1d0] sm:$0xf0]  ;;  %v12042_v63 = vld [vmem:[%s21623_s4 + $0x138] sm:$0xf] }
 0x25b   : > { %5316 = vmatpush.bf16.msra.mxu3 %v5262_v51  ;;  %v4979_v43 = vadd.f32 %v4978_v27, %v4966_v19  ;;  %v11935_v51 = vor.u32 %v14363_v49, %v11934_v48  ;;  %v12115_v27 = vor.u32 %v14408_v57, %v12114_v24  ;;  %v11910_v19 = vld [vmem:[%s21623_s4 + $0x30] sm:$0xf]  ;;  %v12019_v49 = vor.u32 %v14384_v46, %v12018_v45  ;;  %v11948_v24 = vld [vmem:[%s21623_s4 + $0x84] sm:$0xf0] }
 0x25c   : > { %v5004_v11 = vpop.f32.mrf.mxu2  ;;  %v4980_v15 = vpop.f32.mrf.mxu0 }
 0x25d   : > { %v5017_v16 = vpop.f32.mrf.mxu3  ;;  %v4993_v20 = vpop.f32.mrf.mxu1  ;;  %v4992_v44 = vadd.f32 %v4991_v54, %v4979_v43  ;;  %v14360_v54 = vld [vmem:[%s21623_s4 + $0x50] sm:$0xf0]  ;;  %v14357_v43 = vld [vmem:[%s21623_s4 + $0x38] sm:$0xf0] }
 0x25e   : > { %6321 = vmatpush.bf16.msrb.mxu2 %v11971_v37  ;;  %v11923_v62 = vor.u32 %v14360_v54, %v11922_v56  ;;  %v12330_v56 = vld [vmem:[%s21623_s4 + $0x378] sm:$0xf] }
 0x25f   : > { %v5005_v60 = vadd.f32 %v5004_v11, %v4992_v44  ;;  %v12066_v11 = vld [vmem:[%s21623_s4 + $0x168] sm:$0xf]  ;;  %v12054_v44 = vld [vmem:[%s21623_s4 + $0x150] sm:$0xf] }
 0x261   : > { %v5018_v0 = vadd.f32 %v5017_v16, %v5005_v60  ;;  %v14396_v16 = vld [vmem:[%s21623_s4 + $0x170] sm:$0xf0]  ;;  %v14393_v60 = vld [vmem:[%s21623_s4 + $0x158] sm:$0xf0] }
 0x262   : > { %6322 = vmatpush.bf16.msrb.mxu2 %v11959_v32  ;;  %v12067_v20 = vor.u32 %v14396_v16, %v12066_v11  ;;  %v14368_v32 = vld [vmem:[%s21623_s4 + $0x94] sm:$0xf]  ;;  %v14462_v11 = vld [vmem:[%s21623_s4 + $0x380] sm:$0xf0] }
 0x263   : > { %v11963_v41 = vor.u32 %v14368_v32, %v11960_v33  ;;  %v14362_v16 = vld [vmem:[%s21623_s4 + $0x64] sm:$0xf]  ;;  %v12270_v33 = vld [vmem:[%s21623_s4 + $0x300] sm:$0xf] }
 0x264   : > { %v5006_v26 = vpop.f32.mrf.mxu2  ;;  %6334 = vmatpush.bf16.msrb.mxu3 %v12067_v20 }
 0x265   : > { %v5019_v4 = vpop.f32.mrf.mxu3 }
 0x266   : > { %6323 = vmatpush.bf16.msrb.mxu2 %v11947_v47  ;;  %v12103_v4 = vor.u32 %v14405_v59, %v12102_v7  ;;  %v12342_v47 = vld [vmem:[%s21623_s4 + $0x390] sm:$0xf] }
 0x267   : > { %11878 = vmatmul.msk.bf16.vlgmr.msra.gmra.mxu0 %vm799_vm0, %v18637_v61 }
 0x268   : > { %11879 = vmatmul.msk.bf16.vlgmr.msra.gmra.mxu1 %vm799_vm0, %v18637_v61 }
 0x269   : > { %11880 = vmatmul.msk.bf16.vlgmr.msra.gmra.mxu2 %vm799_vm0, %v18637_v61 }
 0x26a   : > { %11881 = vmatmul.msk.bf16.vlgmr.msra.gmra.mxu3 %vm799_vm0, %v18637_v61  ;;  %6324 = vmatpush.bf16.msrb.mxu2 %v11935_v51 }
 0x26e   : > { %6325 = vmatpush.bf16.msrb.mxu2 %v11923_v62  ;;  %v12331_v62 = vor.u32 %v14462_v11, %v12330_v56 }
 0x274   : > { %v5030_v1 = vpop.f32.mrf.mxu0 }
 0x275   : > { %v5043_v2 = vpop.f32.mrf.mxu1  ;;  %v5031_v3 = vadd.f32 %v5030_v1, %v5018_v0  ;;  %v12090_v0 = vld [vmem:[%s21623_s4 + $0x198] sm:$0xf]  ;;  %v14402_v1 = vld [vmem:[%s21623_s4 + $0x1a0] sm:$0xf0] }
 0x277   : > { %v5044_v5 = vadd.f32 %v5043_v2, %v5031_v3  ;;  %v12055_v2 = vor.u32 %v14393_v60, %v12054_v44  ;;  %v11911_v3 = vor.u32 %v14357_v43, %v11910_v19  ;;  %v14378_v19 = vld [vmem:[%s21623_s4 + $0xe0] sm:$0xf0]  ;;  %v14459_v60 = vld [vmem:[%s21623_s4 + $0x368] sm:$0xf0] }
 0x279   : > { %6335 = vmatpush.bf16.msrb.mxu3 %v12055_v2  ;;  %6326 = vmatpush.bf16.msrb.mxu2 %v11911_v3  ;;  %v11924_v3 = vld [vmem:[%s21623_s4 + $0x54] sm:$0xf0] }
 0x27c   : > { %v5056_v6 = vpop.f32.mrf.mxu2  ;;  %v5032_v31 = vpop.f32.mrf.mxu0 }
 0x27d   : > { %v5057_v8 = vadd.f32 %v5056_v6, %v5044_v5  ;;  %v5069_v9 = vpop.f32.mrf.mxu3  ;;  %v5045_v10 = vpop.f32.mrf.mxu1  ;;  %v12091_v5 = vor.u32 %v14402_v1, %v12090_v0  ;;  %v11898_v6 = vld [vmem:[%s21623_s4 + $0x18] sm:$0xf]  ;;  %v14399_v31 = vld [vmem:[%s21623_s4 + $0x188] sm:$0xf0] }
 0x27e   : > { %v14359_v0 = vld [vmem:[%s21623_s4 + $0x4c] sm:$0xf] }
 0x27f   : > { %v5070_v42 = vadd.f32 %v5069_v9, %v5057_v8  ;;  %v14354_v8 = vld [vmem:[%s21623_s4 + $0x20] sm:$0xf0]  ;;  %v12078_v9 = vld [vmem:[%s21623_s4 + $0x180] sm:$0xf] }
 0x280   : > { %v11899_v10 = vor.u32 %v14354_v8, %v11898_v6  ;;  %v12079_v21 = vor.u32 %v14399_v31, %v12078_v9  ;;  %v14375_v6 = vld [vmem:[%s21623_s4 + $0xc8] sm:$0xf0]  ;;  %v12306_v8 = vld [vmem:[%s21623_s4 + $0x348] sm:$0xf] }
 0x281   : > { %v5233_v28 = vpack.c.bf16 %v5070_v42, %v5070_v42  ;;  %v14390_v42 = vld [vmem:[%s21623_s4 + $0x140] sm:$0xf0] }
 0x282   : > { %6327 = vmatpush.bf16.msrb.mxu2 %v11899_v10  ;;  %v14456_v10 = vld [vmem:[%s21623_s4 + $0x350] sm:$0xf0] }
 0x283   : > { %v5265_v29 = vsel %vm5251_vm1, %v5233_v28, 0  ;;  %v14371_v28 = vld [vmem:[%s21623_s4 + $0xac] sm:$0xf] }
 0x284   : > { %5329 = vmatpush.bf16.msrb.mxu0 %v5265_v29  ;;  %v5058_v13 = vpop.f32.mrf.mxu2  ;;  %v11975_v22 = vor.u32 %v14371_v28, %v11972_v12  ;;  %v14351_v29 = vld [vmem:[%s21623_s4 + $0x8] sm:$0xf0]  ;;  %v14453_v12 = vld [vmem:[%s21623_s4 + $0x338] sm:$0xf0] }
 0x285   : > { %v5071_v14 = vpop.f32.mrf.mxu3  ;;  %v11887_v38 = vor.u32 %v14351_v29, %v11886_v23  ;;  %v12030_v13 = vld [vmem:[%s21623_s4 + $0x120] sm:$0xf]  ;;  %v14353_v29 = vld [vmem:[%s21623_s4 + $0x1c] sm:$0xf] }
 0x286   : > { %v14387_v14 = vld [vmem:[%s21623_s4 + $0x128] sm:$0xf0] }
 0x287   : > { %11882 = vmatmul.msk.bf16.vlgmr.msrb.gmra.mxu0 %vm799_vm0, %v18637_v61  ;;  %v12031_v25 = vor.u32 %v14387_v14, %v12030_v13  ;;  %6328 = vmatpush.bf16.msrb.mxu2 %v11887_v38  ;;  %v12282_v13 = vld [vmem:[%s21623_s4 + $0x318] sm:$0xf]  ;;  %v14450_v14 = vld [vmem:[%s21623_s4 + $0x320] sm:$0xf0] }
 0x288   : > { %6347 = vmatpush.bf16.msra.mxu0 %v12163_v34  ;;  %v12043_v34 = vor.u32 %v14390_v42, %v12042_v63  ;;  %v11912_v63 = vld [vmem:[%s21623_s4 + $0x3c] sm:$0xf0]  ;;  %v12307_v42 = vor.u32 %v14456_v10, %v12306_v8  ;;  %v14435_v8 = vld [vmem:[%s21623_s4 + $0x2a8] sm:$0xf0]  ;;  %v14416_v10 = vld [vmem:[%s21623_s4 + $0x214] sm:$0xf] }
 0x28a   : > { %6336 = vmatpush.bf16.msrb.mxu3 %v12043_v34  ;;  %v12294_v34 = vld [vmem:[%s21623_s4 + $0x330] sm:$0xf] }
 0x28b   : > { %v12295_v23 = vor.u32 %v14453_v12, %v12294_v34 }
 0x28c   : > { %6348 = vmatpush.bf16.msra.mxu0 %v12151_v55  ;;  %v12354_v55 = vld [vmem:[%s21623_s4 + $0x3a8] sm:$0xf] }
 0x28e   : > { %6337 = vmatpush.bf16.msrb.mxu3 %v12031_v25  ;;  %v12283_v25 = vor.u32 %v14450_v14, %v12282_v13 }
 0x290   : > { %6349 = vmatpush.bf16.msra.mxu0 %v12139_v35  ;;  %v12355_v35 = vor.u32 %v14468_v30, %v12354_v55  ;;  %v14350_v55 = vld [vmem:[%s21623_s4 + $0x4] sm:$0xf]  ;;  %v11888_v30 = vld [vmem:[%s21623_s4 + $0xc] sm:$0xf0] }
 0x291   : > { %v11891_v32 = vor.u32 %v14350_v55, %v11888_v30  ;;  %v14413_v55 = vld [vmem:[%s21623_s4 + $0x1fc] sm:$0xf] }
 0x292   : > { %6373 = vmatpush.bf16.msra.mxu2 %v12355_v35  ;;  %6338 = vmatpush.bf16.msrb.mxu3 %v12019_v49  ;;  %v14447_v35 = vld [vmem:[%s21623_s4 + $0x308] sm:$0xf0] }
 0x293   : > { %v12271_v46 = vor.u32 %v14447_v35, %v12270_v33  ;;  %v14464_v33 = vld [vmem:[%s21623_s4 + $0x394] sm:$0xf]  ;;  %v12344_v35 = vld [vmem:[%s21623_s4 + $0x39c] sm:$0xf0] }
 0x294   : > { %v18670_v40 = vpop.f32.mrf.mxu0  ;;  %6350 = vmatpush.bf16.msra.mxu0 %v12127_v52  ;;  %v14365_v52 = vld [vmem:[%s21623_s4 + $0x7c] sm:$0xf] }
 0x295   : > { %v18672_v17 = vpop.f32.mrf.mxu1  ;;  %v11951_v51 = vor.u32 %v14365_v52, %v11948_v24 }
 0x296   : > { %v5096_v58 = vadd.f32 %v18672_v17, %v18670_v40  ;;  %v12006_v17 = vld [vmem:[%s21623_s4 + $0xf0] sm:$0xf] }
 0x298   : > { %6351 = vmatpush.bf16.msra.mxu0 %v12115_v27  ;;  %v14381_v27 = vld [vmem:[%s21623_s4 + $0xf8] sm:$0xf0] }
 0x299   : > { %v12007_v59 = vor.u32 %v14381_v27, %v12006_v17  ;;  %v18925_v17 = vld [vmem:[%s21624_s8] sm:$0x3f] }
 0x29b   : > { %6339 = vmatpush.bf16.msrb.mxu3 %v12007_v59  ;;  %v14441_v59 = vld [vmem:[%s21623_s4 + $0x2d8] sm:$0xf0] }
 0x29c   : > { %v18686_v36 = vpop.f32.mrf.mxu2  ;;  %v5084_v50 = vpop.f32.mrf.mxu0  ;;  %6352 = vmatpush.bf16.msra.mxu0 %v12103_v4 }
 0x29d   : > { %v18688_v39 = vpop.f32.mrf.mxu3  ;;  %v5097_v53 = vpop.f32.mrf.mxu1  ;;  %v14465_v50 = vld [vmem:[%s21623_s4 + $0x398] sm:$0xf0]  ;;  %v5109_v54 = vadd.f32 %v18686_v36, %v5096_v58  ;;  %v11994_v36 = vld [vmem:[%s21623_s4 + $0xd8] sm:$0xf] }
 0x29e   : > { %v12343_v53 = vor.u32 %v14465_v50, %v12342_v47  ;;  %v11995_v44 = vor.u32 %v14378_v19, %v11994_v36 }
 0x29f   : > { %v5122_v4 = vadd.f32 %v18688_v39, %v5109_v54  ;;  %v11982_v39 = vld [vmem:[%s21623_s4 + $0xc0] sm:$0xf]  ;;  %v5236_v54 = vperm.slane %v18925_v17, 0 }
 0x2a0   : > { %6353 = vmatpush.bf16.msra.mxu0 %v12091_v5  ;;  %6374 = vmatpush.bf16.msra.mxu2 %v12343_v53  ;;  %v11927_v5 = vor.u32 %v14359_v0, %v11924_v3  ;;  %v11983_v31 = vor.u32 %v14375_v6, %v11982_v39  ;;  %v12164_v0 = vld [vmem:[%s21623_s4 + $0x234] sm:$0xf0]  ;;  %v5238_v3 = vperm.slane %v18925_v17, 2  ;;  %v12222_v6 = vld [vmem:[%s21623_s4 + $0x2a0] sm:$0xf] }
 0x2a1   : > { %6340 = vmatpush.bf16.msrb.mxu3 %v11995_v44  ;;  %v12223_v12 = vor.u32 %v14435_v8, %v12222_v6  ;;  %v12056_v8 = vld [vmem:[%s21623_s4 + $0x15c] sm:$0xf0] }
 0x2a4   : > { %v5110_v15 = vpop.f32.mrf.mxu2  ;;  %6354 = vmatpush.bf16.msra.mxu0 %v12079_v21  ;;  %6375 = vmatpush.bf16.msra.mxu2 %v12331_v62  ;;  %v14356_v21 = vld [vmem:[%s21623_s4 + $0x34] sm:$0xf] }
 0x2a5   : > { %v5123_v26 = vpop.f32.mrf.mxu3  ;;  %v11936_v15 = vld [vmem:[%s21623_s4 + $0x6c] sm:$0xf0]  ;;  %v11915_v28 = vor.u32 %v14356_v21, %v11912_v63  ;;  %6341 = vmatpush.bf16.msrb.mxu3 %v11983_v31  ;;  %v12152_v21 = vld [vmem:[%s21623_s4 + $0x21c] sm:$0xf0] }
 0x2a6   : > { %v11939_v20 = vor.u32 %v14362_v16, %v11936_v15  ;;  %v12318_v26 = vld [vmem:[%s21623_s4 + $0x360] sm:$0xf]  ;;  %v5237_v16 = vperm.slane %v18925_v17, 1  ;;  %v12155_v13 = vor.u32 %v14416_v10, %v12152_v21  ;;  %v12092_v10 = vld [vmem:[%s21623_s4 + $0x1a4] sm:$0xf0] }
 0x2a7   : > { %v12319_v2 = vor.u32 %v14459_v60, %v12318_v26  ;;  %v14419_v60 = vld [vmem:[%s21623_s4 + $0x22c] sm:$0xf] }
 0x2a8   : > { %6399 = vmatpush.bf16.msrb.mxu0 %v11975_v22 }
 0x2a9   : > { %6376 = vmatpush.bf16.msra.mxu2 %v12319_v2 }
 0x2ac   : > { %6400 = vmatpush.bf16.msrb.mxu0 %v11963_v41 }
 0x2ad   : > { %6377 = vmatpush.bf16.msra.mxu2 %v12307_v42 }
 0x2b0   : > { %6401 = vmatpush.bf16.msrb.mxu0 %v11951_v51  ;;  %v12258_v51 = vld [vmem:[%s21623_s4 + $0x2e8] sm:$0xf] }
 0x2b1   : > { %6378 = vmatpush.bf16.msra.mxu2 %v12295_v23  ;;  %v12356_v23 = vld [vmem:[%s21623_s4 + $0x3b4] sm:$0xf0] }
 0x2b4   : > { %v18780_v37 = vpop.f32.mrf.mxu0  ;;  %6402 = vmatpush.bf16.msrb.mxu0 %v11939_v20 }
 0x2b5   : > { %v18791_v18 = vpop.f32.mrf.mxu1  ;;  %v5135_v9 = vadd.f32 %v18780_v37, %v5122_v4  ;;  %v11900_v37 = vld [vmem:[%s21623_s4 + $0x24] sm:$0xf0]  ;;  %6379 = vmatpush.bf16.msra.mxu2 %v12283_v25  ;;  %v12234_v4 = vld [vmem:[%s21623_s4 + $0x2b8] sm:$0xf] }
 0x2b6   : > { %v11903_v38 = vor.u32 %v14353_v29, %v11900_v37  ;;  %v12210_v37 = vld [vmem:[%s21623_s4 + $0x288] sm:$0xf] }
 0x2b7   : > { %v5148_v22 = vadd.f32 %v18791_v18, %v5135_v9  ;;  %v12167_v9 = vor.u32 %v14419_v60, %v12164_v0  ;;  %v14455_v0 = vld [vmem:[%s21623_s4 + $0x34c] sm:$0xf] }
 0x2b8   : > { %6403 = vmatpush.bf16.msrb.mxu0 %v11927_v5 }
 0x2b9   : > { %6380 = vmatpush.bf16.msra.mxu2 %v12271_v46 }
 0x2bc   : > { %v18813_v48 = vpop.f32.mrf.mxu2  ;;  %v5136_v40 = vpop.f32.mrf.mxu0  ;;  %6404 = vmatpush.bf16.msrb.mxu0 %v11915_v28 }
 0x2bd   : > { %v18824_v57 = vpop.f32.mrf.mxu3  ;;  %v5149_v7 = vpop.f32.mrf.mxu1  ;;  %v5161_v18 = vadd.f32 %v18813_v48, %v5148_v22  ;;  %v14467_v22 = vld [vmem:[%s21623_s4 + $0x3ac] sm:$0xf] }
 0x2be   : > { %v12246_v7 = vld [vmem:[%s21623_s4 + $0x2d0] sm:$0xf]  ;;  %v12359_v25 = vor.u32 %v14467_v22, %v12356_v23  ;;  %v12044_v23 = vld [vmem:[%s21623_s4 + $0x144] sm:$0xf0] }
 0x2bf   : > { %v5174_v41 = vadd.f32 %v18824_v57, %v5161_v18  ;;  %v14444_v57 = vld [vmem:[%s21623_s4 + $0x2f0] sm:$0xf0]  ;;  %v12247_v36 = vor.u32 %v14441_v59, %v12246_v7  ;;  %v12140_v18 = vld [vmem:[%s21623_s4 + $0x204] sm:$0xf0] }
 0x2c0   : > { %6405 = vmatpush.bf16.msrb.mxu0 %v11903_v38  ;;  %v12259_v56 = vor.u32 %v14444_v57, %v12258_v51  ;;  %v14432_v38 = vld [vmem:[%s21623_s4 + $0x290] sm:$0xf0]  ;;  %v12143_v46 = vor.u32 %v14413_v55, %v12140_v18  ;;  %v5239_v51 = vperm.slane %v18925_v17, 3  ;;  %v12186_v57 = vld [vmem:[%s21623_s4 + $0x258] sm:$0xf] }
 0x2c4   : > { %v5162_v43 = vpop.f32.mrf.mxu2  ;;  %6406 = vmatpush.bf16.msrb.mxu0 %v11891_v32  ;;  %v12211_v32 = vor.u32 %v14432_v38, %v12210_v37  ;;  %v12080_v37 = vld [vmem:[%s21623_s4 + $0x18c] sm:$0xf0] }
 0x2c5   : > { %v5175_v1 = vpop.f32.mrf.mxu3  ;;  %v14438_v43 = vld [vmem:[%s21623_s4 + $0x2c0] sm:$0xf0] }
 0x2c6   : > { %v12235_v5 = vor.u32 %v14438_v43, %v12234_v4  ;;  %v14404_v4 = vld [vmem:[%s21623_s4 + $0x1b4] sm:$0xf]  ;;  %v12104_v43 = vld [vmem:[%s21623_s4 + $0x1bc] sm:$0xf0] }
 0x2c7   : > { %v12107_v6 = vor.u32 %v14404_v4, %v12104_v43  ;;  %v12146_v4 = vld [vmem:[%s21623_s4 + $0x200] sm:$0xf]  ;;  %v14415_v43 = vld [vmem:[%s21623_s4 + $0x208] sm:$0xf0] }
 0x2d4   : > { %v5186_v45 = vpop.f32.mrf.mxu0 }
 0x2d5   : > { %v5199_v47 = vpop.f32.mrf.mxu1  ;;  %v5187_v58 = vadd.f32 %v5186_v45, %v5174_v41  ;;  %v12198_v41 = vld [vmem:[%s21623_s4 + $0x270] sm:$0xf]  ;;  %v14429_v45 = vld [vmem:[%s21623_s4 + $0x278] sm:$0xf0] }
 0x2d7   : > { %v5200_v48 = vadd.f32 %v5199_v47, %v5187_v58  ;;  %v14410_v47 = vld [vmem:[%s21623_s4 + $0x1e4] sm:$0xf]  ;;  %v12128_v58 = vld [vmem:[%s21623_s4 + $0x1ec] sm:$0xf0] }
 0x2dc   : > { %v5212_v49 = vpop.f32.mrf.mxu2  ;;  %v5188_v24 = vpop.f32.mrf.mxu0 }
 0x2dd   : > { %v5213_v50 = vadd.f32 %v5212_v49, %v5200_v48  ;;  %v5225_v52 = vpop.f32.mrf.mxu3  ;;  %v5201_v53 = vpop.f32.mrf.mxu1  ;;  %v12347_v49 = vor.u32 %v14464_v33, %v12344_v35  ;;  %v14461_v24 = vld [vmem:[%s21623_s4 + $0x37c] sm:$0xf]  ;;  %v12032_v33 = vld [vmem:[%s21623_s4 + $0x12c] sm:$0xf0] }
 0x2de   : > { %v12332_v53 = vld [vmem:[%s21623_s4 + $0x384] sm:$0xf0] }
 0x2df   : > { %v5226_v40 = vadd.f32 %v5225_v52, %v5213_v50  ;;  %v12199_v52 = vor.u32 %v14429_v45, %v12198_v41  ;;  %v12335_v7 = vor.u32 %v14461_v24, %v12332_v53  ;;  %v14446_v41 = vld [vmem:[%s21623_s4 + $0x304] sm:$0xf]  ;;  %v12272_v45 = vld [vmem:[%s21623_s4 + $0x30c] sm:$0xf0]  ;;  %v14373_v53 = vld [vmem:[%s21623_s4 + $0xb8] sm:$0xf0] }
 0x2e0   : > { %v11978_v24 = vld [vmem:[%s21623_s4 + $0xb0] sm:$0xf] }
 0x2e1   : > { %v5234_v27 = vpack.c.bf16 %v5226_v40, %v5226_v40  ;;  %v14426_v40 = vld [vmem:[%s21623_s4 + $0x260] sm:$0xf0] }
 0x2e2   : > { %v12187_v59 = vor.u32 %v14426_v40, %v12186_v57 }
 0x2e3   : > { %v5268_v11 = vsel %vm5251_vm1, %v5234_v27, 0  ;;  %v12131_v27 = vor.u32 %v14410_v47, %v12128_v58  ;;  %v12170_v58 = vld [vmem:[%s21623_s4 + $0x230] sm:$0xf] }
 0x2e4   : > { %v5214_v15 = vpop.f32.mrf.mxu2  ;;  %5342 = vmatpush.bf16.msrb.mxu1 %v5268_v11  ;;  %v5279_v20 = vpop.f32.mrf.mxu0  ;;  %v14458_v11 = vld [vmem:[%s21623_s4 + $0x364] sm:$0xf] }
 0x2e5   : > { %v5227_v62 = vpop.f32.mrf.mxu3  ;;  %v5280_v19 = vadd.f32 %v5279_v20, %v5236_v54  ;;  %v5292_v26 = vpop.f32.mrf.mxu1  ;;  %v12116_v54 = vld [vmem:[%s21623_s4 + $0x1d4] sm:$0xf0]  ;;  %v14423_v20 = vld [vmem:[%s21623_s4 + $0x248] sm:$0xf0] }
 0x2e6   : > { %v5293_v44 = vadd.f32 %v5292_v26, %v5237_v16  ;;  %v12320_v16 = vld [vmem:[%s21623_s4 + $0x36c] sm:$0xf0]  ;;  %v12174_v62 = vld [vmem:[%s21623_s4 + $0x240] sm:$0xf]  ;;  %v12068_v26 = vld [vmem:[%s21623_s4 + $0x174] sm:$0xf0] }
 0x2e7   : > { %11883 = vmatmul.msk.bf16.vlgmr.msrb.gmra.mxu1 %vm799_vm0, %v18637_v61  ;;  %v5348_v1 = vmax.f32 %v5280_v19, 0.0  ;;  %v12175_v60 = vor.u32 %v14423_v20, %v12174_v62  ;;  %v14370_v62 = vld [vmem:[%s21623_s4 + $0xa0] sm:$0xf0]  ;;  %v12450_v20 = vld [vmem:[%s21623_s4 + $0x468] sm:$0xf] }
 0x2e8   : > { %6360 = vmatpush.bf16.msra.mxu1 %v12259_v56  ;;  %v5349_v2 = vmax.f32 %v5293_v44, 0.0  ;;  %v14407_v56 = vld [vmem:[%s21623_s4 + $0x1cc] sm:$0xf]  ;;  %v12323_v44 = vor.u32 %v14458_v11, %v12320_v16  ;;  %v12008_v11 = vld [vmem:[%s21623_s4 + $0xfc] sm:$0xf0] }
 0x2e9   : > { %v18951_v39 = vpack.c.bf16 %v5348_v1, %v5348_v1  ;;  %v12119_v19 = vor.u32 %v14407_v56, %v12116_v54  ;;  %v12308_v1 = vld [vmem:[%s21623_s4 + $0x354] sm:$0xf0]  ;;  %v14418_v56 = vld [vmem:[%s21623_s4 + $0x220] sm:$0xf0] }
 0x2ea   : > { %v18959_v31 = vpack.c.bf16 %v5349_v2, %v5349_v2  ;;  %v12311_v21 = vor.u32 %v14455_v0, %v12308_v1  ;;  %v11966_v16 = vld [vmem:[%s21623_s4 + $0x98] sm:$0xf]  ;;  %v14377_v1 = vld [vmem:[%s21623_s4 + $0xdc] sm:$0xf] }
 0x2eb   : > { %6329 = vmatmul.bf16.vlgmr.msrb.gmra.mxu2 %v18951_v39  ;;  %v11967_v0 = vor.u32 %v14370_v62, %v11966_v16  ;;  %v14477_v16 = vld [vmem:[%s21623_s4 + $0x3f8] sm:$0xf0]  ;;  %v12098_v62 = vld [vmem:[%s21623_s4 + $0x1a0] sm:$0xf] }
 0x2ec   : > { %6361 = vmatpush.bf16.msra.mxu1 %v12247_v36  ;;  %v5305_v63 = vpop.f32.mrf.mxu2  ;;  %6342 = vmatmul.bf16.vlgmr.msrb.gmra.mxu3 %v18959_v31  ;;  %v5281_v34 = vpop.f32.mrf.mxu0  ;;  %v14395_v36 = vld [vmem:[%s21623_s4 + $0x16c] sm:$0xf] }
 0x2ed   : > { %v5306_v42 = vadd.f32 %v5305_v63, %v5238_v3  ;;  %v5318_v28 = vpop.f32.mrf.mxu3  ;;  %v5294_v29 = vpop.f32.mrf.mxu1  ;;  %6425 = vmatpush.bf16.msrb.mxu2 %v12167_v9  ;;  %v12071_v3 = vor.u32 %v14395_v36, %v12068_v26  ;;  %v14401_v9 = vld [vmem:[%s21623_s4 + $0x19c] sm:$0xf]  ;;  %v14452_v63 = vld [vmem:[%s21623_s4 + $0x334] sm:$0xf] }
 0x2ee   : > { %v5319_v15 = vadd.f32 %v5318_v28, %v5239_v51  ;;  %v12095_v22 = vor.u32 %v14401_v9, %v12092_v10  ;;  %v14398_v29 = vld [vmem:[%s21623_s4 + $0x184] sm:$0xf]  ;;  %v12275_v51 = vor.u32 %v14446_v41, %v12272_v45  ;;  %v14492_v36 = vld [vmem:[%s21623_s4 + $0x470] sm:$0xf0]  ;;  %v12426_v10 = vld [vmem:[%s21623_s4 + $0x438] sm:$0xf] }
 0x2ef   : > { %v5350_v14 = vmax.f32 %v5306_v42, 0.0  ;;  %v12296_v42 = vld [vmem:[%s21623_s4 + $0x33c] sm:$0xf0]  ;;  %v12083_v18 = vor.u32 %v14398_v29, %v12080_v37  ;;  %v11984_v29 = vld [vmem:[%s21623_s4 + $0xcc] sm:$0xf0] }
 0x2f0   : > { %6362 = vmatpush.bf16.msra.mxu1 %v12235_v5  ;;  %v5351_v2 = vmax.f32 %v5319_v15, 0.0  ;;  %v14392_v5 = vld [vmem:[%s21623_s4 + $0x154] sm:$0xf]  ;;  %v12299_v38 = vor.u32 %v14452_v63, %v12296_v42  ;;  %v12147_v63 = vor.u32 %v14415_v43, %v12146_v4  ;;  %v11942_v37 = vld [vmem:[%s21623_s4 + $0x68] sm:$0xf] }
 0x2f1   : > { %v18987_v30 = vpack.c.bf16 %v5350_v14, %v5350_v14  ;;  %6426 = vmatpush.bf16.msrb.mxu2 %v12155_v13  ;;  %v12059_v34 = vor.u32 %v14392_v5, %v12056_v8  ;;  %v14449_v13 = vld [vmem:[%s21623_s4 + $0x31c] sm:$0xf]  ;;  %v12284_v14 = vld [vmem:[%s21623_s4 + $0x324] sm:$0xf0]  ;;  %v14367_v8 = vld [vmem:[%s21623_s4 + $0x88] sm:$0xf0] }
 0x2f2   : > { %v19075_v28 = vpack.c.bf16 %v5351_v2, %v5351_v2  ;;  %v12287_v35 = vor.u32 %v14449_v13, %v12284_v14  ;;  %v12438_v2 = vld [vmem:[%s21623_s4 + $0x450] sm:$0xf]  ;;  %v11996_v5 = vld [vmem:[%s21623_s4 + $0xe4] sm:$0xf0]  ;;  %v12414_v14 = vld [vmem:[%s21623_s4 + $0x420] sm:$0xf] }
 0x2f3   : > { %6355 = vmatmul.bf16.vlgmr.msra.gmra.mxu0 %v18987_v30  ;;  %v11999_v42 = vor.u32 %v14377_v1, %v11996_v5  ;;  %v11930_v41 = vld [vmem:[%s21623_s4 + $0x50] sm:$0xf]  ;;  %v14361_v45 = vld [vmem:[%s21623_s4 + $0x58] sm:$0xf0]  ;;  %v14400_v5 = vld [vmem:[%s21623_s4 + $0x190] sm:$0xf0] }
 0x2f4   : > { %6363 = vmatpush.bf16.msra.mxu1 %v12223_v12  ;;  %6451 = vmatpush.bf16.msra.mxu0 %v12359_v25  ;;  %v5307_v48 = vpop.f32.mrf.mxu2  ;;  %v14389_v12 = vld [vmem:[%s21623_s4 + $0x13c] sm:$0xf]  ;;  %v5240_v25 = vperm.slane %v18925_v17, 4 }
 0x2f5   : > { %v5320_v50 = vpop.f32.mrf.mxu3  ;;  %6427 = vmatpush.bf16.msrb.mxu2 %v12143_v46  ;;  %v12047_v55 = vor.u32 %v14389_v12, %v12044_v23  ;;  %v14421_v48 = vld [vmem:[%s21623_s4 + $0x238] sm:$0xf0]  ;;  %v12134_v12 = vld [vmem:[%s21623_s4 + $0x1e8] sm:$0xf]  ;;  %v14374_v23 = vld [vmem:[%s21623_s4 + $0xc4] sm:$0xf] }
 0x2f6   : > { %v12171_v40 = vor.u32 %v14421_v48, %v12170_v58  ;;  %v12452_v58 = vld [vmem:[%s21623_s4 + $0x474] sm:$0xf0]  ;;  %v12402_v48 = vld [vmem:[%s21623_s4 + $0x408] sm:$0xf]  ;;  %v14485_v43 = vld [vmem:[%s21623_s4 + $0x43c] sm:$0xf] }
 0x2f8   : > { %6364 = vmatpush.bf16.msra.mxu1 %v12211_v32  ;;  %6452 = vmatpush.bf16.msra.mxu0 %v12347_v49  ;;  %v14386_v32 = vld [vmem:[%s21623_s4 + $0x124] sm:$0xf]  ;;  %v14383_v49 = vld [vmem:[%s21623_s4 + $0x10c] sm:$0xf] }
 0x2f9   : > { %6428 = vmatpush.bf16.msrb.mxu2 %v12131_v27  ;;  %v12035_v47 = vor.u32 %v14386_v32, %v12032_v33  ;;  %v12158_v27 = vld [vmem:[%s21623_s4 + $0x218] sm:$0xf]  ;;  %v12122_v33 = vld [vmem:[%s21623_s4 + $0x1d0] sm:$0xf] }
 0x2fa   : > { %v12159_v26 = vor.u32 %v14418_v56, %v12158_v27  ;;  %v14488_v56 = vld [vmem:[%s21623_s4 + $0x454] sm:$0xf] }
 0x2fc   : > { %6365 = vmatpush.bf16.msra.mxu1 %v12199_v52  ;;  %6453 = vmatpush.bf16.msra.mxu0 %v12335_v7  ;;  %v12020_v52 = vld [vmem:[%s21623_s4 + $0x114] sm:$0xf0]  ;;  %v11979_v7 = vor.u32 %v14373_v53, %v11978_v24  ;;  %v14406_v53 = vld [vmem:[%s21623_s4 + $0x1c0] sm:$0xf0] }
 0x2fd   : > { %6429 = vmatpush.bf16.msrb.mxu2 %v12119_v19  ;;  %v12023_v54 = vor.u32 %v14383_v49, %v12020_v52  ;;  %v12451_v19 = vor.u32 %v14492_v36, %v12450_v20  ;;  %v14480_v52 = vld [vmem:[%s21623_s4 + $0x410] sm:$0xf0]  ;;  %v12110_v24 = vld [vmem:[%s21623_s4 + $0x1b8] sm:$0xf]  ;;  %v14403_v20 = vld [vmem:[%s21623_s4 + $0x1a8] sm:$0xf0] }
 0x2fe   : > { %v12403_v27 = vor.u32 %v14480_v52, %v12402_v48  ;;  %v12392_v48 = vld [vmem:[%s21623_s4 + $0x3fc] sm:$0xf0] }
 0x2ff   : > { %6386 = vmatpush.bf16.msra.mxu3 %v12451_v19  ;;  %v11906_v19 = vld [vmem:[%s21623_s4 + $0x20] sm:$0xf] }
 0x300   : > { %6366 = vmatpush.bf16.msra.mxu1 %v12187_v59  ;;  %6454 = vmatpush.bf16.msra.mxu0 %v12323_v44  ;;  %v14380_v59 = vld [vmem:[%s21623_s4 + $0xf4] sm:$0xf] }
 0x301   : > { %6430 = vmatpush.bf16.msrb.mxu2 %v12107_v6  ;;  %v11954_v6 = vld [vmem:[%s21623_s4 + $0x80] sm:$0xf] }
 0x303   : > { %6407 = vmatmul.bf16.vlgmr.msrb.gmra.mxu0 %v18951_v39 }
 0x304   : > { %6367 = vmatpush.bf16.msra.mxu1 %v12175_v60  ;;  %6455 = vmatpush.bf16.msra.mxu0 %v12311_v21  ;;  %v5331_v46 = vpop.f32.mrf.mxu0  ;;  %v12011_v60 = vor.u32 %v14380_v59, %v12008_v11  ;;  %v14486_v21 = vld [vmem:[%s21623_s4 + $0x440] sm:$0xf0]  ;;  %v12111_v59 = vor.u32 %v14406_v53, %v12110_v24  ;;  %v12236_v53 = vld [vmem:[%s21623_s4 + $0x2c4] sm:$0xf0] }
 0x305   : > { %6431 = vmatpush.bf16.msrb.mxu2 %v12095_v22  ;;  %v5332_v50 = vadd.f32 %v5331_v46, %v5240_v25  ;;  %v14412_v22 = vld [vmem:[%s21623_s4 + $0x1f0] sm:$0xf0]  ;;  %v12427_v13 = vor.u32 %v14486_v21, %v12426_v10  ;;  %v11987_v25 = vor.u32 %v14374_v23, %v11984_v29  ;;  %v14482_v21 = vld [vmem:[%s21623_s4 + $0x424] sm:$0xf]  ;;  %v14471_v29 = vld [vmem:[%s21623_s4 + $0x3c8] sm:$0xf0] }
 0x307   : > { %6368 = vmatmul.bf16.vlgmr.msra.gmra.mxu1 %v19075_v28  ;;  %v5352_v57 = vmax.f32 %v5332_v50, 0.0 }
 0x308   : > { %6412 = vmatpush.bf16.msrb.mxu1 %v12071_v3  ;;  %6456 = vmatpush.bf16.msra.mxu0 %v12299_v38  ;;  %v14489_v3 = vld [vmem:[%s21623_s4 + $0x458] sm:$0xf0]  ;;  %v14364_v38 = vld [vmem:[%s21623_s4 + $0x70] sm:$0xf0] }
 0x309   : > { %6432 = vmatpush.bf16.msrb.mxu2 %v12083_v18  ;;  %v19143_v15 = vpack.c.bf16 %v5352_v57, %v5352_v57  ;;  %v12439_v9 = vor.u32 %v14489_v3, %v12438_v2  ;;  %v12135_v18 = vor.u32 %v14412_v22, %v12134_v12  ;;  %v11943_v32 = vor.u32 %v14364_v38, %v11942_v37  ;;  %v11918_v57 = vld [vmem:[%s21623_s4 + $0x38] sm:$0xf]  ;;  %v14474_v2 = vld [vmem:[%s21623_s4 + $0x3e0] sm:$0xf0]  ;;  %v12086_v3 = vld [vmem:[%s21623_s4 + $0x188] sm:$0xf] }
 0x30a   : > { %v12362_v12 = vld [vmem:[%s21623_s4 + $0x3b0] sm:$0xf]  ;;  %v14469_v22 = vld [vmem:[%s21623_s4 + $0x3b8] sm:$0xf0] }
 0x30b   : > { %6381 = vmatmul.bf16.vlgmr.msra.gmra.mxu2 %v19143_v15  ;;  %6387 = vmatpush.bf16.msra.mxu3 %v12439_v9  ;;  %v14352_v9 = vld [vmem:[%s21623_s4 + $0x10] sm:$0xf0] }
 0x30c   : > { %6413 = vmatpush.bf16.msrb.mxu1 %v12059_v34  ;;  %6457 = vmatpush.bf16.msra.mxu0 %v12287_v35  ;;  %v5333_v44 = vpop.f32.mrf.mxu0  ;;  %v11955_v34 = vor.u32 %v14367_v8, %v11954_v6  ;;  %v14409_v35 = vld [vmem:[%s21623_s4 + $0x1d8] sm:$0xf0]  ;;  %v11894_v8 = vld [vmem:[%s21623_s4 + $0x8] sm:$0xf] }
 0x30d   : > { %6477 = vmatpush.bf16.msra.mxu2 %v11979_v7  ;;  %v12123_v49 = vor.u32 %v14409_v35, %v12122_v33  ;;  %v12390_v7 = vld [vmem:[%s21623_s4 + $0x3f0] sm:$0xf]  ;;  %v12428_v44 = vld [vmem:[%s21623_s4 + $0x444] sm:$0xf0]  ;;  %v11895_v37 = vor.u32 %v14352_v9, %v11894_v8  ;;  %v12404_v35 = vld [vmem:[%s21623_s4 + $0x414] sm:$0xf0] }
 0x30e   : > { %v12391_v4 = vor.u32 %v14477_v16, %v12390_v7  ;;  %v12431_v1 = vor.u32 %v14485_v43, %v12428_v44  ;;  %v14434_v7 = vld [vmem:[%s21623_s4 + $0x2a4] sm:$0xf]  ;;  %v12368_v16 = vld [vmem:[%s21623_s4 + $0x3cc] sm:$0xf0] }
 0x30f   : > { %6388 = vmatpush.bf16.msra.mxu3 %v12427_v13  ;;  %v12363_v13 = vor.u32 %v14469_v22, %v12362_v12  ;;  %v12242_v22 = vld [vmem:[%s21623_s4 + $0x2c0] sm:$0xf] }
 0x310   : > { %6414 = vmatpush.bf16.msrb.mxu1 %v12047_v55  ;;  %6458 = vmatpush.bf16.msra.mxu0 %v12275_v51  ;;  %v14483_v55 = vld [vmem:[%s21623_s4 + $0x428] sm:$0xf0]  ;;  %v11931_v51 = vor.u32 %v14361_v45, %v11930_v41  ;;  %v14440_v45 = vld [vmem:[%s21623_s4 + $0x2d4] sm:$0xf] }
 0x311   : > { %6478 = vmatpush.bf16.msra.mxu2 %v11967_v0  ;;  %v12415_v46 = vor.u32 %v14483_v55, %v12414_v14  ;;  %v12099_v0 = vor.u32 %v14403_v20, %v12098_v62  ;;  %v14443_v14 = vld [vmem:[%s21623_s4 + $0x2ec] sm:$0xf]  ;;  %v12260_v55 = vld [vmem:[%s21623_s4 + $0x2f4] sm:$0xf0]  ;;  %v12266_v62 = vld [vmem:[%s21623_s4 + $0x2f0] sm:$0xf] }
 0x312   : > { %v12263_v33 = vor.u32 %v14443_v14, %v12260_v55  ;;  %v14445_v20 = vld [vmem:[%s21623_s4 + $0x2f8] sm:$0xf0]  ;;  %v12278_v14 = vld [vmem:[%s21623_s4 + $0x308] sm:$0xf]  ;;  %v14448_v55 = vld [vmem:[%s21623_s4 + $0x310] sm:$0xf0] }
 0x313   : > { %6459 = vmatmul.bf16.vlgmr.msra.gmra.mxu0 %v19143_v15  ;;  %6389 = vmatpush.bf16.msra.mxu3 %v12415_v46  ;;  %v12248_v46 = vld [vmem:[%s21623_s4 + $0x2dc] sm:$0xf0]  ;;  %v12267_v44 = vor.u32 %v14445_v20, %v12266_v62 }
 0x314   : > { %6415 = vmatpush.bf16.msrb.mxu1 %v12035_v47  ;;  %6503 = vmatpush.bf16.msrb.mxu0 %v12171_v40  ;;  %v14491_v47 = vld [vmem:[%s21623_s4 + $0x46c] sm:$0xf]  ;;  %v14358_v40 = vld [vmem:[%s21623_s4 + $0x40] sm:$0xf0]  ;;  %v12251_v52 = vor.u32 %v14440_v45, %v12248_v46  ;;  %v12176_v45 = vld [vmem:[%s21623_s4 + $0x24c] sm:$0xf0] }
 0x315   : > { %6479 = vmatpush.bf16.msra.mxu2 %v11955_v34  ;;  %v12455_v50 = vor.u32 %v14491_v47, %v12452_v58  ;;  %v11919_v36 = vor.u32 %v14358_v40, %v11918_v57  ;;  %v12087_v34 = vor.u32 %v14400_v5, %v12086_v3  ;;  %v14476_v47 = vld [vmem:[%s21623_s4 + $0x3f4] sm:$0xf]  ;;  %v12380_v57 = vld [vmem:[%s21623_s4 + $0x3e4] sm:$0xf0]  ;;  %v12302_v5 = vld [vmem:[%s21623_s4 + $0x338] sm:$0xf] }
 0x316   : > { %v12395_v24 = vor.u32 %v14476_v47, %v12392_v48  ;;  %v12218_v47 = vld [vmem:[%s21623_s4 + $0x290] sm:$0xf] }
 0x317   : > { %6390 = vmatpush.bf16.msra.mxu3 %v12403_v27  ;;  %v12326_v27 = vld [vmem:[%s21623_s4 + $0x368] sm:$0xf] }
 0x318   : > { %6416 = vmatpush.bf16.msrb.mxu1 %v12023_v54  ;;  %6504 = vmatpush.bf16.msrb.mxu0 %v12159_v26  ;;  %v12440_v54 = vld [vmem:[%s21623_s4 + $0x45c] sm:$0xf0]  ;;  %v14355_v26 = vld [vmem:[%s21623_s4 + $0x28] sm:$0xf0] }
 0x319   : > { %6480 = vmatpush.bf16.msra.mxu2 %v11943_v32  ;;  %v12443_v11 = vor.u32 %v14488_v56, %v12440_v54  ;;  %v11907_v6 = vor.u32 %v14355_v26, %v11906_v19  ;;  %v14466_v32 = vld [vmem:[%s21623_s4 + $0x3a0] sm:$0xf0]  ;;  %v12314_v19 = vld [vmem:[%s21623_s4 + $0x350] sm:$0xf]  ;;  %v14457_v26 = vld [vmem:[%s21623_s4 + $0x358] sm:$0xf0] }
 0x31a   : > { %v12315_v3 = vor.u32 %v14457_v26, %v12314_v19  ;;  %v14391_v19 = vld [vmem:[%s21623_s4 + $0x148] sm:$0xf0] }
 0x31b   : > { %6433 = vmatmul.bf16.vlgmr.msrb.gmra.mxu2 %v18987_v30  ;;  %6391 = vmatpush.bf16.msra.mxu3 %v12391_v4 }
 0x31c   : > { %6417 = vmatpush.bf16.msrb.mxu1 %v12011_v60  ;;  %6505 = vmatpush.bf16.msrb.mxu0 %v12147_v63  ;;  %v12378_v60 = vld [vmem:[%s21623_s4 + $0x3d8] sm:$0xf]  ;;  %v12416_v63 = vld [vmem:[%s21623_s4 + $0x42c] sm:$0xf0] }
 0x31d   : > { %6481 = vmatpush.bf16.msra.mxu2 %v11931_v51  ;;  %v12379_v10 = vor.u32 %v14474_v2, %v12378_v60  ;;  %v12419_v23 = vor.u32 %v14482_v21, %v12416_v63  ;;  %v14473_v51 = vld [vmem:[%s21623_s4 + $0x3dc] sm:$0xf]  ;;  %v14431_v60 = vld [vmem:[%s21623_s4 + $0x28c] sm:$0xf]  ;;  %v14442_v2 = vld [vmem:[%s21623_s4 + $0x2e0] sm:$0xf0] }
 0x31e   : > { %v12383_v54 = vor.u32 %v14473_v51, %v12380_v57  ;;  %v12200_v21 = vld [vmem:[%s21623_s4 + $0x27c] sm:$0xf0]  ;;  %v12182_v51 = vld [vmem:[%s21623_s4 + $0x248] sm:$0xf] }
 0x31f   : > { %6392 = vmatpush.bf16.msra.mxu3 %v12379_v10  ;;  %v14428_v10 = vld [vmem:[%s21623_s4 + $0x274] sm:$0xf] }
 0x320   : > { %6418 = vmatpush.bf16.msrb.mxu1 %v11999_v42  ;;  %6506 = vmatpush.bf16.msrb.mxu0 %v12135_v18  ;;  %v12366_v42 = vld [vmem:[%s21623_s4 + $0x3c0] sm:$0xf]  ;;  %v14479_v18 = vld [vmem:[%s21623_s4 + $0x40c] sm:$0xf]  ;;  %v12203_v12 = vor.u32 %v14428_v10, %v12200_v21 }
 0x321   : > { %6482 = vmatpush.bf16.msra.mxu2 %v11919_v36  ;;  %v12367_v38 = vor.u32 %v14471_v29, %v12366_v42  ;;  %v12407_v41 = vor.u32 %v14479_v18, %v12404_v35  ;;  %v12290_v42 = vld [vmem:[%s21623_s4 + $0x320] sm:$0xf]  ;;  %v12279_v35 = vor.u32 %v14448_v55, %v12278_v14  ;;  %v12458_v14 = vld [vmem:[%s21623_s4 + $0x470] sm:$0xf]  ;;  %v14493_v55 = vld [vmem:[%s21623_s4 + $0x478] sm:$0xf0] }
 0x323   : > { %6393 = vmatpush.bf16.msra.mxu3 %v12367_v38  ;;  %v14425_v38 = vld [vmem:[%s21623_s4 + $0x25c] sm:$0xf] }
 0x324   : > { %6419 = vmatpush.bf16.msrb.mxu1 %v11987_v25  ;;  %6507 = vmatpush.bf16.msrb.mxu0 %v12123_v49  ;;  %v12350_v25 = vld [vmem:[%s21623_s4 + $0x398] sm:$0xf]  ;;  %v12338_v49 = vld [vmem:[%s21623_s4 + $0x380] sm:$0xf] }
 0x325   : > { %6483 = vmatpush.bf16.msra.mxu2 %v11907_v6  ;;  %v12351_v58 = vor.u32 %v14466_v32, %v12350_v25  ;;  %v14454_v6 = vld [vmem:[%s21623_s4 + $0x340] sm:$0xf0]  ;;  %v12230_v25 = vld [vmem:[%s21623_s4 + $0x2a8] sm:$0xf]  ;;  %v14436_v32 = vld [vmem:[%s21623_s4 + $0x2b0] sm:$0xf0] }
 0x326   : > { %v12303_v63 = vor.u32 %v14454_v6, %v12302_v5  ;;  %v12026_v5 = vld [vmem:[%s21623_s4 + $0x110] sm:$0xf]  ;;  %v14385_v6 = vld [vmem:[%s21623_s4 + $0x118] sm:$0xf0] }
 0x327   : > { %6420 = vmatmul.bf16.vlgmr.msrb.gmra.mxu1 %v18959_v31  ;;  %6438 = vmatpush.bf16.msrb.mxu3 %v12263_v33  ;;  %v12231_v33 = vor.u32 %v14436_v32, %v12230_v25  ;;  %v12027_v21 = vor.u32 %v14385_v6, %v12026_v5  ;;  %v12459_v25 = vor.u32 %v14493_v55, %v12458_v14  ;;  %v12446_v32 = vld [vmem:[%s21623_s4 + $0x458] sm:$0xf]  ;;  %v12513_v14 = vld [vmem:[%s21625_s3 + $0x60] sm:$0xf] }
 0x328   : > { %6464 = vmatpush.bf16.msra.mxu1 %v12455_v50  ;;  %6508 = vmatpush.bf16.msrb.mxu0 %v12111_v59  ;;  %v14463_v50 = vld [vmem:[%s21623_s4 + $0x388] sm:$0xf0]  ;;  %v12224_v59 = vld [vmem:[%s21623_s4 + $0x2ac] sm:$0xf0] }
 0x329   : > { %6484 = vmatpush.bf16.msra.mxu2 %v11895_v37  ;;  %v12339_v40 = vor.u32 %v14463_v50, %v12338_v49  ;;  %v12227_v4 = vor.u32 %v14434_v7, %v12224_v59  ;;  %v12206_v49 = vld [vmem:[%s21623_s4 + $0x278] sm:$0xf]  ;;  %v14430_v50 = vld [vmem:[%s21623_s4 + $0x280] sm:$0xf0] }
 0x32b   : > { %6439 = vmatpush.bf16.msrb.mxu3 %v12251_v52  ;;  %v12207_v52 = vor.u32 %v14430_v50, %v12206_v49  ;;  %v14484_v49 = vld [vmem:[%s21623_s4 + $0x430] sm:$0xf0] }
 0x32c   : > { %6465 = vmatpush.bf16.msra.mxu1 %v12443_v11  ;;  %6509 = vmatpush.bf16.msrb.mxu0 %v12099_v0  ;;  %v14470_v11 = vld [vmem:[%s21623_s4 + $0x3c4] sm:$0xf]  ;;  %v12212_v0 = vld [vmem:[%s21623_s4 + $0x294] sm:$0xf0] }
 0x32d   : > { %6529 = vmatpush.bf16.msrb.mxu2 %v12363_v13  ;;  %v12371_v43 = vor.u32 %v14470_v11, %v12368_v16  ;;  %v12215_v8 = vor.u32 %v14431_v60, %v12212_v0  ;;  %v12188_v13 = vld [vmem:[%s21623_s4 + $0x264] sm:$0xf0]  ;;  %v12062_v16 = vld [vmem:[%s21623_s4 + $0x158] sm:$0xf] }
 0x32e   : > { %6485 = vmatmul.bf16.vlgmr.msra.gmra.mxu2 %v18951_v39  ;;  %v14460_v39 = vld [vmem:[%s21623_s4 + $0x370] sm:$0xf0]  ;;  %v12191_v18 = vor.u32 %v14425_v38, %v12188_v13  ;;  %v12038_v0 = vld [vmem:[%s21623_s4 + $0x128] sm:$0xf] }
 0x32f   : > { %v12327_v36 = vor.u32 %v14460_v39, %v12326_v27  ;;  %v11990_v38 = vld [vmem:[%s21623_s4 + $0xc8] sm:$0xf] }
 0x330   : > { %6466 = vmatpush.bf16.msra.mxu1 %v12431_v1  ;;  %6510 = vmatpush.bf16.msrb.mxu0 %v12087_v34  ;;  %v12254_v1 = vld [vmem:[%s21623_s4 + $0x2d8] sm:$0xf]  ;;  %v14451_v34 = vld [vmem:[%s21623_s4 + $0x328] sm:$0xf0] }
 0x331   : > { %6530 = vmatpush.bf16.msrb.mxu2 %v12351_v58  ;;  %v12255_v9 = vor.u32 %v14442_v2, %v12254_v1  ;;  %v12291_v37 = vor.u32 %v14451_v34, %v12290_v42  ;;  %v14433_v58 = vld [vmem:[%s21623_s4 + $0x298] sm:$0xf0]  ;;  %v14388_v1 = vld [vmem:[%s21623_s4 + $0x130] sm:$0xf0]  ;;  %v14382_v42 = vld [vmem:[%s21623_s4 + $0x100] sm:$0xf0] }
 0x332   : > { %v12219_v48 = vor.u32 %v14433_v58, %v12218_v47  ;;  %v14487_v47 = vld [vmem:[%s21623_s4 + $0x448] sm:$0xf0] }
 0x333   : > { %6511 = vmatmul.bf16.vlgmr.msrb.gmra.mxu0 %v18987_v30  ;;  %v14437_v30 = vld [vmem:[%s21623_s4 + $0x2bc] sm:$0xf] }
 0x334   : > { %6467 = vmatpush.bf16.msra.mxu1 %v12419_v23  ;;  %v12239_v56 = vor.u32 %v14437_v30, %v12236_v53  ;;  %v14439_v23 = vld [vmem:[%s21623_s4 + $0x2c8] sm:$0xf0] }
 0x335   : > { %6531 = vmatpush.bf16.msrb.mxu2 %v12339_v40  ;;  %v12243_v29 = vor.u32 %v14439_v23, %v12242_v22  ;;  %v14427_v30 = vld [vmem:[%s21623_s4 + $0x268] sm:$0xf0]  ;;  %v5241_v40 = vperm.slane %v18925_v17, 5  ;;  %v14394_v17 = vld [vmem:[%s21623_s4 + $0x160] sm:$0xf0] }
 0x336   : > { %6440 = vmatpush.bf16.msrb.mxu3 %v12239_v56  ;;  %v12074_v56 = vld [vmem:[%s21623_s4 + $0x170] sm:$0xf]  ;;  %v12063_v20 = vor.u32 %v14394_v17, %v12062_v16  ;;  %v14379_v22 = vld [vmem:[%s21623_s4 + $0xe8] sm:$0xf0]  ;;  %v12374_v16 = vld [vmem:[%s21623_s4 + $0x3c8] sm:$0xf] }
 0x337   : > { %v14472_v17 = vld [vmem:[%s21623_s4 + $0x3d0] sm:$0xf0] }
 0x338   : > { %6468 = vmatpush.bf16.msra.mxu1 %v12407_v41  ;;  %v14422_v41 = vld [vmem:[%s21623_s4 + $0x244] sm:$0xf] }
 0x339   : > { %6532 = vmatpush.bf16.msrb.mxu2 %v12327_v36  ;;  %v12179_v46 = vor.u32 %v14422_v41, %v12176_v45  ;;  %v12050_v36 = vld [vmem:[%s21623_s4 + $0x140] sm:$0xf] }
 0x33a   : > { %6441 = vmatpush.bf16.msrb.mxu3 %v12227_v4 }
 0x33c   : > { %6469 = vmatpush.bf16.msra.mxu1 %v12395_v24  ;;  %v12194_v24 = vld [vmem:[%s21623_s4 + $0x260] sm:$0xf] }
 0x33d   : > { %6533 = vmatpush.bf16.msrb.mxu2 %v12315_v3  ;;  %v12195_v53 = vor.u32 %v14427_v30, %v12194_v24  ;;  %v12039_v3 = vor.u32 %v14388_v1, %v12038_v0  ;;  %v12410_v24 = vld [vmem:[%s21623_s4 + $0x410] sm:$0xf] }
 0x33e   : > { %6442 = vmatpush.bf16.msrb.mxu3 %v12215_v8 }
 0x340   : > { %6470 = vmatpush.bf16.msra.mxu1 %v12383_v54  ;;  %v14397_v54 = vld [vmem:[%s21623_s4 + $0x178] sm:$0xf0] }
 0x341   : > { %6534 = vmatpush.bf16.msrb.mxu2 %v12303_v63  ;;  %v12075_v59 = vor.u32 %v14397_v54, %v12074_v56  ;;  %v12014_v63 = vld [vmem:[%s21623_s4 + $0xf8] sm:$0xf]  ;;  %v14475_v56 = vld [vmem:[%s21623_s4 + $0x3e8] sm:$0xf0] }
 0x342   : > { %6443 = vmatpush.bf16.msrb.mxu3 %v12203_v12  ;;  %v12015_v34 = vor.u32 %v14382_v42, %v12014_v63  ;;  %v12002_v12 = vld [vmem:[%s21623_s4 + $0xe0] sm:$0xf] }
 0x344   : > { %6471 = vmatpush.bf16.msra.mxu1 %v12371_v43 }
 0x345   : > { %6535 = vmatpush.bf16.msrb.mxu2 %v12291_v37 }
 0x346   : > { %6444 = vmatpush.bf16.msrb.mxu3 %v12191_v18 }
 0x348   : > { %6516 = vmatpush.bf16.msrb.mxu1 %v12267_v44  ;;  %v12051_v44 = vor.u32 %v14391_v19, %v12050_v36 }
 0x349   : > { %6536 = vmatpush.bf16.msrb.mxu2 %v12279_v35 }
 0x34a   : > { %6445 = vmatpush.bf16.msrb.mxu3 %v12179_v46  ;;  %v12434_v46 = vld [vmem:[%s21623_s4 + $0x440] sm:$0xf] }
 0x34b   : > { %v12435_v58 = vor.u32 %v14487_v47, %v12434_v46  ;;  %v14503_v46 = vld [vmem:[%s21625_s3 + $0x44] sm:$0xf0] }
 0x34c   : > { %6517 = vmatpush.bf16.msrb.mxu1 %v12255_v9  ;;  %6537 = vmatmul.bf16.vlgmr.msrb.gmra.mxu2 %v19143_v15  ;;  %v14424_v15 = vld [vmem:[%s21623_s4 + $0x250] sm:$0xf0] }
 0x34d   : > { %v12183_v57 = vor.u32 %v14424_v15, %v12182_v51  ;;  %v12398_v15 = vld [vmem:[%s21623_s4 + $0x3f8] sm:$0xf] }
 0x350   : > { %6518 = vmatpush.bf16.msrb.mxu1 %v12243_v29  ;;  %v12003_v29 = vor.u32 %v14379_v22, %v12002_v12 }
 0x354   : > { %6519 = vmatpush.bf16.msrb.mxu1 %v12231_v33  ;;  %v14490_v33 = vld [vmem:[%s21623_s4 + $0x460] sm:$0xf0] }
 0x355   : > { %v12447_v45 = vor.u32 %v14490_v33, %v12446_v32  ;;  %v12505_v33 = vld [vmem:[%s21625_s3 + $0x50] sm:$0xf] }
 0x358   : > { %6520 = vmatpush.bf16.msrb.mxu1 %v12219_v48  ;;  %v12422_v48 = vld [vmem:[%s21623_s4 + $0x428] sm:$0xf] }
 0x35c   : > { %6521 = vmatpush.bf16.msrb.mxu1 %v12207_v52  ;;  %v12423_v52 = vor.u32 %v14484_v49, %v12422_v48  ;;  %v12489_v48 = vld [vmem:[%s21625_s3 + $0x30] sm:$0xf]  ;;  %v14501_v49 = vld [vmem:[%s21625_s3 + $0x34] sm:$0xf0] }
 0x360   : > { %6522 = vmatpush.bf16.msrb.mxu1 %v12195_v53 }
 0x364   : > { %6523 = vmatpush.bf16.msrb.mxu1 %v12183_v57  ;;  %v5344_v27 = vpop.f32.mrf.mxu1  ;;  %v14478_v57 = vld [vmem:[%s21623_s4 + $0x400] sm:$0xf0] }
 0x365   : > { %v5345_v39 = vadd.f32 %v5344_v27, %v5241_v40  ;;  %v12399_v27 = vor.u32 %v14478_v57, %v12398_v15 }
 0x367   : > { %v5353_v7 = vmax.f32 %v5345_v39, 0.0  ;;  %v12386_v39 = vld [vmem:[%s21623_s4 + $0x3e0] sm:$0xf] }
 0x369   : > { %v19486_v11 = vpack.c.bf16 %v5353_v7, %v5353_v7  ;;  %v12387_v7 = vor.u32 %v14475_v56, %v12386_v39 }
 0x36b   : > { %6394 = vmatmul.bf16.vlgmr.msra.gmra.mxu3 %v19486_v11  ;;  %6472 = vmatmul.bf16.vlgmr.msra.gmra.mxu1 %v19486_v11 }
 0x36c   : > { %6490 = vmatpush.bf16.msra.mxu3 %v12075_v59  ;;  %v5346_v62 = vpop.f32.mrf.mxu1 }
 0x36e   : > { %v6330_v26 = vpop.f32.mrf.mxu2 }
 0x36f   : > { %v6343_v4 = vpop.f32.mrf.mxu3 }
 0x370   : > { %6491 = vmatpush.bf16.msra.mxu3 %v12063_v20  ;;  %v6356_v43 = vpop.f32.mrf.mxu0  ;;  %v6344_v60 = vadd.f32 %v6343_v4, %v6330_v26  ;;  %v12375_v20 = vor.u32 %v14472_v17, %v12374_v16  ;;  %v12465_v17 = vld [vmem:[%s21625_s3] sm:$0xf] }
 0x372   : > { %v6357_v2 = vadd.f32 %v6356_v43, %v6344_v60 }
 0x374   : > { %6492 = vmatpush.bf16.msra.mxu3 %v12051_v44 }
 0x376   : > { %v6332_v8 = vpop.f32.mrf.mxu2 }
 0x377   : > { %v6345_v9 = vpop.f32.mrf.mxu3 }
 0x378   : > { %6493 = vmatpush.bf16.msra.mxu3 %v12039_v3  ;;  %v6358_v10 = vpop.f32.mrf.mxu0 }
 0x37b   : > { %6446 = vmatmul.bf16.vlgmr.msrb.gmra.mxu3 %v19075_v28  ;;  %6524 = vmatmul.bf16.vlgmr.msrb.gmra.mxu1 %v19075_v28  ;;  %v14376_v28 = vld [vmem:[%s21623_s4 + $0xd0] sm:$0xf0] }
 0x37c   : > { %6494 = vmatpush.bf16.msra.mxu3 %v12027_v21  ;;  %v11991_v18 = vor.u32 %v14376_v28, %v11990_v38  ;;  %v12521_v28 = vld [vmem:[%s21625_s3 + $0x70] sm:$0xf] }
 0x380   : > { %6495 = vmatpush.bf16.msra.mxu3 %v12015_v34  ;;  %v6408_v23 = vpop.f32.mrf.mxu0 }
 0x384   : > { %v6369_v37 = vpop.f32.mrf.mxu1  ;;  %6496 = vmatpush.bf16.msra.mxu3 %v12003_v29 }
 0x385   : > { %v6370_v13 = vadd.f32 %v6369_v37, %v6357_v2 }
 0x388   : > { %6497 = vmatpush.bf16.msra.mxu3 %v11991_v18  ;;  %v6410_v35 = vpop.f32.mrf.mxu0  ;;  %v14507_v18 = vld [vmem:[%s21625_s3 + $0x64] sm:$0xf0] }
 0x389   : > { %v12514_v32 = vor.u32 %v14507_v18, %v12513_v14  ;;  %v14505_v35 = vld [vmem:[%s21625_s3 + $0x54] sm:$0xf0]  ;;  %v12569_v18 = vld [vmem:[%s21625_s3 + $0xd0] sm:$0xf] }
 0x38b   : > { %6498 = vmatmul.bf16.vlgmr.msra.gmra.mxu3 %v18959_v31  ;;  %v14481_v31 = vld [vmem:[%s21623_s4 + $0x418] sm:$0xf0] }
 0x38c   : > { %6542 = vmatpush.bf16.msrb.mxu3 %v12459_v25  ;;  %v6371_v41 = vpop.f32.mrf.mxu1  ;;  %v12411_v51 = vor.u32 %v14481_v31, %v12410_v24  ;;  %v12490_v24 = vor.u32 %v14501_v49, %v12489_v48  ;;  %v14525_v31 = vld [vmem:[%s21625_s3 + $0xf4] sm:$0xf0]  ;;  %v14519_v48 = vld [vmem:[%s21625_s3 + $0xc4] sm:$0xf0]  ;;  %v14518_v49 = vld [vmem:[%s21625_s3 + $0xc4] sm:$0xf] }
 0x38d   : > { %v12506_v41 = vor.u32 %v14505_v35, %v12505_v33  ;;  %v12467_v35 = vld [vmem:[%s21625_s3 + $0x8] sm:$0xf0] }
 0x38e   : > { %v6382_v30 = vpop.f32.mrf.mxu2 }
 0x38f   : > { %v6383_v53 = vadd.f32 %v6382_v30, %v6370_v13  ;;  %v14509_v13 = vld [vmem:[%s21625_s3 + $0x74] sm:$0xf0]  ;;  %v12481_v30 = vld [vmem:[%s21625_s3 + $0x20] sm:$0xf] }
 0x390   : > { %6543 = vmatpush.bf16.msrb.mxu3 %v12447_v45  ;;  %v6460_v50 = vpop.f32.mrf.mxu0  ;;  %v12522_v55 = vor.u32 %v14509_v13, %v12521_v28  ;;  %v12497_v45 = vld [vmem:[%s21625_s3 + $0x40] sm:$0xf]  ;;  %v14522_v28 = vld [vmem:[%s21625_s3 + $0xe4] sm:$0xf]  ;;  %v12579_v13 = vld [vmem:[%s21625_s3 + $0xe8] sm:$0xf0] }
 0x394   : > { %6544 = vmatpush.bf16.msrb.mxu3 %v12435_v58  ;;  %v12498_v58 = vor.u32 %v14503_v46, %v12497_v45  ;;  %v12571_v45 = vld [vmem:[%s21625_s3 + $0xd8] sm:$0xf0] }
 0x396   : > { %v6384_v54 = vpop.f32.mrf.mxu2 }
 0x397   : > { %v14508_v54 = vld [vmem:[%s21625_s3 + $0x74] sm:$0xf] }
 0x398   : > { %6545 = vmatpush.bf16.msrb.mxu3 %v12423_v52  ;;  %v6462_v40 = vpop.f32.mrf.mxu0  ;;  %v12585_v52 = vld [vmem:[%s21625_s3 + $0xf0] sm:$0xf] }
 0x399   : > { %v12473_v40 = vld [vmem:[%s21625_s3 + $0x10] sm:$0xf] }
 0x39c   : > { %6546 = vmatpush.bf16.msrb.mxu3 %v12411_v51  ;;  %v12586_v51 = vor.u32 %v14525_v31, %v12585_v52  ;;  %v12563_v52 = vld [vmem:[%s21625_s3 + $0xc8] sm:$0xf0]  ;;  %v12553_v31 = vld [vmem:[%s21625_s3 + $0xb0] sm:$0xf] }
 0x39e   : > { %v6434_v36 = vpop.f32.mrf.mxu2  ;;  %6921 = vmatpush.bf16.msra.mxu2 %v12586_v51 }
 0x3a0   : > { %6547 = vmatpush.bf16.msrb.mxu3 %v12399_v27  ;;  %v14497_v27 = vld [vmem:[%s21625_s3 + $0x14] sm:$0xf0] }
 0x3a4   : > { %v6421_v59 = vpop.f32.mrf.mxu1  ;;  %6548 = vmatpush.bf16.msrb.mxu3 %v12387_v7  ;;  %v12523_v7 = vld [vmem:[%s21625_s3 + $0x78] sm:$0xf0] }
 0x3a5   : > { %v6422_v62 = vadd.f32 %v6421_v59, %v6408_v23  ;;  %v12474_v59 = vor.u32 %v14497_v27, %v12473_v40  ;;  %v12545_v40 = vld [vmem:[%s21625_s3 + $0xa0] sm:$0xf]  ;;  %v14515_v27 = vld [vmem:[%s21625_s3 + $0xa4] sm:$0xf0] }
 0x3a6   : > { %v6436_v43 = vpop.f32.mrf.mxu2 }
 0x3a7   : > { %v6435_v26 = vadd.f32 %v6434_v36, %v6422_v62  ;;  %v14495_v62 = vld [vmem:[%s21625_s3 + $0x4] sm:$0xf0]  ;;  %v12587_v36 = vld [vmem:[%s21625_s3 + $0xf8] sm:$0xf0]  ;;  %v12515_v43 = vld [vmem:[%s21625_s3 + $0x68] sm:$0xf0] }
 0x3a8   : > { %6549 = vmatpush.bf16.msrb.mxu3 %v12375_v20  ;;  %v14524_v20 = vld [vmem:[%s21625_s3 + $0xf4] sm:$0xf] }
 0x3ab   : > { %6550 = vmatmul.bf16.vlgmr.msrb.gmra.mxu3 %v19486_v11 }
 0x3ac   : > { %v6423_v19 = vpop.f32.mrf.mxu1 }
 0x3b0   : > { %v6512_v4 = vpop.f32.mrf.mxu0 }
 0x3b1   : > { %v6486_v60 = vpop.f32.mrf.mxu2 }
 0x3b8   : > { %v6514_v44 = vpop.f32.mrf.mxu0 }
 0x3b9   : > { %v6488_v0 = vpop.f32.mrf.mxu2  ;;  %v12466_v44 = vor.u32 %v14495_v62, %v12465_v17  ;;  %v14512_v17 = vld [vmem:[%s21625_s3 + $0x94] sm:$0xf] }
 0x3ba   : > { %v12590_v0 = vor.u32 %v14524_v20, %v12587_v36  ;;  %v12539_v20 = vld [vmem:[%s21625_s3 + $0x98] sm:$0xf0] }
 0x3bb   : > { %v12542_v36 = vor.u32 %v14512_v17, %v12539_v20  ;;  %v12593_v20 = vld [vmem:[%s21625_s3 + $0x100] sm:$0xf] }
 0x3cf   : > { %v6538_v1 = vpop.f32.mrf.mxu2 }
 0x3d7   : > { %v6540_v2 = vpop.f32.mrf.mxu2 }
 0x3e8   : > { %v6473_v3 = vpop.f32.mrf.mxu1 }
 0x3ee   : > { %v6395_v5 = vpop.f32.mrf.mxu3 }
 0x3ef   : > { %v6396_v6 = vadd.f32 %v6395_v5, %v6383_v53  ;;  %v14499_v53 = vld [vmem:[%s21625_s3 + $0x24] sm:$0xf0]  ;;  %v12507_v5 = vld [vmem:[%s21625_s3 + $0x58] sm:$0xf0] }
 0x3f0   : > { %v6475_v8 = vpop.f32.mrf.mxu1  ;;  %v12482_v57 = vor.u32 %v14499_v53, %v12481_v30  ;;  %v14517_v30 = vld [vmem:[%s21625_s3 + $0xb4] sm:$0xf0]  ;;  %v14516_v53 = vld [vmem:[%s21625_s3 + $0xb4] sm:$0xf] }
 0x3f1   : > { %v6555_v9 = vpack.c.bf16 %v6396_v6, %v6396_v6  ;;  %v14502_v8 = vld [vmem:[%s21625_s3 + $0x44] sm:$0xf]  ;;  %v12554_v51 = vor.u32 %v14517_v30, %v12553_v31  ;;  %v12611_v30 = vld [vmem:[%s21625_s3 + $0x128] sm:$0xf0] }
 0x3f2   : > { %v14530_v31 = vld [vmem:[%s21625_s3 + $0x124] sm:$0xf] }
 0x3f3   : > { %v6566_v10 = vsel %vm5251_vm1, %v6555_v9, 0  ;;  %v12499_v9 = vld [vmem:[%s21625_s3 + $0x48] sm:$0xf0] }
 0x3f4   : > { %6581 = vmatpush.bf16.msra.mxu0 %v6566_v10  ;;  %v12502_v10 = vor.u32 %v14502_v8, %v12499_v9  ;;  %v12651_v8 = vld [vmem:[%s21625_s3 + $0x178] sm:$0xf0]  ;;  %v12641_v9 = vld [vmem:[%s21625_s3 + $0x160] sm:$0xf] }
 0x3f6   : > { %v6397_v21 = vpop.f32.mrf.mxu3 }
 0x3f7   : > { %12460 = vmatmul.msk.bf16.vlgmr.msra.gmra.mxu0 %vm799_vm0, %v18637_v61  ;;  %v14500_v21 = vld [vmem:[%s21625_s3 + $0x34] sm:$0xf] }
 0x3f8   : > { %v6525_v11 = vpop.f32.mrf.mxu1 }
 0x3fe   : > { %v6447_v63 = vpop.f32.mrf.mxu3 }
 0x3ff   : > { %v6448_v42 = vadd.f32 %v6447_v63, %v6435_v26  ;;  %v12526_v26 = vor.u32 %v14508_v54, %v12523_v7  ;;  %v12546_v54 = vor.u32 %v14515_v27, %v12545_v40 }
 0x400   : > { %v6527_v34 = vpop.f32.mrf.mxu1 }
 0x401   : > { %v6461_v12 = vadd.f32 %v6460_v50, %v6448_v42  ;;  %v14498_v42 = vld [vmem:[%s21625_s3 + $0x24] sm:$0xf]  ;;  %v12483_v34 = vld [vmem:[%s21625_s3 + $0x28] sm:$0xf0] }
 0x403   : > { %v6474_v22 = vadd.f32 %v6473_v3, %v6461_v12  ;;  %v14504_v3 = vld [vmem:[%s21625_s3 + $0x54] sm:$0xf]  ;;  %v12486_v12 = vor.u32 %v14498_v42, %v12483_v34 }
 0x404   : > { %v12510_v6 = vor.u32 %v14504_v3, %v12507_v5  ;;  %v14541_v3 = vld [vmem:[%s21625_s3 + $0x174] sm:$0xf0]  ;;  %v14540_v5 = vld [vmem:[%s21625_s3 + $0x174] sm:$0xf] }
 0x405   : > { %v6556_v23 = vpack.c.bf16 %v6474_v22, %v6474_v22  ;;  %v12577_v22 = vld [vmem:[%s21625_s3 + $0xe0] sm:$0xf] }
 0x406   : > { %v6449_v29 = vpop.f32.mrf.mxu3 }
 0x407   : > { %v6569_v37 = vsel %vm5251_vm1, %v6556_v23, 0  ;;  %v14523_v23 = vld [vmem:[%s21625_s3 + $0xe4] sm:$0xf0]  ;;  %v14496_v29 = vld [vmem:[%s21625_s3 + $0x14] sm:$0xf] }
 0x408   : > { %6594 = vmatpush.bf16.msra.mxu1 %v6569_v37  ;;  %v12578_v37 = vor.u32 %v14523_v23, %v12577_v22  ;;  %v12633_v22 = vld [vmem:[%s21625_s3 + $0x150] sm:$0xf] }
 0x40a   : > { %6922 = vmatpush.bf16.msra.mxu2 %v12578_v37  ;;  %v14536_v37 = vld [vmem:[%s21625_s3 + $0x154] sm:$0xf] }
 0x40b   : > { %12461 = vmatmul.msk.bf16.vlgmr.msra.gmra.mxu1 %vm799_vm0, %v18637_v61 }
 0x40c   : > { %6908 = vmatpush.bf16.msrb.mxu1 %v12522_v55  ;;  %v12582_v55 = vor.u32 %v14522_v28, %v12579_v13 }
 0x40e   : > { %v6499_v38 = vpop.f32.mrf.mxu3 }
 0x40f   : > { %v6500_v47 = vadd.f32 %v6499_v38, %v6486_v60  ;;  %v12475_v38 = vld [vmem:[%s21625_s3 + $0x18] sm:$0xf0] }
 0x410   : > { %6909 = vmatpush.bf16.msrb.mxu1 %v12514_v32  ;;  %v12478_v14 = vor.u32 %v14496_v29, %v12475_v38  ;;  %v14494_v32 = vld [vmem:[%s21625_s3 + $0x4] sm:$0xf]  ;;  %v14537_v29 = vld [vmem:[%s21625_s3 + $0x154] sm:$0xf0]  ;;  %v12635_v38 = vld [vmem:[%s21625_s3 + $0x158] sm:$0xf0] }
 0x411   : > { %v6513_v50 = vadd.f32 %v6512_v4, %v6500_v47  ;;  %v14506_v4 = vld [vmem:[%s21625_s3 + $0x64] sm:$0xf]  ;;  %v12470_v46 = vor.u32 %v14494_v32, %v12467_v35  ;;  %v12634_v13 = vor.u32 %v14537_v29, %v12633_v22 }
 0x412   : > { %v14534_v32 = vld [vmem:[%s21625_s3 + $0x144] sm:$0xf] }
 0x413   : > { %v6526_v15 = vadd.f32 %v6525_v11, %v6513_v50  ;;  %v12491_v11 = vld [vmem:[%s21625_s3 + $0x38] sm:$0xf0] }
 0x414   : > { %6910 = vmatpush.bf16.msrb.mxu1 %v12506_v41  ;;  %v12494_v63 = vor.u32 %v14500_v21, %v12491_v11  ;;  %v14520_v41 = vld [vmem:[%s21625_s3 + $0xd4] sm:$0xf]  ;;  %v12654_v21 = vor.u32 %v14540_v5, %v12651_v8  ;;  %v14538_v11 = vld [vmem:[%s21625_s3 + $0x164] sm:$0xf] }
 0x415   : > { %v6539_v39 = vadd.f32 %v6538_v1, %v6526_v15  ;;  %v12518_v1 = vor.u32 %v14506_v4, %v12515_v43  ;;  %v12574_v47 = vor.u32 %v14520_v41, %v12571_v45  ;;  %v12555_v15 = vld [vmem:[%s21625_s3 + $0xb8] sm:$0xf0]  ;;  %v14510_v4 = vld [vmem:[%s21625_s3 + $0x84] sm:$0xf] }
 0x416   : > { %v6501_v25 = vpop.f32.mrf.mxu3 }
 0x417   : > { %v14521_v25 = vld [vmem:[%s21625_s3 + $0xd4] sm:$0xf0] }
 0x418   : > { %6911 = vmatpush.bf16.msrb.mxu1 %v12498_v58  ;;  %v12570_v33 = vor.u32 %v14521_v25, %v12569_v18  ;;  %v12561_v58 = vld [vmem:[%s21625_s3 + $0xc0] sm:$0xf]  ;;  %v14535_v25 = vld [vmem:[%s21625_s3 + $0x144] sm:$0xf0] }
 0x419   : > { %v12562_v50 = vor.u32 %v14519_v48, %v12561_v58  ;;  %v14532_v58 = vld [vmem:[%s21625_s3 + $0x134] sm:$0xf]  ;;  %v12619_v48 = vld [vmem:[%s21625_s3 + $0x138] sm:$0xf0] }
 0x41a   : > { %6923 = vmatpush.bf16.msra.mxu2 %v12570_v33  ;;  %v12627_v33 = vld [vmem:[%s21625_s3 + $0x148] sm:$0xf0] }
 0x41b   : > { %v12630_v45 = vor.u32 %v14534_v32, %v12627_v33 }
 0x41c   : > { %6912 = vmatpush.bf16.msrb.mxu1 %v12490_v24  ;;  %v12566_v24 = vor.u32 %v14518_v49, %v12563_v52  ;;  %v12609_v52 = vld [vmem:[%s21625_s3 + $0x120] sm:$0xf] }
 0x41e   : > { %6924 = vmatpush.bf16.msra.mxu2 %v12562_v50  ;;  %v12622_v50 = vor.u32 %v14532_v58, %v12619_v48  ;;  %v14550_v58 = vld [vmem:[%s21627_s0 + $0x40] sm:$0xff]  ;;  %v14543_v48 = vld [vmem:[%s21627_s0 + $0x8] sm:$0xff] }
 0x420   : > { %6913 = vmatpush.bf16.msrb.mxu1 %v12482_v57  ;;  %v12558_v57 = vor.u32 %v14516_v53, %v12555_v15 }
 0x422   : > { %6925 = vmatpush.bf16.msra.mxu2 %v12554_v51  ;;  %v12614_v51 = vor.u32 %v14530_v31, %v12611_v30 }
 0x424   : > { %6914 = vmatpush.bf16.msrb.mxu1 %v12474_v59  ;;  %v12537_v59 = vld [vmem:[%s21625_s3 + $0x90] sm:$0xf] }
 0x426   : > { %6926 = vmatpush.bf16.msra.mxu2 %v12546_v54  ;;  %v14529_v54 = vld [vmem:[%s21625_s3 + $0x114] sm:$0xf0] }
 0x428   : > { %6915 = vmatpush.bf16.msrb.mxu1 %v12466_v44  ;;  %v12531_v44 = vld [vmem:[%s21625_s3 + $0x88] sm:$0xf0] }
 0x42c   : > { %6960 = vmatpush.bf16.msra.mxu1 %v12590_v0  ;;  %v12534_v0 = vor.u32 %v14510_v4, %v12531_v44  ;;  %v12595_v4 = vld [vmem:[%s21625_s3 + $0x108] sm:$0xf0] }
 0x42e   : > { %v6551_v56 = vpop.f32.mrf.mxu3 }
 0x42f   : > { %v6552_v16 = vadd.f32 %v6551_v56, %v6539_v39  ;;  %v14514_v39 = vld [vmem:[%s21625_s3 + $0xa4] sm:$0xf]  ;;  %v12547_v56 = vld [vmem:[%s21625_s3 + $0xa8] sm:$0xf0] }
 0x430   : > { %6961 = vmatpush.bf16.msra.mxu1 %v12582_v55  ;;  %v12550_v7 = vor.u32 %v14514_v39, %v12547_v56  ;;  %v12625_v55 = vld [vmem:[%s21625_s3 + $0x140] sm:$0xf]  ;;  %v12601_v56 = vld [vmem:[%s21625_s3 + $0x110] sm:$0xf] }
 0x431   : > { %v6557_v19 = vpack.c.bf16 %v6552_v16, %v6552_v16  ;;  %v14513_v16 = vld [vmem:[%s21625_s3 + $0x94] sm:$0xf0]  ;;  %v12626_v41 = vor.u32 %v14535_v25, %v12625_v55  ;;  %v14552_v25 = vld [vmem:[%s21627_s0 + $0x50] sm:$0xff] }
 0x432   : > { %v12538_v62 = vor.u32 %v14513_v16, %v12537_v59  ;;  %v12602_v59 = vor.u32 %v14529_v54, %v12601_v56  ;;  %v12603_v16 = vld [vmem:[%s21625_s3 + $0x118] sm:$0xf0]  ;;  %v14559_v54 = vld [vmem:[%s21586_s11 + $0x28] sm:$0xff] }
 0x433   : > { %v6572_v60 = vsel %vm5251_vm1, %v6557_v19, 0  ;;  %v12529_v19 = vld [vmem:[%s21625_s3 + $0x80] sm:$0xf] }
 0x434   : > { %6607 = vmatpush.bf16.msrb.mxu0 %v6572_v60  ;;  %6962 = vmatpush.bf16.msra.mxu1 %v12574_v47  ;;  %v19788_v60 = vld [vmem:[%s21626_s27] sm:$0x7]  ;;  %v14533_v47 = vld [vmem:[%s21625_s3 + $0x134] sm:$0xf0]  ;;  %s21629_s27 = sld [smem:[#allocation4_spill]] }
 0x435   : > { %6927 = vmatpush.bf16.msra.mxu2 %v12538_v62  ;;  %v6560_v15 = vperm.slane %v19788_v60, 1  ;;  %v6561_v44 = vperm.slane %v19788_v60, 2 }
 0x436   : > { %v6553_v2 = vpop.f32.mrf.mxu3 }
 0x437   : > { %12462 = vmatmul.msk.bf16.vlgmr.msrb.gmra.mxu0 %vm799_vm0, %v18637_v61  ;;  %v12649_v2 = vld [vmem:[%s21625_s3 + $0x170] sm:$0xf] }
 0x438   : > { %6947 = vmatpush.bf16.msra.mxu0 %v12526_v26  ;;  %6963 = vmatpush.bf16.msra.mxu1 %v12566_v24  ;;  %v14511_v26 = vld [vmem:[%s21625_s3 + $0x84] sm:$0xf0] }
 0x439   : > { %v12530_v43 = vor.u32 %v14511_v26, %v12529_v19  ;;  %v14531_v24 = vld [vmem:[%s21625_s3 + $0x124] sm:$0xf0]  ;;  %v14526_v19 = vld [vmem:[%s21625_s3 + $0x104] sm:$0xf] }
 0x43a   : > { %v12610_v53 = vor.u32 %v14531_v24, %v12609_v52 }
 0x43b   : > { %6928 = vmatpush.bf16.msra.mxu2 %v12530_v43  ;;  %v12598_v43 = vor.u32 %v14526_v19, %v12595_v4 }
 0x43c   : > { %6948 = vmatpush.bf16.msra.mxu0 %v12518_v1  ;;  %6964 = vmatpush.bf16.msra.mxu1 %v12558_v57  ;;  %v6559_v1 = vperm.slane %v19788_v60, 0 }
 0x43f   : > { %6973 = vmatpush.bf16.msrb.mxu2 %v12654_v21 }
 0x440   : > { %6949 = vmatpush.bf16.msra.mxu0 %v12510_v6  ;;  %6965 = vmatpush.bf16.msra.mxu1 %v12550_v7  ;;  %v12650_v6 = vor.u32 %v14541_v3, %v12649_v2  ;;  %v14528_v7 = vld [vmem:[%s21625_s3 + $0x114] sm:$0xf] }
 0x441   : > { %v12606_v62 = vor.u32 %v14528_v7, %v12603_v16  ;;  %v14558_v7 = vld [vmem:[%s21586_s11 + $0x20] sm:$0xff]  ;;  %v14556_v16 = vld [vmem:[%s21586_s11 + $0x10] sm:$0xff] }
 0x442   : > { %6934 = vmatpush.bf16.msra.mxu3 %v12650_v6 }
 0x444   : > { %6950 = vmatpush.bf16.msra.mxu0 %v12502_v10  ;;  %6966 = vmatpush.bf16.msra.mxu1 %v12542_v36  ;;  %v14539_v10 = vld [vmem:[%s21625_s3 + $0x164] sm:$0xf0] }
 0x445   : > { %v12642_v42 = vor.u32 %v14539_v10, %v12641_v9  ;;  %v14527_v36 = vld [vmem:[%s21625_s3 + $0x104] sm:$0xf0] }
 0x446   : > { %v12594_v26 = vor.u32 %v14527_v36, %v12593_v20 }
 0x447   : > { %6935 = vmatpush.bf16.msra.mxu3 %v12642_v42 }
 0x448   : > { %6951 = vmatpush.bf16.msra.mxu0 %v12494_v63  ;;  %6967 = vmatpush.bf16.msra.mxu1 %v12534_v0  ;;  %v12643_v63 = vld [vmem:[%s21625_s3 + $0x168] sm:$0xf0] }
 0x44b   : > { %6936 = vmatpush.bf16.msra.mxu3 %v12634_v13  ;;  %v14553_v13 = vld [vmem:[%s21627_s0 + $0x58] sm:$0xff] }
 0x44c   : > { %6952 = vmatpush.bf16.msra.mxu0 %v12486_v12  ;;  %v12646_v12 = vor.u32 %v14538_v11, %v12643_v63 }
 0x44e   : > { %6974 = vmatpush.bf16.msrb.mxu2 %v12646_v12 }
 0x44f   : > { %6937 = vmatpush.bf16.msra.mxu3 %v12626_v41  ;;  %v14546_v41 = vld [vmem:[%s21627_s0 + $0x20] sm:$0xff] }
 0x450   : > { %6953 = vmatpush.bf16.msra.mxu0 %v12478_v14  ;;  %v12638_v14 = vor.u32 %v14536_v37, %v12635_v38 }
 0x452   : > { %6975 = vmatpush.bf16.msrb.mxu2 %v12638_v14 }
 0x454   : > { %6954 = vmatpush.bf16.msra.mxu0 %v12470_v46  ;;  %v12617_v46 = vld [vmem:[%s21625_s3 + $0x130] sm:$0xf]  ;;  %s21630_s3 = sshll.u32 %s21632_s2, 3 }
 0x455   : > { %v12618_v49 = vor.u32 %v14533_v47, %v12617_v46  ;;  %v14551_v46 = vld [vmem:[%s21627_s0 + $0x48] sm:$0xff]  ;;  %v14544_v47 = vld [vmem:[%s21627_s0 + $0x10] sm:$0xff]  ;;  %s796_s30 = scalar_lea.vmem %s21600_s25, %s21630_s3 }
 0x456   : > { %6976 = vmatpush.bf16.msrb.mxu2 %v12630_v45  ;;  %v14545_v45 = vld [vmem:[%s21627_s0 + $0x18] sm:$0xff] }
 0x457   : > { %6938 = vmatpush.bf16.msra.mxu3 %v12618_v49  ;;  %v14542_v49 = vld [vmem:[%s21627_s0] sm:$0xff] }
 0x45a   : > { %6977 = vmatpush.bf16.msrb.mxu2 %v12622_v50  ;;  %v6664_v50 = vld [vmem:[%s21628_s26] sm:$0x3] }
 0x45b   : > { %6939 = vmatpush.bf16.msra.mxu3 %v12610_v53  ;;  %v6990_v52 = vperm.slane %v6664_v50, 1  ;;  %v6989_v53 = vperm.slane %v6664_v50, 0 }
 0x45e   : > { %6978 = vmatpush.bf16.msrb.mxu2 %v12614_v51 }
 0x45f   : > { %6940 = vmatpush.bf16.msra.mxu3 %v12602_v59  ;;  %v14557_v59 = vld [vmem:[%s21586_s11 + $0x18] sm:$0xff] }
 0x462   : > { %6979 = vmatpush.bf16.msrb.mxu2 %v12606_v62 }
 0x463   : > { %6941 = vmatpush.bf16.msra.mxu3 %v12594_v26 }
 0x466   : > { %6980 = vmatpush.bf16.msrb.mxu2 %v12598_v43  ;;  %v14555_v43 = vld [vmem:[%s21586_s11 + $0x8] sm:$0xff] }
 0x474   : > { %v6583_v34 = vpop.f32.mrf.mxu0 }
 0x475   : > { %v6584_v23 = vadd.f32 %v6583_v34, %v6559_v1 }
 0x477   : > { %v6613_v28 = vmax.f32 %v6584_v23, 0.0 }
 0x479   : > { %v6665_v18 = vpack.c.bf16 %v6613_v28, %v6613_v28  ;;  %v14549_v28 = vld [vmem:[%s21627_s0 + $0x38] sm:$0xff] }
 0x47b   : > { %6916 = vmatmul.bf16.vlgmr.msrb.gmra.mxu1 %v6665_v18  ;;  %6955 = vmatmul.bf16.vlgmr.msra.gmra.mxu0 %v6665_v18  ;;  %v14548_v18 = vld [vmem:[%s21627_s0 + $0x30] sm:$0xff] }
 0x47c   : > { %v6585_v35 = vpop.f32.mrf.mxu0 }
 0x47d   : > { %v14547_v35 = vld [vmem:[%s21627_s0 + $0x28] sm:$0xff]  ;;  %s14819_s0 = smul.u32 6, %s21632_s2 }
 0x47f   : > { %s792_s6 = scalar_lea.vmem %s21629_s27, %s14819_s0 }
 0x488   : > { %v6596_v57 = vpop.f32.mrf.mxu1 }
 0x489   : > { %v6597_v40 = vadd.f32 %v6596_v57, %v6560_v15 }
 0x48b   : > { %v6614_v27 = vmax.f32 %v6597_v40, 0.0 }
 0x48d   : > { %v6666_v39 = vpack.c.bf16 %v6614_v27, %v6614_v27 }
 0x48f   : > { %6929 = vmatmul.bf16.vlgmr.msra.gmra.mxu2 %v6666_v39  ;;  %6968 = vmatmul.bf16.vlgmr.msra.gmra.mxu1 %v6666_v39 }
 0x490   : > { %v6598_v17 = vpop.f32.mrf.mxu1  ;;  %7233 = vmatpush.bf16.msra.mxu2 %v14559_v54 }
 0x494   : > { %7234 = vmatpush.bf16.msra.mxu2 %v14558_v7 }
 0x498   : > { %7235 = vmatpush.bf16.msra.mxu2 %v14557_v59 }
 0x49c   : > { %7236 = vmatpush.bf16.msra.mxu2 %v14556_v16  ;;  %v12831_v16 = vld [vmem:[%s21588_s13 + $0xc0] sm:$0xf] }
 0x4a0   : > { %7237 = vmatpush.bf16.msra.mxu2 %v14555_v43  ;;  %v14678_v43 = vld [vmem:[%s21588_s13 + $0x3b0] sm:$0xf0] }
 0x4b4   : > { %v6609_v0 = vpop.f32.mrf.mxu0 }
 0x4b5   : > { %v6610_v1 = vadd.f32 %v6609_v0, %v6561_v44  ;;  %v14554_v44 = vld [vmem:[%s21586_s11] sm:$0xff]  ;;  %v12915_v0 = vld [vmem:[%s21588_s13 + $0x168] sm:$0xf] }
 0x4b6   : > { %7238 = vmatpush.bf16.msra.mxu2 %v14554_v44 }
 0x4b7   : > { %v6615_v2 = vmax.f32 %v6610_v1, 0.0  ;;  %v14606_v1 = vld [vmem:[%s21588_s13 + $0x170] sm:$0xf0] }
 0x4b9   : > { %v6667_v3 = vpack.c.bf16 %v6615_v2, %v6615_v2  ;;  %v12819_v2 = vld [vmem:[%s21588_s13 + $0xa8] sm:$0xf] }
 0x4bb   : > { %6942 = vmatmul.bf16.vlgmr.msra.gmra.mxu3 %v6667_v3  ;;  %6981 = vmatmul.bf16.vlgmr.msrb.gmra.mxu2 %v6667_v3  ;;  %v12916_v3 = vor.u32 %v14606_v1, %v12915_v0 }
 0x4bc   : > { %v6611_v5 = vpop.f32.mrf.mxu0 }
 0x4bd   : > { %v14582_v5 = vld [vmem:[%s21588_s13 + $0xb0] sm:$0xf0] }
 0x4f8   : > { %v6917_v6 = vpop.f32.mrf.mxu1  ;;  %v6956_v8 = vpop.f32.mrf.mxu0 }
 0x500   : > { %v6919_v9 = vpop.f32.mrf.mxu1  ;;  %v6958_v10 = vpop.f32.mrf.mxu0 }
 0x501   : > { %v12820_v9 = vor.u32 %v14582_v5, %v12819_v2  ;;  %v12807_v10 = vld [vmem:[%s21588_s13 + $0x90] sm:$0xf] }
 0x50c   : > { %v6969_v21 = vpop.f32.mrf.mxu1 }
 0x50d   : > { %v6970_v34 = vadd.f32 %v6969_v21, %v6956_v8  ;;  %v14603_v8 = vld [vmem:[%s21588_s13 + $0x158] sm:$0xf0] }
 0x50e   : > { %v14579_v21 = vld [vmem:[%s21588_s13 + $0x98] sm:$0xf0] }
 0x512   : > { %v6930_v11 = vpop.f32.mrf.mxu2 }
 0x513   : > { %v6931_v12 = vadd.f32 %v6930_v11, %v6917_v6  ;;  %v12903_v6 = vld [vmem:[%s21588_s13 + $0x150] sm:$0xf] }
 0x514   : > { %v6971_v63 = vpop.f32.mrf.mxu1  ;;  %v12904_v11 = vor.u32 %v14603_v8, %v12903_v6  ;;  %v13287_v6 = vld [vmem:[%s21588_s13 + $0x450] sm:$0xf]  ;;  %v14699_v8 = vld [vmem:[%s21588_s13 + $0x458] sm:$0xf0] }
 0x515   : > { %v12808_v63 = vor.u32 %v14579_v21, %v12807_v10  ;;  %v13288_v10 = vor.u32 %v14699_v8, %v13287_v6  ;;  %v12975_v21 = vld [vmem:[%s21588_s13 + $0x1e0] sm:$0xf]  ;;  %v14681_v8 = vld [vmem:[%s21588_s13 + $0x3c8] sm:$0xf0] }
 0x51a   : > { %v6932_v42 = vpop.f32.mrf.mxu2 }
 0x51b   : > { %v12891_v42 = vld [vmem:[%s21588_s13 + $0x138] sm:$0xf] }
 0x53e   : > { %v6943_v22 = vpop.f32.mrf.mxu3  ;;  %v6982_v23 = vpop.f32.mrf.mxu2 }
 0x53f   : > { %v6944_v60 = vadd.f32 %v6943_v22, %v6931_v12  ;;  %v6983_v29 = vadd.f32 %v6982_v23, %v6970_v34  ;;  %v14600_v34 = vld [vmem:[%s21588_s13 + $0x140] sm:$0xf0]  ;;  %v12795_v12 = vld [vmem:[%s21588_s13 + $0x78] sm:$0xf] }
 0x540   : > { %v14576_v22 = vld [vmem:[%s21588_s13 + $0x80] sm:$0xf0]  ;;  %v12892_v23 = vor.u32 %v14600_v34, %v12891_v42  ;;  %v13191_v42 = vld [vmem:[%s21588_s13 + $0x390] sm:$0xf]  ;;  %v14675_v34 = vld [vmem:[%s21588_s13 + $0x398] sm:$0xf0] }
 0x541   : > { %v6986_v37 = vpack.c.bf16 %v6944_v60, %v6944_v60  ;;  %v6987_v38 = vpack.c.bf16 %v6983_v29, %v6983_v29  ;;  %v13011_v60 = vld [vmem:[%s21588_s13 + $0x228] sm:$0xf]  ;;  %v14630_v29 = vld [vmem:[%s21588_s13 + $0x230] sm:$0xf0] }
 0x543   : > { %v6994_v14 = vsel %vm5251_vm1, %v6986_v37, 0  ;;  %v6997_v55 = vsel %vm5251_vm1, %v6987_v38, 0  ;;  %v12796_v37 = vor.u32 %v14576_v22, %v12795_v12  ;;  %v12879_v38 = vld [vmem:[%s21588_s13 + $0x120] sm:$0xf]  ;;  %v13275_v12 = vld [vmem:[%s21588_s13 + $0x438] sm:$0xf]  ;;  %v13192_v22 = vor.u32 %v14675_v34, %v13191_v42 }
 0x544   : > { %7006 = vmatpush.bf16.msrb.mxu3 %v6994_v14  ;;  %7019 = vmatpush.bf16.msrb.mxu0 %v6997_v55  ;;  %v13012_v14 = vor.u32 %v14630_v29, %v13011_v60  ;;  %v14573_v55 = vld [vmem:[%s21588_s13 + $0x68] sm:$0xf0]  ;;  %v12963_v29 = vld [vmem:[%s21588_s13 + $0x1c8] sm:$0xf] }
 0x545   : > { %v12797_v42 = vld [vmem:[%s21588_s13 + $0x84] sm:$0xf0] }
 0x546   : > { %v6945_v32 = vpop.f32.mrf.mxu3  ;;  %v6984_v33 = vpop.f32.mrf.mxu2  ;;  %8328 = vmatpush.bf16.msrb.mxu2 %v13012_v14  ;;  %v13263_v14 = vld [vmem:[%s21588_s13 + $0x420] sm:$0xf] }
 0x547   : > { %12655 = vmatmul.msk.bf16.vlgmr.msrb.gmra.mxu3 %vm799_vm0, %v18637_v61  ;;  %12656 = vmatmul.msk.bf16.vlgmr.msrb.gmra.mxu0 %vm799_vm0, %v18637_v61 }
 0x548   : > { %7130 = vmatpush.bf16.msra.mxu3 %v14549_v28  ;;  %7147 = vmatpush.bf16.msra.mxu0 %v14553_v13  ;;  %v14597_v28 = vld [vmem:[%s21588_s13 + $0x128] sm:$0xf0]  ;;  %v12783_v13 = vld [vmem:[%s21588_s13 + $0x60] sm:$0xf] }
 0x549   : > { %v12880_v33 = vor.u32 %v14597_v28, %v12879_v38  ;;  %v13179_v28 = vld [vmem:[%s21588_s13 + $0x378] sm:$0xf] }
 0x54c   : > { %7131 = vmatpush.bf16.msra.mxu3 %v14548_v18  ;;  %7148 = vmatpush.bf16.msra.mxu0 %v14552_v25  ;;  %v12999_v18 = vld [vmem:[%s21588_s13 + $0x210] sm:$0xf]  ;;  %v14627_v25 = vld [vmem:[%s21588_s13 + $0x218] sm:$0xf0] }
 0x54d   : > { %v13000_v32 = vor.u32 %v14627_v25, %v12999_v18  ;;  %v14693_v18 = vld [vmem:[%s21588_s13 + $0x428] sm:$0xf0] }
 0x54e   : > { %v13264_v25 = vor.u32 %v14693_v18, %v13263_v14  ;;  %v13097_v14 = vld [vmem:[%s21588_s13 + $0x2dc] sm:$0xf0]  ;;  %v14572_v18 = vld [vmem:[%s21588_s13 + $0x64] sm:$0xf] }
 0x54f   : > { %8329 = vmatpush.bf16.msrb.mxu2 %v13000_v32  ;;  %v12951_v32 = vld [vmem:[%s21588_s13 + $0x1b0] sm:$0xf] }
 0x550   : > { %7132 = vmatpush.bf16.msra.mxu3 %v14547_v35  ;;  %7149 = vmatpush.bf16.msra.mxu0 %v14551_v46  ;;  %v12867_v35 = vld [vmem:[%s21588_s13 + $0x108] sm:$0xf]  ;;  %v12987_v46 = vld [vmem:[%s21588_s13 + $0x1f8] sm:$0xf] }
 0x554   : > { %7133 = vmatpush.bf16.msra.mxu3 %v14546_v41  ;;  %7150 = vmatpush.bf16.msra.mxu0 %v14550_v58  ;;  %v12784_v41 = vor.u32 %v14573_v55, %v12783_v13  ;;  %v12771_v58 = vld [vmem:[%s21588_s13 + $0x48] sm:$0xf]  ;;  %v14672_v13 = vld [vmem:[%s21588_s13 + $0x380] sm:$0xf0] }
 0x555   : > { %v13180_v55 = vor.u32 %v14672_v13, %v13179_v28 }
 0x558   : > { %7134 = vmatpush.bf16.msra.mxu3 %v14545_v45  ;;  %v14594_v45 = vld [vmem:[%s21588_s13 + $0x110] sm:$0xf0] }
 0x559   : > { %v12868_v50 = vor.u32 %v14594_v45, %v12867_v35  ;;  %v14669_v45 = vld [vmem:[%s21588_s13 + $0x368] sm:$0xf0] }
 0x55c   : > { %7135 = vmatpush.bf16.msra.mxu3 %v14544_v47  ;;  %v14624_v47 = vld [vmem:[%s21588_s13 + $0x200] sm:$0xf0] }
 0x560   : > { %7136 = vmatpush.bf16.msra.mxu3 %v14543_v48  ;;  %v14570_v48 = vld [vmem:[%s21588_s13 + $0x50] sm:$0xf0] }
 0x564   : > { %7137 = vmatpush.bf16.msra.mxu3 %v14542_v49  ;;  %v12988_v49 = vor.u32 %v14624_v47, %v12987_v46  ;;  %v13251_v46 = vld [vmem:[%s21588_s13 + $0x408] sm:$0xf] }
 0x566   : > { %8330 = vmatpush.bf16.msrb.mxu2 %v12988_v49  ;;  %v14612_v49 = vld [vmem:[%s21588_s13 + $0x1a0] sm:$0xf0] }
 0x568   : > { %8315 = vmatpush.bf16.msrb.mxu3 %v12916_v3 }
 0x56c   : > { %8316 = vmatpush.bf16.msrb.mxu3 %v12904_v11  ;;  %v14621_v11 = vld [vmem:[%s21588_s13 + $0x1e8] sm:$0xf0] }
 0x570   : > { %8317 = vmatpush.bf16.msrb.mxu3 %v12892_v23  ;;  %v14696_v23 = vld [vmem:[%s21588_s13 + $0x440] sm:$0xf0] }
 0x571   : > { %v13276_v60 = vor.u32 %v14696_v23, %v13275_v12  ;;  %v13119_v12 = vld [vmem:[%s21588_s13 + $0x300] sm:$0xf] }
 0x574   : > { %8318 = vmatpush.bf16.msrb.mxu3 %v12880_v33  ;;  %v14615_v33 = vld [vmem:[%s21588_s13 + $0x1b8] sm:$0xf0] }
 0x575   : > { %v12952_v35 = vor.u32 %v14615_v33, %v12951_v32  ;;  %v14626_v33 = vld [vmem:[%s21588_s13 + $0x214] sm:$0xf] }
 0x578   : > { %8319 = vmatpush.bf16.msrb.mxu3 %v12868_v50 }
 0x5c4   : > { %v7021_v24 = vpop.f32.mrf.mxu0 }
 0x5c5   : > { %v7022_v31 = vadd.f32 %v7021_v24, %v6990_v52  ;;  %v12772_v52 = vor.u32 %v14570_v48, %v12771_v58  ;;  %v12855_v24 = vld [vmem:[%s21588_s13 + $0xf0] sm:$0xf]  ;;  %v14690_v58 = vld [vmem:[%s21588_s13 + $0x410] sm:$0xf0]  ;;  %v12939_v48 = vld [vmem:[%s21588_s13 + $0x198] sm:$0xf] }
 0x5c6   : > { %v13252_v50 = vor.u32 %v14690_v58, %v13251_v46  ;;  %v14654_v46 = vld [vmem:[%s21588_s13 + $0x2f0] sm:$0xf0]  ;;  %v13085_v58 = vld [vmem:[%s21588_s13 + $0x2c4] sm:$0xf0] }
 0x5c7   : > { %v7026_v30 = vmax.f32 %v7022_v31, 0.0  ;;  %v14591_v31 = vld [vmem:[%s21588_s13 + $0xf8] sm:$0xf0] }
 0x5c9   : > { %v7053_v51 = vpack.c.bf16 %v7026_v30, %v7026_v30  ;;  %v12759_v30 = vld [vmem:[%s21588_s13 + $0x30] sm:$0xf] }
 0x5ca   : > { %v7008_v15 = vpop.f32.mrf.mxu3 }
 0x5cb   : > { %v7009_v57 = vadd.f32 %v7008_v15, %v6989_v53  ;;  %12705 = vmatmul.msk.bf16.vlgmr.msra.gmra.mxu0 %vm7126_vm2, %v7053_v51  ;;  %v14567_v53 = vld [vmem:[%s21588_s13 + $0x38] sm:$0xf0]  ;;  %v12856_v51 = vor.u32 %v14591_v31, %v12855_v24  ;;  %v13155_v24 = vld [vmem:[%s21588_s13 + $0x348] sm:$0xf]  ;;  %v14666_v31 = vld [vmem:[%s21588_s13 + $0x350] sm:$0xf0] }
 0x5cc   : > { %v7023_v40 = vpop.f32.mrf.mxu0  ;;  %v12760_v15 = vor.u32 %v14567_v53, %v12759_v30  ;;  %v13239_v30 = vld [vmem:[%s21588_s13 + $0x3f0] sm:$0xf]  ;;  %v13156_v53 = vor.u32 %v14666_v31, %v13155_v24 }
 0x5cd   : > { %v7025_v27 = vmax.f32 %v7009_v57, 0.0  ;;  %v12843_v57 = vld [vmem:[%s21588_s13 + $0xd8] sm:$0xf]  ;;  %v14588_v40 = vld [vmem:[%s21588_s13 + $0xe0] sm:$0xf0]  ;;  %8320 = vmatpush.bf16.msrb.mxu3 %v12856_v51 }
 0x5ce   : > { %v12844_v54 = vor.u32 %v14588_v40, %v12843_v57  ;;  %v14687_v51 = vld [vmem:[%s21588_s13 + $0x3f8] sm:$0xf0]  ;;  %v14609_v57 = vld [vmem:[%s21588_s13 + $0x188] sm:$0xf0]  ;;  %v13095_v31 = vld [vmem:[%s21588_s13 + $0x2d0] sm:$0xf] }
 0x5cf   : > { %v7052_v39 = vpack.c.bf16 %v7025_v27, %v7025_v27  ;;  %v14828_v27 = vld [vmem:[%s21585_s10] ss:$0 sm:$0xff]  ;;  %v13240_v40 = vor.u32 %v14687_v51, %v13239_v30 }
 0x5d1   : > { %7138 = vmatmul.bf16.vlgmr.msra.gmra.mxu3 %v7052_v39  ;;  %v12747_v39 = vld [vmem:[%s21588_s13 + $0x18] sm:$0xf] }
 0x5d2   : > { %v7010_v56 = vpop.f32.mrf.mxu3  ;;  %8321 = vmatpush.bf16.msrb.mxu3 %v12844_v54  ;;  %v14581_v54 = vld [vmem:[%s21588_s13 + $0xac] sm:$0xf] }
 0x5d3   : > { %v14564_v56 = vld [vmem:[%s21588_s13 + $0x20] sm:$0xf0] }
 0x5d4   : > { %v12748_v59 = vor.u32 %v14564_v56, %v12747_v39  ;;  %v20174_v39 = vld [vmem:[%s792_s6] sm:$0x3f] }
 0x5d5   : > { %v7510_v56 = vperm.slane %v20174_v39, 1  ;;  %v7511_v23 = vperm.slane %v20174_v39, 2 }
 0x5d7   : > { %v20248_v28 = vpack.c.bf16 %v7511_v23, %v7511_v23 }
 0x648   : > { %v7152_v17 = vpop.f32.mrf.mxu0 }
 0x650   : > { %v7154_v62 = vpop.f32.mrf.mxu0 }
 0x651   : > { %v13299_v62 = vld [vmem:[%s21588_s13 + $0x468] sm:$0xf] }
 0x654   : > { %v7139_v20 = vpop.f32.mrf.mxu3 }
 0x655   : > { %v7153_v36 = vadd.f32 %v7152_v17, %v7139_v20  ;;  %v14585_v17 = vld [vmem:[%s21588_s13 + $0xc8] sm:$0xf0] }
 0x656   : > { %v12832_v0 = vor.u32 %v14585_v17, %v12831_v16  ;;  %v13143_v16 = vld [vmem:[%s21588_s13 + $0x330] sm:$0xf]  ;;  %v14663_v17 = vld [vmem:[%s21588_s13 + $0x338] sm:$0xf0] }
 0x657   : > { %v7156_v19 = vpack.c.bf16 %v7153_v36, %v7153_v36  ;;  %v14702_v36 = vld [vmem:[%s21588_s13 + $0x470] sm:$0xf0] }
 0x658   : > { %v13300_v1 = vor.u32 %v14702_v36, %v13299_v62  ;;  %8322 = vmatpush.bf16.msrb.mxu3 %v12832_v0  ;;  %v13227_v62 = vld [vmem:[%s21588_s13 + $0x3d8] sm:$0xf]  ;;  %v13144_v36 = vor.u32 %v14663_v17, %v13143_v16 }
 0x659   : > { %v7161_v26 = vsel %vm5251_vm1, %v7156_v19, 0  ;;  %v12735_v19 = vld [vmem:[%s21588_s13] sm:$0xf] }
 0x65a   : > { %7170 = vmatpush.bf16.msrb.mxu1 %v7161_v26  ;;  %v14561_v26 = vld [vmem:[%s21588_s13 + $0x8] sm:$0xf0] }
 0x65b   : > { %v12736_v2 = vor.u32 %v14561_v26, %v12735_v19  ;;  %v14684_v19 = vld [vmem:[%s21588_s13 + $0x3e0] sm:$0xf0] }
 0x65c   : > { %v7141_v4 = vpop.f32.mrf.mxu3  ;;  %8367 = vmatpush.bf16.msra.mxu3 %v13300_v1  ;;  %v13228_v26 = vor.u32 %v14684_v19, %v13227_v62  ;;  %v14566_v62 = vld [vmem:[%s21588_s13 + $0x34] sm:$0xf]  ;;  %v13083_v19 = vld [vmem:[%s21588_s13 + $0x2b8] sm:$0xf] }
 0x65d   : > { %12706 = vmatmul.msk.bf16.vlgmr.msrb.gmra.mxu1 %vm799_vm0, %v18637_v61  ;;  %v13203_v4 = vld [vmem:[%s21588_s13 + $0x3a8] sm:$0xf] }
 0x65e   : > { %8302 = vmatpush.bf16.msra.mxu1 %v12820_v9  ;;  %v13204_v5 = vor.u32 %v14678_v43, %v13203_v4  ;;  %v7509_v4 = vperm.slane %v20174_v39, 0  ;;  %v14578_v43 = vld [vmem:[%s21588_s13 + $0x94] sm:$0xf] }
 0x660   : > { %8368 = vmatpush.bf16.msra.mxu3 %v13288_v10  ;;  %v20205_v0 = vpack.c.bf16 %v7509_v4, %v7509_v4  ;;  %v13109_v10 = vld [vmem:[%s21588_s13 + $0x2f4] sm:$0xf0] }
 0x662   : > { %8303 = vmatpush.bf16.msra.mxu1 %v12808_v63  ;;  %v12976_v63 = vor.u32 %v14621_v11, %v12975_v21 }
 0x664   : > { %8331 = vmatpush.bf16.msrb.mxu2 %v12976_v63  ;;  %8369 = vmatpush.bf16.msra.mxu3 %v13276_v60  ;;  %v14575_v63 = vld [vmem:[%s21588_s13 + $0x7c] sm:$0xf] }
 0x665   : > { %v12800_v34 = vor.u32 %v14575_v63, %v12797_v42  ;;  %v13071_v63 = vld [vmem:[%s21588_s13 + $0x2a0] sm:$0xf]  ;;  %v14645_v42 = vld [vmem:[%s21588_s13 + $0x2a8] sm:$0xf0] }
 0x666   : > { %8304 = vmatpush.bf16.msra.mxu1 %v12796_v37  ;;  %v14618_v37 = vld [vmem:[%s21588_s13 + $0x1d0] sm:$0xf0] }
 0x667   : > { %v12964_v38 = vor.u32 %v14618_v37, %v12963_v29  ;;  %v14629_v29 = vld [vmem:[%s21588_s13 + $0x22c] sm:$0xf]  ;;  %v13013_v37 = vld [vmem:[%s21588_s13 + $0x234] sm:$0xf0] }
 0x668   : > { %8370 = vmatpush.bf16.msra.mxu3 %v13264_v25  ;;  %v13016_v13 = vor.u32 %v14629_v29, %v13013_v37  ;;  %v12785_v25 = vld [vmem:[%s21588_s13 + $0x6c] sm:$0xf0]  ;;  %v14560_v29 = vld [vmem:[%s21588_s13 + $0x4] sm:$0xf] }
 0x669   : > { %8332 = vmatpush.bf16.msrb.mxu2 %v12964_v38  ;;  %v14650_v38 = vld [vmem:[%s21588_s13 + $0x2d4] sm:$0xf]  ;;  %v12788_v32 = vor.u32 %v14572_v18, %v12785_v25  ;;  %v12737_v37 = vld [vmem:[%s21588_s13 + $0xc] sm:$0xf0]  ;;  %v13072_v18 = vor.u32 %v14645_v42, %v13071_v63  ;;  %v13023_v63 = vld [vmem:[%s21588_s13 + $0x240] sm:$0xf] }
 0x66a   : > { %8305 = vmatpush.bf16.msra.mxu1 %v12784_v41  ;;  %v13167_v41 = vld [vmem:[%s21588_s13 + $0x360] sm:$0xf]  ;;  %v14633_v42 = vld [vmem:[%s21588_s13 + $0x248] sm:$0xf0] }
 0x66b   : > { %v13168_v47 = vor.u32 %v14669_v45, %v13167_v41  ;;  %v14647_v41 = vld [vmem:[%s21588_s13 + $0x2bc] sm:$0xf]  ;;  %v13107_v45 = vld [vmem:[%s21588_s13 + $0x2e8] sm:$0xf] }
 0x66c   : > { %8371 = vmatpush.bf16.msra.mxu3 %v13252_v50  ;;  %v14569_v50 = vld [vmem:[%s21588_s13 + $0x4c] sm:$0xf]  ;;  %v13108_v51 = vor.u32 %v14654_v46, %v13107_v45  ;;  %v14642_v45 = vld [vmem:[%s21588_s13 + $0x290] sm:$0xf0] }
 0x66d   : > { %8333 = vmatpush.bf16.msrb.mxu2 %v12952_v35  ;;  %v13001_v35 = vld [vmem:[%s21588_s13 + $0x21c] sm:$0xf0] }
 0x66e   : > { %8306 = vmatpush.bf16.msra.mxu1 %v12772_v52  ;;  %v12940_v52 = vor.u32 %v14612_v49, %v12939_v48  ;;  %v13088_v48 = vor.u32 %v14647_v41, %v13085_v58  ;;  %v7514_v49 = vperm.slane %v20174_v39, 5  ;;  %v13059_v41 = vld [vmem:[%s21588_s13 + $0x288] sm:$0xf] }
 0x670   : > { %8372 = vmatpush.bf16.msra.mxu3 %v13240_v40  ;;  %v12989_v40 = vld [vmem:[%s21588_s13 + $0x204] sm:$0xf0] }
 0x671   : > { %8334 = vmatpush.bf16.msrb.mxu2 %v12940_v52  ;;  %v12773_v52 = vld [vmem:[%s21588_s13 + $0x54] sm:$0xf0] }
 0x672   : > { %8307 = vmatpush.bf16.msra.mxu1 %v12760_v15  ;;  %v12927_v15 = vld [vmem:[%s21588_s13 + $0x180] sm:$0xf]  ;;  %v12776_v30 = vor.u32 %v14569_v50, %v12773_v52  ;;  %v7512_v50 = vperm.slane %v20174_v39, 3  ;;  %v14674_v52 = vld [vmem:[%s21588_s13 + $0x394] sm:$0xf] }
 0x674   : > { %8373 = vmatpush.bf16.msra.mxu3 %v13228_v26  ;;  %v14648_v26 = vld [vmem:[%s21588_s13 + $0x2c0] sm:$0xf0] }
 0x676   : > { %8308 = vmatpush.bf16.msra.mxu1 %v12748_v59 }
 0x67a   : > { %8309 = vmatpush.bf16.msra.mxu1 %v12736_v2  ;;  %v13131_v2 = vld [vmem:[%s21588_s13 + $0x318] sm:$0xf] }
 0x67d   : > { %8310 = vmatmul.bf16.vlgmr.msra.gmra.mxu1 %v20205_v0 }
 0x67e   : > { %8354 = vmatpush.bf16.msrb.mxu1 %v13204_v5  ;;  %v13215_v5 = vld [vmem:[%s21588_s13 + $0x3c0] sm:$0xf] }
 0x67f   : > { %v13216_v21 = vor.u32 %v14681_v8, %v13215_v5  ;;  %v14563_v8 = vld [vmem:[%s21588_s13 + $0x1c] sm:$0xf] }
 0x681   : > { %8374 = vmatpush.bf16.msra.mxu3 %v13216_v21 }
 0x682   : > { %8355 = vmatpush.bf16.msrb.mxu1 %v13192_v22  ;;  %v14657_v22 = vld [vmem:[%s21588_s13 + $0x308] sm:$0xf0] }
 0x683   : > { %v13120_v60 = vor.u32 %v14657_v22, %v13119_v12  ;;  %v14617_v12 = vld [vmem:[%s21588_s13 + $0x1cc] sm:$0xf]  ;;  %v14638_v22 = vld [vmem:[%s21588_s13 + $0x274] sm:$0xf] }
 0x686   : > { %8356 = vmatpush.bf16.msrb.mxu1 %v13180_v55  ;;  %v13100_v55 = vor.u32 %v14650_v38, %v13097_v14  ;;  %v14677_v14 = vld [vmem:[%s21588_s13 + $0x3ac] sm:$0xf] }
 0x68a   : > { %8357 = vmatpush.bf16.msrb.mxu1 %v13168_v47  ;;  %v13004_v47 = vor.u32 %v14626_v33, %v13001_v35  ;;  %v12953_v33 = vld [vmem:[%s21588_s13 + $0x1bc] sm:$0xf0]  ;;  %v14635_v35 = vld [vmem:[%s21588_s13 + $0x25c] sm:$0xf] }
 0x68e   : > { %8358 = vmatpush.bf16.msrb.mxu1 %v13156_v53 }
 0x692   : > { %8359 = vmatpush.bf16.msrb.mxu1 %v13144_v36  ;;  %v12761_v36 = vld [vmem:[%s21588_s13 + $0x3c] sm:$0xf0] }
 0x6da   : > { %v7172_v7 = vpop.f32.mrf.mxu1 }
 0x6db   : > { %v7173_v20 = vadd.f32 %v14828_v27, %v7172_v7  ;;  %v12928_v27 = vor.u32 %v14609_v57, %v12927_v15  ;;  %v12821_v7 = vld [vmem:[%s21588_s13 + $0xb4] sm:$0xf0]  ;;  %v20288_v15 = vpack.c.bf16 %v7514_v49, %v7514_v49  ;;  %v14623_v57 = vld [vmem:[%s21588_s13 + $0x1fc] sm:$0xf] }
 0x6dc   : > { %v12824_v59 = vor.u32 %v14581_v54, %v12821_v7  ;;  %v12992_v54 = vor.u32 %v14623_v57, %v12989_v40  ;;  %v13073_v7 = vld [vmem:[%s21588_s13 + $0x2ac] sm:$0xf0]  ;;  %v14639_v49 = vld [vmem:[%s21588_s13 + $0x278] sm:$0xf0] }
 0x6dd   : > { %v7176_v44 = vmax.f32 %v7173_v20, 0.0  ;;  %8335 = vmatpush.bf16.msrb.mxu2 %v12928_v27  ;;  %v20192_v20 = vpack.c.bf16 %v7510_v56, %v7510_v56  ;;  %v14644_v27 = vld [vmem:[%s21588_s13 + $0x2a4] sm:$0xf]  ;;  %v14651_v56 = vld [vmem:[%s21588_s13 + $0x2d8] sm:$0xf0] }
 0x6de   : > { %v13076_v17 = vor.u32 %v14644_v27, %v13073_v7  ;;  %v13025_v40 = vld [vmem:[%s21588_s13 + $0x24c] sm:$0xf0] }
 0x6df   : > { %v7190_v3 = vpack.c.bf16 %v7176_v44, %v7176_v44  ;;  %8323 = vmatmul.bf16.vlgmr.msrb.gmra.mxu3 %v20192_v20  ;;  %v12809_v44 = vld [vmem:[%s21588_s13 + $0x9c] sm:$0xf0]  ;;  %v12923_v27 = vld [vmem:[%s21588_s13 + $0x170] sm:$0xf] }
 0x6e0   : > { %v12812_v1 = vor.u32 %v14578_v43, %v12809_v44  ;;  %v12764_v43 = vor.u32 %v14566_v62, %v12761_v36  ;;  %v13096_v44 = vor.u32 %v14651_v56, %v13095_v31  ;;  %v13060_v31 = vor.u32 %v14642_v45, %v13059_v41  ;;  %v14607_v56 = vld [vmem:[%s21588_s13 + $0x178] sm:$0xf0]  ;;  %v14636_v36 = vld [vmem:[%s21588_s13 + $0x260] sm:$0xf0]  ;;  %v14577_v41 = vld [vmem:[%s21588_s13 + $0x88] sm:$0xf0] }
 0x6e1   : > { %12731 = vmatmul.msk.bf16.vlgmr.msra.gmra.mxu2 %vm7227_vm3, %v7190_v3  ;;  %v14660_v3 = vld [vmem:[%s21588_s13 + $0x320] sm:$0xf0]  ;;  %v12924_v7 = vor.u32 %v14607_v56, %v12923_v27  ;;  %v12887_v45 = vld [vmem:[%s21588_s13 + $0x128] sm:$0xf] }
 0x6e2   : > { %v7174_v9 = vpop.f32.mrf.mxu1  ;;  %8380 = vmatpush.bf16.msra.mxu2 %v12824_v59  ;;  %v13132_v6 = vor.u32 %v14660_v3, %v13131_v2  ;;  %v7513_v59 = vperm.slane %v20174_v39, 4  ;;  %v12977_v2 = vld [vmem:[%s21588_s13 + $0x1ec] sm:$0xf0]  ;;  %v14641_v3 = vld [vmem:[%s21588_s13 + $0x28c] sm:$0xf] }
 0x6e3   : > { %v14653_v9 = vld [vmem:[%s21588_s13 + $0x2ec] sm:$0xf]  ;;  %v12941_v39 = vld [vmem:[%s21588_s13 + $0x1a4] sm:$0xf0] }
 0x6e4   : > { %v13112_v11 = vor.u32 %v14653_v9, %v13109_v10  ;;  %8360 = vmatpush.bf16.msrb.mxu1 %v13132_v6  ;;  %v20320_v4 = vpack.c.bf16 %v7513_v59, %v7513_v59  ;;  %v13061_v6 = vld [vmem:[%s21588_s13 + $0x294] sm:$0xf0]  ;;  %v12749_v9 = vld [vmem:[%s21588_s13 + $0x24] sm:$0xf0] }
 0x6e5   : > { %v13064_v10 = vor.u32 %v14641_v3, %v13061_v6  ;;  %v12752_v21 = vor.u32 %v14563_v8, %v12749_v9  ;;  %v13035_v59 = vld [vmem:[%s21588_s13 + $0x258] sm:$0xf]  ;;  %v14583_v3 = vld [vmem:[%s21588_s13 + $0xb8] sm:$0xf0]  ;;  %v14604_v8 = vld [vmem:[%s21588_s13 + $0x160] sm:$0xf0] }
 0x6e6   : > { %8381 = vmatpush.bf16.msra.mxu2 %v12812_v1  ;;  %8419 = vmatpush.bf16.msrb.mxu3 %v13112_v11  ;;  %v14620_v1 = vld [vmem:[%s21588_s13 + $0x1e4] sm:$0xf]  ;;  %v13133_v27 = vld [vmem:[%s21588_s13 + $0x324] sm:$0xf0] }
 0x6e7   : > { %v12980_v5 = vor.u32 %v14620_v1, %v12977_v2  ;;  %v12827_v2 = vld [vmem:[%s21588_s13 + $0xb0] sm:$0xf] }
 0x6e8   : > { %8361 = vmatpush.bf16.msrb.mxu1 %v13120_v60  ;;  %v13049_v60 = vld [vmem:[%s21588_s13 + $0x27c] sm:$0xf0]  ;;  %v12828_v6 = vor.u32 %v14583_v3, %v12827_v2 }
 0x6e9   : > { %v13052_v38 = vor.u32 %v14638_v22, %v13049_v60  ;;  %v12899_v22 = vld [vmem:[%s21588_s13 + $0x140] sm:$0xf]  ;;  %v12917_v60 = vld [vmem:[%s21588_s13 + $0x174] sm:$0xf0] }
 0x6ea   : > { %8382 = vmatpush.bf16.msra.mxu2 %v12800_v34  ;;  %8420 = vmatpush.bf16.msrb.mxu3 %v13100_v55  ;;  %v13084_v34 = vor.u32 %v14648_v26, %v13083_v19  ;;  %v13205_v55 = vld [vmem:[%s21588_s13 + $0x3b4] sm:$0xf0]  ;;  %v14608_v26 = vld [vmem:[%s21588_s13 + $0x184] sm:$0xf] }
 0x6eb   : > { %8362 = vmatmul.bf16.vlgmr.msrb.gmra.mxu1 %v20320_v4  ;;  %v13208_v25 = vor.u32 %v14677_v14, %v13205_v55  ;;  %v13157_v14 = vld [vmem:[%s21588_s13 + $0x354] sm:$0xf0]  ;;  %v13024_v55 = vor.u32 %v14633_v42, %v13023_v63  ;;  %v14593_v63 = vld [vmem:[%s21588_s13 + $0x10c] sm:$0xf] }
 0x6ec   : > { %8406 = vmatpush.bf16.msra.mxu1 %v13016_v13  ;;  %v12740_v13 = vor.u32 %v14560_v29, %v12737_v37  ;;  %v14601_v37 = vld [vmem:[%s21588_s13 + $0x148] sm:$0xf0]  ;;  %v12869_v42 = vld [vmem:[%s21588_s13 + $0x114] sm:$0xf0] }
 0x6ee   : > { %8383 = vmatpush.bf16.msra.mxu2 %v12788_v32  ;;  %8421 = vmatpush.bf16.msrb.mxu3 %v13088_v48  ;;  %v14614_v32 = vld [vmem:[%s21588_s13 + $0x1b4] sm:$0xf]  ;;  %v13047_v48 = vld [vmem:[%s21588_s13 + $0x270] sm:$0xf] }
 0x6ef   : > { %8375 = vmatmul.bf16.vlgmr.msra.gmra.mxu3 %v20288_v15  ;;  %v12956_v46 = vor.u32 %v14614_v32, %v12953_v33  ;;  %v13048_v62 = vor.u32 %v14639_v49, %v13047_v48  ;;  %v13145_v48 = vld [vmem:[%s21588_s13 + $0x33c] sm:$0xf0] }
 0x6f0   : > { %8407 = vmatpush.bf16.msra.mxu1 %v13004_v47  ;;  %v13037_v47 = vld [vmem:[%s21588_s13 + $0x264] sm:$0xf0] }
 0x6f1   : > { %8336 = vmatmul.bf16.vlgmr.msrb.gmra.mxu2 %v20248_v28  ;;  %v13040_v58 = vor.u32 %v14635_v35, %v13037_v47  ;;  %v12803_v35 = vld [vmem:[%s21588_s13 + $0x80] sm:$0xf]  ;;  %v14598_v47 = vld [vmem:[%s21588_s13 + $0x130] sm:$0xf0] }
 0x6f2   : > { %8384 = vmatpush.bf16.msra.mxu2 %v12776_v30  ;;  %8422 = vmatpush.bf16.msrb.mxu3 %v13076_v17  ;;  %v13181_v17 = vld [vmem:[%s21588_s13 + $0x384] sm:$0xf0]  ;;  %v12888_v49 = vor.u32 %v14598_v47, %v12887_v45  ;;  %v14587_v45 = vld [vmem:[%s21588_s13 + $0xdc] sm:$0xf]  ;;  %v14625_v47 = vld [vmem:[%s21588_s13 + $0x208] sm:$0xf0] }
 0x6f4   : > { %8408 = vmatpush.bf16.msra.mxu1 %v12992_v54 }
 0x6f6   : > { %8385 = vmatpush.bf16.msra.mxu2 %v12764_v43  ;;  %8423 = vmatpush.bf16.msrb.mxu3 %v13064_v10  ;;  %v12929_v43 = vld [vmem:[%s21588_s13 + $0x18c] sm:$0xf0]  ;;  %v14668_v10 = vld [vmem:[%s21588_s13 + $0x364] sm:$0xf] }
 0x6f7   : > { %v12932_v1 = vor.u32 %v14608_v26, %v12929_v43  ;;  %v14592_v26 = vld [vmem:[%s21588_s13 + $0x100] sm:$0xf0] }
 0x6f8   : > { %8409 = vmatpush.bf16.msra.mxu1 %v12980_v5  ;;  %v12911_v5 = vld [vmem:[%s21588_s13 + $0x158] sm:$0xf]  ;;  %v14656_v43 = vld [vmem:[%s21588_s13 + $0x304] sm:$0xf] }
 0x6f9   : > { %v12912_v9 = vor.u32 %v14604_v8, %v12911_v5  ;;  %v13019_v5 = vld [vmem:[%s21588_s13 + $0x230] sm:$0xf] }
 0x6fa   : > { %8386 = vmatpush.bf16.msra.mxu2 %v12752_v21  ;;  %8424 = vmatpush.bf16.msrb.mxu3 %v13052_v38  ;;  %v13169_v21 = vld [vmem:[%s21588_s13 + $0x36c] sm:$0xf0]  ;;  %v12900_v38 = vor.u32 %v14601_v37, %v12899_v22  ;;  %v14590_v22 = vld [vmem:[%s21588_s13 + $0xf4] sm:$0xf]  ;;  %v12872_v37 = vor.u32 %v14593_v63, %v12869_v42 }
 0x6fb   : > { %v14694_v42 = vld [vmem:[%s21588_s13 + $0x430] sm:$0xf0] }
 0x6fe   : > { %8387 = vmatpush.bf16.msra.mxu2 %v12740_v13  ;;  %8425 = vmatpush.bf16.msrb.mxu3 %v13040_v58  ;;  %v14665_v13 = vld [vmem:[%s21588_s13 + $0x34c] sm:$0xf]  ;;  %v14662_v58 = vld [vmem:[%s21588_s13 + $0x334] sm:$0xf] }
 0x6ff   : > { %v13160_v32 = vor.u32 %v14665_v13, %v13157_v14  ;;  %v12755_v13 = vld [vmem:[%s21588_s13 + $0x20] sm:$0xf]  ;;  %v14565_v14 = vld [vmem:[%s21588_s13 + $0x28] sm:$0xf0] }
 0x701   : > { %8388 = vmatmul.bf16.vlgmr.msra.gmra.mxu2 %v20205_v0 }
 0x702   : > { %8432 = vmatpush.bf16.msrb.mxu2 %v13208_v25  ;;  %v12905_v25 = vld [vmem:[%s21588_s13 + $0x15c] sm:$0xf0] }
 0x764   : > { %v7240_v24 = vpop.f32.mrf.mxu2 }
 0x765   : > { %v7244_v53 = vpack.c.bf16 %v7240_v24, %v7240_v24  ;;  %v13193_v24 = vld [vmem:[%s21588_s13 + $0x39c] sm:$0xf0] }
 0x766   : > { %v13196_v30 = vor.u32 %v14674_v52, %v13193_v24  ;;  %v14599_v52 = vld [vmem:[%s21588_s13 + $0x13c] sm:$0xf]  ;;  %v12893_v24 = vld [vmem:[%s21588_s13 + $0x144] sm:$0xf0] }
 0x767   : > { %v7249_v16 = vsel %vm5251_vm1, %v7244_v53, 0  ;;  %v14611_v53 = vld [vmem:[%s21588_s13 + $0x19c] sm:$0xf] }
 0x768   : > { %7258 = vmatpush.bf16.msrb.mxu0 %v7249_v16  ;;  %v12944_v57 = vor.u32 %v14611_v53, %v12941_v39  ;;  %8433 = vmatpush.bf16.msrb.mxu2 %v13196_v30  ;;  %v14671_v16 = vld [vmem:[%s21588_s13 + $0x37c] sm:$0xf]  ;;  %v12791_v30 = vld [vmem:[%s21588_s13 + $0x68] sm:$0xf]  ;;  %v14574_v53 = vld [vmem:[%s21588_s13 + $0x70] sm:$0xf0] }
 0x769   : > { %v13184_v19 = vor.u32 %v14671_v16, %v13181_v17  ;;  %v12875_v39 = vld [vmem:[%s21588_s13 + $0x110] sm:$0xf]  ;;  %v12896_v16 = vor.u32 %v14599_v52, %v12893_v24  ;;  %v14562_v52 = vld [vmem:[%s21588_s13 + $0x10] sm:$0xf0] }
 0x76a   : > { %v12779_v17 = vld [vmem:[%s21588_s13 + $0x50] sm:$0xf] }
 0x76b   : > { %12732 = vmatmul.msk.bf16.vlgmr.msrb.gmra.mxu0 %vm799_vm0, %v18637_v61  ;;  %v12965_v61 = vld [vmem:[%s21588_s13 + $0x1d4] sm:$0xf0] }
 0x76c   : > { %8341 = vmatpush.bf16.msra.mxu0 %v13108_v51  ;;  %v7242_v11 = vpop.f32.mrf.mxu2  ;;  %v12968_v23 = vor.u32 %v14617_v12, %v12965_v61  ;;  %v14632_v51 = vld [vmem:[%s21588_s13 + $0x244] sm:$0xf]  ;;  %8434 = vmatpush.bf16.msrb.mxu2 %v13184_v19  ;;  %v12815_v12 = vld [vmem:[%s21588_s13 + $0x98] sm:$0xf] }
 0x76d   : > { %v13028_v54 = vor.u32 %v14632_v51, %v13025_v40  ;;  %v13036_v11 = vor.u32 %v14636_v36, %v13035_v59  ;;  %v14580_v61 = vld [vmem:[%s21588_s13 + $0xa0] sm:$0xf0]  ;;  %v12792_v51 = vor.u32 %v14574_v53, %v12791_v30  ;;  %v14659_v40 = vld [vmem:[%s21588_s13 + $0x31c] sm:$0xf]  ;;  %v12881_v59 = vld [vmem:[%s21588_s13 + $0x12c] sm:$0xf0] }
 0x76e   : > { %8410 = vmatpush.bf16.msra.mxu1 %v12968_v23  ;;  %v14605_v23 = vld [vmem:[%s21588_s13 + $0x16c] sm:$0xf]  ;;  %v12816_v29 = vor.u32 %v14580_v61, %v12815_v12  ;;  %v12863_v36 = vld [vmem:[%s21588_s13 + $0xf8] sm:$0xf]  ;;  %v14679_v30 = vld [vmem:[%s21588_s13 + $0x3b8] sm:$0xf0] }
 0x76f   : > { %8426 = vmatpush.bf16.msrb.mxu3 %v13028_v54  ;;  %v12920_v33 = vor.u32 %v14605_v23, %v12917_v60  ;;  %v13136_v54 = vor.u32 %v14659_v40, %v13133_v27  ;;  %v12864_v2 = vor.u32 %v14592_v26, %v12863_v36  ;;  %v14589_v12 = vld [vmem:[%s21588_s13 + $0xe8] sm:$0xf0]  ;;  %v12857_v23 = vld [vmem:[%s21588_s13 + $0xfc] sm:$0xf0]  ;;  %v13007_v60 = vld [vmem:[%s21588_s13 + $0x218] sm:$0xf] }
 0x770   : > { %8342 = vmatpush.bf16.msra.mxu0 %v13096_v44  ;;  %v20441_v44 = vpack.c.bf16 %v7512_v50, %v7512_v50  ;;  %v13148_v50 = vor.u32 %v14662_v58, %v13145_v48  ;;  %v12860_v58 = vor.u32 %v14590_v22, %v12857_v23  ;;  %v12845_v48 = vld [vmem:[%s21588_s13 + $0xe4] sm:$0xf0]  ;;  %v13295_v53 = vld [vmem:[%s21588_s13 + $0x458] sm:$0xf]  ;;  %v14622_v27 = vld [vmem:[%s21588_s13 + $0x1f0] sm:$0xf0] }
 0x771   : > { %v12983_v40 = vld [vmem:[%s21588_s13 + $0x1e8] sm:$0xf]  ;;  %v14701_v36 = vld [vmem:[%s21588_s13 + $0x46c] sm:$0xf]  ;;  %v14695_v22 = vld [vmem:[%s21588_s13 + $0x43c] sm:$0xf] }
 0x772   : > { %8411 = vmatpush.bf16.msra.mxu1 %v12956_v46  ;;  %8427 = vmatmul.bf16.vlgmr.msrb.gmra.mxu3 %v20441_v44  ;;  %v12804_v46 = vor.u32 %v14577_v41, %v12803_v35  ;;  %v13277_v23 = vld [vmem:[%s21588_s13 + $0x444] sm:$0xf0] }
 0x773   : > { %8471 = vmatpush.bf16.msra.mxu3 %v12924_v7  ;;  %v14596_v7 = vld [vmem:[%s21588_s13 + $0x124] sm:$0xf] }
 0x774   : > { %8343 = vmatpush.bf16.msra.mxu0 %v13084_v34  ;;  %v13172_v34 = vor.u32 %v14668_v10, %v13169_v21  ;;  %v12884_v8 = vor.u32 %v14596_v7, %v12881_v59  ;;  %v12767_v10 = vld [vmem:[%s21588_s13 + $0x38] sm:$0xf]  ;;  %v14568_v21 = vld [vmem:[%s21588_s13 + $0x40] sm:$0xf0]  ;;  %v12833_v7 = vld [vmem:[%s21588_s13 + $0xcc] sm:$0xf0]  ;;  %v12984_v59 = vor.u32 %v14622_v27, %v12983_v40 }
 0x775   : > { %v14685_v27 = vld [vmem:[%s21588_s13 + $0x3e8] sm:$0xf0] }
 0x776   : > { %8412 = vmatpush.bf16.msra.mxu1 %v12944_v57  ;;  %8435 = vmatpush.bf16.msrb.mxu2 %v13172_v34  ;;  %v14595_v57 = vld [vmem:[%s21588_s13 + $0x118] sm:$0xf0]  ;;  %v12768_v34 = vor.u32 %v14568_v21, %v12767_v10  ;;  %v13271_v10 = vld [vmem:[%s21588_s13 + $0x428] sm:$0xf]  ;;  %v14698_v21 = vld [vmem:[%s21588_s13 + $0x454] sm:$0xf] }
 0x777   : > { %8472 = vmatpush.bf16.msra.mxu3 %v12912_v9  ;;  %v12876_v56 = vor.u32 %v14595_v57, %v12875_v39 }
 0x778   : > { %8344 = vmatpush.bf16.msra.mxu0 %v13072_v18  ;;  %v14602_v18 = vld [vmem:[%s21588_s13 + $0x154] sm:$0xf] }
 0x77a   : > { %8413 = vmatpush.bf16.msra.mxu1 %v12932_v1  ;;  %8436 = vmatpush.bf16.msrb.mxu2 %v13160_v32  ;;  %v13121_v1 = vld [vmem:[%s21588_s13 + $0x30c] sm:$0xf0] }
 0x77b   : > { %8473 = vmatpush.bf16.msra.mxu3 %v12900_v38  ;;  %v13124_v3 = vor.u32 %v14656_v43, %v13121_v1  ;;  %v13307_v32 = vld [vmem:[%s21588_s13 + $0x470] sm:$0xf]  ;;  %v14697_v43 = vld [vmem:[%s21588_s13 + $0x448] sm:$0xf0] }
 0x77c   : > { %8345 = vmatpush.bf16.msra.mxu0 %v13060_v31  ;;  %v12908_v31 = vor.u32 %v14602_v18, %v12905_v25  ;;  %v12756_v18 = vor.u32 %v14565_v14, %v12755_v13  ;;  %v14586_v25 = vld [vmem:[%s21588_s13 + $0xd0] sm:$0xf0]  ;;  %v13259_v13 = vld [vmem:[%s21588_s13 + $0x410] sm:$0xf] }
 0x77d   : > { %8414 = vmatmul.bf16.vlgmr.msra.gmra.mxu1 %v20248_v28 }
 0x77e   : > { %8458 = vmatpush.bf16.msrb.mxu1 %v12828_v6  ;;  %8437 = vmatpush.bf16.msrb.mxu2 %v13148_v50  ;;  %v14631_v6 = vld [vmem:[%s21588_s13 + $0x238] sm:$0xf0]  ;;  %v12743_v50 = vld [vmem:[%s21588_s13 + $0x8] sm:$0xf] }
 0x77f   : > { %8474 = vmatpush.bf16.msra.mxu3 %v12888_v49  ;;  %v13020_v9 = vor.u32 %v14631_v6, %v13019_v5  ;;  %v12744_v24 = vor.u32 %v14562_v52, %v12743_v50  ;;  %v14610_v50 = vld [vmem:[%s21588_s13 + $0x190] sm:$0xf0] }
 0x780   : > { %8346 = vmatpush.bf16.msra.mxu0 %v13048_v62  ;;  %v14571_v62 = vld [vmem:[%s21588_s13 + $0x58] sm:$0xf0] }
 0x781   : > { %v12780_v19 = vor.u32 %v14571_v62, %v12779_v17  ;;  %v14676_v17 = vld [vmem:[%s21588_s13 + $0x3a0] sm:$0xf0]  ;;  %v13283_v62 = vld [vmem:[%s21588_s13 + $0x440] sm:$0xf] }
 0x782   : > { %8459 = vmatpush.bf16.msrb.mxu1 %v12816_v29  ;;  %8438 = vmatpush.bf16.msrb.mxu2 %v13136_v54  ;;  %v14628_v29 = vld [vmem:[%s21588_s13 + $0x220] sm:$0xf0]  ;;  %v13284_v1 = vor.u32 %v14697_v43, %v13283_v62  ;;  %v13241_v62 = vld [vmem:[%s21588_s13 + $0x3fc] sm:$0xf0] }
 0x783   : > { %8475 = vmatpush.bf16.msra.mxu3 %v12876_v56  ;;  %v13008_v38 = vor.u32 %v14628_v29, %v13007_v60  ;;  %v12848_v56 = vor.u32 %v14587_v45, %v12845_v48  ;;  %v14584_v54 = vld [vmem:[%s21588_s13 + $0xc4] sm:$0xf]  ;;  %v13280_v45 = vor.u32 %v14695_v22, %v13277_v23  ;;  %v13079_v22 = vld [vmem:[%s21588_s13 + $0x2a8] sm:$0xf]  ;;  %v14646_v23 = vld [vmem:[%s21588_s13 + $0x2b0] sm:$0xf0] }
 0x784   : > { %8347 = vmatpush.bf16.msra.mxu0 %v13036_v11  ;;  %v12851_v11 = vld [vmem:[%s21588_s13 + $0xe0] sm:$0xf]  ;;  %v12836_v5 = vor.u32 %v14584_v54, %v12833_v7  ;;  %v14688_v48 = vld [vmem:[%s21588_s13 + $0x400] sm:$0xf0] }
 0x785   : > { %v12852_v61 = vor.u32 %v14589_v12, %v12851_v11  ;;  %v13289_v11 = vld [vmem:[%s21588_s13 + $0x45c] sm:$0xf0]  ;;  %v12959_v12 = vld [vmem:[%s21588_s13 + $0x1b8] sm:$0xf] }
 0x786   : > { %8460 = vmatpush.bf16.msrb.mxu1 %v12804_v46  ;;  %8439 = vmatpush.bf16.msrb.mxu2 %v13124_v3  ;;  %v12995_v46 = vld [vmem:[%s21588_s13 + $0x200] sm:$0xf]  ;;  %v14619_v3 = vld [vmem:[%s21588_s13 + $0x1d8] sm:$0xf0]  ;;  %v13292_v29 = vor.u32 %v14698_v21, %v13289_v11 }
 0x787   : > { %8476 = vmatpush.bf16.msra.mxu3 %v12864_v2  ;;  %v12996_v49 = vor.u32 %v14625_v47, %v12995_v46  ;;  %v12971_v2 = vld [vmem:[%s21588_s13 + $0x1d0] sm:$0xf]  ;;  %v13247_v47 = vld [vmem:[%s21588_s13 + $0x3f8] sm:$0xf]  ;;  %v13139_v7 = vld [vmem:[%s21588_s13 + $0x320] sm:$0xf] }
 0x788   : > { %8348 = vmatpush.bf16.msra.mxu0 %v13024_v55  ;;  %v12839_v55 = vld [vmem:[%s21588_s13 + $0xc8] sm:$0xf]  ;;  %v12972_v6 = vor.u32 %v14619_v3, %v12971_v2  ;;  %v13163_v46 = vld [vmem:[%s21588_s13 + $0x350] sm:$0xf]  ;;  %v13248_v52 = vor.u32 %v14688_v48, %v13247_v47  ;;  %v14658_v2 = vld [vmem:[%s21588_s13 + $0x310] sm:$0xf0] }
 0x789   : > { %8440 = vmatmul.bf16.vlgmr.msrb.gmra.mxu2 %v20320_v4  ;;  %v12840_v35 = vor.u32 %v14586_v25, %v12839_v55  ;;  %v14691_v55 = vld [vmem:[%s21588_s13 + $0x418] sm:$0xf0]  ;;  %v14613_v25 = vld [vmem:[%s21588_s13 + $0x1a8] sm:$0xf0]  ;;  %v13229_v3 = vld [vmem:[%s21588_s13 + $0x3e4] sm:$0xf0] }
 0x78a   : > { %8461 = vmatpush.bf16.msrb.mxu1 %v12792_v51  ;;  %8484 = vmatpush.bf16.msra.mxu2 %v13020_v9  ;;  %v14700_v51 = vld [vmem:[%s21588_s13 + $0x460] sm:$0xf0]  ;;  %v13187_v9 = vld [vmem:[%s21588_s13 + $0x380] sm:$0xf]  ;;  %v14637_v47 = vld [vmem:[%s21588_s13 + $0x268] sm:$0xf0] }
 0x78b   : > { %8349 = vmatmul.bf16.vlgmr.msra.gmra.mxu0 %v20441_v44  ;;  %8477 = vmatpush.bf16.msra.mxu3 %v12852_v61  ;;  %v13296_v57 = vor.u32 %v14700_v51, %v13295_v53  ;;  %v14616_v61 = vld [vmem:[%s21588_s13 + $0x1c0] sm:$0xf0]  ;;  %v14689_v51 = vld [vmem:[%s21588_s13 + $0x40c] sm:$0xf] }
 0x78c   : > { %8393 = vmatpush.bf16.msrb.mxu0 %v12920_v33  ;;  %v14703_v33 = vld [vmem:[%s21588_s13 + $0x478] sm:$0xf0]  ;;  %v12960_v60 = vor.u32 %v14616_v61, %v12959_v12  ;;  %v14664_v53 = vld [vmem:[%s21588_s13 + $0x340] sm:$0xf0]  ;;  %v13091_v12 = vld [vmem:[%s21588_s13 + $0x2c0] sm:$0xf] }
 0x78d   : > { %v13308_v41 = vor.u32 %v14703_v33, %v13307_v32  ;;  %v13260_v32 = vor.u32 %v14691_v55, %v13259_v13  ;;  %v14640_v13 = vld [vmem:[%s21588_s13 + $0x280] sm:$0xf0]  ;;  %v14719_v55 = vld [vmem:[%s21590_s15 + $0x74] sm:$0xf0]  ;;  %v13361_v48 = vld [vmem:[%s21590_s15 + $0x68] sm:$0xf0] }
 0x78e   : > { %8462 = vmatpush.bf16.msrb.mxu1 %v12780_v19  ;;  %8485 = vmatpush.bf16.msra.mxu2 %v13008_v38  ;;  %v13301_v19 = vld [vmem:[%s21588_s13 + $0x474] sm:$0xf0]  ;;  %v14670_v38 = vld [vmem:[%s21588_s13 + $0x370] sm:$0xf0] }
 0x78f   : > { %8478 = vmatpush.bf16.msra.mxu3 %v12840_v35  ;;  %v14692_v35 = vld [vmem:[%s21588_s13 + $0x424] sm:$0xf] }
 0x790   : > { %8394 = vmatpush.bf16.msrb.mxu0 %v12908_v31  ;;  %v13211_v31 = vld [vmem:[%s21588_s13 + $0x3b0] sm:$0xf] }
 0x791   : > { %v13212_v39 = vor.u32 %v14679_v30, %v13211_v31  ;;  %v13151_v30 = vld [vmem:[%s21588_s13 + $0x338] sm:$0xf] }
 0x792   : > { %8463 = vmatpush.bf16.msrb.mxu1 %v12768_v34  ;;  %8486 = vmatpush.bf16.msra.mxu2 %v12996_v49  ;;  %v13272_v34 = vor.u32 %v14694_v42, %v13271_v10  ;;  %v12935_v49 = vld [vmem:[%s21588_s13 + $0x188] sm:$0xf]  ;;  %v13152_v40 = vor.u32 %v14664_v53, %v13151_v30  ;;  %v14655_v10 = vld [vmem:[%s21588_s13 + $0x2f8] sm:$0xf0]  ;;  %v14652_v42 = vld [vmem:[%s21588_s13 + $0x2e0] sm:$0xf0] }
 0x793   : > { %8523 = vmatpush.bf16.msrb.mxu3 %v13308_v41  ;;  %v13265_v41 = vld [vmem:[%s21588_s13 + $0x42c] sm:$0xf0]  ;;  %v13031_v53 = vld [vmem:[%s21588_s13 + $0x248] sm:$0xf] }
 0x794   : > { %8395 = vmatpush.bf16.msrb.mxu0 %v12896_v16  ;;  %8479 = vmatmul.bf16.vlgmr.msra.gmra.mxu3 %v20192_v20  ;;  %v13199_v16 = vld [vmem:[%s21588_s13 + $0x398] sm:$0xf]  ;;  %v13268_v31 = vor.u32 %v14692_v35, %v13265_v41  ;;  %v13359_v41 = vld [vmem:[%s21590_s15 + $0x60] sm:$0xf] }
 0x795   : > { %v13200_v26 = vor.u32 %v14676_v17, %v13199_v16  ;;  %v13223_v16 = vld [vmem:[%s21588_s13 + $0x3c8] sm:$0xf]  ;;  %v14686_v17 = vld [vmem:[%s21588_s13 + $0x3f4] sm:$0xf] }
 0x796   : > { %8464 = vmatpush.bf16.msrb.mxu1 %v12756_v18  ;;  %8487 = vmatpush.bf16.msra.mxu2 %v12984_v59  ;;  %v12947_v18 = vld [vmem:[%s21588_s13 + $0x1a0] sm:$0xf]  ;;  %v14661_v59 = vld [vmem:[%s21588_s13 + $0x328] sm:$0xf0]  ;;  %v13244_v43 = vor.u32 %v14686_v17, %v13241_v62  ;;  %v20918_v17 = vpop.f32.mrf.mxu3 }
 0x797   : > { %8524 = vmatpush.bf16.msrb.mxu3 %v13296_v57  ;;  %v12948_v33 = vor.u32 %v14613_v25, %v12947_v18  ;;  %v13253_v57 = vld [vmem:[%s21588_s13 + $0x414] sm:$0xf0]  ;;  %v14718_v18 = vld [vmem:[%s21590_s15 + $0x74] sm:$0xf] }
 0x798   : > { %8396 = vmatpush.bf16.msrb.mxu0 %v12884_v8  ;;  %v13304_v8 = vor.u32 %v14701_v36, %v13301_v19  ;;  %v13256_v54 = vor.u32 %v14689_v51, %v13253_v57  ;;  %v13140_v36 = vor.u32 %v14661_v59, %v13139_v7  ;;  %v14682_v19 = vld [vmem:[%s21588_s13 + $0x3d0] sm:$0xf0]  ;;  %v13345_v7 = vld [vmem:[%s21590_s15 + $0x48] sm:$0xf0] }
 0x79a   : > { %8465 = vmatpush.bf16.msrb.mxu1 %v12744_v24  ;;  %8488 = vmatpush.bf16.msra.mxu2 %v12972_v6  ;;  %v12936_v24 = vor.u32 %v14610_v50, %v12935_v49  ;;  %v13351_v50 = vld [vmem:[%s21590_s15 + $0x50] sm:$0xf] }
 0x79b   : > { %8525 = vmatpush.bf16.msrb.mxu3 %v13284_v1  ;;  %v13127_v1 = vld [vmem:[%s21588_s13 + $0x308] sm:$0xf] }
 0x79c   : > { %8397 = vmatpush.bf16.msrb.mxu0 %v12872_v37  ;;  %v13175_v37 = vld [vmem:[%s21588_s13 + $0x368] sm:$0xf] }
 0x79d   : > { %8466 = vmatmul.bf16.vlgmr.msrb.gmra.mxu1 %v20205_v0  ;;  %v14673_v0 = vld [vmem:[%s21588_s13 + $0x388] sm:$0xf0]  ;;  %v13176_v14 = vor.u32 %v14670_v38, %v13175_v37  ;;  %v13055_v38 = vld [vmem:[%s21588_s13 + $0x278] sm:$0xf] }
 0x79e   : > { %8510 = vmatpush.bf16.msra.mxu1 %v13212_v39  ;;  %v13188_v63 = vor.u32 %v14673_v0, %v13187_v9  ;;  %8489 = vmatpush.bf16.msra.mxu2 %v12960_v60  ;;  %v13235_v39 = vld [vmem:[%s21588_s13 + $0x3e0] sm:$0xf]  ;;  %v13217_v9 = vld [vmem:[%s21588_s13 + $0x3cc] sm:$0xf0]  ;;  %v13080_v60 = vor.u32 %v14646_v23, %v13079_v22 }
 0x79f   : > { %8526 = vmatpush.bf16.msrb.mxu3 %v13272_v34  ;;  %v13115_v0 = vld [vmem:[%s21588_s13 + $0x2f0] sm:$0xf]  ;;  %v13311_v23 = vld [vmem:[%s21590_s15] sm:$0xf] }
 0x7a0   : > { %8398 = vmatpush.bf16.msrb.mxu0 %v12860_v58  ;;  %v13116_v11 = vor.u32 %v14655_v10, %v13115_v0 }
 0x7a2   : > { %8511 = vmatpush.bf16.msra.mxu1 %v13200_v26  ;;  %8490 = vmatpush.bf16.msra.mxu2 %v12948_v33  ;;  %v13224_v26 = vor.u32 %v14682_v19, %v13223_v16  ;;  %v13056_v33 = vor.u32 %v14640_v13, %v13055_v38  ;;  %v14711_v19 = vld [vmem:[%s21590_s15 + $0x34] sm:$0xf0] }
 0x7a3   : > { %8527 = vmatpush.bf16.msrb.mxu3 %v13260_v32  ;;  %v13369_v32 = vld [vmem:[%s21590_s15 + $0x78] sm:$0xf0] }
 0x7a4   : > { %8399 = vmatpush.bf16.msrb.mxu0 %v12848_v56  ;;  %v13236_v56 = vor.u32 %v14685_v27, %v13235_v39  ;;  %v13372_v35 = vor.u32 %v14718_v18, %v13369_v32  ;;  %v14634_v39 = vld [vmem:[%s21588_s13 + $0x250] sm:$0xf0]  ;;  %v14713_v27 = vld [vmem:[%s21590_s15 + $0x44] sm:$0xf0]  ;;  %v13431_v18 = vld [vmem:[%s21590_s15 + $0xf0] sm:$0xf] }
 0x7a5   : > { %v13032_v59 = vor.u32 %v14634_v39, %v13031_v53  ;;  %v14734_v32 = vld [vmem:[%s21590_s15 + $0xf4] sm:$0xf] }
 0x7a6   : > { %8512 = vmatpush.bf16.msra.mxu1 %v13188_v63  ;;  %8491 = vmatpush.bf16.msra.mxu2 %v12936_v24  ;;  %v13103_v63 = vld [vmem:[%s21588_s13 + $0x2d8] sm:$0xf]  ;;  %v14714_v24 = vld [vmem:[%s21590_s15 + $0x54] sm:$0xf] }
 0x7a7   : > { %8528 = vmatpush.bf16.msrb.mxu3 %v13248_v52  ;;  %v13104_v34 = vor.u32 %v14652_v42, %v13103_v63  ;;  %v14715_v52 = vld [vmem:[%s21590_s15 + $0x54] sm:$0xf0]  ;;  %v14706_v63 = vld [vmem:[%s21590_s15 + $0x14] sm:$0xf] }
 0x7a8   : > { %8400 = vmatpush.bf16.msrb.mxu0 %v12836_v5  ;;  %v13128_v5 = vor.u32 %v14658_v2, %v13127_v1  ;;  %v13352_v51 = vor.u32 %v14715_v52, %v13351_v50 }
 0x7a9   : > { %8492 = vmatmul.bf16.vlgmr.msra.gmra.mxu2 %v20248_v28  ;;  %v14683_v28 = vld [vmem:[%s21588_s13 + $0x3dc] sm:$0xf] }
 0x7aa   : > { %8513 = vmatpush.bf16.msra.mxu1 %v13176_v14  ;;  %v13232_v6 = vor.u32 %v14683_v28, %v13229_v3  ;;  %v13367_v14 = vld [vmem:[%s21590_s15 + $0x70] sm:$0xf]  ;;  %v8326_v3 = vpop.f32.mrf.mxu3 }
 0x7ab   : > { %8401 = vmatmul.bf16.vlgmr.msrb.gmra.mxu0 %v20192_v20  ;;  %v14667_v20 = vld [vmem:[%s21588_s13 + $0x358] sm:$0xf0]  ;;  %8529 = vmatpush.bf16.msrb.mxu3 %v13236_v56  ;;  %v13368_v25 = vor.u32 %v14719_v55, %v13367_v14  ;;  %v20910_v56 = vpop.f32.mrf.mxu1  ;;  %v14727_v3 = vld [vmem:[%s21590_s15 + $0xb4] sm:$0xf0] }
 0x7ac   : > { %8445 = vmatpush.bf16.msra.mxu0 %v13304_v8  ;;  %v13164_v58 = vor.u32 %v14667_v20, %v13163_v46  ;;  %v14680_v8 = vld [vmem:[%s21588_s13 + $0x3c4] sm:$0xf]  ;;  %v13043_v20 = vld [vmem:[%s21588_s13 + $0x260] sm:$0xf] }
 0x7ad   : > { %v13220_v21 = vor.u32 %v14680_v8, %v13217_v9  ;;  %v14716_v46 = vld [vmem:[%s21590_s15 + $0x64] sm:$0xf]  ;;  %8787 = vmatpush.bf16.msrb.mxu2 %v13368_v25  ;;  %v13044_v30 = vor.u32 %v14637_v47, %v13043_v20  ;;  %v8337_v9 = vpop.f32.mrf.mxu2  ;;  %v14735_v25 = vld [vmem:[%s21590_s15 + $0xf4] sm:$0xf0] }
 0x7ae   : > { %8514 = vmatpush.bf16.msra.mxu1 %v13164_v58  ;;  %v13364_v49 = vor.u32 %v14716_v46, %v13361_v48  ;;  %v14708_v8 = vld [vmem:[%s21590_s15 + $0x24] sm:$0xf]  ;;  %v20998_v48 = vld [vmem:[%s21589_s14] sm:$0x7] }
 0x7af   : > { %8530 = vmatpush.bf16.msrb.mxu3 %v13224_v26  ;;  %v14710_v26 = vld [vmem:[%s21590_s15 + $0x34] sm:$0xf]  ;;  %v14732_v47 = vld [vmem:[%s21590_s15 + $0xe4] sm:$0xf]  ;;  %v8296_v52 = vperm.slane %v20998_v48, 0 }
 0x7b0   : > { %8446 = vmatpush.bf16.msra.mxu0 %v13292_v29  ;;  %v13067_v29 = vld [vmem:[%s21588_s13 + $0x290] sm:$0xf] }
 0x7b2   : > { %8515 = vmatpush.bf16.msra.mxu1 %v13152_v40  ;;  %8531 = vmatmul.bf16.vlgmr.msrb.gmra.mxu3 %v20288_v15  ;;  %v13343_v40 = vld [vmem:[%s21590_s15 + $0x40] sm:$0xf]  ;;  %v8376_v22 = vpop.f32.mrf.mxu3 }
 0x7b3   : > { %8826 = vmatpush.bf16.msra.mxu3 %v13372_v35  ;;  %v13344_v16 = vor.u32 %v14713_v27, %v13343_v40  ;;  %v8313_v28 = vpop.f32.mrf.mxu1  ;;  %v13433_v35 = vld [vmem:[%s21590_s15 + $0xf8] sm:$0xf0]  ;;  %v14730_v40 = vld [vmem:[%s21590_s15 + $0xd4] sm:$0xf] }
 0x7b4   : > { %8447 = vmatpush.bf16.msra.mxu0 %v13280_v45  ;;  %v14717_v45 = vld [vmem:[%s21590_s15 + $0x64] sm:$0xf0]  ;;  %v13436_v20 = vor.u32 %v14734_v32, %v13433_v35  ;;  %v13399_v28 = vld [vmem:[%s21590_s15 + $0xb0] sm:$0xf]  ;;  %v14720_v32 = vld [vmem:[%s21590_s15 + $0x84] sm:$0xf] }
 0x7b5   : > { %v13360_v58 = vor.u32 %v14717_v45, %v13359_v41  ;;  %v8339_v38 = vpop.f32.mrf.mxu2  ;;  %v13423_v41 = vld [vmem:[%s21590_s15 + $0xe0] sm:$0xf]  ;;  %v14733_v45 = vld [vmem:[%s21590_s15 + $0xe4] sm:$0xf0]  ;;  %v13377_v35 = vld [vmem:[%s21590_s15 + $0x88] sm:$0xf0] }
 0x7b6   : > { %8516 = vmatpush.bf16.msra.mxu1 %v13140_v36  ;;  %v13335_v36 = vld [vmem:[%s21590_s15 + $0x30] sm:$0xf] }
 0x7b7   : > { %8788 = vmatpush.bf16.msrb.mxu2 %v13360_v58  ;;  %8827 = vmatpush.bf16.msra.mxu3 %v13364_v49  ;;  %v13336_v1 = vor.u32 %v14711_v19, %v13335_v36  ;;  %v13425_v58 = vld [vmem:[%s21590_s15 + $0xe8] sm:$0xf0]  ;;  %v13424_v49 = vor.u32 %v14733_v45, %v13423_v41  ;;  %v13380_v45 = vor.u32 %v14720_v32, %v13377_v35 }
 0x7b8   : > { %8448 = vmatpush.bf16.msra.mxu0 %v13268_v31  ;;  %v13353_v31 = vld [vmem:[%s21590_s15 + $0x58] sm:$0xf0]  ;;  %v13428_v50 = vor.u32 %v14732_v47, %v13425_v58  ;;  %v13409_v36 = vld [vmem:[%s21590_s15 + $0xc8] sm:$0xf0]  ;;  %v14751_v47 = vld [vmem:[%s21590_s15 + $0x174] sm:$0xf0] }
 0x7b9   : > { %v13356_v57 = vor.u32 %v14714_v24, %v13353_v31  ;;  %v8312_v31 = vadd.f32 %v20910_v56, %v8296_v52  ;;  %v13417_v56 = vld [vmem:[%s21590_s15 + $0xd8] sm:$0xf0]  ;;  %v14750_v58 = vld [vmem:[%s21590_s15 + $0x174] sm:$0xf] }
 0x7ba   : > { %8517 = vmatpush.bf16.msra.mxu1 %v13128_v5  ;;  %v13327_v5 = vld [vmem:[%s21590_s15 + $0x20] sm:$0xf]  ;;  %v8378_v46 = vpop.f32.mrf.mxu3  ;;  %v13497_v52 = vld [vmem:[%s21590_s15 + $0x178] sm:$0xf0] }
 0x7bb   : > { %8789 = vmatpush.bf16.msrb.mxu2 %v13352_v51  ;;  %8828 = vmatpush.bf16.msra.mxu3 %v13356_v57  ;;  %v8363_v42 = vpop.f32.mrf.mxu1  ;;  %v13415_v51 = vld [vmem:[%s21590_s15 + $0xd0] sm:$0xf]  ;;  %v14731_v57 = vld [vmem:[%s21590_s15 + $0xd4] sm:$0xf0] }
 0x7bc   : > { %8449 = vmatpush.bf16.msra.mxu0 %v13256_v54  ;;  %v14712_v54 = vld [vmem:[%s21590_s15 + $0x44] sm:$0xf] }
 0x7bd   : > { %8518 = vmatmul.bf16.vlgmr.msra.gmra.mxu1 %v20320_v4  ;;  %v14649_v4 = vld [vmem:[%s21588_s13 + $0x2c8] sm:$0xf0]  ;;  %v13348_v62 = vor.u32 %v14712_v54, %v13345_v7  ;;  %v21001_v24 = vpop.f32.mrf.mxu2  ;;  %v13416_v54 = vor.u32 %v14731_v57, %v13415_v51  ;;  %v13407_v7 = vld [vmem:[%s21590_s15 + $0xc0] sm:$0xf]  ;;  %v8297_v51 = vperm.slane %v20998_v48, 1 }
 0x7be   : > { %v13092_v61 = vor.u32 %v14649_v4, %v13091_v12  ;;  %v13321_v12 = vld [vmem:[%s21590_s15 + $0x18] sm:$0xf0] }
 0x7bf   : > { %8790 = vmatpush.bf16.msrb.mxu2 %v13344_v16  ;;  %8829 = vmatpush.bf16.msra.mxu3 %v13348_v62  ;;  %v14728_v62 = vld [vmem:[%s21590_s15 + $0xc4] sm:$0xf] }
 0x7c0   : > { %8450 = vmatpush.bf16.msra.mxu0 %v13244_v43  ;;  %v13337_v43 = vld [vmem:[%s21590_s15 + $0x38] sm:$0xf0] }
 0x7c1   : > { %v13340_v2 = vor.u32 %v14710_v26, %v13337_v43  ;;  %v13412_v43 = vor.u32 %v14728_v62, %v13409_v36  ;;  %v8390_v62 = vadd.f32 %v21001_v24, %v8297_v51  ;;  %v13473_v24 = vld [vmem:[%s21590_s15 + $0x148] sm:$0xf0] }
 0x7c3   : > { %8791 = vmatpush.bf16.msrb.mxu2 %v13336_v1  ;;  %8830 = vmatpush.bf16.msra.mxu3 %v13340_v2  ;;  %v8365_v14 = vpop.f32.mrf.mxu1 }
 0x7c4   : > { %8451 = vmatpush.bf16.msra.mxu0 %v13232_v6  ;;  %v14709_v6 = vld [vmem:[%s21590_s15 + $0x24] sm:$0xf0] }
 0x7c5   : > { %v13328_v0 = vor.u32 %v14709_v6, %v13327_v5  ;;  %v8391_v53 = vpop.f32.mrf.mxu2  ;;  %v14726_v5 = vld [vmem:[%s21590_s15 + $0xb4] sm:$0xf] }
 0x7c6   : > { %v14749_v53 = vld [vmem:[%s21590_s15 + $0x164] sm:$0xf0] }
 0x7c7   : > { %8792 = vmatpush.bf16.msrb.mxu2 %v13328_v0  ;;  %v13391_v0 = vld [vmem:[%s21590_s15 + $0xa0] sm:$0xf] }
 0x7c8   : > { %8452 = vmatpush.bf16.msra.mxu0 %v13220_v21  ;;  %v13319_v21 = vld [vmem:[%s21590_s15 + $0x10] sm:$0xf] }
 0x7cb   : > { %8453 = vmatmul.bf16.vlgmr.msra.gmra.mxu0 %v20288_v15  ;;  %v14643_v15 = vld [vmem:[%s21588_s13 + $0x298] sm:$0xf0] }
 0x7cc   : > { %8497 = vmatpush.bf16.msrb.mxu0 %v13116_v11  ;;  %v13068_v37 = vor.u32 %v14643_v15, %v13067_v29  ;;  %v14707_v11 = vld [vmem:[%s21590_s15 + $0x14] sm:$0xf0]  ;;  %v14704_v29 = vld [vmem:[%s21590_s15 + $0x4] sm:$0xf] }
 0x7d0   : > { %8498 = vmatpush.bf16.msrb.mxu0 %v13104_v34  ;;  %v13320_v34 = vor.u32 %v14707_v11, %v13319_v21 }
 0x7d2   : > { %8793 = vmatpush.bf16.msrb.mxu2 %v13320_v34 }
 0x7d4   : > { %8499 = vmatpush.bf16.msrb.mxu0 %v13092_v61  ;;  %v13324_v61 = vor.u32 %v14706_v63, %v13321_v12  ;;  %v14724_v63 = vld [vmem:[%s21590_s15 + $0xa4] sm:$0xf] }
 0x7d8   : > { %8500 = vmatpush.bf16.msrb.mxu0 %v13080_v60  ;;  %v14705_v60 = vld [vmem:[%s21590_s15 + $0x4] sm:$0xf0] }
 0x7d9   : > { %v13312_v15 = vor.u32 %v14705_v60, %v13311_v23 }
 0x7db   : > { %8794 = vmatpush.bf16.msrb.mxu2 %v13312_v15  ;;  %v14723_v15 = vld [vmem:[%s21590_s15 + $0x94] sm:$0xf0] }
 0x7dc   : > { %8501 = vmatpush.bf16.msrb.mxu0 %v13068_v37  ;;  %v13313_v37 = vld [vmem:[%s21590_s15 + $0x8] sm:$0xf0] }
 0x7dd   : > { %v13316_v13 = vor.u32 %v14704_v29, %v13313_v37  ;;  %v13383_v29 = vld [vmem:[%s21590_s15 + $0x90] sm:$0xf]  ;;  %v14722_v37 = vld [vmem:[%s21590_s15 + $0x94] sm:$0xf] }
 0x7de   : > { %v13384_v38 = vor.u32 %v14723_v15, %v13383_v29 }
 0x7df   : > { %8839 = vmatpush.bf16.msra.mxu2 %v13436_v20  ;;  %v13495_v20 = vld [vmem:[%s21590_s15 + $0x170] sm:$0xf] }
 0x7e0   : > { %8502 = vmatpush.bf16.msrb.mxu0 %v13056_v33  ;;  %v13432_v33 = vor.u32 %v14735_v25, %v13431_v18  ;;  %v13375_v18 = vld [vmem:[%s21590_s15 + $0x80] sm:$0xf]  ;;  %v14721_v25 = vld [vmem:[%s21590_s15 + $0x84] sm:$0xf0] }
 0x7e3   : > { %8840 = vmatpush.bf16.msra.mxu2 %v13428_v50  ;;  %v13496_v50 = vor.u32 %v14751_v47, %v13495_v20  ;;  %v14737_v20 = vld [vmem:[%s21590_s15 + $0x104] sm:$0xf0]  ;;  %v14736_v47 = vld [vmem:[%s21590_s15 + $0x104] sm:$0xf] }
 0x7e4   : > { %8503 = vmatpush.bf16.msrb.mxu0 %v13044_v30  ;;  %v8325_v30 = vadd.f32 %v20918_v17, %v8312_v31  ;;  %v13420_v17 = vor.u32 %v14730_v40, %v13417_v56  ;;  %v13500_v31 = vor.u32 %v14750_v58, %v13497_v52  ;;  %v13489_v40 = vld [vmem:[%s21590_s15 + $0x168] sm:$0xf0]  ;;  %v13479_v56 = vld [vmem:[%s21590_s15 + $0x150] sm:$0xf] }
 0x7e5   : > { %8813 = vmatpush.bf16.msrb.mxu1 %v13496_v50  ;;  %v13441_v52 = vld [vmem:[%s21590_s15 + $0x108] sm:$0xf0] }
 0x7e6   : > { %v8338_v39 = vadd.f32 %v8337_v9, %v8325_v30  ;;  %v13401_v9 = vld [vmem:[%s21590_s15 + $0xb8] sm:$0xf0]  ;;  %v13487_v30 = vld [vmem:[%s21590_s15 + $0x160] sm:$0xf] }
 0x7e7   : > { %8841 = vmatpush.bf16.msra.mxu2 %v13420_v17  ;;  %v13404_v11 = vor.u32 %v14726_v5, %v13401_v9  ;;  %v13488_v57 = vor.u32 %v14749_v53, %v13487_v30  ;;  %v13481_v17 = vld [vmem:[%s21590_s15 + $0x158] sm:$0xf0]  ;;  %v13463_v9 = vld [vmem:[%s21590_s15 + $0x130] sm:$0xf] }
 0x7e8   : > { %8504 = vmatpush.bf16.msrb.mxu0 %v13032_v59  ;;  %v20957_v4 = vpop.f32.mrf.mxu0  ;;  %v14729_v59 = vld [vmem:[%s21590_s15 + $0xc4] sm:$0xf0] }
 0x7e9   : > { %v13408_v26 = vor.u32 %v14729_v59, %v13407_v7  ;;  %v14747_v7 = vld [vmem:[%s21590_s15 + $0x154] sm:$0xf0]  ;;  %8814 = vmatpush.bf16.msrb.mxu1 %v13488_v57 }
 0x7eb   : > { %8505 = vmatmul.bf16.vlgmr.msrb.gmra.mxu0 %v20441_v44  ;;  %v13329_v44 = vld [vmem:[%s21590_s15 + $0x28] sm:$0xf0]  ;;  %8842 = vmatpush.bf16.msra.mxu2 %v13412_v43  ;;  %v13471_v43 = vld [vmem:[%s21590_s15 + $0x140] sm:$0xf] }
 0x7ec   : > { %v13332_v10 = vor.u32 %v14708_v8, %v13329_v44  ;;  %8800 = vmatpush.bf16.msra.mxu0 %v13432_v33  ;;  %v13400_v8 = vor.u32 %v14727_v3, %v13399_v28  ;;  %v14725_v44 = vld [vmem:[%s21590_s15 + $0xa4] sm:$0xf0]  ;;  %v13376_v33 = vor.u32 %v14721_v25, %v13375_v18  ;;  %v14744_v28 = vld [vmem:[%s21590_s15 + $0x144] sm:$0xf] }
 0x7ee   : > { %8831 = vmatpush.bf16.msra.mxu3 %v13332_v10 }
 0x7ef   : > { %8843 = vmatpush.bf16.msra.mxu2 %v13404_v11 }
 0x7f0   : > { %v7262_v55 = vpop.f32.mrf.mxu0  ;;  %8801 = vmatpush.bf16.msra.mxu0 %v13424_v49 }
 0x7f2   : > { %8832 = vmatpush.bf16.msra.mxu3 %v13324_v61  ;;  %v13392_v61 = vor.u32 %v14725_v44, %v13391_v0  ;;  %v14743_v0 = vld [vmem:[%s21590_s15 + $0x134] sm:$0xf0]  ;;  %v14742_v44 = vld [vmem:[%s21590_s15 + $0x134] sm:$0xf] }
 0x7f4   : > { %8802 = vmatpush.bf16.msra.mxu0 %v13416_v54 }
 0x7f5   : > { %v21040_v6 = vpop.f32.mrf.mxu3 }
 0x7f6   : > { %8833 = vmatpush.bf16.msra.mxu3 %v13316_v13  ;;  %v13385_v13 = vld [vmem:[%s21590_s15 + $0x98] sm:$0xf0] }
 0x7f7   : > { %v13388_v14 = vor.u32 %v14722_v37, %v13385_v13  ;;  %v13447_v13 = vld [vmem:[%s21590_s15 + $0x110] sm:$0xf] }
 0x7f8   : > { %8803 = vmatpush.bf16.msra.mxu0 %v13408_v26 }
 0x7fa   : > { %v21014_v27 = vpop.f32.mrf.mxu1 }
 0x7fc   : > { %8804 = vmatpush.bf16.msra.mxu0 %v13400_v8  ;;  %v13476_v8 = vor.u32 %v14744_v28, %v13473_v24  ;;  %v13551_v24 = vld [vmem:[%s21592_s17 + $0x60] sm:$0xf] }
 0x7fd   : > { %v8430_v23 = vpop.f32.mrf.mxu3 }
 0x7fe   : > { %v14741_v23 = vld [vmem:[%s21590_s15 + $0x124] sm:$0xf0] }
 0x800   : > { %8805 = vmatpush.bf16.msra.mxu0 %v13392_v61 }
 0x802   : > { %v8417_v10 = vpop.f32.mrf.mxu1 }
 0x803   : > { %v13465_v10 = vld [vmem:[%s21590_s15 + $0x138] sm:$0xf0] }
 0x804   : > { %8806 = vmatpush.bf16.msra.mxu0 %v13384_v38 }
 0x808   : > { %v8350_v16 = vpop.f32.mrf.mxu0  ;;  %8807 = vmatpush.bf16.msra.mxu0 %v13376_v33 }
 0x809   : > { %v8351_v19 = vadd.f32 %v8350_v16, %v8338_v39  ;;  %v14748_v39 = vld [vmem:[%s21590_s15 + $0x164] sm:$0xf]  ;;  %v14746_v16 = vld [vmem:[%s21590_s15 + $0x154] sm:$0xf] }
 0x80a   : > { %v13492_v54 = vor.u32 %v14748_v39, %v13489_v40  ;;  %v13484_v26 = vor.u32 %v14746_v16, %v13481_v17  ;;  %v8298_v39 = vperm.slane %v20998_v48, 2 }
 0x80b   : > { %v8364_v1 = vadd.f32 %v8363_v42, %v8351_v19  ;;  %v13393_v42 = vld [vmem:[%s21590_s15 + $0xa8] sm:$0xf0]  ;;  %v13480_v19 = vor.u32 %v14747_v7, %v13479_v56 }
 0x80c   : > { %v21057_v60 = vpop.f32.mrf.mxu2  ;;  %8852 = vmatpush.bf16.msrb.mxu0 %v13500_v31  ;;  %v13444_v31 = vor.u32 %v14736_v47, %v13441_v52  ;;  %v14756_v47 = vld [vmem:[%s21592_s17 + $0x24] sm:$0xf]  ;;  %v13521_v52 = vld [vmem:[%s21592_s17 + $0x28] sm:$0xf0] }
 0x80d   : > { %v8377_v2 = vadd.f32 %v8376_v22, %v8364_v1  ;;  %v13396_v22 = vor.u32 %v14724_v63, %v13393_v42  ;;  %v14745_v1 = vld [vmem:[%s21590_s15 + $0x144] sm:$0xf0]  ;;  %8815 = vmatpush.bf16.msrb.mxu1 %v13480_v19  ;;  %v13464_v63 = vor.u32 %v14743_v0, %v13463_v9  ;;  %v13468_v42 = vor.u32 %v14742_v44, %v13465_v10  ;;  %v13553_v9 = vld [vmem:[%s21592_s17 + $0x68] sm:$0xf0]  ;;  %v13543_v44 = vld [vmem:[%s21592_s17 + $0x50] sm:$0xf] }
 0x80e   : > { %v13472_v5 = vor.u32 %v14745_v1, %v13471_v43  ;;  %v14766_v43 = vld [vmem:[%s21592_s17 + $0x74] sm:$0xf]  ;;  %v14763_v10 = vld [vmem:[%s21592_s17 + $0x54] sm:$0xf0] }
 0x80f   : > { %v8536_v21 = vmax.f32 %v8377_v2, 0.0  ;;  %8844 = vmatpush.bf16.msra.mxu2 %v13396_v22  ;;  %v13455_v22 = vld [vmem:[%s21590_s15 + $0x120] sm:$0xf] }
 0x810   : > { %v8352_v34 = vpop.f32.mrf.mxu0  ;;  %8853 = vmatpush.bf16.msrb.mxu0 %v13492_v54  ;;  %v13456_v29 = vor.u32 %v14741_v23, %v13455_v22  ;;  %v13537_v23 = vld [vmem:[%s21592_s17 + $0x48] sm:$0xf0] }
 0x811   : > { %v8539_v12 = vpack.c.bf16 %v8536_v21, %v8536_v21  ;;  %8816 = vmatpush.bf16.msrb.mxu1 %v13472_v5  ;;  %v14764_v5 = vld [vmem:[%s21592_s17 + $0x64] sm:$0xf] }
 0x812   : > { %v13556_v0 = vor.u32 %v14764_v5, %v13553_v9  ;;  %v13569_v9 = vld [vmem:[%s21592_s17 + $0x88] sm:$0xf0] }
 0x813   : > { %8795 = vmatmul.bf16.vlgmr.msrb.gmra.mxu2 %v8539_v12  ;;  %8834 = vmatmul.bf16.vlgmr.msra.gmra.mxu3 %v8539_v12 }
 0x814   : > { %v8443_v55 = vpop.f32.mrf.mxu2  ;;  %8845 = vmatpush.bf16.msra.mxu2 %v13388_v14  ;;  %8854 = vmatpush.bf16.msrb.mxu0 %v13484_v26  ;;  %v14739_v14 = vld [vmem:[%s21590_s15 + $0x114] sm:$0xf0] }
 0x815   : > { %8817 = vmatpush.bf16.msrb.mxu1 %v13464_v63  ;;  %v14738_v55 = vld [vmem:[%s21590_s15 + $0x114] sm:$0xf]  ;;  %v13448_v25 = vor.u32 %v14739_v14, %v13447_v13  ;;  %v13545_v63 = vld [vmem:[%s21592_s17 + $0x58] sm:$0xf0] }
 0x816   : > { %v13529_v14 = vld [vmem:[%s21592_s17 + $0x38] sm:$0xf0] }
 0x817   : > { %v21094_v49 = vpop.f32.mrf.mxu3 }
 0x818   : > { %8846 = vmatpush.bf16.msra.mxu2 %v13380_v45  ;;  %8855 = vmatpush.bf16.msrb.mxu0 %v13476_v8  ;;  %v13439_v45 = vld [vmem:[%s21590_s15 + $0x100] sm:$0xf] }
 0x819   : > { %8818 = vmatpush.bf16.msrb.mxu1 %v13456_v29  ;;  %v13440_v50 = vor.u32 %v14737_v20, %v13439_v45  ;;  %v14759_v29 = vld [vmem:[%s21592_s17 + $0x34] sm:$0xf0] }
 0x81a   : > { %v21083_v46 = vpop.f32.mrf.mxu1 }
 0x81b   : > { %v8468_v51 = vadd.f32 %v21083_v46, %v8298_v39  ;;  %v13559_v46 = vld [vmem:[%s21592_s17 + $0x70] sm:$0xf]  ;;  %v14770_v39 = vld [vmem:[%s21592_s17 + $0x94] sm:$0xf] }
 0x81c   : > { %8856 = vmatpush.bf16.msrb.mxu0 %v13468_v42 }
 0x81d   : > { %8819 = vmatpush.bf16.msrb.mxu1 %v13448_v25  ;;  %v8481_v57 = vadd.f32 %v21094_v49, %v8468_v51  ;;  %v14767_v49 = vld [vmem:[%s21592_s17 + $0x74] sm:$0xf0] }
 0x81e   : > { %v13560_v1 = vor.u32 %v14767_v49, %v13559_v46  ;;  %v13503_v46 = vld [vmem:[%s21592_s17] sm:$0xf]  ;;  %v14753_v49 = vld [vmem:[%s21592_s17 + $0x4] sm:$0xf0] }
 0x81f   : > { %v8482_v2 = vpop.f32.mrf.mxu3 }
 0x820   : > { %v13561_v2 = vld [vmem:[%s21592_s17 + $0x78] sm:$0xf0] }
 0x821   : > { %8820 = vmatpush.bf16.msrb.mxu1 %v13440_v50  ;;  %v13564_v28 = vor.u32 %v14766_v43, %v13561_v2  ;;  %v13585_v50 = vld [vmem:[%s21592_s17 + $0xa8] sm:$0xf0]  ;;  %v13567_v43 = vld [vmem:[%s21592_s17 + $0x80] sm:$0xf]  ;;  %v14769_v2 = vld [vmem:[%s21592_s17 + $0x84] sm:$0xf0] }
 0x822   : > { %v8469_v36 = vpop.f32.mrf.mxu1 }
 0x823   : > { %9071 = vmatpush.bf16.msrb.mxu2 %v13564_v28  ;;  %v14752_v28 = vld [vmem:[%s21592_s17 + $0x4] sm:$0xf] }
 0x825   : > { %9045 = vmatpush.bf16.msra.mxu1 %v13560_v1  ;;  %v13504_v1 = vor.u32 %v14753_v49, %v13503_v46 }
 0x827   : > { %9072 = vmatpush.bf16.msrb.mxu2 %v13556_v0 }
 0x828   : > { %v8402_v41 = vpop.f32.mrf.mxu0 }
 0x829   : > { %v8403_v3 = vadd.f32 %v8402_v41, %v8390_v62 }
 0x82b   : > { %v8416_v11 = vadd.f32 %v21014_v27, %v8403_v3  ;;  %v14740_v27 = vld [vmem:[%s21590_s15 + $0x124] sm:$0xf]  ;;  %v14765_v3 = vld [vmem:[%s21592_s17 + $0x64] sm:$0xf0] }
 0x82c   : > { %v8493_v21 = vpop.f32.mrf.mxu2  ;;  %v13552_v8 = vor.u32 %v14765_v3, %v13551_v24  ;;  %v13505_v24 = vld [vmem:[%s21592_s17 + $0x8] sm:$0xf0]  ;;  %v13568_v3 = vor.u32 %v14769_v2, %v13567_v43  ;;  %v14781_v2 = vld [vmem:[%s21594_s19 + $0x24] sm:$0xf0] }
 0x82d   : > { %v8429_v12 = vadd.f32 %v21040_v6, %v8416_v11  ;;  %v13457_v6 = vld [vmem:[%s21590_s15 + $0x128] sm:$0xf0]  ;;  %v8494_v40 = vadd.f32 %v8493_v21, %v8481_v57  ;;  %v14762_v21 = vld [vmem:[%s21592_s17 + $0x54] sm:$0xf]  ;;  %v13544_v11 = vor.u32 %v14763_v10, %v13543_v44  ;;  %v13508_v5 = vor.u32 %v14752_v28, %v13505_v24  ;;  %v14780_v28 = vld [vmem:[%s21594_s19 + $0x24] sm:$0xf] }
 0x82e   : > { %v13460_v37 = vor.u32 %v14740_v27, %v13457_v6  ;;  %9046 = vmatpush.bf16.msra.mxu1 %v13552_v8  ;;  %v13548_v42 = vor.u32 %v14762_v21, %v13545_v63  ;;  %v13527_v27 = vld [vmem:[%s21592_s17 + $0x30] sm:$0xf]  ;;  %v14768_v8 = vld [vmem:[%s21592_s17 + $0x84] sm:$0xf]  ;;  %v14790_v63 = vld [vmem:[%s21594_s19 + $0x74] sm:$0xf] }
 0x82f   : > { %v8442_v38 = vadd.f32 %v21057_v60, %v8429_v12  ;;  %v13449_v60 = vld [vmem:[%s21590_s15 + $0x118] sm:$0xf0]  ;;  %v14761_v12 = vld [vmem:[%s21592_s17 + $0x44] sm:$0xf0]  ;;  %v13572_v0 = vor.u32 %v14768_v8, %v13569_v9  ;;  %v13657_v21 = vld [vmem:[%s21594_s19 + $0x70] sm:$0xf] }
 0x830   : > { %v8404_v59 = vpop.f32.mrf.mxu0  ;;  %8857 = vmatpush.bf16.msrb.mxu0 %v13460_v37  ;;  %v13452_v33 = vor.u32 %v14738_v55, %v13449_v60  ;;  %9073 = vmatpush.bf16.msrb.mxu2 %v13548_v42  ;;  %v14775_v37 = vld [vmem:[%s21592_s17 + $0xb4] sm:$0xf0]  ;;  %v14774_v55 = vld [vmem:[%s21592_s17 + $0xb4] sm:$0xf]  ;;  %v13583_v60 = vld [vmem:[%s21592_s17 + $0xa0] sm:$0xf] }
 0x831   : > { %v13683_v8 = vld [vmem:[%s21594_s19 + $0xa8] sm:$0xf0] }
 0x832   : > { %9047 = vmatpush.bf16.msra.mxu1 %v13544_v11  ;;  %v14791_v11 = vld [vmem:[%s21594_s19 + $0x74] sm:$0xf0] }
 0x833   : > { %v13658_v42 = vor.u32 %v14791_v11, %v13657_v21  ;;  %v13609_v11 = vld [vmem:[%s21594_s19 + $0x10] sm:$0xf] }
 0x834   : > { %v8495_v15 = vpop.f32.mrf.mxu2  ;;  %8858 = vmatpush.bf16.msrb.mxu0 %v13452_v33  ;;  %v13519_v33 = vld [vmem:[%s21592_s17 + $0x20] sm:$0xf] }
 0x835   : > { %v8532_v61 = vpop.f32.mrf.mxu3  ;;  %v13591_v15 = vld [vmem:[%s21592_s17 + $0xb0] sm:$0xf] }
 0x836   : > { %v13592_v13 = vor.u32 %v14775_v37, %v13591_v15  ;;  %v13641_v15 = vld [vmem:[%s21594_s19 + $0x50] sm:$0xf]  ;;  %v14787_v37 = vld [vmem:[%s21594_s19 + $0x54] sm:$0xf0] }
 0x838   : > { %8859 = vmatpush.bf16.msrb.mxu0 %v13444_v31  ;;  %9062 = vmatpush.bf16.msrb.mxu3 %v13592_v13  ;;  %v14786_v13 = vld [vmem:[%s21594_s19 + $0x54] sm:$0xf] }
 0x83a   : > { %v8519_v34 = vpop.f32.mrf.mxu1 }
 0x83d   : > { %v8534_v41 = vpop.f32.mrf.mxu3 }
 0x83e   : > { %v14773_v41 = vld [vmem:[%s21592_s17 + $0xa4] sm:$0xf0] }
 0x83f   : > { %v13584_v20 = vor.u32 %v14773_v41, %v13583_v60  ;;  %v14784_v41 = vld [vmem:[%s21594_s19 + $0x44] sm:$0xf] }
 0x841   : > { %9063 = vmatpush.bf16.msrb.mxu3 %v13584_v20 }
 0x842   : > { %v8521_v18 = vpop.f32.mrf.mxu1 }
 0x843   : > { %v13593_v18 = vld [vmem:[%s21592_s17 + $0xb8] sm:$0xf0] }
 0x844   : > { %v13596_v25 = vor.u32 %v14774_v55, %v13593_v18  ;;  %v14798_v55 = vld [vmem:[%s21594_s19 + $0xb4] sm:$0xf]  ;;  %v13642_v18 = vor.u32 %v14787_v37, %v13641_v15  ;;  %v13601_v37 = vld [vmem:[%s21594_s19] sm:$0xf] }
 0x848   : > { %v8454_v32 = vpop.f32.mrf.mxu0 }
 0x849   : > { %v8455_v35 = vadd.f32 %v8454_v32, %v8442_v38  ;;  %v14758_v38 = vld [vmem:[%s21592_s17 + $0x34] sm:$0xf]  ;;  %v13528_v32 = vor.u32 %v14759_v29, %v13527_v27  ;;  %v13651_v27 = vld [vmem:[%s21594_s19 + $0x68] sm:$0xf0] }
 0x84a   : > { %v13532_v45 = vor.u32 %v14758_v38, %v13529_v14  ;;  %v13643_v14 = vld [vmem:[%s21594_s19 + $0x58] sm:$0xf0] }
 0x84b   : > { %v8537_v58 = vmax.f32 %v8455_v35, 0.0  ;;  %v14757_v35 = vld [vmem:[%s21592_s17 + $0x24] sm:$0xf0]  ;;  %v13646_v60 = vor.u32 %v14786_v13, %v13643_v14  ;;  %v14776_v13 = vld [vmem:[%s21594_s19 + $0x4] sm:$0xf] }
 0x84c   : > { %v13520_v51 = vor.u32 %v14757_v35, %v13519_v33  ;;  %v14785_v33 = vld [vmem:[%s21594_s19 + $0x44] sm:$0xf0] }
 0x84d   : > { %v8540_v30 = vpack.c.bf16 %v8537_v58, %v8537_v58  ;;  %v14772_v58 = vld [vmem:[%s21592_s17 + $0xa4] sm:$0xf] }
 0x84e   : > { %v13588_v31 = vor.u32 %v14772_v58, %v13585_v50  ;;  %v13625_v58 = vld [vmem:[%s21594_s19 + $0x30] sm:$0xf]  ;;  %v14783_v50 = vld [vmem:[%s21594_s19 + $0x34] sm:$0xf0] }
 0x84f   : > { %8808 = vmatmul.bf16.vlgmr.msra.gmra.mxu0 %v8540_v30  ;;  %8847 = vmatmul.bf16.vlgmr.msra.gmra.mxu2 %v8540_v30  ;;  %v13575_v30 = vld [vmem:[%s21592_s17 + $0x90] sm:$0xf] }
 0x850   : > { %v8456_v53 = vpop.f32.mrf.mxu0  ;;  %9088 = vmatpush.bf16.msra.mxu0 %v13596_v25  ;;  %v13691_v25 = vld [vmem:[%s21594_s19 + $0xb8] sm:$0xf0] }
 0x851   : > { %v14771_v53 = vld [vmem:[%s21592_s17 + $0x94] sm:$0xf0]  ;;  %v13694_v35 = vor.u32 %v14798_v55, %v13691_v25  ;;  %v13603_v55 = vld [vmem:[%s21594_s19 + $0x8] sm:$0xf0]  ;;  %v14792_v25 = vld [vmem:[%s21594_s19 + $0x84] sm:$0xf] }
 0x852   : > { %v13576_v57 = vor.u32 %v14771_v53, %v13575_v30  ;;  %v7507_v30 = vld [vmem:[%s21591_s16] sm:$0x3]  ;;  %v13626_v53 = vor.u32 %v14783_v50, %v13625_v58  ;;  %v14805_v58 = vld [vmem:[%s21596_s21 + $0x28] sm:$0xff] }
 0x853   : > { %v14804_v50 = vld [vmem:[%s21596_s21 + $0x20] sm:$0xff] }
 0x854   : > { %9089 = vmatpush.bf16.msra.mxu0 %v13588_v31  ;;  %9064 = vmatpush.bf16.msrb.mxu3 %v13576_v57  ;;  %v13627_v31 = vld [vmem:[%s21594_s19 + $0x38] sm:$0xf0]  ;;  %v8784_v57 = vperm.slane %v7507_v30, 1 }
 0x858   : > { %9065 = vmatpush.bf16.msrb.mxu3 %v13568_v3  ;;  %v13619_v3 = vld [vmem:[%s21594_s19 + $0x28] sm:$0xf0] }
 0x859   : > { %v13622_v9 = vor.u32 %v14780_v28, %v13619_v3  ;;  %v14808_v28 = vld [vmem:[%s21596_s21 + $0x40] sm:$0xff]  ;;  %v14817_v3 = vld [vmem:[%s21598_s23 + $0x28] sm:$0xff] }
 0x85c   : > { %9229 = vmatpush.bf16.msra.mxu3 %v13658_v42  ;;  %v14778_v42 = vld [vmem:[%s21594_s19 + $0x14] sm:$0xf] }
 0x868   : > { %v8506_v54 = vpop.f32.mrf.mxu0 }
 0x869   : > { %v8507_v56 = vadd.f32 %v8506_v54, %v8494_v40  ;;  %v13577_v40 = vld [vmem:[%s21592_s17 + $0x98] sm:$0xf0]  ;;  %v13524_v54 = vor.u32 %v14756_v47, %v13521_v52  ;;  %v14782_v52 = vld [vmem:[%s21594_s19 + $0x34] sm:$0xf] }
 0x86b   : > { %v8520_v7 = vadd.f32 %v8519_v34, %v8507_v56  ;;  %v13535_v34 = vld [vmem:[%s21592_s17 + $0x40] sm:$0xf]  ;;  %v13511_v56 = vld [vmem:[%s21592_s17 + $0x10] sm:$0xf] }
 0x86c   : > { %v13536_v22 = vor.u32 %v14761_v12, %v13535_v34  ;;  %v13659_v34 = vld [vmem:[%s21594_s19 + $0x78] sm:$0xf0]  ;;  %v13649_v12 = vld [vmem:[%s21594_s19 + $0x60] sm:$0xf] }
 0x86d   : > { %v8533_v59 = vadd.f32 %v8532_v61, %v8520_v7  ;;  %v14760_v61 = vld [vmem:[%s21592_s17 + $0x44] sm:$0xf]  ;;  %v14755_v7 = vld [vmem:[%s21592_s17 + $0x14] sm:$0xf0] }
 0x86e   : > { %v13540_v6 = vor.u32 %v14760_v61, %v13537_v23  ;;  %9048 = vmatpush.bf16.msra.mxu1 %v13536_v22  ;;  %v14789_v61 = vld [vmem:[%s21594_s19 + $0x64] sm:$0xf0]  ;;  %v13662_v22 = vor.u32 %v14790_v63, %v13659_v34  ;;  %v14788_v23 = vld [vmem:[%s21594_s19 + $0x64] sm:$0xf]  ;;  %v14779_v63 = vld [vmem:[%s21594_s19 + $0x14] sm:$0xf0] }
 0x86f   : > { %v8538_v16 = vmax.f32 %v8533_v59, 0.0  ;;  %v13580_v59 = vor.u32 %v14770_v39, %v13577_v40  ;;  %v13650_v29 = vor.u32 %v14789_v61, %v13649_v12  ;;  %v13630_v39 = vor.u32 %v14782_v52, %v13627_v31  ;;  %v13611_v12 = vld [vmem:[%s21594_s19 + $0x18] sm:$0xf0]  ;;  %v8889_v52 = vld [vmem:[%s21593_s18] sm:$0x3] }
 0x870   : > { %v8508_v17 = vpop.f32.mrf.mxu0  ;;  %9074 = vmatpush.bf16.msrb.mxu2 %v13540_v6  ;;  %v13654_v6 = vor.u32 %v14788_v23, %v13651_v27  ;;  %v13610_v34 = vor.u32 %v14779_v63, %v13609_v11  ;;  %v13614_v61 = vor.u32 %v14778_v42, %v13611_v12  ;;  %v13675_v23 = vld [vmem:[%s21594_s19 + $0x98] sm:$0xf0] }
 0x871   : > { %v8541_v62 = vpack.c.bf16 %v8538_v16, %v8538_v16  ;;  %v14754_v16 = vld [vmem:[%s21592_s17 + $0x14] sm:$0xf]  ;;  %v13513_v17 = vld [vmem:[%s21592_s17 + $0x18] sm:$0xf0]  ;;  %9090 = vmatpush.bf16.msra.mxu0 %v13580_v59  ;;  %9230 = vmatpush.bf16.msra.mxu3 %v13650_v29  ;;  %v13673_v29 = vld [vmem:[%s21594_s19 + $0x90] sm:$0xf] }
 0x872   : > { %9049 = vmatpush.bf16.msra.mxu1 %v13528_v32  ;;  %v13633_v32 = vld [vmem:[%s21594_s19 + $0x40] sm:$0xf]  ;;  %v14803_v31 = vld [vmem:[%s21596_s21 + $0x18] sm:$0xff] }
 0x873   : > { %8821 = vmatmul.bf16.vlgmr.msrb.gmra.mxu1 %v8541_v62  ;;  %8860 = vmatmul.bf16.vlgmr.msrb.gmra.mxu0 %v8541_v62  ;;  %v13512_v62 = vor.u32 %v14755_v7, %v13511_v56  ;;  %v13634_v20 = vor.u32 %v14785_v33, %v13633_v32  ;;  %v13665_v32 = vld [vmem:[%s21594_s19 + $0x80] sm:$0xf] }
 0x874   : > { %9075 = vmatpush.bf16.msrb.mxu2 %v13532_v45  ;;  %v13635_v45 = vld [vmem:[%s21594_s19 + $0x48] sm:$0xf0] }
 0x875   : > { %9091 = vmatpush.bf16.msra.mxu0 %v13572_v0  ;;  %9231 = vmatpush.bf16.msra.mxu3 %v13642_v18  ;;  %v13638_v47 = vor.u32 %v14784_v41, %v13635_v45  ;;  %v13606_v18 = vor.u32 %v14776_v13, %v13603_v55  ;;  %v14807_v45 = vld [vmem:[%s21596_s21 + $0x38] sm:$0xff]  ;;  %v14812_v13 = vld [vmem:[%s21598_s23] sm:$0xff] }
 0x876   : > { %9050 = vmatpush.bf16.msra.mxu1 %v13520_v51  ;;  %v8783_v51 = vperm.slane %v7507_v30, 0  ;;  %v9305_v55 = vld [vmem:[%s21597_s22] sm:$0x1] }
 0x878   : > { %9076 = vmatpush.bf16.msrb.mxu2 %v13524_v54 }
 0x879   : > { %9232 = vmatpush.bf16.msra.mxu3 %v13634_v20  ;;  %v14811_v20 = vld [vmem:[%s21596_s21 + $0x58] sm:$0xff] }
 0x87a   : > { %9051 = vmatpush.bf16.msra.mxu1 %v13512_v62 }
 0x87d   : > { %9233 = vmatpush.bf16.msra.mxu3 %v13626_v53  ;;  %v9038_v53 = vperm.slane %v8889_v52, 0 }
 0x87e   : > { %9052 = vmatpush.bf16.msra.mxu1 %v13504_v1  ;;  %v13617_v1 = vld [vmem:[%s21594_s19 + $0x20] sm:$0xf] }
 0x87f   : > { %v13618_v24 = vor.u32 %v14781_v2, %v13617_v1  ;;  %v14809_v1 = vld [vmem:[%s21596_s21 + $0x48] sm:$0xff] }
 0x880   : > { %v14801_v2 = vld [vmem:[%s21596_s21 + $0x8] sm:$0xff] }
 0x881   : > { %9234 = vmatpush.bf16.msra.mxu3 %v13618_v24  ;;  %v14800_v24 = vld [vmem:[%s21596_s21] sm:$0xff] }
 0x882   : > { %9255 = vmatpush.bf16.msrb.mxu1 %v13662_v22  ;;  %v14794_v22 = vld [vmem:[%s21594_s19 + $0x94] sm:$0xf] }
 0x883   : > { %v13678_v27 = vor.u32 %v14794_v22, %v13675_v23 }
 0x885   : > { %9235 = vmatpush.bf16.msra.mxu3 %v13610_v34 }
 0x886   : > { %9256 = vmatpush.bf16.msrb.mxu1 %v13654_v6  ;;  %v14795_v6 = vld [vmem:[%s21594_s19 + $0x94] sm:$0xf0] }
 0x887   : > { %v13674_v15 = vor.u32 %v14795_v6, %v13673_v29 }
 0x88a   : > { %9257 = vmatpush.bf16.msrb.mxu1 %v13646_v60  ;;  %v13667_v60 = vld [vmem:[%s21594_s19 + $0x88] sm:$0xf0] }
 0x88b   : > { %v13670_v33 = vor.u32 %v14792_v25, %v13667_v60 }
 0x88e   : > { %9258 = vmatpush.bf16.msrb.mxu1 %v13638_v47  ;;  %v14806_v47 = vld [vmem:[%s21596_s21 + $0x30] sm:$0xff] }
 0x892   : > { %9259 = vmatpush.bf16.msrb.mxu1 %v13630_v39 }
 0x896   : > { %v21191_v36 = vpop.f32.mrf.mxu2  ;;  %v21193_v19 = vpop.f32.mrf.mxu3  ;;  %9260 = vmatpush.bf16.msrb.mxu1 %v13622_v9 }
 0x897   : > { %v8797_v40 = vadd.f32 %v21191_v36, %v8783_v51  ;;  %v8836_v54 = vadd.f32 %v21193_v19, %v8784_v57  ;;  %v13689_v36 = vld [vmem:[%s21594_s19 + $0xb0] sm:$0xf]  ;;  %v14799_v19 = vld [vmem:[%s21594_s19 + $0xb4] sm:$0xf0]  ;;  %v9039_v51 = vperm.slane %v8889_v52, 1 }
 0x89a   : > { %9261 = vmatpush.bf16.msrb.mxu1 %v13614_v61 }
 0x89e   : > { %v8798_v26 = vpop.f32.mrf.mxu2  ;;  %v8837_v48 = vpop.f32.mrf.mxu3  ;;  %9262 = vmatpush.bf16.msrb.mxu1 %v13606_v18 }
 0x89f   : > { %v13516_v26 = vor.u32 %v14754_v16, %v13513_v17 }
 0x8a1   : > { %9077 = vmatpush.bf16.msrb.mxu2 %v13516_v26 }
 0x8a5   : > { %9078 = vmatpush.bf16.msrb.mxu2 %v13508_v5  ;;  %v14796_v5 = vld [vmem:[%s21594_s19 + $0xa4] sm:$0xf] }
 0x8a6   : > { %v13686_v0 = vor.u32 %v14796_v5, %v13683_v8  ;;  %v14816_v5 = vld [vmem:[%s21598_s23 + $0x20] sm:$0xff]  ;;  %v14815_v8 = vld [vmem:[%s21598_s23 + $0x18] sm:$0xff] }
 0x8a9   : > { %9272 = vmatpush.bf16.msra.mxu2 %v13694_v35  ;;  %v14793_v35 = vld [vmem:[%s21594_s19 + $0x84] sm:$0xf0] }
 0x8aa   : > { %v13666_v41 = vor.u32 %v14793_v35, %v13665_v32 }
 0x8ad   : > { %9273 = vmatpush.bf16.msra.mxu2 %v13686_v0  ;;  %v8914_v0 = vld [vmem:[%s21595_s20] sm:$0x3] }
 0x8b1   : > { %9274 = vmatpush.bf16.msra.mxu2 %v13678_v27 }
 0x8b5   : > { %9275 = vmatpush.bf16.msra.mxu2 %v13670_v33 }
 0x8cc   : > { %v21315_v48 = vpop.f32.mrf.mxu0 }
 0x8cd   : > { %v8810_v56 = vadd.f32 %v21315_v48, %v8797_v40  ;;  %v13690_v48 = vor.u32 %v14799_v19, %v13689_v36  ;;  %v14810_v19 = vld [vmem:[%s21596_s21 + $0x50] sm:$0xff] }
 0x8cf   : > { %9246 = vmatpush.bf16.msrb.mxu0 %v13690_v48  ;;  %v14802_v48 = vld [vmem:[%s21596_s21 + $0x10] sm:$0xff] }
 0x8d2   : > { %v8848_v44 = vpop.f32.mrf.mxu2 }
 0x8d3   : > { %v8849_v7 = vadd.f32 %v8848_v44, %v8836_v54  ;;  %v13681_v44 = vld [vmem:[%s21594_s19 + $0xa0] sm:$0xf] }
 0x8d4   : > { %v8811_v10 = vpop.f32.mrf.mxu0 }
 0x8d5   : > { %v14797_v10 = vld [vmem:[%s21594_s19 + $0xa4] sm:$0xf0] }
 0x8d6   : > { %v13682_v21 = vor.u32 %v14797_v10, %v13681_v44  ;;  %v9222_v10 = vperm.slane %v8914_v0, 0 }
 0x8d8   : > { %9247 = vmatpush.bf16.msrb.mxu0 %v13682_v21  ;;  %v9223_v21 = vperm.slane %v8914_v0, 1 }
 0x8da   : > { %v8850_v38 = vpop.f32.mrf.mxu2 }
 0x8db   : > { %v14777_v38 = vld [vmem:[%s21594_s19 + $0x4] sm:$0xf0] }
 0x8dc   : > { %v13602_v14 = vor.u32 %v14777_v38, %v13601_v37  ;;  %9248 = vmatpush.bf16.msrb.mxu0 %v13674_v15  ;;  %v14814_v37 = vld [vmem:[%s21598_s23 + $0x10] sm:$0xff]  ;;  %v14813_v38 = vld [vmem:[%s21598_s23 + $0x8] sm:$0xff] }
 0x8de   : > { %9236 = vmatpush.bf16.msra.mxu3 %v13602_v14 }
 0x8e0   : > { %9249 = vmatpush.bf16.msrb.mxu0 %v13666_v41 }
 0x8f0   : > { %v8822_v59 = vpop.f32.mrf.mxu1  ;;  %v8861_v16 = vpop.f32.mrf.mxu0 }
 0x8f1   : > { %v8823_v17 = vadd.f32 %v8822_v59, %v8810_v56  ;;  %v8862_v62 = vadd.f32 %v8861_v16, %v8849_v7 }
 0x8f3   : > { %v8915_v26 = vpack.c.bf16 %v8823_v17, %v8823_v17  ;;  %v8916_v46 = vpack.c.bf16 %v8862_v62, %v8862_v62 }
 0x8f5   : > { %9053 = vmatmul.bf16.vlgmr.msra.gmra.mxu1 %v8915_v26  ;;  %13597 = vmatmul.msk.bf16.vlgmr.msrb.gmra.mxu3 %vm7126_vm2, %v8916_v46 }
 0x8f6   : > { %9079 = vmatmul.bf16.vlgmr.msrb.gmra.mxu2 %v8915_v26  ;;  %13598 = vmatmul.msk.bf16.vlgmr.msra.gmra.mxu0 %vm7126_vm2, %v8916_v46 }
 0x8f7   : > { %9396 = vmatpush.bf16.msra.mxu0 %v14807_v45  ;;  %9413 = vmatpush.bf16.msrb.mxu3 %v14811_v20  ;;  %v14829_v45 = vld [vmem:[%s21587_s12] ss:$0 sm:$0xff] }
 0x8f8   : > { %v8824_v49 = vpop.f32.mrf.mxu1  ;;  %v8863_v43 = vpop.f32.mrf.mxu0  ;;  %9465 = vmatpush.bf16.msrb.mxu2 %v14817_v3  ;;  %v9318_v20 = vld [vmem:[%s21599_s24] sm:$0x1] }
 0x8fb   : > { %9397 = vmatpush.bf16.msra.mxu0 %v14806_v47  ;;  %9414 = vmatpush.bf16.msrb.mxu3 %v14810_v19  ;;  %v7261_v47 = vadd.f32 %v14829_v45, %v20957_v4 }
 0x8fc   : > { %9466 = vmatpush.bf16.msrb.mxu2 %v14816_v5 }
 0x8fd   : > { %v7264_v52 = vmax.f32 %v7261_v47, 0.0 }
 0x8ff   : > { %9398 = vmatpush.bf16.msra.mxu0 %v14805_v58  ;;  %9415 = vmatpush.bf16.msrb.mxu3 %v14809_v1 }
 0x900   : > { %9467 = vmatpush.bf16.msrb.mxu2 %v14815_v8 }
 0x903   : > { %9399 = vmatpush.bf16.msra.mxu0 %v14804_v50  ;;  %9416 = vmatpush.bf16.msrb.mxu3 %v14808_v28 }
 0x904   : > { %9468 = vmatpush.bf16.msrb.mxu2 %v14814_v37 }
 0x907   : > { %9400 = vmatpush.bf16.msra.mxu0 %v14803_v31 }
 0x908   : > { %9469 = vmatpush.bf16.msrb.mxu2 %v14813_v38 }
 0x90b   : > { %9401 = vmatpush.bf16.msra.mxu0 %v14802_v48 }
 0x90c   : > { %9470 = vmatpush.bf16.msrb.mxu2 %v14812_v13 }
 0x90f   : > { %9402 = vmatpush.bf16.msra.mxu0 %v14801_v2 }
 0x913   : > { %9403 = vmatpush.bf16.msra.mxu0 %v14800_v24 }
 0x972   : > { %v9054_v30 = vpop.f32.mrf.mxu1 }
 0x973   : > { %v9093_v39 = vpop.f32.mrf.mxu0  ;;  %v9055_v57 = vadd.f32 %v9054_v30, %v9038_v53 }
 0x978   : > { %v9067_v40 = vpop.f32.mrf.mxu3 }
 0x979   : > { %v9068_v54 = vadd.f32 %v9067_v40, %v9055_v57  ;;  %v9080_v56 = vpop.f32.mrf.mxu2 }
 0x97a   : > { %v9081_v7 = vadd.f32 %v9080_v56, %v9039_v51  ;;  %v9056_v59 = vpop.f32.mrf.mxu1 }
 0x97b   : > { %v9097_v16 = vmax.f32 %v9068_v54, 0.0  ;;  %v9095_v17 = vpop.f32.mrf.mxu0 }
 0x97c   : > { %v9094_v62 = vadd.f32 %v9093_v39, %v9081_v7 }
 0x97d   : > { %v9099_v26 = vpack.c.bf16 %v9097_v16, %v9097_v16 }
 0x97e   : > { %v9098_v46 = vmax.f32 %v9094_v62, 0.0 }
 0x97f   : > { %9237 = vmatmul.bf16.vlgmr.msra.gmra.mxu3 %v9099_v26  ;;  %9263 = vmatmul.bf16.vlgmr.msrb.gmra.mxu1 %v9099_v26 }
 0x980   : > { %v9100_v49 = vpack.c.bf16 %v9098_v46, %v9098_v46  ;;  %v9069_v43 = vpop.f32.mrf.mxu3 }
 0x981   : > { %v9082_v36 = vpop.f32.mrf.mxu2 }
 0x982   : > { %13695 = vmatmul.msk.bf16.vlgmr.msrb.gmra.mxu0 %vm7126_vm2, %v9100_v49  ;;  %13696 = vmatmul.msk.bf16.vlgmr.msra.gmra.mxu2 %vm7126_vm2, %v9100_v49 }
 0x9fc   : > { %v9264_v9 = vpop.f32.mrf.mxu1 }
 0x9fd   : > { %v9265_v42 = vadd.f32 %v9264_v9, %v9223_v21 }
 0x9ff   : > { %v9251_v44 = vpop.f32.mrf.mxu0 }
 0xa02   : > { %v9238_v11 = vpop.f32.mrf.mxu3 }
 0xa03   : > { %v9239_v63 = vadd.f32 %v9238_v11, %v9222_v10 }
 0xa04   : > { %v9266_v34 = vpop.f32.mrf.mxu1 }
 0xa05   : > { %v9252_v12 = vadd.f32 %v9251_v44, %v9239_v63  ;;  %v9277_v61 = vpop.f32.mrf.mxu2 }
 0xa06   : > { %v9278_v22 = vadd.f32 %v9277_v61, %v9265_v42 }
 0xa07   : > { %v9319_v23 = vpack.c.bf16 %v9252_v12, %v9252_v12  ;;  %v9253_v27 = vpop.f32.mrf.mxu0 }
 0xa08   : > { %v9320_v29 = vpack.c.bf16 %v9278_v22, %v9278_v22 }
 0xa09   : > { %9404 = vmatmul.bf16.vlgmr.msra.gmra.mxu0 %v9319_v23 }
 0xa0a   : > { %13745 = vmatmul.msk.bf16.vlgmr.msrb.gmra.mxu3 %vm7126_vm2, %v9320_v29  ;;  %v9240_v6 = vpop.f32.mrf.mxu3 }
 0xa0d   : > { %v9279_v15 = vpop.f32.mrf.mxu2 }
 0xa86   : > { %v9405_v14 = vpop.f32.mrf.mxu0 }
 0xa87   : > { %v9406_v18 = vadd.f32 %v9405_v14, %v9305_v55 }
 0xa8d   : > { %v9418_v25 = vpop.f32.mrf.mxu3 }
 0xa8e   : > { %v9419_v60 = vadd.f32 %v9418_v25, %v9406_v18  ;;  %v9407_v32 = vpop.f32.mrf.mxu0 }
 0xa90   : > { %v9422_v33 = vmax.f32 %v9419_v60, 0.0 }
 0xa92   : > { %v9423_v35 = vpack.c.bf16 %v9422_v33, %v9422_v33 }
 0xa94   : > { %13770 = vmatmul.msk.bf16.vlgmr.msrb.gmra.mxu2 %vm7227_vm3, %v9423_v35 }
 0xa95   : > { %v9420_v41 = vpop.f32.mrf.mxu3 }
 0xb17   : > { %v9472_v58 = vpop.f32.mrf.mxu2 }
 0xb18   : > { %v9473_v50 = vadd.f32 %v9472_v58, %v9318_v20 }
 0xb1a   : > { %v9476_v31 = vperm.slane %v9473_v50, 0 }
 0xb1c   : > { %v9477_v30 = vmul.f32 %v9476_v31, %v7264_v52 }
 0xb1e   : > { %v9479_v53 = vsel %vm9478_vm4, %v9477_v30, 0.0 }
 0xb1f   : > { %v9474_v39 = vpop.f32.mrf.mxu2  ;;  %9480 = vadd.xlane.f32.xlu1 %v9479_v53 }
 0xb92   : > { %v9481_v51 = vpop.xlane.xlu1 %9480 }
 0xb93   : > { %v9483_v57 = vmul.f32 1.442695, %v9481_v51  ;;  %vm9482_vm6 = vcmp.gt.f32.partialorder %v9481_v51, 0.0 }
 0xb95   : > { %14834 = vpow2.f32 %v9483_v57 }
 0xb9b   : > { %v14835_v40 = vpop.eup %14834 }
 0xb9c   : > { %v13771_v4 = vadd.f32 -1.0, %v14835_v40 }
 0xb9e   : > { %v9486_v54 = vsel %vm9482_vm6, %v9481_v51, %v13771_v4 }
 0xb9f   : > { %9488 = vst.msk [vmem:[%s796_s30] sm:$0xff] %vm9487_vm5, %v9486_v54 }
 0xba0 PF: > { %s35_s29 = sadd.s32 1, %s14843_s29  }
 0xba1   : > { %p32_p4 = scmp.ge.s32.totalorder %s35_s29, 4  }
 0xba3   :  { %34 = sbr.rel (!%p32_p4) target bundleno = 11 (0xb), region = 156 }

</bundles_post_ra>
